<compile_context>
chip_gen: v6e
topology: v6e:2x2x1
jax: 0.10.0
libtpu: 0.0.40
codegen_flags: <defaults>
</compile_context>

<pallas_src>
import functools

import jax
import jax.numpy as jnp
from jax.experimental import pallas as pl
from jax.experimental.pallas import tpu as pltpu


def _round_up(x, m):
    return ((x + m - 1) // m) * m


# ----------------------------------------------------------------------------
# Pallas kernels
# ----------------------------------------------------------------------------
def _matmul_bias_act_kernel(x_ref, w_ref, b_ref, o_ref, *, activation):
    acc = jnp.dot(x_ref[...], w_ref[...], preferred_element_type=jnp.float32)
    acc = acc + b_ref[...]
    if activation == "relu":
        acc = jnp.maximum(acc, 0.0)
    elif activation == "sigmoid":
        acc = jax.nn.sigmoid(acc)
    o_ref[...] = acc.astype(o_ref.dtype)


def pallas_linear(x, w, b, activation="none", out_dtype=jnp.bfloat16):
    """Fused (M,K)@(K,N) + bias + activation; bf16 operands, f32 accumulate.

    Rows are padded to a multiple of 16 (bf16 sublane pack).  M >= 1024 gets a
    2-wide "parallel" grid (work for v7x's second TensorCore); smaller layers
    run as a single full-extent block.
    """
    x = x.astype(jnp.bfloat16)
    w = w.astype(jnp.bfloat16)
    M, K = x.shape
    K2, N = w.shape
    assert K == K2, (K, K2)
    b2 = b.reshape(1, N).astype(jnp.float32)

    Mp = _round_up(M, 16)
    if Mp != M:
        x = jnp.pad(x, ((0, Mp - M), (0, 0)))
    tm = Mp // 2 if Mp >= 1024 else Mp      # Mp % 16 == 0 -> tm % 8 == 0
    grid = (Mp // tm,)

    kernel = functools.partial(_matmul_bias_act_kernel, activation=activation)
    out = pl.pallas_call(
        kernel,
        out_shape=jax.ShapeDtypeStruct((Mp, N), out_dtype),
        grid_spec=pltpu.PrefetchScalarGridSpec(
            num_scalar_prefetch=0,
            grid=grid,
            in_specs=[
                pl.BlockSpec((tm, K), lambda i: (i, 0)),
                pl.BlockSpec((K, N), lambda i: (0, 0)),
                pl.BlockSpec((1, N), lambda i: (0, 0)),
            ],
            out_specs=pl.BlockSpec((tm, N), lambda i: (i, 0)),
        ),
        compiler_params=pltpu.CompilerParams(
            dimension_semantics=("parallel",)),
    )(x, w, b2)
    return out[:M] if Mp != M else out


def _fc_chain_kernel(h_ref, eps_ref,
                     w1_ref, b1_ref, ws_ref, bs_ref,
                     w3_ref, b3_ref, w4_ref, b4_ref,
                     slab_ref, dec_ref, *, latent_dim):
    """e_fc1 -> e_fc2([mean|logvar], one dot) -> reparam -> d_fc1 -> d_fc2."""
    L = latent_dim
    h1 = jnp.dot(h_ref[...], w1_ref[...],
                 preferred_element_type=jnp.float32) + b1_ref[...]
    h1 = jnp.maximum(h1, 0.0).astype(jnp.bfloat16)

    # one dot for the stats layer: columns [0:L] = mean, [L:2L] = logvar
    stats = jnp.dot(h1, ws_ref[...],
                    preferred_element_type=jnp.float32) + bs_ref[...]
    mean = stats[:, :L]
    logvar = stats[:, L:2 * L]
    z = mean + jnp.exp(0.5 * logvar) * eps_ref[...]

    d1 = jnp.dot(z.astype(jnp.bfloat16), w3_ref[...],
                 preferred_element_type=jnp.float32) + b3_ref[...]
    d1 = jnp.maximum(d1, 0.0).astype(jnp.bfloat16)
    d2 = jnp.dot(d1, w4_ref[...],
                 preferred_element_type=jnp.float32) + b4_ref[...]
    d2 = jnp.maximum(d2, 0.0)

    pad = slab_ref.shape[1] - 3 * L
    slab_ref[...] = jnp.concatenate(
        [stats, z, jnp.zeros((stats.shape[0], pad), jnp.float32)], axis=-1)
    dec_ref[...] = d2.astype(dec_ref.dtype)


def fused_fc_chain(h, eps, p, latent_dim):
    """Single pallas_call for the whole FC/reparam bottleneck (weights ~1 MiB)."""
    B = h.shape[0]
    assert 3 * latent_dim <= 128
    kernel = functools.partial(_fc_chain_kernel, latent_dim=latent_dim)
    slab, dec = pl.pallas_call(
        kernel,
        out_shape=(
            jax.ShapeDtypeStruct((B, 128), jnp.float32),    # [mean|logvar|z|0]
            jax.ShapeDtypeStruct((B, 1024), jnp.bfloat16),  # decoder fc2 output
        ),
    )(h.astype(jnp.bfloat16), eps.astype(jnp.float32),
      p["e_fc1_w"], p["e_fc1_b"], p["e_fc2_w"], p["e_fc2_b"],
      p["d_fc1_w"], p["d_fc1_b"], p["d_fc2_w"], p["d_fc2_b"])
    return slab, dec


# ----------------------------------------------------------------------------
# Conv / ConvTranspose lowered to the Pallas matmul kernel (glue in plain JAX)
# ----------------------------------------------------------------------------
def _im2col(x, kh, kw, stride, pad):
    """x: (B,H,W,C) -> (B*oh*ow, kh*kw*C); column order is (ki, kj, c)."""
    if pad > 0:
        x = jnp.pad(x, ((0, 0), (pad, pad), (pad, pad), (0, 0)))
    B, H, W, C = x.shape
    oh = (H - kh) // stride + 1
    ow = (W - kw) // stride + 1
    patches = []
    for i in range(kh):
        for j in range(kw):
            patches.append(
                x[:, i:i + (oh - 1) * stride + 1:stride,
                     j:j + (ow - 1) * stride + 1:stride, :])
    cols = jnp.stack(patches, axis=3)  # (B, oh, ow, kh*kw, C)
    return cols.reshape(B * oh * ow, kh * kw * C), oh, ow


def conv2d(x_nhwc, wmat, b, kh, kw, stride, pad, activation,
           out_dtype=jnp.bfloat16):
    """wmat is pre-packed (kh*kw*C_in, C_out) bf16."""
    B = x_nhwc.shape[0]
    cols, oh, ow = _im2col(x_nhwc, kh, kw, stride, pad)
    y = pallas_linear(cols, wmat, b, activation, out_dtype)
    return y.reshape(B, oh, ow, -1)


def conv_transpose2d_4phase(x_nhwc, wmat4, b4, activation,
                            out_dtype=jnp.bfloat16):
    """ConvTranspose2d(k=4, s=2, p=1) as one 2x2-window matmul over 4 phases.

    wmat4: (4*C_in, 4*C_out) with the four output-parity phase kernels
    concatenated along N (phase order (0,0),(0,1),(1,0),(1,1));
    b4: bias tiled 4x. Output (B, 2H, 2W, C_out) NHWC.
    """
    B, H, W, _ = x_nhwc.shape
    cout = wmat4.shape[1] // 4
    cols, oh, ow = _im2col(x_nhwc, 2, 2, 1, 1)          # oh=H+1, ow=W+1
    y = pallas_linear(cols, wmat4, b4, activation, out_dtype)
    y = y.reshape(B, oh, ow, 2, 2, cout)                # (b, p, q, py, px, c)
    # out[b, 2m+py, 2n+px, c] = y[b, m+py, n+px, py, px, c]
    p00 = y[:, 0:H,     0:W,     0, 0, :]
    p01 = y[:, 0:H,     1:W + 1, 0, 1, :]
    p10 = y[:, 1:H + 1, 0:W,     1, 0, :]
    p11 = y[:, 1:H + 1, 1:W + 1, 1, 1, :]
    row0 = jnp.stack([p00, p01], axis=3)                # (B,H,W,2,C)
    row1 = jnp.stack([p10, p11], axis=3)
    out = jnp.stack([row0, row1], axis=2)               # (B,H,2,W,2,C)
    return out.reshape(B, 2 * H, 2 * W, cout)


def conv_transpose2d_final(x_nhwc, wT, bT):
    """Last ConvT layer, computed transposed for a lane-dense output store.

    wT: (4*C_out, 4*C_in) bf16 (= phase-packed weight, transposed);
    bT: (4*C_out, 1) f32.  Fuses the sigmoid in-kernel; returns NCHW f32.
    """
    B, H, W, _ = x_nhwc.shape
    cout = wT.shape[0] // 4
    cols, oh, ow = _im2col(x_nhwc, 2, 2, 1, 1)           # (M, 4*C_in)
    M = cols.shape[0]
    Mp = _round_up(M, 256)
    colsT = jnp.pad(cols, ((0, Mp - M), (0, 0))).T.astype(jnp.bfloat16)
    Kc = colsT.shape[0]
    tn = Mp // 2 if Mp >= 1024 else Mp                   # multiple of 128

    kernel = functools.partial(_matmul_bias_act_kernel, activation="sigmoid")
    yT = pl.pallas_call(
        kernel,
        out_shape=jax.ShapeDtypeStruct((4 * cout, Mp), jnp.float32),
        grid_spec=pltpu.PrefetchScalarGridSpec(
            num_scalar_prefetch=0,
            grid=(Mp // tn,),
            in_specs=[
                pl.BlockSpec((4 * cout, Kc), lambda j: (0, 0)),   # lhs = W^T
                pl.BlockSpec((Kc, tn), lambda j: (0, j)),         # rhs = cols^T
                pl.BlockSpec((4 * cout, 1), lambda j: (0, 0)),    # bias column
            ],
            out_specs=pl.BlockSpec((4 * cout, tn), lambda j: (0, j)),
        ),
        compiler_params=pltpu.CompilerParams(
            dimension_semantics=("parallel",)),
    )(wT.astype(jnp.bfloat16), colsT, bT.astype(jnp.float32))

    y = yT[:, :M].reshape(2, 2, cout, B, oh, ow)         # (py, px, c, b, p, q)
    p00 = y[0, 0, :, :, 0:H,     0:W]
    p01 = y[0, 1, :, :, 0:H,     1:W + 1]
    p10 = y[1, 0, :, :, 1:H + 1, 0:W]
    p11 = y[1, 1, :, :, 1:H + 1, 1:W + 1]
    row0 = jnp.stack([p00, p01], axis=-1)                # (C,B,H,W,2)
    row1 = jnp.stack([p10, p11], axis=-1)
    out = jnp.stack([row0, row1], axis=3)                # (C,B,H,2,W,2)
    out = out.reshape(cout, B, 2 * H, 2 * W)
    return jnp.transpose(out, (1, 0, 2, 3))              # NCHW


# ----------------------------------------------------------------------------
# Parameters (deterministic synthetic init; replaces `weights_init`)
# ----------------------------------------------------------------------------
def init_params(key, img_size=(1, 64, 64), latent_dim=10):
    n_chan = img_size[0]
    shapes = {
        # encoder (Conv2d weights are (out, in, kh, kw); Linear are (out, in))
        "e_conv1_w": (32, n_chan, 4, 4), "e_conv1_b": (32,),
        "e_conv2_w": (32, 32, 4, 4),     "e_conv2_b": (32,),
        "e_conv3_w": (64, 32, 4, 4),     "e_conv3_b": (64,),
        "e_conv4_w": (64, 64, 4, 4),     "e_conv4_b": (64,),
        "e_fc1_w": (256, 64 * 4 * 4),    "e_fc1_b": (256,),
        "e_fc2_w": (latent_dim * 2, 256), "e_fc2_b": (latent_dim * 2,),
        # decoder (ConvTranspose2d weights are (in, out, kh, kw))
        "d_fc1_w": (256, latent_dim),    "d_fc1_b": (256,),
        "d_fc2_w": (1024, 256),          "d_fc2_b": (1024,),
        "d_conv1_w": (64, 64, 4, 4),     "d_conv1_b": (64,),
        "d_conv2_w": (64, 32, 4, 4),     "d_conv2_b": (32,),
        "d_conv3_w": (32, 32, 4, 4),     "d_conv3_b": (32,),
        "d_conv4_w": (32, n_chan, 4, 4), "d_conv4_b": (n_chan,),
    }
    params = {}
    keys = jax.random.split(key, len(shapes))
    for k, (name, shp) in zip(keys, sorted(shapes.items())):
        scale = 0.05 if name.endswith("_w") else 0.01
        params[name] = scale * jax.random.normal(k, shp, dtype=jnp.float32)
    return params


def _pack_conv_weight(w_oihw):
    """(out, in, kh, kw) -> (kh*kw*in, out) matching im2col column order."""
    o, i, kh, kw = w_oihw.shape
    return jnp.transpose(w_oihw, (2, 3, 1, 0)).reshape(kh * kw * i, o)


def _pack_convT_weight(w_iohw):
    """(in, out, 4, 4) -> (4*in, 4*out): four phase kernels along columns.

    Phase (py, px) 2x2 kernel: kk[a, b] = w[:, :, 3-2a-py, 3-2b-px].
    Row order (a, b, c_in) matches the 2x2-window im2col column order.
    """
    cin, cout = int(w_iohw.shape[0]), int(w_iohw.shape[1])
    cols = []
    for py in (0, 1):
        for px in (0, 1):
            ky = jnp.array([3 - py, 1 - py])
            kx = jnp.array([3 - px, 1 - px])
            kk = w_iohw[:, :, ky, :][:, :, :, kx]        # (cin, cout, 2, 2)
            kk = jnp.transpose(kk, (2, 3, 0, 1)).reshape(4 * cin, cout)
            cols.append(kk)
    return jnp.concatenate(cols, axis=1)                 # (4*cin, 4*cout)


def pack_params(params, latent_dim):
    """One-time layout/precision packing of weights (done outside the jit)."""
    bf = jnp.bfloat16
    f32 = jnp.float32
    p = {}
    for name in ("e_conv1", "e_conv2", "e_conv3", "e_conv4"):
        p[name + "_w"] = _pack_conv_weight(params[name + "_w"]).astype(bf)
        p[name + "_b"] = params[name + "_b"].astype(f32)
    for name in ("d_conv1", "d_conv2", "d_conv3"):
        p[name + "_w"] = _pack_convT_weight(params[name + "_w"]).astype(bf)
        p[name + "_b"] = jnp.tile(params[name + "_b"], 4).astype(f32)
    # final convT: transposed phase-packed weight for a lane-dense output slab
    w4m = _pack_convT_weight(params["d_conv4_w"])
    p["d_conv4_wT"] = w4m.T.astype(bf)                       # (4*cout, 4*cin)
    p["d_conv4_bT"] = jnp.tile(params["d_conv4_b"], 4).reshape(-1, 1).astype(f32)

    # e_fc1: rows permuted (c,h,w)->(h,w,c) so the NHWC conv4 output feeds it
    # without an activation transpose.
    w1 = params["e_fc1_w"].T.reshape(64, 4, 4, 256)
    p["e_fc1_w"] = jnp.transpose(w1, (1, 2, 0, 3)).reshape(1024, 256).astype(bf)
    p["e_fc1_b"] = params["e_fc1_b"].reshape(1, -1).astype(f32)
    # e_fc2: mean (even PyTorch rows of the stats view) and logvar (odd rows)
    # concatenated along N -> one dot in the fused FC kernel.
    w2, b2 = params["e_fc2_w"], params["e_fc2_b"]
    p["e_fc2_w"] = jnp.concatenate([w2[0::2].T, w2[1::2].T], axis=1).astype(bf)
    p["e_fc2_b"] = jnp.concatenate([b2[0::2], b2[1::2]]).reshape(1, -1).astype(f32)
    p["d_fc1_w"] = params["d_fc1_w"].T.astype(bf)            # (L, 256)
    p["d_fc1_b"] = params["d_fc1_b"].reshape(1, -1).astype(f32)
    # d_fc2: columns permuted (c,h,w)->(h,w,c) so its output is NHWC-flat.
    w5 = params["d_fc2_w"].T.reshape(256, 64, 4, 4)
    p["d_fc2_w"] = jnp.transpose(w5, (0, 2, 3, 1)).reshape(256, 1024).astype(bf)
    p["d_fc2_b"] = params["d_fc2_b"].reshape(64, 4, 4).transpose(
        1, 2, 0).reshape(1, -1).astype(f32)
    return p


# ----------------------------------------------------------------------------
# Forward pass (matches Model.forward in training mode, deterministic eps)
# ----------------------------------------------------------------------------
def vae_forward(packed, x_nchw, eps):
    B = x_nchw.shape[0]
    L = eps.shape[1]
    x = jnp.transpose(x_nchw, (0, 2, 3, 1)).astype(jnp.bfloat16)  # NCHW -> NHWC

    # ---- encoder convs (im2col + fused matmul/bias/relu, bf16 slabs) ----
    h = conv2d(x, packed["e_conv1_w"], packed["e_conv1_b"], 4, 4, 2, 1, "relu")
    h = conv2d(h, packed["e_conv2_w"], packed["e_conv2_b"], 4, 4, 2, 1, "relu")
    h = conv2d(h, packed["e_conv3_w"], packed["e_conv3_b"], 4, 4, 2, 1, "relu")
    h = conv2d(h, packed["e_conv4_w"], packed["e_conv4_b"], 4, 4, 2, 1, "relu")
    h = h.reshape(B, -1)   # NHWC flatten; e_fc1_w rows are pre-permuted to match

    # ---- fused FC chain: e_fc1 + e_fc2 + reparameterize + d_fc1 + d_fc2 ----
    slab, dec = fused_fc_chain(h, eps, packed, L)
    mean = slab[:, :L]
    logvar = slab[:, L:2 * L]
    samples_qzx = slab[:, 2 * L:3 * L]
    stats_qzx = jnp.stack([mean, logvar], axis=-1)        # (B, L, 2)

    # ---- decoder conv-transposes (4-phase sub-pixel lowering) ----
    d = dec.reshape(B, 4, 4, 64)   # already NHWC-flat (d_fc2_w pre-permuted)
    d = conv_transpose2d_4phase(d, packed["d_conv1_w"], packed["d_conv1_b"], "relu")
    d = conv_transpose2d_4phase(d, packed["d_conv2_w"], packed["d_conv2_b"], "relu")
    d = conv_transpose2d_4phase(d, packed["d_conv3_w"], packed["d_conv3_b"], "relu")
    reconstructions = conv_transpose2d_final(
        d, packed["d_conv4_wT"], packed["d_conv4_bT"])    # NCHW f32, sigmoid

    return {"reconstructions": reconstructions,
            "stats_qzx": stats_qzx,
            "samples_qzx": samples_qzx}


if __name__ == "__main__":
    img_size = (1, 64, 64)   # Locatello architecture requires 64x64 spatial
    latent_dim = 10
    batch = 2

    key = jax.random.PRNGKey(0)
    pkey, xkey, ekey = jax.random.split(key, 3)
    params = init_params(pkey, img_size, latent_dim)
    packed = pack_params(params, latent_dim)              # one-time packing
    x = jax.random.normal(xkey, (batch, *img_size), dtype=jnp.float32)
    # torch.randn_like(std) replaced by a deterministic, precomputed eps
    eps = jax.random.normal(ekey, (batch, latent_dim), dtype=jnp.float32)

    fwd = jax.jit(vae_forward)
    out = fwd(packed, x, eps)
    out = jax.tree_util.tree_map(jax.block_until_ready, out)

    assert out["reconstructions"].shape == (batch, *img_size)
    assert out["stats_qzx"].shape == (batch, latent_dim, 2)
    assert out["samples_qzx"].shape == (batch, latent_dim)
    assert jnp.all(jnp.isfinite(out["reconstructions"]))
    print("KERNEL_OK")
</pallas_src>

<mosaic_0001>
module attributes {stable_mosaic.version = 11 : i64} {
  func.func @_matmul_bias_act_kernel(%arg0: i32, %arg1: memref<1024x16xbf16, #tpu.memory_space<vmem>>, %arg2: memref<16x32xbf16, #tpu.memory_space<vmem>>, %arg3: memref<1x32xf32, #tpu.memory_space<vmem>>, %arg4: memref<1024x32xbf16, #tpu.memory_space<vmem>>) attributes {dimension_semantics = [#tpu.dimension_semantics<parallel>], iteration_bounds = array<i64: 2>, scalar_prefetch = 0 : i64, scratch_operands = 0 : i64, tpu.core_type = #tpu.core_type<tc>, window_params = [{transform_indices = @transform_0, window_bounds = array<i64: 1024, 16>}, {pipeline_mode = #tpu.pipeline_mode<synchronous>, transform_indices = @transform_1, window_bounds = array<i64: 16, 32>}, {pipeline_mode = #tpu.pipeline_mode<synchronous>, transform_indices = @transform_2, window_bounds = array<i64: 1, 32>}, {transform_indices = @transform_3, window_bounds = array<i64: 1024, 32>}]} {
    %c0 = arith.constant 0 : index
    %c0_0 = arith.constant 0 : index
    %0 = vector.load %arg1[%c0, %c0_0] : memref<1024x16xbf16, #tpu.memory_space<vmem>>, vector<1024x16xbf16>
    %c0_1 = arith.constant 0 : index
    %c0_2 = arith.constant 0 : index
    %1 = vector.load %arg2[%c0_1, %c0_2] : memref<16x32xbf16, #tpu.memory_space<vmem>>, vector<16x32xbf16>
    %cst = arith.constant dense<0.000000e+00> : vector<1024x32xf32>
    %2 = tpu.matmul %0, %1, %cst {dimension_numbers = #tpu.dot_dimension_numbers<[1], [0], [0], [1], [0, 0, 1, 1], [], []>} : vector<1024x16xbf16>, vector<16x32xbf16>, vector<1024x32xf32> -> vector<1024x32xf32>
    %c0_3 = arith.constant 0 : index
    %c0_4 = arith.constant 0 : index
    %3 = vector.load %arg3[%c0_3, %c0_4] : memref<1x32xf32, #tpu.memory_space<vmem>>, vector<1x32xf32>
    %4 = vector.broadcast %3 : vector<1x32xf32> to vector<1024x32xf32>
    %5 = arith.addf %2, %4 : vector<1024x32xf32>
    %cst_5 = arith.constant 0.000000e+00 : f32
    %6 = vector.broadcast %cst_5 : f32 to vector<1024x32xf32>
    %7 = arith.maximumf %5, %6 : vector<1024x32xf32>
    %8 = arith.truncf %7 : vector<1024x32xf32> to vector<1024x32xbf16>
    %c0_6 = arith.constant 0 : index
    %c0_7 = arith.constant 0 : index
    %9 = vector.load %arg4[%c0_6, %c0_7] : memref<1024x32xbf16, #tpu.memory_space<vmem>>, vector<1024x32xbf16>
    tpu.vector_store %arg4[%c0_6, %c0_7], %8 {strides = array<i32>} : memref<1024x32xbf16, #tpu.memory_space<vmem>>, vector<1024x32xbf16>,
    return
  }
  func.func @transform_0(%arg0: i32) -> (i32, i32) {
    %c0_i32 = arith.constant 0 : i32
    %c0_i32_0 = arith.constant 0 : i32
    return %arg0, %c0_i32 : i32, i32
  }
  func.func @transform_1(%arg0: i32) -> (i32, i32) {
    %c0_i32 = arith.constant 0 : i32
    %c0_i32_0 = arith.constant 0 : i32
    %c0_i32_1 = arith.constant 0 : i32
    return %c0_i32, %c0_i32_0 : i32, i32
  }
  func.func @transform_2(%arg0: i32) -> (i32, i32) {
    %c0_i32 = arith.constant 0 : i32
    %c0_i32_0 = arith.constant 0 : i32
    %c0_i32_1 = arith.constant 0 : i32
    return %c0_i32, %c0_i32_0 : i32, i32
  }
  func.func @transform_3(%arg0: i32) -> (i32, i32) {
    %c0_i32 = arith.constant 0 : i32
    %c0_i32_0 = arith.constant 0 : i32
    return %arg0, %c0_i32 : i32, i32
  }
}

module attributes {stable_mosaic.version = 11 : i64} {
  func.func @_matmul_bias_act_kernel(%arg0: i32, %arg1: memref<512x512xbf16, #tpu.memory_space<vmem>>, %arg2: memref<512x32xbf16, #tpu.memory_space<vmem>>, %arg3: memref<1x32xf32, #tpu.memory_space<vmem>>, %arg4: memref<512x32xbf16, #tpu.memory_space<vmem>>) attributes {dimension_semantics = [#tpu.dimension_semantics<parallel>], iteration_bounds = array<i64: 1>, scalar_prefetch = 0 : i64, scratch_operands = 0 : i64, tpu.core_type = #tpu.core_type<tc>, window_params = [{transform_indices = @transform_0, window_bounds = array<i64: 512, 512>}, {pipeline_mode = #tpu.pipeline_mode<synchronous>, transform_indices = @transform_1, window_bounds = array<i64: 512, 32>}, {pipeline_mode = #tpu.pipeline_mode<synchronous>, transform_indices = @transform_2, window_bounds = array<i64: 1, 32>}, {transform_indices = @transform_3, window_bounds = array<i64: 512, 32>}]} {
    %c0 = arith.constant 0 : index
    %c0_0 = arith.constant 0 : index
    %0 = vector.load %arg1[%c0, %c0_0] : memref<512x512xbf16, #tpu.memory_space<vmem>>, vector<512x512xbf16>
    %c0_1 = arith.constant 0 : index
    %c0_2 = arith.constant 0 : index
    %1 = vector.load %arg2[%c0_1, %c0_2] : memref<512x32xbf16, #tpu.memory_space<vmem>>, vector<512x32xbf16>
    %cst = arith.constant dense<0.000000e+00> : vector<512x32xf32>
    %2 = tpu.matmul %0, %1, %cst {dimension_numbers = #tpu.dot_dimension_numbers<[1], [0], [0], [1], [0, 0, 1, 1], [], []>} : vector<512x512xbf16>, vector<512x32xbf16>, vector<512x32xf32> -> vector<512x32xf32>
    %c0_3 = arith.constant 0 : index
    %c0_4 = arith.constant 0 : index
    %3 = vector.load %arg3[%c0_3, %c0_4] : memref<1x32xf32, #tpu.memory_space<vmem>>, vector<1x32xf32>
    %4 = vector.broadcast %3 : vector<1x32xf32> to vector<512x32xf32>
    %5 = arith.addf %2, %4 : vector<512x32xf32>
    %cst_5 = arith.constant 0.000000e+00 : f32
    %6 = vector.broadcast %cst_5 : f32 to vector<512x32xf32>
    %7 = arith.maximumf %5, %6 : vector<512x32xf32>
    %8 = arith.truncf %7 : vector<512x32xf32> to vector<512x32xbf16>
    %c0_6 = arith.constant 0 : index
    %c0_7 = arith.constant 0 : index
    %9 = vector.load %arg4[%c0_6, %c0_7] : memref<512x32xbf16, #tpu.memory_space<vmem>>, vector<512x32xbf16>
    tpu.vector_store %arg4[%c0_6, %c0_7], %8 {strides = array<i32>} : memref<512x32xbf16, #tpu.memory_space<vmem>>, vector<512x32xbf16>,
    return
  }
  func.func @transform_0(%arg0: i32) -> (i32, i32) {
    %c0_i32 = arith.constant 0 : i32
    %c0_i32_0 = arith.constant 0 : i32
    return %arg0, %c0_i32 : i32, i32
  }
  func.func @transform_1(%arg0: i32) -> (i32, i32) {
    %c0_i32 = arith.constant 0 : i32
    %c0_i32_0 = arith.constant 0 : i32
    %c0_i32_1 = arith.constant 0 : i32
    return %c0_i32, %c0_i32_0 : i32, i32
  }
  func.func @transform_2(%arg0: i32) -> (i32, i32) {
    %c0_i32 = arith.constant 0 : i32
    %c0_i32_0 = arith.constant 0 : i32
    %c0_i32_1 = arith.constant 0 : i32
    return %c0_i32, %c0_i32_0 : i32, i32
  }
  func.func @transform_3(%arg0: i32) -> (i32, i32) {
    %c0_i32 = arith.constant 0 : i32
    %c0_i32_0 = arith.constant 0 : i32
    return %arg0, %c0_i32 : i32, i32
  }
}

module attributes {stable_mosaic.version = 11 : i64} {
  func.func @_matmul_bias_act_kernel(%arg0: i32, %arg1: memref<128x512xbf16, #tpu.memory_space<vmem>>, %arg2: memref<512x64xbf16, #tpu.memory_space<vmem>>, %arg3: memref<1x64xf32, #tpu.memory_space<vmem>>, %arg4: memref<128x64xbf16, #tpu.memory_space<vmem>>) attributes {dimension_semantics = [#tpu.dimension_semantics<parallel>], iteration_bounds = array<i64: 1>, scalar_prefetch = 0 : i64, scratch_operands = 0 : i64, tpu.core_type = #tpu.core_type<tc>, window_params = [{transform_indices = @transform_0, window_bounds = array<i64: 128, 512>}, {pipeline_mode = #tpu.pipeline_mode<synchronous>, transform_indices = @transform_1, window_bounds = array<i64: 512, 64>}, {pipeline_mode = #tpu.pipeline_mode<synchronous>, transform_indices = @transform_2, window_bounds = array<i64: 1, 64>}, {transform_indices = @transform_3, window_bounds = array<i64: 128, 64>}]} {
    %c0 = arith.constant 0 : index
    %c0_0 = arith.constant 0 : index
    %0 = vector.load %arg1[%c0, %c0_0] : memref<128x512xbf16, #tpu.memory_space<vmem>>, vector<128x512xbf16>
    %c0_1 = arith.constant 0 : index
    %c0_2 = arith.constant 0 : index
    %1 = vector.load %arg2[%c0_1, %c0_2] : memref<512x64xbf16, #tpu.memory_space<vmem>>, vector<512x64xbf16>
    %cst = arith.constant dense<0.000000e+00> : vector<128x64xf32>
    %2 = tpu.matmul %0, %1, %cst {dimension_numbers = #tpu.dot_dimension_numbers<[1], [0], [0], [1], [0, 0, 1, 1], [], []>} : vector<128x512xbf16>, vector<512x64xbf16>, vector<128x64xf32> -> vector<128x64xf32>
    %c0_3 = arith.constant 0 : index
    %c0_4 = arith.constant 0 : index
    %3 = vector.load %arg3[%c0_3, %c0_4] : memref<1x64xf32, #tpu.memory_space<vmem>>, vector<1x64xf32>
    %4 = vector.broadcast %3 : vector<1x64xf32> to vector<128x64xf32>
    %5 = arith.addf %2, %4 : vector<128x64xf32>
    %cst_5 = arith.constant 0.000000e+00 : f32
    %6 = vector.broadcast %cst_5 : f32 to vector<128x64xf32>
    %7 = arith.maximumf %5, %6 : vector<128x64xf32>
    %8 = arith.truncf %7 : vector<128x64xf32> to vector<128x64xbf16>
    %c0_6 = arith.constant 0 : index
    %c0_7 = arith.constant 0 : index
    %9 = vector.load %arg4[%c0_6, %c0_7] : memref<128x64xbf16, #tpu.memory_space<vmem>>, vector<128x64xbf16>
    tpu.vector_store %arg4[%c0_6, %c0_7], %8 {strides = array<i32>} : memref<128x64xbf16, #tpu.memory_space<vmem>>, vector<128x64xbf16>,
    return
  }
  func.func @transform_0(%arg0: i32) -> (i32, i32) {
    %c0_i32 = arith.constant 0 : i32
    %c0_i32_0 = arith.constant 0 : i32
    return %arg0, %c0_i32 : i32, i32
  }
  func.func @transform_1(%arg0: i32) -> (i32, i32) {
    %c0_i32 = arith.constant 0 : i32
    %c0_i32_0 = arith.constant 0 : i32
    %c0_i32_1 = arith.constant 0 : i32
    return %c0_i32, %c0_i32_0 : i32, i32
  }
  func.func @transform_2(%arg0: i32) -> (i32, i32) {
    %c0_i32 = arith.constant 0 : i32
    %c0_i32_0 = arith.constant 0 : i32
    %c0_i32_1 = arith.constant 0 : i32
    return %c0_i32, %c0_i32_0 : i32, i32
  }
  func.func @transform_3(%arg0: i32) -> (i32, i32) {
    %c0_i32 = arith.constant 0 : i32
    %c0_i32_0 = arith.constant 0 : i32
    return %arg0, %c0_i32 : i32, i32
  }
}

module attributes {stable_mosaic.version = 11 : i64} {
  func.func @_matmul_bias_act_kernel(%arg0: i32, %arg1: memref<32x1024xbf16, #tpu.memory_space<vmem>>, %arg2: memref<1024x64xbf16, #tpu.memory_space<vmem>>, %arg3: memref<1x64xf32, #tpu.memory_space<vmem>>, %arg4: memref<32x64xbf16, #tpu.memory_space<vmem>>) attributes {dimension_semantics = [#tpu.dimension_semantics<parallel>], iteration_bounds = array<i64: 1>, scalar_prefetch = 0 : i64, scratch_operands = 0 : i64, tpu.core_type = #tpu.core_type<tc>, window_params = [{transform_indices = @transform_0, window_bounds = array<i64: 32, 1024>}, {pipeline_mode = #tpu.pipeline_mode<synchronous>, transform_indices = @transform_1, window_bounds = array<i64: 1024, 64>}, {pipeline_mode = #tpu.pipeline_mode<synchronous>, transform_indices = @transform_2, window_bounds = array<i64: 1, 64>}, {transform_indices = @transform_3, window_bounds = array<i64: 32, 64>}]} {
    %c0 = arith.constant 0 : index
    %c0_0 = arith.constant 0 : index
    %0 = vector.load %arg1[%c0, %c0_0] : memref<32x1024xbf16, #tpu.memory_space<vmem>>, vector<32x1024xbf16>
    %c0_1 = arith.constant 0 : index
    %c0_2 = arith.constant 0 : index
    %1 = vector.load %arg2[%c0_1, %c0_2] : memref<1024x64xbf16, #tpu.memory_space<vmem>>, vector<1024x64xbf16>
    %cst = arith.constant dense<0.000000e+00> : vector<32x64xf32>
    %2 = tpu.matmul %0, %1, %cst {dimension_numbers = #tpu.dot_dimension_numbers<[1], [0], [0], [1], [0, 0, 1, 1], [], []>} : vector<32x1024xbf16>, vector<1024x64xbf16>, vector<32x64xf32> -> vector<32x64xf32>
    %c0_3 = arith.constant 0 : index
    %c0_4 = arith.constant 0 : index
    %3 = vector.load %arg3[%c0_3, %c0_4] : memref<1x64xf32, #tpu.memory_space<vmem>>, vector<1x64xf32>
    %4 = vector.broadcast %3 : vector<1x64xf32> to vector<32x64xf32>
    %5 = arith.addf %2, %4 : vector<32x64xf32>
    %cst_5 = arith.constant 0.000000e+00 : f32
    %6 = vector.broadcast %cst_5 : f32 to vector<32x64xf32>
    %7 = arith.maximumf %5, %6 : vector<32x64xf32>
    %8 = arith.truncf %7 : vector<32x64xf32> to vector<32x64xbf16>
    %c0_6 = arith.constant 0 : index
    %c0_7 = arith.constant 0 : index
    %9 = vector.load %arg4[%c0_6, %c0_7] : memref<32x64xbf16, #tpu.memory_space<vmem>>, vector<32x64xbf16>
    tpu.vector_store %arg4[%c0_6, %c0_7], %8 {strides = array<i32>} : memref<32x64xbf16, #tpu.memory_space<vmem>>, vector<32x64xbf16>,
    return
  }
  func.func @transform_0(%arg0: i32) -> (i32, i32) {
    %c0_i32 = arith.constant 0 : i32
    %c0_i32_0 = arith.constant 0 : i32
    return %arg0, %c0_i32 : i32, i32
  }
  func.func @transform_1(%arg0: i32) -> (i32, i32) {
    %c0_i32 = arith.constant 0 : i32
    %c0_i32_0 = arith.constant 0 : i32
    %c0_i32_1 = arith.constant 0 : i32
    return %c0_i32, %c0_i32_0 : i32, i32
  }
  func.func @transform_2(%arg0: i32) -> (i32, i32) {
    %c0_i32 = arith.constant 0 : i32
    %c0_i32_0 = arith.constant 0 : i32
    %c0_i32_1 = arith.constant 0 : i32
    return %c0_i32, %c0_i32_0 : i32, i32
  }
  func.func @transform_3(%arg0: i32) -> (i32, i32) {
    %c0_i32 = arith.constant 0 : i32
    %c0_i32_0 = arith.constant 0 : i32
    return %arg0, %c0_i32 : i32, i32
  }
}

module attributes {stable_mosaic.version = 11 : i64} {
  func.func @_fc_chain_kernel(%arg0: memref<2x1024xbf16, #tpu.memory_space<vmem>>, %arg1: memref<2x10xf32, #tpu.memory_space<vmem>>, %arg2: memref<1024x256xbf16, #tpu.memory_space<vmem>>, %arg3: memref<1x256xf32, #tpu.memory_space<vmem>>, %arg4: memref<256x20xbf16, #tpu.memory_space<vmem>>, %arg5: memref<1x20xf32, #tpu.memory_space<vmem>>, %arg6: memref<10x256xbf16, #tpu.memory_space<vmem>>, %arg7: memref<1x256xf32, #tpu.memory_space<vmem>>, %arg8: memref<256x1024xbf16, #tpu.memory_space<vmem>>, %arg9: memref<1x1024xf32, #tpu.memory_space<vmem>>, %arg10: memref<2x128xf32, #tpu.memory_space<vmem>>, %arg11: memref<2x1024xbf16, #tpu.memory_space<vmem>>) attributes {dimension_semantics = [], scalar_prefetch = 0 : i64, scratch_operands = 0 : i64, tpu.core_type = #tpu.core_type<tc>} {
    %c0 = arith.constant 0 : index
    %c0_0 = arith.constant 0 : index
    %0 = vector.load %arg0[%c0, %c0_0] : memref<2x1024xbf16, #tpu.memory_space<vmem>>, vector<2x1024xbf16>
    %c0_1 = arith.constant 0 : index
    %c0_2 = arith.constant 0 : index
    %1 = vector.load %arg2[%c0_1, %c0_2] : memref<1024x256xbf16, #tpu.memory_space<vmem>>, vector<1024x256xbf16>
    %cst = arith.constant dense<0.000000e+00> : vector<2x256xf32>
    %2 = tpu.matmul %0, %1, %cst {dimension_numbers = #tpu.dot_dimension_numbers<[1], [0], [0], [1], [0, 0, 1, 1], [], []>} : vector<2x1024xbf16>, vector<1024x256xbf16>, vector<2x256xf32> -> vector<2x256xf32>
    %c0_3 = arith.constant 0 : index
    %c0_4 = arith.constant 0 : index
    %3 = vector.load %arg3[%c0_3, %c0_4] : memref<1x256xf32, #tpu.memory_space<vmem>>, vector<1x256xf32>
    %4 = vector.broadcast %3 : vector<1x256xf32> to vector<2x256xf32>
    %5 = arith.addf %2, %4 : vector<2x256xf32>
    %cst_5 = arith.constant 0.000000e+00 : f32
    %6 = vector.broadcast %cst_5 : f32 to vector<2x256xf32>
    %7 = arith.maximumf %5, %6 : vector<2x256xf32>
    %8 = arith.truncf %7 : vector<2x256xf32> to vector<2x256xbf16>
    %c0_6 = arith.constant 0 : index
    %c0_7 = arith.constant 0 : index
    %9 = vector.load %arg4[%c0_6, %c0_7] : memref<256x20xbf16, #tpu.memory_space<vmem>>, vector<256x20xbf16>
    %cst_8 = arith.constant dense<0.000000e+00> : vector<2x20xf32>
    %10 = tpu.matmul %8, %9, %cst_8 {dimension_numbers = #tpu.dot_dimension_numbers<[1], [0], [0], [1], [0, 0, 1, 1], [], []>} : vector<2x256xbf16>, vector<256x20xbf16>, vector<2x20xf32> -> vector<2x20xf32>
    %c0_9 = arith.constant 0 : index
    %c0_10 = arith.constant 0 : index
    %11 = vector.load %arg5[%c0_9, %c0_10] : memref<1x20xf32, #tpu.memory_space<vmem>>, vector<1x20xf32>
    %12 = vector.broadcast %11 : vector<1x20xf32> to vector<2x20xf32>
    %13 = arith.addf %10, %12 : vector<2x20xf32>
    %14 = vector.extract_strided_slice %13 {offsets = [0, 0], sizes = [2, 10], strides = [1, 1]} : vector<2x20xf32> to vector<2x10xf32>
    %15 = vector.extract_strided_slice %13 {offsets = [0, 10], sizes = [2, 10], strides = [1, 1]} : vector<2x20xf32> to vector<2x10xf32>
    %cst_11 = arith.constant 5.000000e-01 : f32
    %16 = vector.broadcast %cst_11 : f32 to vector<2x10xf32>
    %17 = arith.mulf %16, %15 : vector<2x10xf32>
    %18 = math.exp %17 : vector<2x10xf32>
    %c0_12 = arith.constant 0 : index
    %c0_13 = arith.constant 0 : index
    %19 = vector.load %arg1[%c0_12, %c0_13] : memref<2x10xf32, #tpu.memory_space<vmem>>, vector<2x10xf32>
    %20 = arith.mulf %18, %19 : vector<2x10xf32>
    %21 = arith.addf %14, %20 : vector<2x10xf32>
    %22 = arith.truncf %21 : vector<2x10xf32> to vector<2x10xbf16>
    %c0_14 = arith.constant 0 : index
    %c0_15 = arith.constant 0 : index
    %23 = vector.load %arg6[%c0_14, %c0_15] : memref<10x256xbf16, #tpu.memory_space<vmem>>, vector<10x256xbf16>
    %cst_16 = arith.constant dense<0.000000e+00> : vector<2x256xf32>
    %24 = tpu.matmul %22, %23, %cst_16 {dimension_numbers = #tpu.dot_dimension_numbers<[1], [0], [0], [1], [0, 0, 1, 1], [], []>} : vector<2x10xbf16>, vector<10x256xbf16>, vector<2x256xf32> -> vector<2x256xf32>
    %c0_17 = arith.constant 0 : index
    %c0_18 = arith.constant 0 : index
    %25 = vector.load %arg7[%c0_17, %c0_18] : memref<1x256xf32, #tpu.memory_space<vmem>>, vector<1x256xf32>
    %26 = vector.broadcast %25 : vector<1x256xf32> to vector<2x256xf32>
    %27 = arith.addf %24, %26 : vector<2x256xf32>
    %cst_19 = arith.constant 0.000000e+00 : f32
    %28 = vector.broadcast %cst_19 : f32 to vector<2x256xf32>
    %29 = arith.maximumf %27, %28 : vector<2x256xf32>
    %30 = arith.truncf %29 : vector<2x256xf32> to vector<2x256xbf16>
    %c0_20 = arith.constant 0 : index
    %c0_21 = arith.constant 0 : index
    %31 = vector.load %arg8[%c0_20, %c0_21] : memref<256x1024xbf16, #tpu.memory_space<vmem>>, vector<256x1024xbf16>
    %cst_22 = arith.constant dense<0.000000e+00> : vector<2x1024xf32>
    %32 = tpu.matmul %30, %31, %cst_22 {dimension_numbers = #tpu.dot_dimension_numbers<[1], [0], [0], [1], [0, 0, 1, 1], [], []>} : vector<2x256xbf16>, vector<256x1024xbf16>, vector<2x1024xf32> -> vector<2x1024xf32>
    %c0_23 = arith.constant 0 : index
    %c0_24 = arith.constant 0 : index
    %33 = vector.load %arg9[%c0_23, %c0_24] : memref<1x1024xf32, #tpu.memory_space<vmem>>, vector<1x1024xf32>
    %34 = vector.broadcast %33 : vector<1x1024xf32> to vector<2x1024xf32>
    %35 = arith.addf %32, %34 : vector<2x1024xf32>
    %cst_25 = arith.constant 0.000000e+00 : f32
    %36 = vector.broadcast %cst_25 : f32 to vector<2x1024xf32>
    %37 = arith.maximumf %35, %36 : vector<2x1024xf32>
    %cst_26 = arith.constant 0.000000e+00 : f32
    %38 = vector.broadcast %cst_26 : f32 to vector<2x98xf32>
    %39 = tpu.concatenate %13, %21, %38 in 1 : vector<2x20xf32>, vector<2x10xf32>, vector<2x98xf32> -> vector<2x128xf32>
    %c0_27 = arith.constant 0 : index
    %c0_28 = arith.constant 0 : index
    %40 = vector.load %arg10[%c0_27, %c0_28] : memref<2x128xf32, #tpu.memory_space<vmem>>, vector<2x128xf32>
    tpu.vector_store %arg10[%c0_27, %c0_28], %39 {strides = array<i32>} : memref<2x128xf32, #tpu.memory_space<vmem>>, vector<2x128xf32>,
    %41 = arith.truncf %37 : vector<2x1024xf32> to vector<2x1024xbf16>
    %c0_29 = arith.constant 0 : index
    %c0_30 = arith.constant 0 : index
    %42 = vector.load %arg11[%c0_29, %c0_30] : memref<2x1024xbf16, #tpu.memory_space<vmem>>, vector<2x1024xbf16>
    tpu.vector_store %arg11[%c0_29, %c0_30], %41 {strides = array<i32>} : memref<2x1024xbf16, #tpu.memory_space<vmem>>, vector<2x1024xbf16>,
    return
  }
}

module attributes {stable_mosaic.version = 11 : i64} {
  func.func @_matmul_bias_act_kernel(%arg0: i32, %arg1: memref<64x256xbf16, #tpu.memory_space<vmem>>, %arg2: memref<256x256xbf16, #tpu.memory_space<vmem>>, %arg3: memref<1x256xf32, #tpu.memory_space<vmem>>, %arg4: memref<64x256xbf16, #tpu.memory_space<vmem>>) attributes {dimension_semantics = [#tpu.dimension_semantics<parallel>], iteration_bounds = array<i64: 1>, scalar_prefetch = 0 : i64, scratch_operands = 0 : i64, tpu.core_type = #tpu.core_type<tc>, window_params = [{transform_indices = @transform_0, window_bounds = array<i64: 64, 256>}, {pipeline_mode = #tpu.pipeline_mode<synchronous>, transform_indices = @transform_1, window_bounds = array<i64: 256, 256>}, {pipeline_mode = #tpu.pipeline_mode<synchronous>, transform_indices = @transform_2, window_bounds = array<i64: 1, 256>}, {transform_indices = @transform_3, window_bounds = array<i64: 64, 256>}]} {
    %c0 = arith.constant 0 : index
    %c0_0 = arith.constant 0 : index
    %0 = vector.load %arg1[%c0, %c0_0] : memref<64x256xbf16, #tpu.memory_space<vmem>>, vector<64x256xbf16>
    %c0_1 = arith.constant 0 : index
    %c0_2 = arith.constant 0 : index
    %1 = vector.load %arg2[%c0_1, %c0_2] : memref<256x256xbf16, #tpu.memory_space<vmem>>, vector<256x256xbf16>
    %cst = arith.constant dense<0.000000e+00> : vector<64x256xf32>
    %2 = tpu.matmul %0, %1, %cst {dimension_numbers = #tpu.dot_dimension_numbers<[1], [0], [0], [1], [0, 0, 1, 1], [], []>} : vector<64x256xbf16>, vector<256x256xbf16>, vector<64x256xf32> -> vector<64x256xf32>
    %c0_3 = arith.constant 0 : index
    %c0_4 = arith.constant 0 : index
    %3 = vector.load %arg3[%c0_3, %c0_4] : memref<1x256xf32, #tpu.memory_space<vmem>>, vector<1x256xf32>
    %4 = vector.broadcast %3 : vector<1x256xf32> to vector<64x256xf32>
    %5 = arith.addf %2, %4 : vector<64x256xf32>
    %cst_5 = arith.constant 0.000000e+00 : f32
    %6 = vector.broadcast %cst_5 : f32 to vector<64x256xf32>
    %7 = arith.maximumf %5, %6 : vector<64x256xf32>
    %8 = arith.truncf %7 : vector<64x256xf32> to vector<64x256xbf16>
    %c0_6 = arith.constant 0 : index
    %c0_7 = arith.constant 0 : index
    %9 = vector.load %arg4[%c0_6, %c0_7] : memref<64x256xbf16, #tpu.memory_space<vmem>>, vector<64x256xbf16>
    tpu.vector_store %arg4[%c0_6, %c0_7], %8 {strides = array<i32>} : memref<64x256xbf16, #tpu.memory_space<vmem>>, vector<64x256xbf16>,
    return
  }
  func.func @transform_0(%arg0: i32) -> (i32, i32) {
    %c0_i32 = arith.constant 0 : i32
    %c0_i32_0 = arith.constant 0 : i32
    return %arg0, %c0_i32 : i32, i32
  }
  func.func @transform_1(%arg0: i32) -> (i32, i32) {
    %c0_i32 = arith.constant 0 : i32
    %c0_i32_0 = arith.constant 0 : i32
    %c0_i32_1 = arith.constant 0 : i32
    return %c0_i32, %c0_i32_0 : i32, i32
  }
  func.func @transform_2(%arg0: i32) -> (i32, i32) {
    %c0_i32 = arith.constant 0 : i32
    %c0_i32_0 = arith.constant 0 : i32
    %c0_i32_1 = arith.constant 0 : i32
    return %c0_i32, %c0_i32_0 : i32, i32
  }
  func.func @transform_3(%arg0: i32) -> (i32, i32) {
    %c0_i32 = arith.constant 0 : i32
    %c0_i32_0 = arith.constant 0 : i32
    return %arg0, %c0_i32 : i32, i32
  }
}

module attributes {stable_mosaic.version = 11 : i64} {
  func.func @_matmul_bias_act_kernel(%arg0: i32, %arg1: memref<176x256xbf16, #tpu.memory_space<vmem>>, %arg2: memref<256x128xbf16, #tpu.memory_space<vmem>>, %arg3: memref<1x128xf32, #tpu.memory_space<vmem>>, %arg4: memref<176x128xbf16, #tpu.memory_space<vmem>>) attributes {dimension_semantics = [#tpu.dimension_semantics<parallel>], iteration_bounds = array<i64: 1>, scalar_prefetch = 0 : i64, scratch_operands = 0 : i64, tpu.core_type = #tpu.core_type<tc>, window_params = [{transform_indices = @transform_0, window_bounds = array<i64: 176, 256>}, {pipeline_mode = #tpu.pipeline_mode<synchronous>, transform_indices = @transform_1, window_bounds = array<i64: 256, 128>}, {pipeline_mode = #tpu.pipeline_mode<synchronous>, transform_indices = @transform_2, window_bounds = array<i64: 1, 128>}, {transform_indices = @transform_3, window_bounds = array<i64: 176, 128>}]} {
    %c0 = arith.constant 0 : index
    %c0_0 = arith.constant 0 : index
    %0 = vector.load %arg1[%c0, %c0_0] : memref<176x256xbf16, #tpu.memory_space<vmem>>, vector<176x256xbf16>
    %c0_1 = arith.constant 0 : index
    %c0_2 = arith.constant 0 : index
    %1 = vector.load %arg2[%c0_1, %c0_2] : memref<256x128xbf16, #tpu.memory_space<vmem>>, vector<256x128xbf16>
    %cst = arith.constant dense<0.000000e+00> : vector<176x128xf32>
    %2 = tpu.matmul %0, %1, %cst {dimension_numbers = #tpu.dot_dimension_numbers<[1], [0], [0], [1], [0, 0, 1, 1], [], []>} : vector<176x256xbf16>, vector<256x128xbf16>, vector<176x128xf32> -> vector<176x128xf32>
    %c0_3 = arith.constant 0 : index
    %c0_4 = arith.constant 0 : index
    %3 = vector.load %arg3[%c0_3, %c0_4] : memref<1x128xf32, #tpu.memory_space<vmem>>, vector<1x128xf32>
    %4 = vector.broadcast %3 : vector<1x128xf32> to vector<176x128xf32>
    %5 = arith.addf %2, %4 : vector<176x128xf32>
    %cst_5 = arith.constant 0.000000e+00 : f32
    %6 = vector.broadcast %cst_5 : f32 to vector<176x128xf32>
    %7 = arith.maximumf %5, %6 : vector<176x128xf32>
    %8 = arith.truncf %7 : vector<176x128xf32> to vector<176x128xbf16>
    %c0_6 = arith.constant 0 : index
    %c0_7 = arith.constant 0 : index
    %9 = vector.load %arg4[%c0_6, %c0_7] : memref<176x128xbf16, #tpu.memory_space<vmem>>, vector<176x128xbf16>
    tpu.vector_store %arg4[%c0_6, %c0_7], %8 {strides = array<i32>} : memref<176x128xbf16, #tpu.memory_space<vmem>>, vector<176x128xbf16>,
    return
  }
  func.func @transform_0(%arg0: i32) -> (i32, i32) {
    %c0_i32 = arith.constant 0 : i32
    %c0_i32_0 = arith.constant 0 : i32
    return %arg0, %c0_i32 : i32, i32
  }
  func.func @transform_1(%arg0: i32) -> (i32, i32) {
    %c0_i32 = arith.constant 0 : i32
    %c0_i32_0 = arith.constant 0 : i32
    %c0_i32_1 = arith.constant 0 : i32
    return %c0_i32, %c0_i32_0 : i32, i32
  }
  func.func @transform_2(%arg0: i32) -> (i32, i32) {
    %c0_i32 = arith.constant 0 : i32
    %c0_i32_0 = arith.constant 0 : i32
    %c0_i32_1 = arith.constant 0 : i32
    return %c0_i32, %c0_i32_0 : i32, i32
  }
  func.func @transform_3(%arg0: i32) -> (i32, i32) {
    %c0_i32 = arith.constant 0 : i32
    %c0_i32_0 = arith.constant 0 : i32
    return %arg0, %c0_i32 : i32, i32
  }
}

module attributes {stable_mosaic.version = 11 : i64} {
  func.func @_matmul_bias_act_kernel(%arg0: i32, %arg1: memref<592x128xbf16, #tpu.memory_space<vmem>>, %arg2: memref<128x128xbf16, #tpu.memory_space<vmem>>, %arg3: memref<1x128xf32, #tpu.memory_space<vmem>>, %arg4: memref<592x128xbf16, #tpu.memory_space<vmem>>) attributes {dimension_semantics = [#tpu.dimension_semantics<parallel>], iteration_bounds = array<i64: 1>, scalar_prefetch = 0 : i64, scratch_operands = 0 : i64, tpu.core_type = #tpu.core_type<tc>, window_params = [{transform_indices = @transform_0, window_bounds = array<i64: 592, 128>}, {pipeline_mode = #tpu.pipeline_mode<synchronous>, transform_indices = @transform_1, window_bounds = array<i64: 128, 128>}, {pipeline_mode = #tpu.pipeline_mode<synchronous>, transform_indices = @transform_2, window_bounds = array<i64: 1, 128>}, {transform_indices = @transform_3, window_bounds = array<i64: 592, 128>}]} {
    %c0 = arith.constant 0 : index
    %c0_0 = arith.constant 0 : index
    %0 = vector.load %arg1[%c0, %c0_0] : memref<592x128xbf16, #tpu.memory_space<vmem>>, vector<592x128xbf16>
    %c0_1 = arith.constant 0 : index
    %c0_2 = arith.constant 0 : index
    %1 = vector.load %arg2[%c0_1, %c0_2] : memref<128x128xbf16, #tpu.memory_space<vmem>>, vector<128x128xbf16>
    %cst = arith.constant dense<0.000000e+00> : vector<592x128xf32>
    %2 = tpu.matmul %0, %1, %cst {dimension_numbers = #tpu.dot_dimension_numbers<[1], [0], [0], [1], [0, 0, 1, 1], [], []>} : vector<592x128xbf16>, vector<128x128xbf16>, vector<592x128xf32> -> vector<592x128xf32>
    %c0_3 = arith.constant 0 : index
    %c0_4 = arith.constant 0 : index
    %3 = vector.load %arg3[%c0_3, %c0_4] : memref<1x128xf32, #tpu.memory_space<vmem>>, vector<1x128xf32>
    %4 = vector.broadcast %3 : vector<1x128xf32> to vector<592x128xf32>
    %5 = arith.addf %2, %4 : vector<592x128xf32>
    %cst_5 = arith.constant 0.000000e+00 : f32
    %6 = vector.broadcast %cst_5 : f32 to vector<592x128xf32>
    %7 = arith.maximumf %5, %6 : vector<592x128xf32>
    %8 = arith.truncf %7 : vector<592x128xf32> to vector<592x128xbf16>
    %c0_6 = arith.constant 0 : index
    %c0_7 = arith.constant 0 : index
    %9 = vector.load %arg4[%c0_6, %c0_7] : memref<592x128xbf16, #tpu.memory_space<vmem>>, vector<592x128xbf16>
    tpu.vector_store %arg4[%c0_6, %c0_7], %8 {strides = array<i32>} : memref<592x128xbf16, #tpu.memory_space<vmem>>, vector<592x128xbf16>,
    return
  }
  func.func @transform_0(%arg0: i32) -> (i32, i32) {
    %c0_i32 = arith.constant 0 : i32
    %c0_i32_0 = arith.constant 0 : i32
    return %arg0, %c0_i32 : i32, i32
  }
  func.func @transform_1(%arg0: i32) -> (i32, i32) {
    %c0_i32 = arith.constant 0 : i32
    %c0_i32_0 = arith.constant 0 : i32
    %c0_i32_1 = arith.constant 0 : i32
    return %c0_i32, %c0_i32_0 : i32, i32
  }
  func.func @transform_2(%arg0: i32) -> (i32, i32) {
    %c0_i32 = arith.constant 0 : i32
    %c0_i32_0 = arith.constant 0 : i32
    %c0_i32_1 = arith.constant 0 : i32
    return %c0_i32, %c0_i32_0 : i32, i32
  }
  func.func @transform_3(%arg0: i32) -> (i32, i32) {
    %c0_i32 = arith.constant 0 : i32
    %c0_i32_0 = arith.constant 0 : i32
    return %arg0, %c0_i32 : i32, i32
  }
}

module attributes {stable_mosaic.version = 11 : i64} {
  func.func @_matmul_bias_act_kernel(%arg0: i32, %arg1: memref<4x128xbf16, #tpu.memory_space<vmem>>, %arg2: memref<128x1152xbf16, #tpu.memory_space<vmem>>, %arg3: memref<4x1xf32, #tpu.memory_space<vmem>>, %arg4: memref<4x1152xf32, #tpu.memory_space<vmem>>) attributes {dimension_semantics = [#tpu.dimension_semantics<parallel>], iteration_bounds = array<i64: 2>, scalar_prefetch = 0 : i64, scratch_operands = 0 : i64, tpu.core_type = #tpu.core_type<tc>, window_params = [{pipeline_mode = #tpu.pipeline_mode<synchronous>, transform_indices = @transform_0, window_bounds = array<i64: 4, 128>}, {transform_indices = @transform_1, window_bounds = array<i64: 128, 1152>}, {pipeline_mode = #tpu.pipeline_mode<synchronous>, transform_indices = @transform_2, window_bounds = array<i64: 4, 1>}, {transform_indices = @transform_3, window_bounds = array<i64: 4, 1152>}]} {
    %c0 = arith.constant 0 : index
    %c0_0 = arith.constant 0 : index
    %0 = vector.load %arg1[%c0, %c0_0] : memref<4x128xbf16, #tpu.memory_space<vmem>>, vector<4x128xbf16>
    %c0_1 = arith.constant 0 : index
    %c0_2 = arith.constant 0 : index
    %1 = vector.load %arg2[%c0_1, %c0_2] : memref<128x1152xbf16, #tpu.memory_space<vmem>>, vector<128x1152xbf16>
    %cst = arith.constant dense<0.000000e+00> : vector<4x1152xf32>
    %2 = tpu.matmul %0, %1, %cst {dimension_numbers = #tpu.dot_dimension_numbers<[1], [0], [0], [1], [0, 0, 1, 1], [], []>} : vector<4x128xbf16>, vector<128x1152xbf16>, vector<4x1152xf32> -> vector<4x1152xf32>
    %c0_3 = arith.constant 0 : index
    %c0_4 = arith.constant 0 : index
    %3 = vector.load %arg3[%c0_3, %c0_4] : memref<4x1xf32, #tpu.memory_space<vmem>>, vector<4x1xf32>
    %4 = vector.broadcast %3 : vector<4x1xf32> to vector<4x1152xf32>
    %5 = arith.addf %2, %4 : vector<4x1152xf32>
    %6 = arith.negf %5 : vector<4x1152xf32>
    %7 = math.exp %6 : vector<4x1152xf32>
    %cst_5 = arith.constant 1.000000e+00 : f32
    %8 = vector.broadcast %cst_5 : f32 to vector<4x1152xf32>
    %9 = arith.addf %8, %7 : vector<4x1152xf32>
    %10 = arith.divf %8, %9 : vector<4x1152xf32>
    %c0_6 = arith.constant 0 : index
    %c0_7 = arith.constant 0 : index
    %11 = vector.load %arg4[%c0_6, %c0_7] : memref<4x1152xf32, #tpu.memory_space<vmem>>, vector<4x1152xf32>
    tpu.vector_store %arg4[%c0_6, %c0_7], %10 {strides = array<i32>} : memref<4x1152xf32, #tpu.memory_space<vmem>>, vector<4x1152xf32>,
    return
  }
  func.func @transform_0(%arg0: i32) -> (i32, i32) {
    %c0_i32 = arith.constant 0 : i32
    %c0_i32_0 = arith.constant 0 : i32
    %c0_i32_1 = arith.constant 0 : i32
    return %c0_i32, %c0_i32_0 : i32, i32
  }
  func.func @transform_1(%arg0: i32) -> (i32, i32) {
    %c0_i32 = arith.constant 0 : i32
    %c0_i32_0 = arith.constant 0 : i32
    return %c0_i32, %arg0 : i32, i32
  }
  func.func @transform_2(%arg0: i32) -> (i32, i32) {
    %c0_i32 = arith.constant 0 : i32
    %c0_i32_0 = arith.constant 0 : i32
    %c0_i32_1 = arith.constant 0 : i32
    return %c0_i32, %c0_i32_0 : i32, i32
  }
  func.func @transform_3(%arg0: i32) -> (i32, i32) {
    %c0_i32 = arith.constant 0 : i32
    %c0_i32_0 = arith.constant 0 : i32
    return %c0_i32, %arg0 : i32, i32
  }
}

</mosaic_0001>

<bundles_post_ra>
// kernel: vae_forward.9
= control target key start
LH: loop header
LB: loop body
LE: loop exit
PB: predicated region body
PF: predicated region fallthrough
CT: control target
= control target key end

     0   :  { %8 = vsyncpa [#allocation3], 0  ;;  %s3630_s0 = inlined_call_operand.vmem [shape: bf16[2048,16], index: 0, kind: input, shape index: {}]   ;;  %s3631_s1 = inlined_call_operand.hbm [shape: bf16[16,32], index: 1, kind: input, shape index: {}]   ;;  %s3632_s2 = inlined_call_operand.hbm [shape: f32[1,32], index: 2, kind: input, shape index: {}]   ;;  %s3633_s3 = inlined_call_operand.vmem [shape: bf16[2048,32], index: 3, kind: output, shape index: {}]  }
   0x1   :  { %9 = vsyncpa [#allocation5], 0  ;;  %s3038_s12 = smov 0  }
   0x2 LB: > { %s2251_s13 = sadd.s32 4294967295, %s3012_s12   ;;  %p2253_p0 = scmp.ge.s32.totalorder %s3012_s12, 1  ;;  %s3012_s12 = sphi %s3038_s12, %s15_s12  }
   0x3   : > { %p114_p1 = scmp.lt.s32.totalorder %s3012_s12, 3  ;;  %s3014_s14 = smov [#allocation2]  }
   0x4   : > { %s126_s15 = sshll.u32 %s3014_s14, 4  ;;  %p3052_p3 = scmp.eq.s32.totalorder %s2251_s13, 0  ;;  %s127_s15 = int_to_ptr.vmem [resolvable:$true] %s126_s15 }
   0x5   : > { %p3046_p2 = pnand %p2253_p0, %p114_p1  ;;  %s3015_s18 = smov [#allocation4]  }
   0x6   : > { %s140_s19 = sshll.u32 %s3015_s18, 4  ;;  %s2957_s21 = scalar_lea.vmem %s127_s15, 128  ;;  %s141_s19 = int_to_ptr.vmem [resolvable:$true] %s140_s19 }
   0x7   : > { %p2857_p4 = pneg %p3046_p2  ;;  %p2958_p7 = scmp.ne.s32.totalorder %s127_s15, %s2957_s21 }
   0x8   : > { %p2965_p10 = scmp.lt.s32.totalorder %s127_s15, %s127_s15  ;;  %p2966_p11 = scmp.lt.s32.totalorder %s2957_s21, %s2957_s21 }
   0x9   : > { %p3060_p5 = pnand %p3052_p3, %p2857_p4 }
   0xa   : > { %p2967_p12 = por %p2966_p11, %p2965_p10 }
   0xb   : > { %p2948_p6 = pneg %p3060_p5 }
   0xd   : > { %p2960_p8 = pnand %p2958_p7, %p2948_p6 }
   0xf   : > { %p2961_p9 = pneg %p2960_p8 }
  0x11   : > { %p2968_p13 = pnand %p2967_p12, %p2961_p9 }
  0x13   : > { %2971 = shalt.err (!%p2968_p13)
}
  0x14   : > { %s3016_s22 = smov 64   ;;  %s3017_s23 = smov 4  }
  0x15   : > { %2860 = dma.hbm_to_vmem [thread:$0]  (!%p3060_p5), %s3631_s1, 128, %s127_s15, [#allocation3], %s3016_s22, %s3016_s22, %s3017_s23  }
  0x16   : > { %s2983_s26 = scalar_lea.vmem %s141_s19, 16  ;;  %s2990_s27 = scalar_lea.vmem %s141_s19, 32 }
  0x17   : > { %p2984_p0 = scmp.ne.s32.totalorder %s141_s19, %s2983_s26  ;;  %p2991_p7 = scmp.lt.s32.totalorder %s141_s19, %s141_s19 }
  0x18   : > { %p2992_p8 = scmp.lt.s32.totalorder %s2990_s27, %s2983_s26 }
  0x19   : > { %p2986_p1 = pnand %p2984_p0, %p2948_p6 }
  0x1a   : > { %p2993_p9 = por %p2992_p8, %p2991_p7 }
  0x1b   : > { %p2987_p4 = pneg %p2986_p1 }
  0x1d   : > { %p2994_p10 = pnand %p2993_p9, %p2987_p4 }
  0x1f   : > { %2997 = shalt.err (!%p2994_p10)
}
  0x20   : > { %2863 = dma.hbm_to_vmem [thread:$0]  (!%p3060_p5), %s3632_s2, 16, %s141_s19, [#allocation5]  }
  0x21   : > { %162 = sbr.rel (%p3046_p2) target bundleno = 376 (0x178), region = 32 }
  0x26   : > { %3003 = dma.done.wait (%p3052_p3), [#allocation3], 128  }
  0x27   : > { %3005 = vsyncadd (%p3052_p3), [#allocation3], 4294967168 }
  0x28   : > { %3007 = dma.done.wait (%p3052_p3), [#allocation5], 16  }
  0x29   : > { %3009 = vsyncadd (%p3052_p3), [#allocation5], 4294967280  ;;  %s2260_s30 = sshll.u32 %s2251_s13, 7  ;;  %v2880_v0 = vld [vmem:[#allocation2] sm:$0xff]   ;;  %vm666_vm0 = vcmask 130048   ;;  %vm2044_vm1 = vcmask 257024  }
  0x2a   : > { %p191_p6 = scmp.lt.s32.totalorder %s2260_s30, 255  ;;  %2717 = vmatprep.subr.bf16.mxu0 %v2880_v0  ;;  %2847 = vmatprep.subr.bf16.mxu1 %v2880_v0 }
  0x2b   : > { %2718 = vmatpush3.bf16.msra.mxu0 %v2880_v0  ;;  %2848 = vmatpush3.bf16.msra.mxu1 %v2880_v0 }
  0x2c   : > { %s3638_s30 = smov (!%p191_p6, %s2260_s30), 255 }
  0x2d   : > { %s2261_s4 = sshll.u32 %s3638_s30, 2 }
  0x2e   : > { %s3102_s7 = scalar_lea.vmem %s3630_s0, %s2261_s4  ;;  %s3243_s10 = scalar_lea.vmem %s3633_s3, %s2261_s4 }
  0x2f   : > { %v2881_v1 = vld [vmem:[%s3102_s7] sm:$0xff]   ;;  %v2883_v3 = vld [vmem:[%s3102_s7 + $0x8] sm:$0xff]   ;;  %v2885_v5 = vld [vmem:[%s3102_s7 + $0x10] sm:$0xff]  }
  0x30   : > { %v2882_v2 = vld [vmem:[%s3102_s7 + $0x100] sm:$0xff]   ;;  %2719 = vmatprep.mubr.msk.bf16.mxu0 %vm666_vm0, %v2881_v1  ;;  %v2884_v4 = vld [vmem:[%s3102_s7 + $0x108] sm:$0xff]   ;;  %v2886_v6 = vld [vmem:[%s3102_s7 + $0x110] sm:$0xff]  }
  0x31   : > { %2783 = vmatprep.mubr.msk.bf16.mxu1 %vm666_vm0, %v2882_v2  ;;  %2720 = vmatmul.mubr.msk.bf16.vlgmr.msra.gmra.mxu0 %vm666_vm0, %v2883_v3  ;;  %v2887_v7 = vld [vmem:[%s3102_s7 + $0x18] sm:$0xff]   ;;  %v2889_v9 = vld [vmem:[%s3102_s7 + $0x20] sm:$0xff]   ;;  %v2891_v11 = vld [vmem:[%s3102_s7 + $0x28] sm:$0xff]  }
  0x32   : > { %2784 = vmatmul.mubr.msk.bf16.vlgmr.msra.gmra.mxu1 %vm666_vm0, %v2884_v4  ;;  %2723 = vmatprep.mubr.msk.bf16.mxu0 %vm666_vm0, %v2885_v5  ;;  %v2888_v8 = vld [vmem:[%s3102_s7 + $0x118] sm:$0xff]   ;;  %v2890_v10 = vld [vmem:[%s3102_s7 + $0x120] sm:$0xff]   ;;  %v2892_v12 = vld [vmem:[%s3102_s7 + $0x128] sm:$0xff]  }
  0x33   : > { %2787 = vmatprep.mubr.msk.bf16.mxu1 %vm666_vm0, %v2886_v6  ;;  %v2893_v13 = vld [vmem:[%s3102_s7 + $0x30] sm:$0xff]   ;;  %v2895_v15 = vld [vmem:[%s3102_s7 + $0x38] sm:$0xff]   ;;  %v2897_v17 = vld [vmem:[%s3102_s7 + $0x40] sm:$0xff]  }
  0x34   : > { %v2894_v14 = vld [vmem:[%s3102_s7 + $0x130] sm:$0xff]   ;;  %v2896_v16 = vld [vmem:[%s3102_s7 + $0x138] sm:$0xff]   ;;  %v2898_v18 = vld [vmem:[%s3102_s7 + $0x140] sm:$0xff]  }
  0x35   : > { %v2899_v19 = vld [vmem:[%s3102_s7 + $0x48] sm:$0xff]   ;;  %v2901_v21 = vld [vmem:[%s3102_s7 + $0x50] sm:$0xff]   ;;  %v2903_v23 = vld [vmem:[%s3102_s7 + $0x58] sm:$0xff]  }
  0x36   : > { %v2900_v20 = vld [vmem:[%s3102_s7 + $0x148] sm:$0xff]   ;;  %v2902_v22 = vld [vmem:[%s3102_s7 + $0x150] sm:$0xff]   ;;  %v2904_v24 = vld [vmem:[%s3102_s7 + $0x158] sm:$0xff]  }
  0x37   : > { %v2905_v25 = vld [vmem:[%s3102_s7 + $0x60] sm:$0xff]   ;;  %v2907_v27 = vld [vmem:[%s3102_s7 + $0x68] sm:$0xff]   ;;  %v2909_v29 = vld [vmem:[%s3102_s7 + $0x70] sm:$0xff]  }
  0x38   : > { %v2906_v26 = vld [vmem:[%s3102_s7 + $0x160] sm:$0xff]   ;;  %v2908_v28 = vld [vmem:[%s3102_s7 + $0x168] sm:$0xff]   ;;  %v2910_v30 = vld [vmem:[%s3102_s7 + $0x170] sm:$0xff]  }
  0x39   : > { %2724 = vmatmul.mubr.msk.bf16.gmra.mxu0 %vm666_vm0, %v2887_v7  ;;  %v2911_v31 = vld [vmem:[%s3102_s7 + $0x78] sm:$0xff]   ;;  %v2913_v33 = vld [vmem:[%s3102_s7 + $0x80] sm:$0xff]   ;;  %v2915_v35 = vld [vmem:[%s3102_s7 + $0x88] sm:$0xff]  }
  0x3a   : > { %2788 = vmatmul.mubr.msk.bf16.gmra.mxu1 %vm666_vm0, %v2888_v8  ;;  %2727 = vmatprep.mubr.msk.bf16.mxu0 %vm666_vm0, %v2889_v9  ;;  %v2912_v32 = vld [vmem:[%s3102_s7 + $0x178] sm:$0xff]   ;;  %v2914_v34 = vld [vmem:[%s3102_s7 + $0x180] sm:$0xff]   ;;  %v2916_v36 = vld [vmem:[%s3102_s7 + $0x188] sm:$0xff]  }
  0x3b   : > { %2791 = vmatprep.mubr.msk.bf16.mxu1 %vm666_vm0, %v2890_v10  ;;  %v2917_v37 = vld [vmem:[%s3102_s7 + $0x90] sm:$0xff]   ;;  %v2919_v39 = vld [vmem:[%s3102_s7 + $0x98] sm:$0xff]   ;;  %v2921_v41 = vld [vmem:[%s3102_s7 + $0xa0] sm:$0xff]  }
  0x3c   : > { %v2918_v38 = vld [vmem:[%s3102_s7 + $0x190] sm:$0xff]   ;;  %v2920_v40 = vld [vmem:[%s3102_s7 + $0x198] sm:$0xff]   ;;  %v2922_v42 = vld [vmem:[%s3102_s7 + $0x1a0] sm:$0xff]  }
  0x3d   : > { %v2923_v43 = vld [vmem:[%s3102_s7 + $0xa8] sm:$0xff]   ;;  %v2925_v45 = vld [vmem:[%s3102_s7 + $0xb0] sm:$0xff]   ;;  %v2927_v47 = vld [vmem:[%s3102_s7 + $0xb8] sm:$0xff]  }
  0x3e   : > { %v2924_v44 = vld [vmem:[%s3102_s7 + $0x1a8] sm:$0xff]   ;;  %v2926_v46 = vld [vmem:[%s3102_s7 + $0x1b0] sm:$0xff]   ;;  %v2928_v48 = vld [vmem:[%s3102_s7 + $0x1b8] sm:$0xff]  }
  0x3f   : > { %v2929_v49 = vld [vmem:[%s3102_s7 + $0xc0] sm:$0xff]   ;;  %v2931_v51 = vld [vmem:[%s3102_s7 + $0xc8] sm:$0xff]   ;;  %v2933_v53 = vld [vmem:[%s3102_s7 + $0xd0] sm:$0xff]  }
  0x40   : > { %v2930_v50 = vld [vmem:[%s3102_s7 + $0x1c0] sm:$0xff]   ;;  %v2932_v52 = vld [vmem:[%s3102_s7 + $0x1c8] sm:$0xff]   ;;  %v2934_v54 = vld [vmem:[%s3102_s7 + $0x1d0] sm:$0xff]  }
  0x41   : > { %2728 = vmatmul.mubr.msk.bf16.gmra.mxu0 %vm666_vm0, %v2891_v11  ;;  %v2935_v55 = vld [vmem:[%s3102_s7 + $0xd8] sm:$0xff]   ;;  %v2937_v57 = vld [vmem:[%s3102_s7 + $0xe0] sm:$0xff]   ;;  %v2939_v59 = vld [vmem:[%s3102_s7 + $0xe8] sm:$0xff]  }
  0x42   : > { %2792 = vmatmul.mubr.msk.bf16.gmra.mxu1 %vm666_vm0, %v2892_v12  ;;  %2731 = vmatprep.mubr.msk.bf16.mxu0 %vm666_vm0, %v2893_v13  ;;  %v2936_v56 = vld [vmem:[%s3102_s7 + $0x1d8] sm:$0xff]   ;;  %v2938_v58 = vld [vmem:[%s3102_s7 + $0x1e0] sm:$0xff]   ;;  %v2940_v60 = vld [vmem:[%s3102_s7 + $0x1e8] sm:$0xff]  }
  0x43   : > { %2795 = vmatprep.mubr.msk.bf16.mxu1 %vm666_vm0, %v2894_v14  ;;  %v2941_v61 = vld [vmem:[%s3102_s7 + $0xf0] sm:$0xff]   ;;  %v2943_v63 = vld [vmem:[%s3102_s7 + $0xf8] sm:$0xff]   ;;  %v3232_v1 = vld [vmem:[#allocation4] ss:$0 sm:$0xff] }
  0x44   : > { %v2942_v62 = vld [vmem:[%s3102_s7 + $0x1f0] sm:$0xff]   ;;  %v2944_v0 = vld [vmem:[%s3102_s7 + $0x1f8] sm:$0xff]  }
  0x49   : > { %2732 = vmatmul.mubr.msk.bf16.gmra.mxu0 %vm666_vm0, %v2895_v15 }
  0x4a   : > { %2796 = vmatmul.mubr.msk.bf16.gmra.mxu1 %vm666_vm0, %v2896_v16  ;;  %2735 = vmatprep.mubr.msk.bf16.mxu0 %vm666_vm0, %v2897_v17 }
  0x4b   : > { %2799 = vmatprep.mubr.msk.bf16.mxu1 %vm666_vm0, %v2898_v18 }
  0x51   : > { %2736 = vmatmul.mubr.msk.bf16.gmra.mxu0 %vm666_vm0, %v2899_v19 }
  0x52   : > { %2800 = vmatmul.mubr.msk.bf16.gmra.mxu1 %vm666_vm0, %v2900_v20  ;;  %2739 = vmatprep.mubr.msk.bf16.mxu0 %vm666_vm0, %v2901_v21 }
  0x53   : > { %2803 = vmatprep.mubr.msk.bf16.mxu1 %vm666_vm0, %v2902_v22 }
  0x59   : > { %2740 = vmatmul.mubr.msk.bf16.gmra.mxu0 %vm666_vm0, %v2903_v23 }
  0x5a   : > { %2804 = vmatmul.mubr.msk.bf16.gmra.mxu1 %vm666_vm0, %v2904_v24  ;;  %2743 = vmatprep.mubr.msk.bf16.mxu0 %vm666_vm0, %v2905_v25 }
  0x5b   : > { %2807 = vmatprep.mubr.msk.bf16.mxu1 %vm666_vm0, %v2906_v26 }
  0x61   : > { %2744 = vmatmul.mubr.msk.bf16.gmra.mxu0 %vm666_vm0, %v2907_v27 }
  0x62   : > { %2808 = vmatmul.mubr.msk.bf16.gmra.mxu1 %vm666_vm0, %v2908_v28  ;;  %2747 = vmatprep.mubr.msk.bf16.mxu0 %vm666_vm0, %v2909_v29 }
  0x63   : > { %2811 = vmatprep.mubr.msk.bf16.mxu1 %vm666_vm0, %v2910_v30 }
  0x69   : > { %2748 = vmatmul.mubr.msk.bf16.gmra.mxu0 %vm666_vm0, %v2911_v31 }
  0x6a   : > { %2812 = vmatmul.mubr.msk.bf16.gmra.mxu1 %vm666_vm0, %v2912_v32  ;;  %2751 = vmatprep.mubr.msk.bf16.mxu0 %vm666_vm0, %v2913_v33 }
  0x6b   : > { %2815 = vmatprep.mubr.msk.bf16.mxu1 %vm666_vm0, %v2914_v34 }
  0x71   : > { %2752 = vmatmul.mubr.msk.bf16.gmra.mxu0 %vm666_vm0, %v2915_v35 }
  0x72   : > { %2816 = vmatmul.mubr.msk.bf16.gmra.mxu1 %vm666_vm0, %v2916_v36  ;;  %2755 = vmatprep.mubr.msk.bf16.mxu0 %vm666_vm0, %v2917_v37 }
  0x73   : > { %2819 = vmatprep.mubr.msk.bf16.mxu1 %vm666_vm0, %v2918_v38 }
  0x79   : > { %2756 = vmatmul.mubr.msk.bf16.gmra.mxu0 %vm666_vm0, %v2919_v39 }
  0x7a   : > { %2820 = vmatmul.mubr.msk.bf16.gmra.mxu1 %vm666_vm0, %v2920_v40  ;;  %2759 = vmatprep.mubr.msk.bf16.mxu0 %vm666_vm0, %v2921_v41 }
  0x7b   : > { %2823 = vmatprep.mubr.msk.bf16.mxu1 %vm666_vm0, %v2922_v42 }
  0x81   : > { %2760 = vmatmul.mubr.msk.bf16.gmra.mxu0 %vm666_vm0, %v2923_v43 }
  0x82   : > { %2824 = vmatmul.mubr.msk.bf16.gmra.mxu1 %vm666_vm0, %v2924_v44  ;;  %2763 = vmatprep.mubr.msk.bf16.mxu0 %vm666_vm0, %v2925_v45 }
  0x83   : > { %2827 = vmatprep.mubr.msk.bf16.mxu1 %vm666_vm0, %v2926_v46 }
  0x89   : > { %2764 = vmatmul.mubr.msk.bf16.gmra.mxu0 %vm666_vm0, %v2927_v47 }
  0x8a   : > { %2828 = vmatmul.mubr.msk.bf16.gmra.mxu1 %vm666_vm0, %v2928_v48  ;;  %2767 = vmatprep.mubr.msk.bf16.mxu0 %vm666_vm0, %v2929_v49 }
  0x8b   : > { %2831 = vmatprep.mubr.msk.bf16.mxu1 %vm666_vm0, %v2930_v50 }
  0x91   : > { %2768 = vmatmul.mubr.msk.bf16.gmra.mxu0 %vm666_vm0, %v2931_v51 }
  0x92   : > { %2832 = vmatmul.mubr.msk.bf16.gmra.mxu1 %vm666_vm0, %v2932_v52  ;;  %2771 = vmatprep.mubr.msk.bf16.mxu0 %vm666_vm0, %v2933_v53 }
  0x93   : > { %2835 = vmatprep.mubr.msk.bf16.mxu1 %vm666_vm0, %v2934_v54 }
  0x99   : > { %2772 = vmatmul.mubr.msk.bf16.gmra.mxu0 %vm666_vm0, %v2935_v55 }
  0x9a   : > { %2836 = vmatmul.mubr.msk.bf16.gmra.mxu1 %vm666_vm0, %v2936_v56  ;;  %2775 = vmatprep.mubr.msk.bf16.mxu0 %vm666_vm0, %v2937_v57 }
  0x9b   : > { %2839 = vmatprep.mubr.msk.bf16.mxu1 %vm666_vm0, %v2938_v58 }
  0xa1   : > { %2776 = vmatmul.mubr.msk.bf16.gmra.mxu0 %vm666_vm0, %v2939_v59 }
  0xa2   : > { %2840 = vmatmul.mubr.msk.bf16.gmra.mxu1 %vm666_vm0, %v2940_v60  ;;  %2779 = vmatprep.mubr.msk.bf16.mxu0 %vm666_vm0, %v2941_v61 }
  0xa3   : > { %2843 = vmatprep.mubr.msk.bf16.mxu1 %vm666_vm0, %v2942_v62 }
  0xa9   : > { %2780 = vmatmul.mubr.msk.bf16.gmra.mxu0 %vm666_vm0, %v2943_v63 }
  0xaa   : > { %2844 = vmatmul.mubr.msk.bf16.gmra.mxu1 %vm666_vm0, %v2944_v0 }
  0xf1   : > { %v2721_v2 = vpop.f32.mrf.mxu0 }
  0xf2   : > { %v2785_v3 = vpop.f32.mrf.mxu1  ;;  %v902_v4 = vadd.f32 %v2721_v2, %v3232_v1 }
  0xf3   : > { %v1158_v5 = vadd.f32 %v2785_v3, %v3232_v1  ;;  %v893_v6 = vpop.f32.mrf.mxu0 }
  0xf4   : > { %v1149_v7 = vpop.f32.mrf.mxu1  ;;  %v1406_v8 = vmax.f32 %v902_v4, 0.0  ;;  %v894_v10 = vadd.f32 %v3232_v1, %v893_v6 }
  0xf5   : > { %v1470_v9 = vmax.f32 %v1158_v5, 0.0  ;;  %v1150_v11 = vadd.f32 %v3232_v1, %v1149_v7  ;;  %v2722_v12 = vpop.f32.mrf.mxu0 }
  0xf6   : > { %v2786_v13 = vpop.f32.mrf.mxu1  ;;  %v2526_v14 = vpack.c.bf16 %v1406_v8, %v1406_v8  ;;  %v1404_v16 = vmax.f32 %v894_v10, 0.0  ;;  %v905_v18 = vadd.f32 %v2722_v12, %v3232_v1 }
  0xf7   : > { %v2590_v15 = vpack.c.bf16 %v1470_v9, %v1470_v9  ;;  %v1468_v17 = vmax.f32 %v1150_v11, 0.0  ;;  %v1161_v19 = vadd.f32 %v2786_v13, %v3232_v1  ;;  %v896_v20 = vpop.f32.mrf.mxu0 }
  0xf8   : > { %v1152_v21 = vpop.f32.mrf.mxu1  ;;  %2047 = vst.msk [vmem:[%s3243_s10 + $0x8] sm:$0xf] %vm2044_vm1, %v2526_v14  ;;  %v2524_v22 = vpack.c.bf16 %v1404_v16, %v1404_v16  ;;  %v897_v24 = vadd.f32 %v3232_v1, %v896_v20  ;;  %v1407_v26 = vmax.f32 %v905_v18, 0.0 }
  0xf9   : > { %2111 = vst.msk [vmem:[%s3243_s10 + $0x108] sm:$0xf] %vm2044_vm1, %v2590_v15  ;;  %v2588_v23 = vpack.c.bf16 %v1468_v17, %v1468_v17  ;;  %v1153_v25 = vadd.f32 %v3232_v1, %v1152_v21  ;;  %v1471_v27 = vmax.f32 %v1161_v19, 0.0  ;;  %v2725_v28 = vpop.f32.mrf.mxu0 }
  0xfa   : > { %v2789_v29 = vpop.f32.mrf.mxu1  ;;  %2045 = vst.msk [vmem:[%s3243_s10] sm:$0xf] %vm2044_vm1, %v2524_v22  ;;  %v1405_v30 = vmax.f32 %v897_v24, 0.0  ;;  %v918_v32 = vadd.f32 %v2725_v28, %v3232_v1  ;;  %v2527_v34 = vpack.c.bf16 %v1407_v26, %v1407_v26 }
  0xfb   : > { %2109 = vst.msk [vmem:[%s3243_s10 + $0x100] sm:$0xf] %vm2044_vm1, %v2588_v23  ;;  %v1469_v31 = vmax.f32 %v1153_v25, 0.0  ;;  %v1174_v33 = vadd.f32 %v2789_v29, %v3232_v1  ;;  %v2591_v35 = vpack.c.bf16 %v1471_v27, %v1471_v27  ;;  %v909_v36 = vpop.f32.mrf.mxu0 }
  0xfc   : > { %v1165_v37 = vpop.f32.mrf.mxu1  ;;  %v2525_v38 = vpack.c.bf16 %v1405_v30, %v1405_v30  ;;  %v1410_v40 = vmax.f32 %v918_v32, 0.0  ;;  %2048 = vst.msk [vmem:[%s3243_s10 + $0xc] sm:$0xf] %vm2044_vm1, %v2527_v34  ;;  %v910_v42 = vadd.f32 %v3232_v1, %v909_v36 }
  0xfd   : > { %v2589_v39 = vpack.c.bf16 %v1469_v31, %v1469_v31  ;;  %v1474_v41 = vmax.f32 %v1174_v33, 0.0  ;;  %2112 = vst.msk [vmem:[%s3243_s10 + $0x10c] sm:$0xf] %vm2044_vm1, %v2591_v35  ;;  %v1166_v43 = vadd.f32 %v3232_v1, %v1165_v37  ;;  %v2726_v44 = vpop.f32.mrf.mxu0 }
  0xfe   : > { %v2790_v45 = vpop.f32.mrf.mxu1  ;;  %2046 = vst.msk [vmem:[%s3243_s10 + $0x4] sm:$0xf] %vm2044_vm1, %v2525_v38  ;;  %v2530_v46 = vpack.c.bf16 %v1410_v40, %v1410_v40  ;;  %v921_v48 = vadd.f32 %v2726_v44, %v3232_v1  ;;  %v1408_v50 = vmax.f32 %v910_v42, 0.0 }
  0xff   : > { %2110 = vst.msk [vmem:[%s3243_s10 + $0x104] sm:$0xf] %vm2044_vm1, %v2589_v39  ;;  %v2594_v47 = vpack.c.bf16 %v1474_v41, %v1474_v41  ;;  %v1177_v49 = vadd.f32 %v2790_v45, %v3232_v1  ;;  %v1472_v51 = vmax.f32 %v1166_v43, 0.0  ;;  %v912_v52 = vpop.f32.mrf.mxu0 }
 0x100   : > { %v1168_v53 = vpop.f32.mrf.mxu1  ;;  %2051 = vst.msk [vmem:[%s3243_s10 + $0x18] sm:$0xf] %vm2044_vm1, %v2530_v46  ;;  %v1411_v54 = vmax.f32 %v921_v48, 0.0  ;;  %v913_v56 = vadd.f32 %v3232_v1, %v912_v52  ;;  %v2528_v58 = vpack.c.bf16 %v1408_v50, %v1408_v50 }
 0x101   : > { %2115 = vst.msk [vmem:[%s3243_s10 + $0x118] sm:$0xf] %vm2044_vm1, %v2594_v47  ;;  %v1475_v55 = vmax.f32 %v1177_v49, 0.0  ;;  %v1169_v57 = vadd.f32 %v3232_v1, %v1168_v53  ;;  %v2592_v59 = vpack.c.bf16 %v1472_v51, %v1472_v51  ;;  %v2729_v60 = vpop.f32.mrf.mxu0 }
 0x102   : > { %v2793_v61 = vpop.f32.mrf.mxu1  ;;  %v2531_v62 = vpack.c.bf16 %v1411_v54, %v1411_v54  ;;  %v1409_v0 = vmax.f32 %v913_v56, 0.0  ;;  %2049 = vst.msk [vmem:[%s3243_s10 + $0x10] sm:$0xf] %vm2044_vm1, %v2528_v58  ;;  %v934_v3 = vadd.f32 %v2729_v60, %v3232_v1 }
 0x103   : > { %v2595_v63 = vpack.c.bf16 %v1475_v55, %v1475_v55  ;;  %v1473_v2 = vmax.f32 %v1169_v57, 0.0  ;;  %2113 = vst.msk [vmem:[%s3243_s10 + $0x110] sm:$0xf] %vm2044_vm1, %v2592_v59  ;;  %v1190_v4 = vadd.f32 %v2793_v61, %v3232_v1  ;;  %v925_v5 = vpop.f32.mrf.mxu0 }
 0x104   : > { %v1181_v6 = vpop.f32.mrf.mxu1  ;;  %2052 = vst.msk [vmem:[%s3243_s10 + $0x1c] sm:$0xf] %vm2044_vm1, %v2531_v62  ;;  %v2529_v7 = vpack.c.bf16 %v1409_v0, %v1409_v0  ;;  %v926_v9 = vadd.f32 %v3232_v1, %v925_v5  ;;  %v1414_v11 = vmax.f32 %v934_v3, 0.0 }
 0x105   : > { %2116 = vst.msk [vmem:[%s3243_s10 + $0x11c] sm:$0xf] %vm2044_vm1, %v2595_v63  ;;  %v2593_v8 = vpack.c.bf16 %v1473_v2, %v1473_v2  ;;  %v1182_v10 = vadd.f32 %v3232_v1, %v1181_v6  ;;  %v1478_v12 = vmax.f32 %v1190_v4, 0.0  ;;  %v2730_v13 = vpop.f32.mrf.mxu0 }
 0x106   : > { %v2794_v14 = vpop.f32.mrf.mxu1  ;;  %2050 = vst.msk [vmem:[%s3243_s10 + $0x14] sm:$0xf] %vm2044_vm1, %v2529_v7  ;;  %v1412_v15 = vmax.f32 %v926_v9, 0.0  ;;  %v937_v17 = vadd.f32 %v2730_v13, %v3232_v1  ;;  %v2534_v19 = vpack.c.bf16 %v1414_v11, %v1414_v11 }
 0x107   : > { %2114 = vst.msk [vmem:[%s3243_s10 + $0x114] sm:$0xf] %vm2044_vm1, %v2593_v8  ;;  %v1476_v16 = vmax.f32 %v1182_v10, 0.0  ;;  %v1193_v18 = vadd.f32 %v2794_v14, %v3232_v1  ;;  %v2598_v20 = vpack.c.bf16 %v1478_v12, %v1478_v12  ;;  %v928_v21 = vpop.f32.mrf.mxu0 }
 0x108   : > { %v1184_v22 = vpop.f32.mrf.mxu1  ;;  %v2532_v23 = vpack.c.bf16 %v1412_v15, %v1412_v15  ;;  %v1415_v25 = vmax.f32 %v937_v17, 0.0  ;;  %2055 = vst.msk [vmem:[%s3243_s10 + $0x28] sm:$0xf] %vm2044_vm1, %v2534_v19  ;;  %v929_v27 = vadd.f32 %v3232_v1, %v928_v21 }
 0x109   : > { %v2596_v24 = vpack.c.bf16 %v1476_v16, %v1476_v16  ;;  %v1479_v26 = vmax.f32 %v1193_v18, 0.0  ;;  %2119 = vst.msk [vmem:[%s3243_s10 + $0x128] sm:$0xf] %vm2044_vm1, %v2598_v20  ;;  %v1185_v28 = vadd.f32 %v3232_v1, %v1184_v22  ;;  %v2733_v29 = vpop.f32.mrf.mxu0 }
 0x10a   : > { %v2797_v30 = vpop.f32.mrf.mxu1  ;;  %2053 = vst.msk [vmem:[%s3243_s10 + $0x20] sm:$0xf] %vm2044_vm1, %v2532_v23  ;;  %v2535_v31 = vpack.c.bf16 %v1415_v25, %v1415_v25  ;;  %v950_v33 = vadd.f32 %v2733_v29, %v3232_v1  ;;  %v1413_v35 = vmax.f32 %v929_v27, 0.0 }
 0x10b   : > { %2117 = vst.msk [vmem:[%s3243_s10 + $0x120] sm:$0xf] %vm2044_vm1, %v2596_v24  ;;  %v2599_v32 = vpack.c.bf16 %v1479_v26, %v1479_v26  ;;  %v1206_v34 = vadd.f32 %v2797_v30, %v3232_v1  ;;  %v1477_v36 = vmax.f32 %v1185_v28, 0.0  ;;  %v941_v37 = vpop.f32.mrf.mxu0 }
 0x10c   : > { %v1197_v38 = vpop.f32.mrf.mxu1  ;;  %2056 = vst.msk [vmem:[%s3243_s10 + $0x2c] sm:$0xf] %vm2044_vm1, %v2535_v31  ;;  %v1418_v39 = vmax.f32 %v950_v33, 0.0  ;;  %v942_v41 = vadd.f32 %v3232_v1, %v941_v37  ;;  %v2533_v43 = vpack.c.bf16 %v1413_v35, %v1413_v35 }
 0x10d   : > { %2120 = vst.msk [vmem:[%s3243_s10 + $0x12c] sm:$0xf] %vm2044_vm1, %v2599_v32  ;;  %v1482_v40 = vmax.f32 %v1206_v34, 0.0  ;;  %v1198_v42 = vadd.f32 %v3232_v1, %v1197_v38  ;;  %v2597_v44 = vpack.c.bf16 %v1477_v36, %v1477_v36  ;;  %v2734_v45 = vpop.f32.mrf.mxu0 }
 0x10e   : > { %v2798_v46 = vpop.f32.mrf.mxu1  ;;  %v2538_v47 = vpack.c.bf16 %v1418_v39, %v1418_v39  ;;  %v1416_v49 = vmax.f32 %v942_v41, 0.0  ;;  %2054 = vst.msk [vmem:[%s3243_s10 + $0x24] sm:$0xf] %vm2044_vm1, %v2533_v43  ;;  %v953_v51 = vadd.f32 %v2734_v45, %v3232_v1 }
 0x10f   : > { %v2602_v48 = vpack.c.bf16 %v1482_v40, %v1482_v40  ;;  %v1480_v50 = vmax.f32 %v1198_v42, 0.0  ;;  %2118 = vst.msk [vmem:[%s3243_s10 + $0x124] sm:$0xf] %vm2044_vm1, %v2597_v44  ;;  %v1209_v52 = vadd.f32 %v2798_v46, %v3232_v1  ;;  %v944_v53 = vpop.f32.mrf.mxu0 }
 0x110   : > { %v1200_v54 = vpop.f32.mrf.mxu1  ;;  %2059 = vst.msk [vmem:[%s3243_s10 + $0x38] sm:$0xf] %vm2044_vm1, %v2538_v47  ;;  %v2536_v55 = vpack.c.bf16 %v1416_v49, %v1416_v49  ;;  %v945_v57 = vadd.f32 %v3232_v1, %v944_v53  ;;  %v1419_v59 = vmax.f32 %v953_v51, 0.0 }
 0x111   : > { %2123 = vst.msk [vmem:[%s3243_s10 + $0x138] sm:$0xf] %vm2044_vm1, %v2602_v48  ;;  %v2600_v56 = vpack.c.bf16 %v1480_v50, %v1480_v50  ;;  %v1201_v58 = vadd.f32 %v3232_v1, %v1200_v54  ;;  %v1483_v60 = vmax.f32 %v1209_v52, 0.0  ;;  %v2737_v61 = vpop.f32.mrf.mxu0 }
 0x112   : > { %v2801_v62 = vpop.f32.mrf.mxu1  ;;  %2057 = vst.msk [vmem:[%s3243_s10 + $0x30] sm:$0xf] %vm2044_vm1, %v2536_v55  ;;  %v1417_v63 = vmax.f32 %v945_v57, 0.0  ;;  %v966_v2 = vadd.f32 %v2737_v61, %v3232_v1  ;;  %v2539_v4 = vpack.c.bf16 %v1419_v59, %v1419_v59 }
 0x113   : > { %2121 = vst.msk [vmem:[%s3243_s10 + $0x130] sm:$0xf] %vm2044_vm1, %v2600_v56  ;;  %v1481_v0 = vmax.f32 %v1201_v58, 0.0  ;;  %v1222_v3 = vadd.f32 %v2801_v62, %v3232_v1  ;;  %v2603_v5 = vpack.c.bf16 %v1483_v60, %v1483_v60  ;;  %v957_v6 = vpop.f32.mrf.mxu0 }
 0x114   : > { %v1213_v7 = vpop.f32.mrf.mxu1  ;;  %v2537_v8 = vpack.c.bf16 %v1417_v63, %v1417_v63  ;;  %v1422_v10 = vmax.f32 %v966_v2, 0.0  ;;  %2060 = vst.msk [vmem:[%s3243_s10 + $0x3c] sm:$0xf] %vm2044_vm1, %v2539_v4  ;;  %v958_v12 = vadd.f32 %v3232_v1, %v957_v6 }
 0x115   : > { %v2601_v9 = vpack.c.bf16 %v1481_v0, %v1481_v0  ;;  %v1486_v11 = vmax.f32 %v1222_v3, 0.0  ;;  %2124 = vst.msk [vmem:[%s3243_s10 + $0x13c] sm:$0xf] %vm2044_vm1, %v2603_v5  ;;  %v1214_v13 = vadd.f32 %v3232_v1, %v1213_v7  ;;  %v2738_v14 = vpop.f32.mrf.mxu0 }
 0x116   : > { %v2802_v15 = vpop.f32.mrf.mxu1  ;;  %2058 = vst.msk [vmem:[%s3243_s10 + $0x34] sm:$0xf] %vm2044_vm1, %v2537_v8  ;;  %v2542_v16 = vpack.c.bf16 %v1422_v10, %v1422_v10  ;;  %v969_v18 = vadd.f32 %v2738_v14, %v3232_v1  ;;  %v1420_v20 = vmax.f32 %v958_v12, 0.0 }
 0x117   : > { %2122 = vst.msk [vmem:[%s3243_s10 + $0x134] sm:$0xf] %vm2044_vm1, %v2601_v9  ;;  %v2606_v17 = vpack.c.bf16 %v1486_v11, %v1486_v11  ;;  %v1225_v19 = vadd.f32 %v2802_v15, %v3232_v1  ;;  %v1484_v21 = vmax.f32 %v1214_v13, 0.0  ;;  %v960_v22 = vpop.f32.mrf.mxu0 }
 0x118   : > { %v1216_v23 = vpop.f32.mrf.mxu1  ;;  %2063 = vst.msk [vmem:[%s3243_s10 + $0x48] sm:$0xf] %vm2044_vm1, %v2542_v16  ;;  %v1423_v24 = vmax.f32 %v969_v18, 0.0  ;;  %v961_v26 = vadd.f32 %v3232_v1, %v960_v22  ;;  %v2540_v28 = vpack.c.bf16 %v1420_v20, %v1420_v20 }
 0x119   : > { %2127 = vst.msk [vmem:[%s3243_s10 + $0x148] sm:$0xf] %vm2044_vm1, %v2606_v17  ;;  %v1487_v25 = vmax.f32 %v1225_v19, 0.0  ;;  %v1217_v27 = vadd.f32 %v3232_v1, %v1216_v23  ;;  %v2604_v29 = vpack.c.bf16 %v1484_v21, %v1484_v21  ;;  %v2741_v30 = vpop.f32.mrf.mxu0 }
 0x11a   : > { %v2805_v31 = vpop.f32.mrf.mxu1  ;;  %v2543_v32 = vpack.c.bf16 %v1423_v24, %v1423_v24  ;;  %v1421_v34 = vmax.f32 %v961_v26, 0.0  ;;  %2061 = vst.msk [vmem:[%s3243_s10 + $0x40] sm:$0xf] %vm2044_vm1, %v2540_v28  ;;  %v982_v36 = vadd.f32 %v2741_v30, %v3232_v1 }
 0x11b   : > { %v2607_v33 = vpack.c.bf16 %v1487_v25, %v1487_v25  ;;  %v1485_v35 = vmax.f32 %v1217_v27, 0.0  ;;  %2125 = vst.msk [vmem:[%s3243_s10 + $0x140] sm:$0xf] %vm2044_vm1, %v2604_v29  ;;  %v1238_v37 = vadd.f32 %v2805_v31, %v3232_v1  ;;  %v973_v38 = vpop.f32.mrf.mxu0 }
 0x11c   : > { %v1229_v39 = vpop.f32.mrf.mxu1  ;;  %2064 = vst.msk [vmem:[%s3243_s10 + $0x4c] sm:$0xf] %vm2044_vm1, %v2543_v32  ;;  %v2541_v40 = vpack.c.bf16 %v1421_v34, %v1421_v34  ;;  %v974_v42 = vadd.f32 %v3232_v1, %v973_v38  ;;  %v1426_v44 = vmax.f32 %v982_v36, 0.0 }
 0x11d   : > { %2128 = vst.msk [vmem:[%s3243_s10 + $0x14c] sm:$0xf] %vm2044_vm1, %v2607_v33  ;;  %v2605_v41 = vpack.c.bf16 %v1485_v35, %v1485_v35  ;;  %v1230_v43 = vadd.f32 %v3232_v1, %v1229_v39  ;;  %v1490_v45 = vmax.f32 %v1238_v37, 0.0  ;;  %v2742_v46 = vpop.f32.mrf.mxu0 }
 0x11e   : > { %v2806_v47 = vpop.f32.mrf.mxu1  ;;  %2062 = vst.msk [vmem:[%s3243_s10 + $0x44] sm:$0xf] %vm2044_vm1, %v2541_v40  ;;  %v1424_v48 = vmax.f32 %v974_v42, 0.0  ;;  %v985_v50 = vadd.f32 %v2742_v46, %v3232_v1  ;;  %v2546_v52 = vpack.c.bf16 %v1426_v44, %v1426_v44 }
 0x11f   : > { %2126 = vst.msk [vmem:[%s3243_s10 + $0x144] sm:$0xf] %vm2044_vm1, %v2605_v41  ;;  %v1488_v49 = vmax.f32 %v1230_v43, 0.0  ;;  %v1241_v51 = vadd.f32 %v2806_v47, %v3232_v1  ;;  %v2610_v53 = vpack.c.bf16 %v1490_v45, %v1490_v45  ;;  %v976_v54 = vpop.f32.mrf.mxu0 }
 0x120   : > { %v1232_v55 = vpop.f32.mrf.mxu1  ;;  %v2544_v56 = vpack.c.bf16 %v1424_v48, %v1424_v48  ;;  %v1427_v58 = vmax.f32 %v985_v50, 0.0  ;;  %2067 = vst.msk [vmem:[%s3243_s10 + $0x58] sm:$0xf] %vm2044_vm1, %v2546_v52  ;;  %v977_v60 = vadd.f32 %v3232_v1, %v976_v54 }
 0x121   : > { %v2608_v57 = vpack.c.bf16 %v1488_v49, %v1488_v49  ;;  %v1491_v59 = vmax.f32 %v1241_v51, 0.0  ;;  %2131 = vst.msk [vmem:[%s3243_s10 + $0x158] sm:$0xf] %vm2044_vm1, %v2610_v53  ;;  %v1233_v61 = vadd.f32 %v3232_v1, %v1232_v55  ;;  %v2745_v62 = vpop.f32.mrf.mxu0 }
 0x122   : > { %v2809_v63 = vpop.f32.mrf.mxu1  ;;  %2065 = vst.msk [vmem:[%s3243_s10 + $0x50] sm:$0xf] %vm2044_vm1, %v2544_v56  ;;  %v2547_v0 = vpack.c.bf16 %v1427_v58, %v1427_v58  ;;  %v998_v3 = vadd.f32 %v2745_v62, %v3232_v1  ;;  %v1425_v5 = vmax.f32 %v977_v60, 0.0 }
 0x123   : > { %2129 = vst.msk [vmem:[%s3243_s10 + $0x150] sm:$0xf] %vm2044_vm1, %v2608_v57  ;;  %v2611_v2 = vpack.c.bf16 %v1491_v59, %v1491_v59  ;;  %v1254_v4 = vadd.f32 %v2809_v63, %v3232_v1  ;;  %v1489_v6 = vmax.f32 %v1233_v61, 0.0  ;;  %v989_v7 = vpop.f32.mrf.mxu0 }
 0x124   : > { %v1245_v8 = vpop.f32.mrf.mxu1  ;;  %2068 = vst.msk [vmem:[%s3243_s10 + $0x5c] sm:$0xf] %vm2044_vm1, %v2547_v0  ;;  %v1430_v9 = vmax.f32 %v998_v3, 0.0  ;;  %v990_v11 = vadd.f32 %v3232_v1, %v989_v7  ;;  %v2545_v13 = vpack.c.bf16 %v1425_v5, %v1425_v5 }
 0x125   : > { %2132 = vst.msk [vmem:[%s3243_s10 + $0x15c] sm:$0xf] %vm2044_vm1, %v2611_v2  ;;  %v1494_v10 = vmax.f32 %v1254_v4, 0.0  ;;  %v1246_v12 = vadd.f32 %v3232_v1, %v1245_v8  ;;  %v2609_v14 = vpack.c.bf16 %v1489_v6, %v1489_v6  ;;  %v2746_v15 = vpop.f32.mrf.mxu0 }
 0x126   : > { %v2810_v16 = vpop.f32.mrf.mxu1  ;;  %v2550_v17 = vpack.c.bf16 %v1430_v9, %v1430_v9  ;;  %v1428_v19 = vmax.f32 %v990_v11, 0.0  ;;  %2066 = vst.msk [vmem:[%s3243_s10 + $0x54] sm:$0xf] %vm2044_vm1, %v2545_v13  ;;  %v1001_v21 = vadd.f32 %v2746_v15, %v3232_v1 }
 0x127   : > { %v2614_v18 = vpack.c.bf16 %v1494_v10, %v1494_v10  ;;  %v1492_v20 = vmax.f32 %v1246_v12, 0.0  ;;  %2130 = vst.msk [vmem:[%s3243_s10 + $0x154] sm:$0xf] %vm2044_vm1, %v2609_v14  ;;  %v1257_v22 = vadd.f32 %v2810_v16, %v3232_v1  ;;  %v992_v23 = vpop.f32.mrf.mxu0 }
 0x128   : > { %v1248_v24 = vpop.f32.mrf.mxu1  ;;  %2071 = vst.msk [vmem:[%s3243_s10 + $0x68] sm:$0xf] %vm2044_vm1, %v2550_v17  ;;  %v2548_v25 = vpack.c.bf16 %v1428_v19, %v1428_v19  ;;  %v993_v27 = vadd.f32 %v3232_v1, %v992_v23  ;;  %v1431_v29 = vmax.f32 %v1001_v21, 0.0 }
 0x129   : > { %2135 = vst.msk [vmem:[%s3243_s10 + $0x168] sm:$0xf] %vm2044_vm1, %v2614_v18  ;;  %v2612_v26 = vpack.c.bf16 %v1492_v20, %v1492_v20  ;;  %v1249_v28 = vadd.f32 %v3232_v1, %v1248_v24  ;;  %v1495_v30 = vmax.f32 %v1257_v22, 0.0  ;;  %v2749_v31 = vpop.f32.mrf.mxu0 }
 0x12a   : > { %v2813_v32 = vpop.f32.mrf.mxu1  ;;  %2069 = vst.msk [vmem:[%s3243_s10 + $0x60] sm:$0xf] %vm2044_vm1, %v2548_v25  ;;  %v1429_v33 = vmax.f32 %v993_v27, 0.0  ;;  %v1014_v35 = vadd.f32 %v2749_v31, %v3232_v1  ;;  %v2551_v37 = vpack.c.bf16 %v1431_v29, %v1431_v29 }
 0x12b   : > { %2133 = vst.msk [vmem:[%s3243_s10 + $0x160] sm:$0xf] %vm2044_vm1, %v2612_v26  ;;  %v1493_v34 = vmax.f32 %v1249_v28, 0.0  ;;  %v1270_v36 = vadd.f32 %v2813_v32, %v3232_v1  ;;  %v2615_v38 = vpack.c.bf16 %v1495_v30, %v1495_v30  ;;  %v1005_v39 = vpop.f32.mrf.mxu0 }
 0x12c   : > { %v1261_v40 = vpop.f32.mrf.mxu1  ;;  %v2549_v41 = vpack.c.bf16 %v1429_v33, %v1429_v33  ;;  %v1434_v43 = vmax.f32 %v1014_v35, 0.0  ;;  %2072 = vst.msk [vmem:[%s3243_s10 + $0x6c] sm:$0xf] %vm2044_vm1, %v2551_v37  ;;  %v1006_v45 = vadd.f32 %v3232_v1, %v1005_v39 }
 0x12d   : > { %v2613_v42 = vpack.c.bf16 %v1493_v34, %v1493_v34  ;;  %v1498_v44 = vmax.f32 %v1270_v36, 0.0  ;;  %2136 = vst.msk [vmem:[%s3243_s10 + $0x16c] sm:$0xf] %vm2044_vm1, %v2615_v38  ;;  %v1262_v46 = vadd.f32 %v3232_v1, %v1261_v40  ;;  %v2750_v47 = vpop.f32.mrf.mxu0 }
 0x12e   : > { %v2814_v48 = vpop.f32.mrf.mxu1  ;;  %2070 = vst.msk [vmem:[%s3243_s10 + $0x64] sm:$0xf] %vm2044_vm1, %v2549_v41  ;;  %v2554_v49 = vpack.c.bf16 %v1434_v43, %v1434_v43  ;;  %v1017_v51 = vadd.f32 %v2750_v47, %v3232_v1  ;;  %v1432_v53 = vmax.f32 %v1006_v45, 0.0 }
 0x12f   : > { %2134 = vst.msk [vmem:[%s3243_s10 + $0x164] sm:$0xf] %vm2044_vm1, %v2613_v42  ;;  %v2618_v50 = vpack.c.bf16 %v1498_v44, %v1498_v44  ;;  %v1273_v52 = vadd.f32 %v2814_v48, %v3232_v1  ;;  %v1496_v54 = vmax.f32 %v1262_v46, 0.0  ;;  %v1008_v55 = vpop.f32.mrf.mxu0 }
 0x130   : > { %v1264_v56 = vpop.f32.mrf.mxu1  ;;  %2075 = vst.msk [vmem:[%s3243_s10 + $0x78] sm:$0xf] %vm2044_vm1, %v2554_v49  ;;  %v1435_v57 = vmax.f32 %v1017_v51, 0.0  ;;  %v1009_v59 = vadd.f32 %v3232_v1, %v1008_v55  ;;  %v2552_v61 = vpack.c.bf16 %v1432_v53, %v1432_v53 }
 0x131   : > { %2139 = vst.msk [vmem:[%s3243_s10 + $0x178] sm:$0xf] %vm2044_vm1, %v2618_v50  ;;  %v1499_v58 = vmax.f32 %v1273_v52, 0.0  ;;  %v1265_v60 = vadd.f32 %v3232_v1, %v1264_v56  ;;  %v2616_v62 = vpack.c.bf16 %v1496_v54, %v1496_v54  ;;  %v2753_v63 = vpop.f32.mrf.mxu0 }
 0x132   : > { %v2817_v0 = vpop.f32.mrf.mxu1  ;;  %v2555_v2 = vpack.c.bf16 %v1435_v57, %v1435_v57  ;;  %v1433_v4 = vmax.f32 %v1009_v59, 0.0  ;;  %2073 = vst.msk [vmem:[%s3243_s10 + $0x70] sm:$0xf] %vm2044_vm1, %v2552_v61  ;;  %v1030_v6 = vadd.f32 %v2753_v63, %v3232_v1 }
 0x133   : > { %v2619_v3 = vpack.c.bf16 %v1499_v58, %v1499_v58  ;;  %v1497_v5 = vmax.f32 %v1265_v60, 0.0  ;;  %2137 = vst.msk [vmem:[%s3243_s10 + $0x170] sm:$0xf] %vm2044_vm1, %v2616_v62  ;;  %v1286_v7 = vadd.f32 %v2817_v0, %v3232_v1  ;;  %v1021_v8 = vpop.f32.mrf.mxu0 }
 0x134   : > { %v1277_v9 = vpop.f32.mrf.mxu1  ;;  %2076 = vst.msk [vmem:[%s3243_s10 + $0x7c] sm:$0xf] %vm2044_vm1, %v2555_v2  ;;  %v2553_v10 = vpack.c.bf16 %v1433_v4, %v1433_v4  ;;  %v1022_v12 = vadd.f32 %v3232_v1, %v1021_v8  ;;  %v1438_v14 = vmax.f32 %v1030_v6, 0.0 }
 0x135   : > { %2140 = vst.msk [vmem:[%s3243_s10 + $0x17c] sm:$0xf] %vm2044_vm1, %v2619_v3  ;;  %v2617_v11 = vpack.c.bf16 %v1497_v5, %v1497_v5  ;;  %v1278_v13 = vadd.f32 %v3232_v1, %v1277_v9  ;;  %v1502_v15 = vmax.f32 %v1286_v7, 0.0  ;;  %v2754_v16 = vpop.f32.mrf.mxu0 }
 0x136   : > { %v2818_v17 = vpop.f32.mrf.mxu1  ;;  %2074 = vst.msk [vmem:[%s3243_s10 + $0x74] sm:$0xf] %vm2044_vm1, %v2553_v10  ;;  %v1436_v18 = vmax.f32 %v1022_v12, 0.0  ;;  %v1033_v20 = vadd.f32 %v2754_v16, %v3232_v1  ;;  %v2558_v22 = vpack.c.bf16 %v1438_v14, %v1438_v14 }
 0x137   : > { %2138 = vst.msk [vmem:[%s3243_s10 + $0x174] sm:$0xf] %vm2044_vm1, %v2617_v11  ;;  %v1500_v19 = vmax.f32 %v1278_v13, 0.0  ;;  %v1289_v21 = vadd.f32 %v2818_v17, %v3232_v1  ;;  %v2622_v23 = vpack.c.bf16 %v1502_v15, %v1502_v15  ;;  %v1024_v24 = vpop.f32.mrf.mxu0 }
 0x138   : > { %v1280_v25 = vpop.f32.mrf.mxu1  ;;  %v2556_v26 = vpack.c.bf16 %v1436_v18, %v1436_v18  ;;  %v1439_v28 = vmax.f32 %v1033_v20, 0.0  ;;  %2079 = vst.msk [vmem:[%s3243_s10 + $0x88] sm:$0xf] %vm2044_vm1, %v2558_v22  ;;  %v1025_v30 = vadd.f32 %v3232_v1, %v1024_v24 }
 0x139   : > { %v2620_v27 = vpack.c.bf16 %v1500_v19, %v1500_v19  ;;  %v1503_v29 = vmax.f32 %v1289_v21, 0.0  ;;  %2143 = vst.msk [vmem:[%s3243_s10 + $0x188] sm:$0xf] %vm2044_vm1, %v2622_v23  ;;  %v1281_v31 = vadd.f32 %v3232_v1, %v1280_v25  ;;  %v2757_v32 = vpop.f32.mrf.mxu0 }
 0x13a   : > { %v2821_v33 = vpop.f32.mrf.mxu1  ;;  %2077 = vst.msk [vmem:[%s3243_s10 + $0x80] sm:$0xf] %vm2044_vm1, %v2556_v26  ;;  %v2559_v34 = vpack.c.bf16 %v1439_v28, %v1439_v28  ;;  %v1046_v36 = vadd.f32 %v2757_v32, %v3232_v1  ;;  %v1437_v38 = vmax.f32 %v1025_v30, 0.0 }
 0x13b   : > { %2141 = vst.msk [vmem:[%s3243_s10 + $0x180] sm:$0xf] %vm2044_vm1, %v2620_v27  ;;  %v2623_v35 = vpack.c.bf16 %v1503_v29, %v1503_v29  ;;  %v1302_v37 = vadd.f32 %v2821_v33, %v3232_v1  ;;  %v1501_v39 = vmax.f32 %v1281_v31, 0.0  ;;  %v1037_v40 = vpop.f32.mrf.mxu0 }
 0x13c   : > { %v1293_v41 = vpop.f32.mrf.mxu1  ;;  %2080 = vst.msk [vmem:[%s3243_s10 + $0x8c] sm:$0xf] %vm2044_vm1, %v2559_v34  ;;  %v1442_v42 = vmax.f32 %v1046_v36, 0.0  ;;  %v1038_v44 = vadd.f32 %v3232_v1, %v1037_v40  ;;  %v2557_v46 = vpack.c.bf16 %v1437_v38, %v1437_v38 }
 0x13d   : > { %2144 = vst.msk [vmem:[%s3243_s10 + $0x18c] sm:$0xf] %vm2044_vm1, %v2623_v35  ;;  %v1506_v43 = vmax.f32 %v1302_v37, 0.0  ;;  %v1294_v45 = vadd.f32 %v3232_v1, %v1293_v41  ;;  %v2621_v47 = vpack.c.bf16 %v1501_v39, %v1501_v39  ;;  %v2758_v48 = vpop.f32.mrf.mxu0 }
 0x13e   : > { %v2822_v49 = vpop.f32.mrf.mxu1  ;;  %v2562_v50 = vpack.c.bf16 %v1442_v42, %v1442_v42  ;;  %v1440_v52 = vmax.f32 %v1038_v44, 0.0  ;;  %2078 = vst.msk [vmem:[%s3243_s10 + $0x84] sm:$0xf] %vm2044_vm1, %v2557_v46  ;;  %v1049_v54 = vadd.f32 %v2758_v48, %v3232_v1 }
 0x13f   : > { %v2626_v51 = vpack.c.bf16 %v1506_v43, %v1506_v43  ;;  %v1504_v53 = vmax.f32 %v1294_v45, 0.0  ;;  %2142 = vst.msk [vmem:[%s3243_s10 + $0x184] sm:$0xf] %vm2044_vm1, %v2621_v47  ;;  %v1305_v55 = vadd.f32 %v2822_v49, %v3232_v1  ;;  %v1040_v56 = vpop.f32.mrf.mxu0 }
 0x140   : > { %v1296_v57 = vpop.f32.mrf.mxu1  ;;  %2083 = vst.msk [vmem:[%s3243_s10 + $0x98] sm:$0xf] %vm2044_vm1, %v2562_v50  ;;  %v2560_v58 = vpack.c.bf16 %v1440_v52, %v1440_v52  ;;  %v1041_v60 = vadd.f32 %v3232_v1, %v1040_v56  ;;  %v1443_v62 = vmax.f32 %v1049_v54, 0.0 }
 0x141   : > { %2147 = vst.msk [vmem:[%s3243_s10 + $0x198] sm:$0xf] %vm2044_vm1, %v2626_v51  ;;  %v2624_v59 = vpack.c.bf16 %v1504_v53, %v1504_v53  ;;  %v1297_v61 = vadd.f32 %v3232_v1, %v1296_v57  ;;  %v1507_v63 = vmax.f32 %v1305_v55, 0.0  ;;  %v2761_v0 = vpop.f32.mrf.mxu0 }
 0x142   : > { %v2825_v2 = vpop.f32.mrf.mxu1  ;;  %2081 = vst.msk [vmem:[%s3243_s10 + $0x90] sm:$0xf] %vm2044_vm1, %v2560_v58  ;;  %v1441_v3 = vmax.f32 %v1041_v60, 0.0  ;;  %v1062_v5 = vadd.f32 %v2761_v0, %v3232_v1  ;;  %v2563_v7 = vpack.c.bf16 %v1443_v62, %v1443_v62 }
 0x143   : > { %2145 = vst.msk [vmem:[%s3243_s10 + $0x190] sm:$0xf] %vm2044_vm1, %v2624_v59  ;;  %v1505_v4 = vmax.f32 %v1297_v61, 0.0  ;;  %v1318_v6 = vadd.f32 %v2825_v2, %v3232_v1  ;;  %v2627_v8 = vpack.c.bf16 %v1507_v63, %v1507_v63  ;;  %v1053_v9 = vpop.f32.mrf.mxu0 }
 0x144   : > { %v1309_v10 = vpop.f32.mrf.mxu1  ;;  %v2561_v11 = vpack.c.bf16 %v1441_v3, %v1441_v3  ;;  %v1446_v13 = vmax.f32 %v1062_v5, 0.0  ;;  %2084 = vst.msk [vmem:[%s3243_s10 + $0x9c] sm:$0xf] %vm2044_vm1, %v2563_v7  ;;  %v1054_v15 = vadd.f32 %v3232_v1, %v1053_v9 }
 0x145   : > { %v2625_v12 = vpack.c.bf16 %v1505_v4, %v1505_v4  ;;  %v1510_v14 = vmax.f32 %v1318_v6, 0.0  ;;  %2148 = vst.msk [vmem:[%s3243_s10 + $0x19c] sm:$0xf] %vm2044_vm1, %v2627_v8  ;;  %v1310_v16 = vadd.f32 %v3232_v1, %v1309_v10  ;;  %v2762_v17 = vpop.f32.mrf.mxu0 }
 0x146   : > { %v2826_v18 = vpop.f32.mrf.mxu1  ;;  %2082 = vst.msk [vmem:[%s3243_s10 + $0x94] sm:$0xf] %vm2044_vm1, %v2561_v11  ;;  %v2566_v19 = vpack.c.bf16 %v1446_v13, %v1446_v13  ;;  %v1065_v21 = vadd.f32 %v2762_v17, %v3232_v1  ;;  %v1444_v23 = vmax.f32 %v1054_v15, 0.0 }
 0x147   : > { %2146 = vst.msk [vmem:[%s3243_s10 + $0x194] sm:$0xf] %vm2044_vm1, %v2625_v12  ;;  %v2630_v20 = vpack.c.bf16 %v1510_v14, %v1510_v14  ;;  %v1321_v22 = vadd.f32 %v2826_v18, %v3232_v1  ;;  %v1508_v24 = vmax.f32 %v1310_v16, 0.0  ;;  %v1056_v25 = vpop.f32.mrf.mxu0 }
 0x148   : > { %v1312_v26 = vpop.f32.mrf.mxu1  ;;  %2087 = vst.msk [vmem:[%s3243_s10 + $0xa8] sm:$0xf] %vm2044_vm1, %v2566_v19  ;;  %v1447_v27 = vmax.f32 %v1065_v21, 0.0  ;;  %v1057_v29 = vadd.f32 %v3232_v1, %v1056_v25  ;;  %v2564_v31 = vpack.c.bf16 %v1444_v23, %v1444_v23 }
 0x149   : > { %2151 = vst.msk [vmem:[%s3243_s10 + $0x1a8] sm:$0xf] %vm2044_vm1, %v2630_v20  ;;  %v1511_v28 = vmax.f32 %v1321_v22, 0.0  ;;  %v1313_v30 = vadd.f32 %v3232_v1, %v1312_v26  ;;  %v2628_v32 = vpack.c.bf16 %v1508_v24, %v1508_v24  ;;  %v2765_v33 = vpop.f32.mrf.mxu0 }
 0x14a   : > { %v2829_v34 = vpop.f32.mrf.mxu1  ;;  %v2567_v35 = vpack.c.bf16 %v1447_v27, %v1447_v27  ;;  %v1445_v37 = vmax.f32 %v1057_v29, 0.0  ;;  %2085 = vst.msk [vmem:[%s3243_s10 + $0xa0] sm:$0xf] %vm2044_vm1, %v2564_v31  ;;  %v1078_v39 = vadd.f32 %v2765_v33, %v3232_v1 }
 0x14b   : > { %v2631_v36 = vpack.c.bf16 %v1511_v28, %v1511_v28  ;;  %v1509_v38 = vmax.f32 %v1313_v30, 0.0  ;;  %2149 = vst.msk [vmem:[%s3243_s10 + $0x1a0] sm:$0xf] %vm2044_vm1, %v2628_v32  ;;  %v1334_v40 = vadd.f32 %v2829_v34, %v3232_v1  ;;  %v1069_v41 = vpop.f32.mrf.mxu0 }
 0x14c   : > { %v1325_v42 = vpop.f32.mrf.mxu1  ;;  %2088 = vst.msk [vmem:[%s3243_s10 + $0xac] sm:$0xf] %vm2044_vm1, %v2567_v35  ;;  %v2565_v43 = vpack.c.bf16 %v1445_v37, %v1445_v37  ;;  %v1070_v45 = vadd.f32 %v3232_v1, %v1069_v41  ;;  %v1450_v47 = vmax.f32 %v1078_v39, 0.0 }
 0x14d   : > { %2152 = vst.msk [vmem:[%s3243_s10 + $0x1ac] sm:$0xf] %vm2044_vm1, %v2631_v36  ;;  %v2629_v44 = vpack.c.bf16 %v1509_v38, %v1509_v38  ;;  %v1326_v46 = vadd.f32 %v3232_v1, %v1325_v42  ;;  %v1514_v48 = vmax.f32 %v1334_v40, 0.0  ;;  %v2766_v49 = vpop.f32.mrf.mxu0  ;;  %v3545_v38 = vld [vmem:[#allocation4] ss:$0 sm:$0xff] }
 0x14e   : > { %v2830_v50 = vpop.f32.mrf.mxu1  ;;  %2086 = vst.msk [vmem:[%s3243_s10 + $0xa4] sm:$0xf] %vm2044_vm1, %v2565_v43  ;;  %v1448_v51 = vmax.f32 %v1070_v45, 0.0  ;;  %v1081_v53 = vadd.f32 %v2766_v49, %v3232_v1  ;;  %v2570_v55 = vpack.c.bf16 %v1450_v47, %v1450_v47 }
 0x14f   : > { %2150 = vst.msk [vmem:[%s3243_s10 + $0x1a4] sm:$0xf] %vm2044_vm1, %v2629_v44  ;;  %v1512_v52 = vmax.f32 %v1326_v46, 0.0  ;;  %v1337_v54 = vadd.f32 %v2830_v50, %v3232_v1  ;;  %v2634_v56 = vpack.c.bf16 %v1514_v48, %v1514_v48  ;;  %v1072_v57 = vpop.f32.mrf.mxu0 }
 0x150   : > { %v1328_v58 = vpop.f32.mrf.mxu1  ;;  %v2568_v59 = vpack.c.bf16 %v1448_v51, %v1448_v51  ;;  %v1451_v61 = vmax.f32 %v1081_v53, 0.0  ;;  %2091 = vst.msk [vmem:[%s3243_s10 + $0xb8] sm:$0xf] %vm2044_vm1, %v2570_v55  ;;  %v1073_v63 = vadd.f32 %v3232_v1, %v1072_v57 }
 0x151   : > { %v2632_v60 = vpack.c.bf16 %v1512_v52, %v1512_v52  ;;  %v1515_v62 = vmax.f32 %v1337_v54, 0.0  ;;  %2155 = vst.msk [vmem:[%s3243_s10 + $0x1b8] sm:$0xf] %vm2044_vm1, %v2634_v56  ;;  %v1329_v0 = vadd.f32 %v3232_v1, %v1328_v58  ;;  %v2769_v2 = vpop.f32.mrf.mxu0 }
 0x152   : > { %v2833_v3 = vpop.f32.mrf.mxu1  ;;  %2089 = vst.msk [vmem:[%s3243_s10 + $0xb0] sm:$0xf] %vm2044_vm1, %v2568_v59  ;;  %v2571_v4 = vpack.c.bf16 %v1451_v61, %v1451_v61  ;;  %v1094_v6 = vadd.f32 %v2769_v2, %v3232_v1  ;;  %v1449_v8 = vmax.f32 %v1073_v63, 0.0 }
 0x153   : > { %2153 = vst.msk [vmem:[%s3243_s10 + $0x1b0] sm:$0xf] %vm2044_vm1, %v2632_v60  ;;  %v2635_v5 = vpack.c.bf16 %v1515_v62, %v1515_v62  ;;  %v1350_v7 = vadd.f32 %v2833_v3, %v3232_v1  ;;  %v1513_v9 = vmax.f32 %v1329_v0, 0.0  ;;  %v1085_v10 = vpop.f32.mrf.mxu0 }
 0x154   : > { %v1341_v11 = vpop.f32.mrf.mxu1  ;;  %2092 = vst.msk [vmem:[%s3243_s10 + $0xbc] sm:$0xf] %vm2044_vm1, %v2571_v4  ;;  %v1454_v12 = vmax.f32 %v1094_v6, 0.0  ;;  %v1086_v14 = vadd.f32 %v3232_v1, %v1085_v10  ;;  %v2569_v16 = vpack.c.bf16 %v1449_v8, %v1449_v8 }
 0x155   : > { %2156 = vst.msk [vmem:[%s3243_s10 + $0x1bc] sm:$0xf] %vm2044_vm1, %v2635_v5  ;;  %v1518_v13 = vmax.f32 %v1350_v7, 0.0  ;;  %v1342_v15 = vadd.f32 %v3232_v1, %v1341_v11  ;;  %v2633_v17 = vpack.c.bf16 %v1513_v9, %v1513_v9  ;;  %v2770_v18 = vpop.f32.mrf.mxu0 }
 0x156   : > { %v2834_v19 = vpop.f32.mrf.mxu1  ;;  %v2574_v20 = vpack.c.bf16 %v1454_v12, %v1454_v12  ;;  %v1452_v22 = vmax.f32 %v1086_v14, 0.0  ;;  %2090 = vst.msk [vmem:[%s3243_s10 + $0xb4] sm:$0xf] %vm2044_vm1, %v2569_v16  ;;  %v1097_v24 = vadd.f32 %v2770_v18, %v3232_v1 }
 0x157   : > { %v2638_v21 = vpack.c.bf16 %v1518_v13, %v1518_v13  ;;  %v1516_v23 = vmax.f32 %v1342_v15, 0.0  ;;  %2154 = vst.msk [vmem:[%s3243_s10 + $0x1b4] sm:$0xf] %vm2044_vm1, %v2633_v17  ;;  %v1353_v25 = vadd.f32 %v2834_v19, %v3232_v1  ;;  %v1088_v26 = vpop.f32.mrf.mxu0 }
 0x158   : > { %v1344_v27 = vpop.f32.mrf.mxu1  ;;  %2095 = vst.msk [vmem:[%s3243_s10 + $0xc8] sm:$0xf] %vm2044_vm1, %v2574_v20  ;;  %v2572_v28 = vpack.c.bf16 %v1452_v22, %v1452_v22  ;;  %v1089_v30 = vadd.f32 %v3232_v1, %v1088_v26  ;;  %v1455_v32 = vmax.f32 %v1097_v24, 0.0 }
 0x159   : > { %2159 = vst.msk [vmem:[%s3243_s10 + $0x1c8] sm:$0xf] %vm2044_vm1, %v2638_v21  ;;  %v2636_v29 = vpack.c.bf16 %v1516_v23, %v1516_v23  ;;  %v1345_v31 = vadd.f32 %v3232_v1, %v1344_v27  ;;  %v1519_v33 = vmax.f32 %v1353_v25, 0.0  ;;  %v2773_v34 = vpop.f32.mrf.mxu0 }
 0x15a   : > { %v2837_v35 = vpop.f32.mrf.mxu1  ;;  %2093 = vst.msk [vmem:[%s3243_s10 + $0xc0] sm:$0xf] %vm2044_vm1, %v2572_v28  ;;  %v1453_v36 = vmax.f32 %v1089_v30, 0.0  ;;  %v1110_v39 = vadd.f32 %v3545_v38, %v2773_v34  ;;  %v2575_v1 = vpack.c.bf16 %v1455_v32, %v1455_v32 }
 0x15b   : > { %2157 = vst.msk [vmem:[%s3243_s10 + $0x1c0] sm:$0xf] %vm2044_vm1, %v2636_v29  ;;  %v1517_v37 = vmax.f32 %v1345_v31, 0.0  ;;  %v1366_v40 = vadd.f32 %v3545_v38, %v2837_v35  ;;  %v2639_v41 = vpack.c.bf16 %v1519_v33, %v1519_v33  ;;  %v1101_v42 = vpop.f32.mrf.mxu0 }
 0x15c   : > { %v1357_v43 = vpop.f32.mrf.mxu1  ;;  %v2573_v44 = vpack.c.bf16 %v1453_v36, %v1453_v36  ;;  %v1458_v46 = vmax.f32 %v1110_v39, 0.0  ;;  %2096 = vst.msk [vmem:[%s3243_s10 + $0xcc] sm:$0xf] %vm2044_vm1, %v2575_v1  ;;  %v1102_v48 = vadd.f32 %v3545_v38, %v1101_v42 }
 0x15d   : > { %v2637_v45 = vpack.c.bf16 %v1517_v37, %v1517_v37  ;;  %v1522_v47 = vmax.f32 %v1366_v40, 0.0  ;;  %2160 = vst.msk [vmem:[%s3243_s10 + $0x1cc] sm:$0xf] %vm2044_vm1, %v2639_v41  ;;  %v1358_v49 = vadd.f32 %v3545_v38, %v1357_v43  ;;  %v2774_v50 = vpop.f32.mrf.mxu0 }
 0x15e   : > { %v2838_v51 = vpop.f32.mrf.mxu1  ;;  %2094 = vst.msk [vmem:[%s3243_s10 + $0xc4] sm:$0xf] %vm2044_vm1, %v2573_v44  ;;  %v2578_v52 = vpack.c.bf16 %v1458_v46, %v1458_v46  ;;  %v1113_v54 = vadd.f32 %v3545_v38, %v2774_v50  ;;  %v1456_v56 = vmax.f32 %v1102_v48, 0.0 }
 0x15f   : > { %2158 = vst.msk [vmem:[%s3243_s10 + $0x1c4] sm:$0xf] %vm2044_vm1, %v2637_v45  ;;  %v2642_v53 = vpack.c.bf16 %v1522_v47, %v1522_v47  ;;  %v1369_v55 = vadd.f32 %v3545_v38, %v2838_v51  ;;  %v1520_v57 = vmax.f32 %v1358_v49, 0.0  ;;  %v1104_v58 = vpop.f32.mrf.mxu0 }
 0x160   : > { %v1360_v59 = vpop.f32.mrf.mxu1  ;;  %2099 = vst.msk [vmem:[%s3243_s10 + $0xd8] sm:$0xf] %vm2044_vm1, %v2578_v52  ;;  %v1459_v60 = vmax.f32 %v1113_v54, 0.0  ;;  %v1105_v62 = vadd.f32 %v3545_v38, %v1104_v58  ;;  %v2576_v0 = vpack.c.bf16 %v1456_v56, %v1456_v56 }
 0x161   : > { %2163 = vst.msk [vmem:[%s3243_s10 + $0x1d8] sm:$0xf] %vm2044_vm1, %v2642_v53  ;;  %v1523_v61 = vmax.f32 %v1369_v55, 0.0  ;;  %v1361_v63 = vadd.f32 %v3545_v38, %v1360_v59  ;;  %v2640_v2 = vpack.c.bf16 %v1520_v57, %v1520_v57  ;;  %v2777_v3 = vpop.f32.mrf.mxu0 }
 0x162   : > { %v2841_v4 = vpop.f32.mrf.mxu1  ;;  %v2579_v5 = vpack.c.bf16 %v1459_v60, %v1459_v60  ;;  %v1457_v7 = vmax.f32 %v1105_v62, 0.0  ;;  %2097 = vst.msk [vmem:[%s3243_s10 + $0xd0] sm:$0xf] %vm2044_vm1, %v2576_v0  ;;  %v1126_v9 = vadd.f32 %v3545_v38, %v2777_v3 }
 0x163   : > { %v2643_v6 = vpack.c.bf16 %v1523_v61, %v1523_v61  ;;  %v1521_v8 = vmax.f32 %v1361_v63, 0.0  ;;  %2161 = vst.msk [vmem:[%s3243_s10 + $0x1d0] sm:$0xf] %vm2044_vm1, %v2640_v2  ;;  %v1382_v10 = vadd.f32 %v3545_v38, %v2841_v4  ;;  %v1117_v11 = vpop.f32.mrf.mxu0 }
 0x164   : > { %v1373_v12 = vpop.f32.mrf.mxu1  ;;  %2100 = vst.msk [vmem:[%s3243_s10 + $0xdc] sm:$0xf] %vm2044_vm1, %v2579_v5  ;;  %v2577_v13 = vpack.c.bf16 %v1457_v7, %v1457_v7  ;;  %v1118_v15 = vadd.f32 %v3545_v38, %v1117_v11  ;;  %v1462_v17 = vmax.f32 %v1126_v9, 0.0 }
 0x165   : > { %2164 = vst.msk [vmem:[%s3243_s10 + $0x1dc] sm:$0xf] %vm2044_vm1, %v2643_v6  ;;  %v2641_v14 = vpack.c.bf16 %v1521_v8, %v1521_v8  ;;  %v1374_v16 = vadd.f32 %v3545_v38, %v1373_v12  ;;  %v1526_v18 = vmax.f32 %v1382_v10, 0.0  ;;  %v2778_v19 = vpop.f32.mrf.mxu0 }
 0x166   : > { %v2842_v20 = vpop.f32.mrf.mxu1  ;;  %2098 = vst.msk [vmem:[%s3243_s10 + $0xd4] sm:$0xf] %vm2044_vm1, %v2577_v13  ;;  %v1460_v21 = vmax.f32 %v1118_v15, 0.0  ;;  %v1129_v23 = vadd.f32 %v3545_v38, %v2778_v19  ;;  %v2582_v25 = vpack.c.bf16 %v1462_v17, %v1462_v17 }
 0x167   : > { %2162 = vst.msk [vmem:[%s3243_s10 + $0x1d4] sm:$0xf] %vm2044_vm1, %v2641_v14  ;;  %v1524_v22 = vmax.f32 %v1374_v16, 0.0  ;;  %v1385_v24 = vadd.f32 %v3545_v38, %v2842_v20  ;;  %v2646_v26 = vpack.c.bf16 %v1526_v18, %v1526_v18  ;;  %v1120_v27 = vpop.f32.mrf.mxu0 }
 0x168   : > { %v1376_v28 = vpop.f32.mrf.mxu1  ;;  %v2580_v29 = vpack.c.bf16 %v1460_v21, %v1460_v21  ;;  %v1463_v31 = vmax.f32 %v1129_v23, 0.0  ;;  %2103 = vst.msk [vmem:[%s3243_s10 + $0xe8] sm:$0xf] %vm2044_vm1, %v2582_v25  ;;  %v1121_v33 = vadd.f32 %v3545_v38, %v1120_v27 }
 0x169   : > { %v2644_v30 = vpack.c.bf16 %v1524_v22, %v1524_v22  ;;  %v1527_v32 = vmax.f32 %v1385_v24, 0.0  ;;  %2167 = vst.msk [vmem:[%s3243_s10 + $0x1e8] sm:$0xf] %vm2044_vm1, %v2646_v26  ;;  %v1377_v34 = vadd.f32 %v3545_v38, %v1376_v28  ;;  %v2781_v35 = vpop.f32.mrf.mxu0 }
 0x16a   : > { %v2845_v36 = vpop.f32.mrf.mxu1  ;;  %2101 = vst.msk [vmem:[%s3243_s10 + $0xe0] sm:$0xf] %vm2044_vm1, %v2580_v29  ;;  %v2583_v37 = vpack.c.bf16 %v1463_v31, %v1463_v31  ;;  %v1142_v40 = vadd.f32 %v3545_v38, %v2781_v35  ;;  %v1461_v41 = vmax.f32 %v1121_v33, 0.0 }
 0x16b   : > { %2165 = vst.msk [vmem:[%s3243_s10 + $0x1e0] sm:$0xf] %vm2044_vm1, %v2644_v30  ;;  %v2647_v39 = vpack.c.bf16 %v1527_v32, %v1527_v32  ;;  %v1398_v1 = vadd.f32 %v3545_v38, %v2845_v36  ;;  %v1525_v42 = vmax.f32 %v1377_v34, 0.0  ;;  %v1133_v43 = vpop.f32.mrf.mxu0 }
 0x16c   : > { %v1389_v44 = vpop.f32.mrf.mxu1  ;;  %2104 = vst.msk [vmem:[%s3243_s10 + $0xec] sm:$0xf] %vm2044_vm1, %v2583_v37  ;;  %v1466_v45 = vmax.f32 %v1142_v40, 0.0  ;;  %v1134_v47 = vadd.f32 %v3545_v38, %v1133_v43  ;;  %v2581_v49 = vpack.c.bf16 %v1461_v41, %v1461_v41 }
 0x16d   : > { %2168 = vst.msk [vmem:[%s3243_s10 + $0x1ec] sm:$0xf] %vm2044_vm1, %v2647_v39  ;;  %v1530_v46 = vmax.f32 %v1398_v1, 0.0  ;;  %v1390_v48 = vadd.f32 %v3545_v38, %v1389_v44  ;;  %v2645_v50 = vpack.c.bf16 %v1525_v42, %v1525_v42  ;;  %v2782_v51 = vpop.f32.mrf.mxu0 }
 0x16e   : > { %v2846_v52 = vpop.f32.mrf.mxu1  ;;  %v2586_v53 = vpack.c.bf16 %v1466_v45, %v1466_v45  ;;  %v1464_v55 = vmax.f32 %v1134_v47, 0.0  ;;  %2102 = vst.msk [vmem:[%s3243_s10 + $0xe4] sm:$0xf] %vm2044_vm1, %v2581_v49  ;;  %v1145_v57 = vadd.f32 %v3545_v38, %v2782_v51 }
 0x16f   : > { %v2650_v54 = vpack.c.bf16 %v1530_v46, %v1530_v46  ;;  %v1528_v56 = vmax.f32 %v1390_v48, 0.0  ;;  %2166 = vst.msk [vmem:[%s3243_s10 + $0x1e4] sm:$0xf] %vm2044_vm1, %v2645_v50  ;;  %v1401_v58 = vadd.f32 %v3545_v38, %v2846_v52  ;;  %v1136_v59 = vpop.f32.mrf.mxu0 }
 0x170   : > { %v1392_v60 = vpop.f32.mrf.mxu1  ;;  %2107 = vst.msk [vmem:[%s3243_s10 + $0xf8] sm:$0xf] %vm2044_vm1, %v2586_v53  ;;  %v2584_v61 = vpack.c.bf16 %v1464_v55, %v1464_v55  ;;  %v1137_v63 = vadd.f32 %v3545_v38, %v1136_v59  ;;  %v1467_v2 = vmax.f32 %v1145_v57, 0.0 }
 0x171   : > { %2171 = vst.msk [vmem:[%s3243_s10 + $0x1f8] sm:$0xf] %vm2044_vm1, %v2650_v54  ;;  %v2648_v62 = vpack.c.bf16 %v1528_v56, %v1528_v56  ;;  %v1393_v0 = vadd.f32 %v3545_v38, %v1392_v60  ;;  %v1531_v3 = vmax.f32 %v1401_v58, 0.0 }
 0x172   : > { %2105 = vst.msk [vmem:[%s3243_s10 + $0xf0] sm:$0xf] %vm2044_vm1, %v2584_v61  ;;  %v1465_v4 = vmax.f32 %v1137_v63, 0.0  ;;  %v2587_v6 = vpack.c.bf16 %v1467_v2, %v1467_v2 }
 0x173   : > { %2169 = vst.msk [vmem:[%s3243_s10 + $0x1f0] sm:$0xf] %vm2044_vm1, %v2648_v62  ;;  %v1529_v5 = vmax.f32 %v1393_v0, 0.0  ;;  %v2651_v7 = vpack.c.bf16 %v1531_v3, %v1531_v3 }
 0x174   : > { %v2585_v8 = vpack.c.bf16 %v1465_v4, %v1465_v4  ;;  %2108 = vst.msk [vmem:[%s3243_s10 + $0xfc] sm:$0xf] %vm2044_vm1, %v2587_v6 }
 0x175   : > { %v2649_v9 = vpack.c.bf16 %v1529_v5, %v1529_v5  ;;  %2172 = vst.msk [vmem:[%s3243_s10 + $0x1fc] sm:$0xf] %vm2044_vm1, %v2651_v7 }
 0x176   : > { %2106 = vst.msk [vmem:[%s3243_s10 + $0xf4] sm:$0xf] %vm2044_vm1, %v2585_v8 }
 0x177   : > { %2170 = vst.msk [vmem:[%s3243_s10 + $0x1f4] sm:$0xf] %vm2044_vm1, %v2649_v9 }
 0x178 PF: > { %s15_s12 = sadd.s32 1, %s3012_s12  }
 0x179   : > { %p12_p2 = scmp.ge.s32.totalorder %s15_s12, 4  }
 0x17b   :  { %14 = sbr.rel (!%p12_p2) target bundleno = 2 (0x2), region = 71 }
 0x180   :  { %2195 = vsyncpa [#allocation3], 1 }
 0x181   :  { %2197 = vsyncpa [#allocation3 + $0x1], 1 }
 0x182   :  { %2198 = vsyncpa [#allocation5], 1 }

// kernel: vae_forward.10
= control target key start
LH: loop header
LB: loop body
LE: loop exit
PB: predicated region body
PF: predicated region fallthrough
CT: control target
= control target key end

     0   :  { %v2524_v0 = vmov 0   ;;  %vm1944_vm0 = vcmask 257024   ;;  %s3399_s1 = inlined_call_operand.vmem [shape: bf16[512,32], index: 1, kind: input, shape index: {}]   ;;  %s3400_s0 = inlined_call_operand.vmem [shape: bf16[512,512], index: 0, kind: input, shape index: {}]   ;;  %s3401_s2 = inlined_call_operand.vmem [shape: f32[1,32], index: 2, kind: input, shape index: {}]   ;;  %s3402_s3 = inlined_call_operand.vmem [shape: bf16[512,32], index: 3, kind: output, shape index: {}]  }
   0x1   :  { %1046 = vmatprep.subr.bf16.mxu0 %v2524_v0  ;;  %1335 = vmatprep.subr.bf16.mxu1 %v2524_v0  ;;  %v2303_v1 = vld [vmem:[%s3399_s1 + $0x38] sm:$0xff]   ;;  %v2305_v3 = vld [vmem:[%s3399_s1 + $0x30] sm:$0xff]   ;;  %v2307_v5 = vld [vmem:[%s3399_s1 + $0x28] sm:$0xff]  }
   0x2   :  { %v2304_v2 = vld [vmem:[%s3399_s1 + $0xb8] sm:$0xff]   ;;  %1047 = vmatpush1.bf16.msra.mxu0 %v2303_v1  ;;  %v2306_v4 = vld [vmem:[%s3399_s1 + $0xb0] sm:$0xff]   ;;  %v2308_v6 = vld [vmem:[%s3399_s1 + $0xa8] sm:$0xff]  }
   0x3   :  { %1336 = vmatpush1.bf16.msra.mxu1 %v2304_v2  ;;  %1048 = vmatprep.subr.bf16.mxu0 %v2524_v0  ;;  %v2309_v7 = vld [vmem:[%s3399_s1 + $0x20] sm:$0xff]   ;;  %v2311_v9 = vld [vmem:[%s3399_s1 + $0x18] sm:$0xff]   ;;  %v2313_v11 = vld [vmem:[%s3399_s1 + $0x10] sm:$0xff]  }
   0x4   :  { %1337 = vmatprep.subr.bf16.mxu1 %v2524_v0  ;;  %v2310_v8 = vld [vmem:[%s3399_s1 + $0xa0] sm:$0xff]   ;;  %v2312_v10 = vld [vmem:[%s3399_s1 + $0x98] sm:$0xff]   ;;  %v2314_v12 = vld [vmem:[%s3399_s1 + $0x90] sm:$0xff]  }
   0x5   :  { %v2315_v13 = vld [vmem:[%s3399_s1 + $0x8] sm:$0xff]   ;;  %v2317_v15 = vld [vmem:[%s3399_s1] sm:$0xff]   ;;  %v2319_v17 = vld [vmem:[%s3399_s1 + $0x78] sm:$0xff]  }
   0x6   :  { %1049 = vmatpush1.bf16.msra.mxu0 %v2305_v3  ;;  %v2316_v14 = vld [vmem:[%s3399_s1 + $0x88] sm:$0xff]   ;;  %v2318_v16 = vld [vmem:[%s3399_s1 + $0x80] sm:$0xff]   ;;  %v2320_v18 = vld [vmem:[%s3399_s1 + $0xf8] sm:$0xff]  }
   0x7   :  { %1338 = vmatpush1.bf16.msra.mxu1 %v2306_v4  ;;  %1050 = vmatprep.subr.bf16.mxu0 %v2524_v0  ;;  %v2337_v19 = vld [vmem:[%s3400_s0 + $0x4] ss:$16 sps:$4 sm:$0xff]   ;;  %v2340_v21 = vld [vmem:[%s3400_s0 + $0xc] ss:$16 sps:$4 sm:$0xff]   ;;  %v2335_v35 = vld [vmem:[%s3400_s0] ss:$16 sps:$4 sm:$0xff]  }
   0x8   :  { %1339 = vmatprep.subr.bf16.mxu1 %v2524_v0  ;;  %v2321_v20 = vld [vmem:[%s3399_s1 + $0x70] sm:$0xff]   ;;  %1078 = vmatprep.mubr.bf16.mxu0 %v2337_v19  ;;  %v2323_v23 = vld [vmem:[%s3399_s1 + $0x68] sm:$0xff]   ;;  %v2325_v25 = vld [vmem:[%s3399_s1 + $0x60] sm:$0xff]  }
   0x9   :  { %v2322_v22 = vld [vmem:[%s3399_s1 + $0xf0] sm:$0xff]   ;;  %1367 = vmatprep.mubr.bf16.mxu1 %v2340_v21  ;;  %v2324_v24 = vld [vmem:[%s3399_s1 + $0xe8] sm:$0xff]   ;;  %v2326_v26 = vld [vmem:[%s3399_s1 + $0xe0] sm:$0xff]  }
   0xa   :  { %1051 = vmatpush1.bf16.msra.mxu0 %v2307_v5  ;;  %v2327_v27 = vld [vmem:[%s3399_s1 + $0x58] sm:$0xff]   ;;  %v2329_v29 = vld [vmem:[%s3399_s1 + $0x50] sm:$0xff]   ;;  %v2331_v31 = vld [vmem:[%s3399_s1 + $0x48] sm:$0xff]  }
   0xb   :  { %1340 = vmatpush1.bf16.msra.mxu1 %v2308_v6  ;;  %1052 = vmatprep.subr.bf16.mxu0 %v2524_v0  ;;  %v2328_v28 = vld [vmem:[%s3399_s1 + $0xd8] sm:$0xff]   ;;  %v2330_v30 = vld [vmem:[%s3399_s1 + $0xd0] sm:$0xff]   ;;  %v2332_v32 = vld [vmem:[%s3399_s1 + $0xc8] sm:$0xff]  }
   0xc   :  { %1341 = vmatprep.subr.bf16.mxu1 %v2524_v0  ;;  %v2333_v33 = vld [vmem:[%s3399_s1 + $0x40] sm:$0xff]   ;;  %v2338_v36 = vld [vmem:[%s3400_s0 + $0x8] ss:$16 sps:$4 sm:$0xff]   ;;  %v2343_v38 = vld [vmem:[%s3400_s0 + $0x2c] ss:$16 sps:$4 sm:$0xff]  }
   0xd   :  { %v2334_v34 = vld [vmem:[%s3399_s1 + $0xc0] sm:$0xff]   ;;  %v2346_v40 = vld [vmem:[%s3400_s0 + $0x28] ss:$16 sps:$4 sm:$0xff]   ;;  %v2349_v42 = vld [vmem:[%s3400_s0 + $0x4c] ss:$16 sps:$4 sm:$0xff]  }
   0xe   :  { %1053 = vmatpush1.bf16.msra.mxu0 %v2309_v7  ;;  %v2341_v37 = vld [vmem:[%s3400_s0 + $0x24] ss:$16 sps:$4 sm:$0xff]   ;;  %v2345_v39 = vld [vmem:[%s3400_s0 + $0x20] ss:$16 sps:$4 sm:$0xff]   ;;  %v2352_v44 = vld [vmem:[%s3400_s0 + $0x48] ss:$16 sps:$4 sm:$0xff]  }
   0xf   :  { %1342 = vmatpush1.bf16.msra.mxu1 %v2310_v8  ;;  %1054 = vmatprep.subr.bf16.mxu0 %v2524_v0  ;;  %v2347_v41 = vld [vmem:[%s3400_s0 + $0x44] ss:$16 sps:$4 sm:$0xff]   ;;  %v2351_v43 = vld [vmem:[%s3400_s0 + $0x40] ss:$16 sps:$4 sm:$0xff]   ;;  %v2355_v46 = vld [vmem:[%s3400_s0 + $0x6c] ss:$16 sps:$4 sm:$0xff]  }
  0x10   :  { %1343 = vmatprep.subr.bf16.mxu1 %v2524_v0  ;;  %v2353_v45 = vld [vmem:[%s3400_s0 + $0x64] ss:$16 sps:$4 sm:$0xff]   ;;  %v2357_v47 = vld [vmem:[%s3400_s0 + $0x60] ss:$16 sps:$4 sm:$0xff]   ;;  %v2358_v48 = vld [vmem:[%s3400_s0 + $0x68] ss:$16 sps:$4 sm:$0xff]  }
  0x11   :  { %v2359_v49 = vld [vmem:[%s3400_s0 + $0x84] ss:$16 sps:$4 sm:$0xff]   ;;  %v2361_v50 = vld [vmem:[%s3400_s0 + $0x8c] ss:$16 sps:$4 sm:$0xff]   ;;  %v2363_v51 = vld [vmem:[%s3400_s0 + $0x80] ss:$16 sps:$4 sm:$0xff]  }
  0x12   :  { %1055 = vmatpush1.bf16.msra.mxu0 %v2311_v9  ;;  %v2364_v52 = vld [vmem:[%s3400_s0 + $0x88] ss:$16 sps:$4 sm:$0xff]   ;;  %v2365_v53 = vld [vmem:[%s3400_s0 + $0xa4] ss:$16 sps:$4 sm:$0xff]   ;;  %v2367_v54 = vld [vmem:[%s3400_s0 + $0xac] ss:$16 sps:$4 sm:$0xff]  }
  0x13   :  { %1344 = vmatpush1.bf16.msra.mxu1 %v2312_v10  ;;  %1056 = vmatprep.subr.bf16.mxu0 %v2524_v0  ;;  %v2369_v55 = vld [vmem:[%s3400_s0 + $0xa0] ss:$16 sps:$4 sm:$0xff]   ;;  %v2370_v56 = vld [vmem:[%s3400_s0 + $0xa8] ss:$16 sps:$4 sm:$0xff]   ;;  %v2371_v57 = vld [vmem:[%s3400_s0 + $0xc4] ss:$16 sps:$4 sm:$0xff]  }
  0x14   :  { %1345 = vmatprep.subr.bf16.mxu1 %v2524_v0  ;;  %v2373_v58 = vld [vmem:[%s3400_s0 + $0xcc] ss:$16 sps:$4 sm:$0xff]   ;;  %v2375_v59 = vld [vmem:[%s3400_s0 + $0xc0] ss:$16 sps:$4 sm:$0xff]   ;;  %v2376_v60 = vld [vmem:[%s3400_s0 + $0xc8] ss:$16 sps:$4 sm:$0xff]  }
  0x15   :  { %v2377_v61 = vld [vmem:[%s3400_s0 + $0xe4] ss:$16 sps:$4 sm:$0xff]   ;;  %v2379_v62 = vld [vmem:[%s3400_s0 + $0xec] ss:$16 sps:$4 sm:$0xff]   ;;  %v2381_v63 = vld [vmem:[%s3400_s0 + $0xe0] ss:$16 sps:$4 sm:$0xff]  }
  0x16   :  { %1057 = vmatpush1.bf16.msra.mxu0 %v2313_v11  ;;  %v2383_v1 = vld [vmem:[%s3400_s0 + $0x104] ss:$16 sps:$4 sm:$0xff]   ;;  %v2385_v2 = vld [vmem:[%s3400_s0 + $0x10c] ss:$16 sps:$4 sm:$0xff]   ;;  %v2387_v3 = vld [vmem:[%s3400_s0 + $0x100] ss:$16 sps:$4 sm:$0xff]  }
  0x17   :  { %1346 = vmatpush1.bf16.msra.mxu1 %v2314_v12  ;;  %1058 = vmatprep.subr.bf16.mxu0 %v2524_v0  ;;  %v2388_v4 = vld [vmem:[%s3400_s0 + $0x108] ss:$16 sps:$4 sm:$0xff]   ;;  %v2389_v5 = vld [vmem:[%s3400_s0 + $0x124] ss:$16 sps:$4 sm:$0xff]   ;;  %v2391_v6 = vld [vmem:[%s3400_s0 + $0x12c] ss:$16 sps:$4 sm:$0xff]  }
  0x18   :  { %1347 = vmatprep.subr.bf16.mxu1 %v2524_v0  ;;  %v2393_v7 = vld [vmem:[%s3400_s0 + $0x120] ss:$16 sps:$4 sm:$0xff]   ;;  %v2394_v8 = vld [vmem:[%s3400_s0 + $0x128] ss:$16 sps:$4 sm:$0xff]   ;;  %v2395_v9 = vld [vmem:[%s3400_s0 + $0x144] ss:$16 sps:$4 sm:$0xff]  }
  0x19   :  { %v2397_v10 = vld [vmem:[%s3400_s0 + $0x14c] ss:$16 sps:$4 sm:$0xff]   ;;  %v2399_v11 = vld [vmem:[%s3400_s0 + $0x140] ss:$16 sps:$4 sm:$0xff]   ;;  %v2400_v12 = vld [vmem:[%s3400_s0 + $0x148] ss:$16 sps:$4 sm:$0xff]  }
  0x1a   :  { %1059 = vmatpush1.bf16.msra.mxu0 %v2315_v13  ;;  %v2401_v13 = vld [vmem:[%s3400_s0 + $0x164] ss:$16 sps:$4 sm:$0xff]   ;;  %v2411_v19 = vld [vmem:[%s3400_s0 + $0x180] ss:$16 sps:$4 sm:$0xff]  }
  0x1b   :  { %1348 = vmatpush1.bf16.msra.mxu1 %v2316_v14  ;;  %1060 = vmatprep.subr.bf16.mxu0 %v2524_v0  ;;  %v2403_v14 = vld [vmem:[%s3400_s0 + $0x16c] ss:$16 sps:$4 sm:$0xff]   ;;  %v2413_v21 = vld [vmem:[%s3400_s0 + $0x1a4] ss:$16 sps:$4 sm:$0xff]  }
  0x1c   :  { %1349 = vmatprep.subr.bf16.mxu1 %v2524_v0 }
  0x1e   :  { %1061 = vmatpush1.bf16.msra.mxu0 %v2317_v15  ;;  %v2405_v15 = vld [vmem:[%s3400_s0 + $0x160] ss:$16 sps:$4 sm:$0xff]  }
  0x1f   :  { %1350 = vmatpush1.bf16.msra.mxu1 %v2318_v16  ;;  %1062 = vmatprep.subr.bf16.mxu0 %v2524_v0  ;;  %v2406_v16 = vld [vmem:[%s3400_s0 + $0x168] ss:$16 sps:$4 sm:$0xff]  }
  0x20   :  { %1351 = vmatprep.subr.bf16.mxu1 %v2524_v0 }
  0x22   :  { %1063 = vmatpush2.bf16.msra.mxu0 %v2319_v17  ;;  %v2407_v17 = vld [vmem:[%s3400_s0 + $0x184] ss:$16 sps:$4 sm:$0xff]  }
  0x23   :  { %1352 = vmatpush2.bf16.msra.mxu1 %v2320_v18  ;;  %1064 = vmatprep.subr.bf16.mxu0 %v2524_v0  ;;  %v2409_v18 = vld [vmem:[%s3400_s0 + $0x18c] ss:$16 sps:$4 sm:$0xff]  }
  0x24   :  { %1353 = vmatprep.subr.bf16.mxu1 %v2524_v0 }
  0x26   :  { %1065 = vmatpush2.bf16.msra.mxu0 %v2321_v20  ;;  %v2412_v20 = vld [vmem:[%s3400_s0 + $0x188] ss:$16 sps:$4 sm:$0xff]  }
  0x27   :  { %1354 = vmatpush2.bf16.msra.mxu1 %v2322_v22  ;;  %1066 = vmatprep.subr.bf16.mxu0 %v2524_v0  ;;  %v2415_v22 = vld [vmem:[%s3400_s0 + $0x1ac] ss:$16 sps:$4 sm:$0xff]  }
  0x28   :  { %1355 = vmatprep.subr.bf16.mxu1 %v2524_v0 }
  0x2a   :  { %1067 = vmatpush2.bf16.msra.mxu0 %v2323_v23  ;;  %v2417_v23 = vld [vmem:[%s3400_s0 + $0x1a0] ss:$16 sps:$4 sm:$0xff]  }
  0x2b   :  { %1356 = vmatpush2.bf16.msra.mxu1 %v2324_v24  ;;  %1068 = vmatprep.subr.bf16.mxu0 %v2524_v0  ;;  %v2418_v24 = vld [vmem:[%s3400_s0 + $0x1a8] ss:$16 sps:$4 sm:$0xff]  }
  0x2c   :  { %1357 = vmatprep.subr.bf16.mxu1 %v2524_v0 }
  0x2e   :  { %1069 = vmatpush2.bf16.msra.mxu0 %v2325_v25  ;;  %v2419_v25 = vld [vmem:[%s3400_s0 + $0x1c4] ss:$16 sps:$4 sm:$0xff]  }
  0x2f   :  { %1358 = vmatpush2.bf16.msra.mxu1 %v2326_v26  ;;  %1070 = vmatprep.subr.bf16.mxu0 %v2524_v0  ;;  %v2421_v26 = vld [vmem:[%s3400_s0 + $0x1cc] ss:$16 sps:$4 sm:$0xff]  }
  0x30   :  { %1359 = vmatprep.subr.bf16.mxu1 %v2524_v0 }
  0x32   :  { %1071 = vmatpush2.bf16.msra.mxu0 %v2327_v27  ;;  %v2423_v27 = vld [vmem:[%s3400_s0 + $0x1c0] ss:$16 sps:$4 sm:$0xff]  }
  0x33   :  { %1360 = vmatpush2.bf16.msra.mxu1 %v2328_v28  ;;  %1072 = vmatprep.subr.bf16.mxu0 %v2524_v0  ;;  %v2424_v28 = vld [vmem:[%s3400_s0 + $0x1c8] ss:$16 sps:$4 sm:$0xff]  }
  0x34   :  { %1361 = vmatprep.subr.bf16.mxu1 %v2524_v0 }
  0x36   :  { %1073 = vmatpush2.bf16.msra.mxu0 %v2329_v29  ;;  %v2425_v29 = vld [vmem:[%s3400_s0 + $0x1e4] ss:$16 sps:$4 sm:$0xff]  }
  0x37   :  { %1362 = vmatpush2.bf16.msra.mxu1 %v2330_v30  ;;  %1074 = vmatprep.subr.bf16.mxu0 %v2524_v0  ;;  %v2427_v30 = vld [vmem:[%s3400_s0 + $0x1ec] ss:$16 sps:$4 sm:$0xff]  }
  0x38   :  { %1363 = vmatprep.subr.bf16.mxu1 %v2524_v0 }
  0x3a   :  { %1075 = vmatpush2.bf16.msra.mxu0 %v2331_v31  ;;  %v2429_v31 = vld [vmem:[%s3400_s0 + $0x1e0] ss:$16 sps:$4 sm:$0xff]  }
  0x3b   :  { %1364 = vmatpush2.bf16.msra.mxu1 %v2332_v32  ;;  %1076 = vmatprep.subr.bf16.mxu0 %v2524_v0  ;;  %v2430_v32 = vld [vmem:[%s3400_s0 + $0x1e8] ss:$16 sps:$4 sm:$0xff]  }
  0x3c   :  { %1365 = vmatprep.subr.bf16.mxu1 %v2524_v0  ;;  %v2382_v0 = vld [vmem:[%s3400_s0 + $0xe8] ss:$16 sps:$4 sm:$0xff]  }
  0x3e   :  { %1077 = vmatpush2.bf16.msra.mxu0 %v2333_v33  ;;  %v2431_v33 = vld [vmem:[%s3400_s0 + $0x204] ss:$16 sps:$4 sm:$0xff]  }
  0x3f   :  { %1366 = vmatpush2.bf16.msra.mxu1 %v2334_v34  ;;  %v2433_v34 = vld [vmem:[%s3400_s0 + $0x20c] ss:$16 sps:$4 sm:$0xff]  }
  0x41   :  { %1079 = vmatmul.mubr.bf16.vlgmr.msra.gmra.mxu0 %v2335_v35  ;;  %v2435_v35 = vld [vmem:[%s3400_s0 + $0x200] ss:$16 sps:$4 sm:$0xff]  }
  0x42   :  { %1368 = vmatmul.mubr.bf16.vlgmr.msra.gmra.mxu1 %v2338_v36  ;;  %1086 = vmatprep.mubr.bf16.mxu0 %v2341_v37  ;;  %v2436_v36 = vld [vmem:[%s3400_s0 + $0x208] ss:$16 sps:$4 sm:$0xff]   ;;  %v2437_v37 = vld [vmem:[%s3400_s0 + $0x224] ss:$16 sps:$4 sm:$0xff]  }
  0x43   :  { %1375 = vmatprep.mubr.bf16.mxu1 %v2343_v38  ;;  %v2439_v38 = vld [vmem:[%s3400_s0 + $0x22c] ss:$16 sps:$4 sm:$0xff]  }
  0x49   :  { %1087 = vmatmul.mubr.bf16.gmra.mxu0 %v2345_v39  ;;  %v2441_v39 = vld [vmem:[%s3400_s0 + $0x220] ss:$16 sps:$4 sm:$0xff]  }
  0x4a   :  { %1376 = vmatmul.mubr.bf16.gmra.mxu1 %v2346_v40  ;;  %1094 = vmatprep.mubr.bf16.mxu0 %v2347_v41  ;;  %v2442_v40 = vld [vmem:[%s3400_s0 + $0x228] ss:$16 sps:$4 sm:$0xff]   ;;  %v2443_v41 = vld [vmem:[%s3400_s0 + $0x244] ss:$16 sps:$4 sm:$0xff]  }
  0x4b   :  { %1383 = vmatprep.mubr.bf16.mxu1 %v2349_v42  ;;  %v2445_v42 = vld [vmem:[%s3400_s0 + $0x24c] ss:$16 sps:$4 sm:$0xff]  }
  0x51   :  { %1095 = vmatmul.mubr.bf16.gmra.mxu0 %v2351_v43  ;;  %v2447_v43 = vld [vmem:[%s3400_s0 + $0x240] ss:$16 sps:$4 sm:$0xff]  }
  0x52   :  { %1384 = vmatmul.mubr.bf16.gmra.mxu1 %v2352_v44  ;;  %1102 = vmatprep.mubr.bf16.mxu0 %v2353_v45  ;;  %v2448_v44 = vld [vmem:[%s3400_s0 + $0x248] ss:$16 sps:$4 sm:$0xff]   ;;  %v2449_v45 = vld [vmem:[%s3400_s0 + $0x264] ss:$16 sps:$4 sm:$0xff]  }
  0x53   :  { %1391 = vmatprep.mubr.bf16.mxu1 %v2355_v46  ;;  %v2451_v46 = vld [vmem:[%s3400_s0 + $0x26c] ss:$16 sps:$4 sm:$0xff]  }
  0x59   :  { %1103 = vmatmul.mubr.bf16.gmra.mxu0 %v2357_v47  ;;  %v2453_v47 = vld [vmem:[%s3400_s0 + $0x260] ss:$16 sps:$4 sm:$0xff]  }
  0x5a   :  { %1392 = vmatmul.mubr.bf16.gmra.mxu1 %v2358_v48  ;;  %1110 = vmatprep.mubr.bf16.mxu0 %v2359_v49  ;;  %v2454_v48 = vld [vmem:[%s3400_s0 + $0x268] ss:$16 sps:$4 sm:$0xff]   ;;  %v2455_v49 = vld [vmem:[%s3400_s0 + $0x284] ss:$16 sps:$4 sm:$0xff]  }
  0x5b   :  { %1399 = vmatprep.mubr.bf16.mxu1 %v2361_v50  ;;  %v2457_v50 = vld [vmem:[%s3400_s0 + $0x28c] ss:$16 sps:$4 sm:$0xff]  }
  0x61   :  { %1111 = vmatmul.mubr.bf16.gmra.mxu0 %v2363_v51  ;;  %v2459_v51 = vld [vmem:[%s3400_s0 + $0x280] ss:$16 sps:$4 sm:$0xff]  }
  0x62   :  { %1400 = vmatmul.mubr.bf16.gmra.mxu1 %v2364_v52  ;;  %1118 = vmatprep.mubr.bf16.mxu0 %v2365_v53  ;;  %v2460_v52 = vld [vmem:[%s3400_s0 + $0x288] ss:$16 sps:$4 sm:$0xff]   ;;  %v2461_v53 = vld [vmem:[%s3400_s0 + $0x2a4] ss:$16 sps:$4 sm:$0xff]  }
  0x63   :  { %1407 = vmatprep.mubr.bf16.mxu1 %v2367_v54  ;;  %v2463_v54 = vld [vmem:[%s3400_s0 + $0x2ac] ss:$16 sps:$4 sm:$0xff]  }
  0x69   :  { %1119 = vmatmul.mubr.bf16.gmra.mxu0 %v2369_v55  ;;  %v2465_v55 = vld [vmem:[%s3400_s0 + $0x2a0] ss:$16 sps:$4 sm:$0xff]  }
  0x6a   :  { %1408 = vmatmul.mubr.bf16.gmra.mxu1 %v2370_v56  ;;  %1126 = vmatprep.mubr.bf16.mxu0 %v2371_v57  ;;  %v2466_v56 = vld [vmem:[%s3400_s0 + $0x2a8] ss:$16 sps:$4 sm:$0xff]   ;;  %v2467_v57 = vld [vmem:[%s3400_s0 + $0x2c4] ss:$16 sps:$4 sm:$0xff]  }
  0x6b   :  { %1415 = vmatprep.mubr.bf16.mxu1 %v2373_v58  ;;  %v2469_v58 = vld [vmem:[%s3400_s0 + $0x2cc] ss:$16 sps:$4 sm:$0xff]  }
  0x71   :  { %1127 = vmatmul.mubr.bf16.gmra.mxu0 %v2375_v59  ;;  %v2471_v59 = vld [vmem:[%s3400_s0 + $0x2c0] ss:$16 sps:$4 sm:$0xff]  }
  0x72   :  { %1416 = vmatmul.mubr.bf16.gmra.mxu1 %v2376_v60  ;;  %1134 = vmatprep.mubr.bf16.mxu0 %v2377_v61  ;;  %v2472_v60 = vld [vmem:[%s3400_s0 + $0x2c8] ss:$16 sps:$4 sm:$0xff]   ;;  %v2473_v61 = vld [vmem:[%s3400_s0 + $0x2e4] ss:$16 sps:$4 sm:$0xff]  }
  0x73   :  { %1423 = vmatprep.mubr.bf16.mxu1 %v2379_v62  ;;  %v2475_v62 = vld [vmem:[%s3400_s0 + $0x2ec] ss:$16 sps:$4 sm:$0xff]  }
  0x79   :  { %1135 = vmatmul.mubr.bf16.gmra.mxu0 %v2381_v63  ;;  %v2477_v63 = vld [vmem:[%s3400_s0 + $0x2e0] ss:$16 sps:$4 sm:$0xff]  }
  0x7a   :  { %1424 = vmatmul.mubr.bf16.gmra.mxu1 %v2382_v0  ;;  %1142 = vmatprep.mubr.bf16.mxu0 %v2383_v1  ;;  %v2478_v0 = vld [vmem:[%s3400_s0 + $0x2e8] ss:$16 sps:$4 sm:$0xff]   ;;  %v2479_v1 = vld [vmem:[%s3400_s0 + $0x304] ss:$16 sps:$4 sm:$0xff]  }
  0x7b   :  { %1431 = vmatprep.mubr.bf16.mxu1 %v2385_v2  ;;  %v2481_v2 = vld [vmem:[%s3400_s0 + $0x30c] ss:$16 sps:$4 sm:$0xff]  }
  0x81   :  { %1143 = vmatmul.mubr.bf16.gmra.mxu0 %v2387_v3  ;;  %v112_v3 = vld [vmem:[%s3400_s0 + $0x308] sm:$0xff] }
  0x82   :  { %1432 = vmatmul.mubr.bf16.gmra.mxu1 %v2388_v4  ;;  %1150 = vmatprep.mubr.bf16.mxu0 %v2389_v5  ;;  %v114_v4 = vld [vmem:[%s3400_s0 + $0x318] sm:$0xff]  ;;  %v2483_v5 = vld [vmem:[%s3400_s0 + $0x300] ss:$16 sps:$4 sm:$0xff]  }
  0x83   :  { %1439 = vmatprep.mubr.bf16.mxu1 %v2391_v6  ;;  %v2112_v6 = vcombine.low %v112_v3, %v114_v4  ;;  %v2501_v4 = vld [vmem:[%s3400_s0 + $0x384] ss:$16 sps:$4 sm:$0xff]  }
  0x89   :  { %1151 = vmatmul.mubr.bf16.gmra.mxu0 %v2393_v7  ;;  %v2484_v7 = vld [vmem:[%s3400_s0 + $0x324] ss:$16 sps:$4 sm:$0xff]  }
  0x8a   :  { %1440 = vmatmul.mubr.bf16.gmra.mxu1 %v2394_v8  ;;  %1158 = vmatprep.mubr.bf16.mxu0 %v2395_v9  ;;  %v2982_v8 = vld [vmem:[%s3401_s2] ss:$0 sm:$0xff]  ;;  %v2486_v9 = vld [vmem:[%s3400_s0 + $0x32c] ss:$16 sps:$4 sm:$0xff]  }
  0x8b   :  { %1447 = vmatprep.mubr.bf16.mxu1 %v2397_v10 }
  0x91   :  { %1159 = vmatmul.mubr.bf16.gmra.mxu0 %v2399_v11 }
  0x92   :  { %1448 = vmatmul.mubr.bf16.gmra.mxu1 %v2400_v12  ;;  %1166 = vmatprep.mubr.bf16.mxu0 %v2401_v13 }
  0x93   :  { %1455 = vmatprep.mubr.bf16.mxu1 %v2403_v14  ;;  %v116_v14 = vld [vmem:[%s3400_s0 + $0x328] sm:$0xff] }
  0x99   :  { %1167 = vmatmul.mubr.bf16.gmra.mxu0 %v2405_v15  ;;  %v118_v15 = vld [vmem:[%s3400_s0 + $0x338] sm:$0xff] }
  0x9a   :  { %1456 = vmatmul.mubr.bf16.gmra.mxu1 %v2406_v16  ;;  %1174 = vmatprep.mubr.bf16.mxu0 %v2407_v17 }
  0x9b   :  { %1463 = vmatprep.mubr.bf16.mxu1 %v2409_v18 }
  0xa1   :  { %1175 = vmatmul.mubr.bf16.gmra.mxu0 %v2411_v19  ;;  %v2488_v19 = vld [vmem:[%s3400_s0 + $0x320] ss:$16 sps:$4 sm:$0xff]  }
  0xa2   :  { %1464 = vmatmul.mubr.bf16.gmra.mxu1 %v2412_v20  ;;  %1182 = vmatprep.mubr.bf16.mxu0 %v2413_v21 }
  0xa3   :  { %1471 = vmatprep.mubr.bf16.mxu1 %v2415_v22 }
  0xa9   :  { %1183 = vmatmul.mubr.bf16.gmra.mxu0 %v2417_v23  ;;  %v2116_v23 = vcombine.low %v116_v14, %v118_v15 }
  0xaa   :  { %1472 = vmatmul.mubr.bf16.gmra.mxu1 %v2418_v24  ;;  %1190 = vmatprep.mubr.bf16.mxu0 %v2419_v25  ;;  %v2489_v24 = vld [vmem:[%s3400_s0 + $0x344] ss:$16 sps:$4 sm:$0xff]  }
  0xab   :  { %1479 = vmatprep.mubr.bf16.mxu1 %v2421_v26  ;;  %v2491_v26 = vld [vmem:[%s3400_s0 + $0x34c] ss:$16 sps:$4 sm:$0xff]  }
  0xb1   :  { %1191 = vmatmul.mubr.bf16.gmra.mxu0 %v2423_v27 }
  0xb2   :  { %1480 = vmatmul.mubr.bf16.gmra.mxu1 %v2424_v28  ;;  %1198 = vmatprep.mubr.bf16.mxu0 %v2425_v29 }
  0xb3   :  { %1487 = vmatprep.mubr.bf16.mxu1 %v2427_v30 }
  0xb9   :  { %1199 = vmatmul.mubr.bf16.gmra.mxu0 %v2429_v31 }
  0xba   :  { %1488 = vmatmul.mubr.bf16.gmra.mxu1 %v2430_v32  ;;  %1206 = vmatprep.mubr.bf16.mxu0 %v2431_v33 }
  0xbb   :  { %1495 = vmatprep.mubr.bf16.mxu1 %v2433_v34 }
  0xc1   :  { %1207 = vmatmul.mubr.bf16.gmra.mxu0 %v2435_v35  ;;  %v120_v35 = vld [vmem:[%s3400_s0 + $0x348] sm:$0xff] }
  0xc2   :  { %1496 = vmatmul.mubr.bf16.gmra.mxu1 %v2436_v36  ;;  %1214 = vmatprep.mubr.bf16.mxu0 %v2437_v37  ;;  %v122_v36 = vld [vmem:[%s3400_s0 + $0x358] sm:$0xff] }
  0xc3   :  { %1503 = vmatprep.mubr.bf16.mxu1 %v2439_v38 }
  0xc9   :  { %1215 = vmatmul.mubr.bf16.gmra.mxu0 %v2441_v39 }
  0xca   :  { %1504 = vmatmul.mubr.bf16.gmra.mxu1 %v2442_v40  ;;  %1222 = vmatprep.mubr.bf16.mxu0 %v2443_v41  ;;  %v2493_v41 = vld [vmem:[%s3400_s0 + $0x340] ss:$16 sps:$4 sm:$0xff]  }
  0xcb   :  { %1511 = vmatprep.mubr.bf16.mxu1 %v2445_v42 }
  0xd1   :  { %1223 = vmatmul.mubr.bf16.gmra.mxu0 %v2447_v43 }
  0xd2   :  { %1512 = vmatmul.mubr.bf16.gmra.mxu1 %v2448_v44  ;;  %1230 = vmatprep.mubr.bf16.mxu0 %v2449_v45  ;;  %v2120_v45 = vcombine.low %v120_v35, %v122_v36 }
  0xd3   :  { %1519 = vmatprep.mubr.bf16.mxu1 %v2451_v46  ;;  %v2494_v46 = vld [vmem:[%s3400_s0 + $0x364] ss:$16 sps:$4 sm:$0xff]  }
  0xd9   :  { %1231 = vmatmul.mubr.bf16.gmra.mxu0 %v2453_v47 }
  0xda   :  { %1520 = vmatmul.mubr.bf16.gmra.mxu1 %v2454_v48  ;;  %1238 = vmatprep.mubr.bf16.mxu0 %v2455_v49  ;;  %v2496_v48 = vld [vmem:[%s3400_s0 + $0x36c] ss:$16 sps:$4 sm:$0xff]  }
  0xdb   :  { %1527 = vmatprep.mubr.bf16.mxu1 %v2457_v50 }
  0xe1   :  { %1239 = vmatmul.mubr.bf16.gmra.mxu0 %v2459_v51 }
  0xe2   :  { %1528 = vmatmul.mubr.bf16.gmra.mxu1 %v2460_v52  ;;  %1246 = vmatprep.mubr.bf16.mxu0 %v2461_v53 }
  0xe3   :  { %1535 = vmatprep.mubr.bf16.mxu1 %v2463_v54 }
  0xe9   :  { %1247 = vmatmul.mubr.bf16.gmra.mxu0 %v2465_v55 }
  0xea   :  { %1536 = vmatmul.mubr.bf16.gmra.mxu1 %v2466_v56  ;;  %1254 = vmatprep.mubr.bf16.mxu0 %v2467_v57  ;;  %v124_v57 = vld [vmem:[%s3400_s0 + $0x368] sm:$0xff] }
  0xeb   :  { %1543 = vmatprep.mubr.bf16.mxu1 %v2469_v58  ;;  %v126_v58 = vld [vmem:[%s3400_s0 + $0x378] sm:$0xff] }
  0xec   :  { %v2124_v3 = vcombine.low %v124_v57, %v126_v58 }
  0xf1   :  { %1255 = vmatmul.mubr.bf16.gmra.mxu0 %v2471_v59 }
  0xf2   :  { %1544 = vmatmul.mubr.bf16.gmra.mxu1 %v2472_v60  ;;  %1262 = vmatprep.mubr.bf16.mxu0 %v2473_v61 }
  0xf3   :  { %1551 = vmatprep.mubr.bf16.mxu1 %v2475_v62 }
  0xf9   :  { %1263 = vmatmul.mubr.bf16.gmra.mxu0 %v2477_v63  ;;  %v2498_v63 = vld [vmem:[%s3400_s0 + $0x360] ss:$16 sps:$4 sm:$0xff]  }
  0xfa   :  { %1552 = vmatmul.mubr.bf16.gmra.mxu1 %v2478_v0  ;;  %1270 = vmatprep.mubr.bf16.mxu0 %v2479_v1 }
  0xfb   :  { %1559 = vmatprep.mubr.bf16.mxu1 %v2481_v2 }
 0x101   :  { %v1080_v10 = vpop.f32.mrf.mxu0  ;;  %1271 = vmatmul.mubr.bf16.gmra.mxu0 %v2483_v5 }
 0x102   :  { %v1081_v11 = vadd.f32 %v2982_v8, %v1080_v10  ;;  %v1369_v12 = vpop.f32.mrf.mxu1  ;;  %1560 = vmatmul.mubr.bf16.gmra.mxu1 %v2112_v6  ;;  %1278 = vmatprep.mubr.bf16.mxu0 %v2484_v7  ;;  %v2504_v6 = vld [vmem:[%s3400_s0 + $0x38c] ss:$16 sps:$4 sm:$0xff]  }
 0x103   :  { %v1082_v13 = vpop.f32.mrf.mxu0  ;;  %1567 = vmatprep.mubr.bf16.mxu1 %v2486_v9 }
 0x104   :  { %v1370_v16 = vadd.f32 %v1369_v12, %v1081_v11  ;;  %v1371_v17 = vpop.f32.mrf.mxu1 }
 0x105   :  { %v1083_v18 = vpop.f32.mrf.mxu0 }
 0x106   :  { %v1624_v20 = vmax.f32 %v1370_v16, 0.0  ;;  %v1084_v21 = vadd.f32 %v2982_v8, %v1083_v18  ;;  %v1372_v22 = vpop.f32.mrf.mxu1 }
 0x107   :  { %v1085_v25 = vpop.f32.mrf.mxu0 }
 0x108   :  { %v2238_v27 = vpack.c.bf16 %v1624_v20, %v1624_v20  ;;  %v1373_v28 = vadd.f32 %v1372_v22, %v1084_v21  ;;  %v1374_v29 = vpop.f32.mrf.mxu1  ;;  %v2499_v20 = vld [vmem:[%s3400_s0 + $0x380] ss:$16 sps:$4 sm:$0xff]   ;;  %v2507_v25 = vld [vmem:[%s3400_s0 + $0x3a4] ss:$16 sps:$4 sm:$0xff]  }
 0x109   :  { %v1088_v30 = vpop.f32.mrf.mxu0  ;;  %1279 = vmatmul.mubr.bf16.gmra.mxu0 %v2488_v19 }
 0x10a   :  { %1945 = vst.msk [vmem:[%s3402_s3] sm:$0xf] %vm1944_vm0, %v2238_v27  ;;  %v1625_v31 = vmax.f32 %v1373_v28, 0.0  ;;  %v1089_v32 = vadd.f32 %v2982_v8, %v1088_v30  ;;  %v1377_v33 = vpop.f32.mrf.mxu1  ;;  %1568 = vmatmul.mubr.bf16.gmra.mxu1 %v2116_v23  ;;  %1286 = vmatprep.mubr.bf16.mxu0 %v2489_v24  ;;  %v2502_v24 = vld [vmem:[%s3400_s0 + $0x388] ss:$16 sps:$4 sm:$0xff]  }
 0x10b   :  { %v1090_v34 = vpop.f32.mrf.mxu0  ;;  %1575 = vmatprep.mubr.bf16.mxu1 %v2491_v26  ;;  %v2510_v27 = vld [vmem:[%s3400_s0 + $0x3ac] ss:$16 sps:$4 sm:$0xff]  }
 0x10c   :  { %v2239_v37 = vpack.c.bf16 %v1625_v31, %v1625_v31  ;;  %v1378_v38 = vadd.f32 %v1377_v33, %v1089_v32  ;;  %v1379_v39 = vpop.f32.mrf.mxu1 }
 0x10d   :  { %v1091_v40 = vpop.f32.mrf.mxu0 }
 0x10e   :  { %1946 = vst.msk [vmem:[%s3402_s3 + $0x4] sm:$0xf] %vm1944_vm0, %v2239_v37  ;;  %v1626_v42 = vmax.f32 %v1378_v38, 0.0  ;;  %v1092_v43 = vadd.f32 %v2982_v8, %v1091_v40  ;;  %v1380_v44 = vpop.f32.mrf.mxu1  ;;  %v2505_v40 = vld [vmem:[%s3400_s0 + $0x3a0] ss:$16 sps:$4 sm:$0xff]  }
 0x10f   :  { %v1093_v47 = vpop.f32.mrf.mxu0 }
 0x110   :  { %v2240_v49 = vpack.c.bf16 %v1626_v42, %v1626_v42  ;;  %v1381_v50 = vadd.f32 %v1380_v44, %v1092_v43  ;;  %v1382_v51 = vpop.f32.mrf.mxu1  ;;  %v2508_v44 = vld [vmem:[%s3400_s0 + $0x3a8] ss:$16 sps:$4 sm:$0xff]   ;;  %v2516_v47 = vld [vmem:[%s3400_s0 + $0x3cc] ss:$16 sps:$4 sm:$0xff]  }
 0x111   :  { %v1096_v52 = vpop.f32.mrf.mxu0  ;;  %1287 = vmatmul.mubr.bf16.gmra.mxu0 %v2493_v41 }
 0x112   :  { %1947 = vst.msk [vmem:[%s3402_s3 + $0x8] sm:$0xf] %vm1944_vm0, %v2240_v49  ;;  %v1627_v53 = vmax.f32 %v1381_v50, 0.0  ;;  %v1097_v54 = vadd.f32 %v2982_v8, %v1096_v52  ;;  %v1385_v55 = vpop.f32.mrf.mxu1  ;;  %1576 = vmatmul.mubr.bf16.gmra.mxu1 %v2120_v45  ;;  %1294 = vmatprep.mubr.bf16.mxu0 %v2494_v46  ;;  %v2513_v45 = vld [vmem:[%s3400_s0 + $0x3c4] ss:$16 sps:$4 sm:$0xff]  }
 0x113   :  { %v1098_v56 = vpop.f32.mrf.mxu0  ;;  %1583 = vmatprep.mubr.bf16.mxu1 %v2496_v48 }
 0x114   :  { %v2241_v59 = vpack.c.bf16 %v1627_v53, %v1627_v53  ;;  %v1386_v60 = vadd.f32 %v1385_v55, %v1097_v54  ;;  %v1387_v61 = vpop.f32.mrf.mxu1 }
 0x115   :  { %v1099_v62 = vpop.f32.mrf.mxu0 }
 0x116   :  { %1948 = vst.msk [vmem:[%s3402_s3 + $0xc] sm:$0xf] %vm1944_vm0, %v2241_v59  ;;  %v1628_v0 = vmax.f32 %v1386_v60, 0.0  ;;  %v1100_v1 = vadd.f32 %v2982_v8, %v1099_v62  ;;  %v1388_v2 = vpop.f32.mrf.mxu1  ;;  %v2511_v60 = vld [vmem:[%s3400_s0 + $0x3c0] ss:$16 sps:$4 sm:$0xff]  }
 0x117   :  { %v1101_v5 = vpop.f32.mrf.mxu0 }
 0x118   :  { %v2242_v7 = vpack.c.bf16 %v1628_v0, %v1628_v0  ;;  %v1389_v9 = vadd.f32 %v1388_v2, %v1100_v1  ;;  %v1390_v10 = vpop.f32.mrf.mxu1  ;;  %v2514_v0 = vld [vmem:[%s3400_s0 + $0x3c8] ss:$16 sps:$4 sm:$0xff]   ;;  %v2519_v1 = vld [vmem:[%s3400_s0 + $0x3e4] ss:$16 sps:$4 sm:$0xff]  }
 0x119   :  { %v1104_v11 = vpop.f32.mrf.mxu0  ;;  %1295 = vmatmul.mubr.bf16.gmra.mxu0 %v2498_v63 }
 0x11a   :  { %1949 = vst.msk [vmem:[%s3402_s3 + $0x10] sm:$0xf] %vm1944_vm0, %v2242_v7  ;;  %v1629_v12 = vmax.f32 %v1389_v9, 0.0  ;;  %v1105_v13 = vadd.f32 %v2982_v8, %v1104_v11  ;;  %v1393_v14 = vpop.f32.mrf.mxu1  ;;  %1584 = vmatmul.mubr.bf16.gmra.mxu1 %v2124_v3  ;;  %1302 = vmatprep.mubr.bf16.mxu0 %v2501_v4  ;;  %v2522_v3 = vld [vmem:[%s3400_s0 + $0x3ec] ss:$16 sps:$4 sm:$0xff]  }
 0x11b   :  { %v1106_v15 = vpop.f32.mrf.mxu0  ;;  %1591 = vmatprep.mubr.bf16.mxu1 %v2504_v6 }
 0x11c   :  { %v2243_v16 = vpack.c.bf16 %v1629_v12, %v1629_v12  ;;  %v1394_v17 = vadd.f32 %v1393_v14, %v1105_v13  ;;  %v1395_v18 = vpop.f32.mrf.mxu1 }
 0x11d   :  { %v1107_v19 = vpop.f32.mrf.mxu0 }
 0x11e   :  { %1950 = vst.msk [vmem:[%s3402_s3 + $0x14] sm:$0xf] %vm1944_vm0, %v2243_v16  ;;  %v1630_v21 = vmax.f32 %v1394_v17, 0.0  ;;  %v1108_v22 = vadd.f32 %v2982_v8, %v1107_v19  ;;  %v1396_v23 = vpop.f32.mrf.mxu1  ;;  %v2517_v17 = vld [vmem:[%s3400_s0 + $0x3e0] ss:$16 sps:$4 sm:$0xff]  }
 0x11f   :  { %v1109_v26 = vpop.f32.mrf.mxu0 }
 0x120   :  { %v2244_v28 = vpack.c.bf16 %v1630_v21, %v1630_v21  ;;  %v1397_v29 = vadd.f32 %v1396_v23, %v1108_v22  ;;  %v1398_v30 = vpop.f32.mrf.mxu1  ;;  %v2520_v21 = vld [vmem:[%s3400_s0 + $0x3e8] ss:$16 sps:$4 sm:$0xff]  }
 0x121   :  { %v1112_v31 = vpop.f32.mrf.mxu0  ;;  %1303 = vmatmul.mubr.bf16.gmra.mxu0 %v2499_v20 }
 0x122   :  { %1951 = vst.msk [vmem:[%s3402_s3 + $0x18] sm:$0xf] %vm1944_vm0, %v2244_v28  ;;  %v1631_v32 = vmax.f32 %v1397_v29, 0.0  ;;  %v1113_v33 = vadd.f32 %v2982_v8, %v1112_v31  ;;  %v1401_v34 = vpop.f32.mrf.mxu1  ;;  %1592 = vmatmul.mubr.bf16.gmra.mxu1 %v2502_v24  ;;  %1310 = vmatprep.mubr.bf16.mxu0 %v2507_v25 }
 0x123   :  { %v1114_v35 = vpop.f32.mrf.mxu0  ;;  %1599 = vmatprep.mubr.bf16.mxu1 %v2510_v27 }
 0x124   :  { %v2245_v36 = vpack.c.bf16 %v1631_v32, %v1631_v32  ;;  %v1402_v37 = vadd.f32 %v1401_v34, %v1113_v33  ;;  %v1403_v38 = vpop.f32.mrf.mxu1 }
 0x125   :  { %v1115_v39 = vpop.f32.mrf.mxu0 }
 0x126   :  { %1952 = vst.msk [vmem:[%s3402_s3 + $0x1c] sm:$0xf] %vm1944_vm0, %v2245_v36  ;;  %v1632_v41 = vmax.f32 %v1402_v37, 0.0  ;;  %v1116_v42 = vadd.f32 %v2982_v8, %v1115_v39  ;;  %v1404_v43 = vpop.f32.mrf.mxu1 }
 0x127   :  { %v1117_v46 = vpop.f32.mrf.mxu0 }
 0x128   :  { %v2246_v48 = vpack.c.bf16 %v1632_v41, %v1632_v41  ;;  %v1405_v49 = vadd.f32 %v1404_v43, %v1116_v42  ;;  %v1406_v50 = vpop.f32.mrf.mxu1 }
 0x129   :  { %v1120_v51 = vpop.f32.mrf.mxu0  ;;  %1311 = vmatmul.mubr.bf16.gmra.mxu0 %v2505_v40 }
 0x12a   :  { %1953 = vst.msk [vmem:[%s3402_s3 + $0x20] sm:$0xf] %vm1944_vm0, %v2246_v48  ;;  %v1633_v52 = vmax.f32 %v1405_v49, 0.0  ;;  %v1121_v53 = vadd.f32 %v2982_v8, %v1120_v51  ;;  %v1409_v54 = vpop.f32.mrf.mxu1  ;;  %1600 = vmatmul.mubr.bf16.gmra.mxu1 %v2508_v44  ;;  %1318 = vmatprep.mubr.bf16.mxu0 %v2513_v45 }
 0x12b   :  { %v1122_v55 = vpop.f32.mrf.mxu0  ;;  %1607 = vmatprep.mubr.bf16.mxu1 %v2516_v47 }
 0x12c   :  { %v2247_v56 = vpack.c.bf16 %v1633_v52, %v1633_v52  ;;  %v1410_v57 = vadd.f32 %v1409_v54, %v1121_v53  ;;  %v1411_v58 = vpop.f32.mrf.mxu1 }
 0x12d   :  { %v1123_v59 = vpop.f32.mrf.mxu0 }
 0x12e   :  { %1954 = vst.msk [vmem:[%s3402_s3 + $0x24] sm:$0xf] %vm1944_vm0, %v2247_v56  ;;  %v1634_v61 = vmax.f32 %v1410_v57, 0.0  ;;  %v1124_v62 = vadd.f32 %v2982_v8, %v1123_v59  ;;  %v1412_v63 = vpop.f32.mrf.mxu1 }
 0x12f   :  { %v1125_v2 = vpop.f32.mrf.mxu0 }
 0x130   :  { %v2248_v4 = vpack.c.bf16 %v1634_v61, %v1634_v61  ;;  %v1413_v5 = vadd.f32 %v1412_v63, %v1124_v62  ;;  %v1414_v6 = vpop.f32.mrf.mxu1 }
 0x131   :  { %v1128_v7 = vpop.f32.mrf.mxu0  ;;  %1319 = vmatmul.mubr.bf16.gmra.mxu0 %v2511_v60 }
 0x132   :  { %1955 = vst.msk [vmem:[%s3402_s3 + $0x28] sm:$0xf] %vm1944_vm0, %v2248_v4  ;;  %v1635_v9 = vmax.f32 %v1413_v5, 0.0  ;;  %v1129_v10 = vadd.f32 %v2982_v8, %v1128_v7  ;;  %v1417_v11 = vpop.f32.mrf.mxu1  ;;  %1608 = vmatmul.mubr.bf16.gmra.mxu1 %v2514_v0  ;;  %1326 = vmatprep.mubr.bf16.mxu0 %v2519_v1 }
 0x133   :  { %v1130_v12 = vpop.f32.mrf.mxu0  ;;  %1615 = vmatprep.mubr.bf16.mxu1 %v2522_v3 }
 0x134   :  { %v2249_v13 = vpack.c.bf16 %v1635_v9, %v1635_v9  ;;  %v1418_v14 = vadd.f32 %v1417_v11, %v1129_v10  ;;  %v1419_v15 = vpop.f32.mrf.mxu1 }
 0x135   :  { %v1131_v16 = vpop.f32.mrf.mxu0 }
 0x136   :  { %1956 = vst.msk [vmem:[%s3402_s3 + $0x2c] sm:$0xf] %vm1944_vm0, %v2249_v13  ;;  %v1636_v18 = vmax.f32 %v1418_v14, 0.0  ;;  %v1132_v19 = vadd.f32 %v2982_v8, %v1131_v16  ;;  %v1420_v20 = vpop.f32.mrf.mxu1 }
 0x137   :  { %v1133_v22 = vpop.f32.mrf.mxu0 }
 0x138   :  { %v2250_v23 = vpack.c.bf16 %v1636_v18, %v1636_v18  ;;  %v1421_v24 = vadd.f32 %v1420_v20, %v1132_v19  ;;  %v1422_v25 = vpop.f32.mrf.mxu1 }
 0x139   :  { %v1136_v26 = vpop.f32.mrf.mxu0  ;;  %1327 = vmatmul.mubr.bf16.gmra.mxu0 %v2517_v17 }
 0x13a   :  { %1957 = vst.msk [vmem:[%s3402_s3 + $0x30] sm:$0xf] %vm1944_vm0, %v2250_v23  ;;  %v1637_v27 = vmax.f32 %v1421_v24, 0.0  ;;  %v1137_v28 = vadd.f32 %v2982_v8, %v1136_v26  ;;  %v1425_v29 = vpop.f32.mrf.mxu1  ;;  %1616 = vmatmul.mubr.bf16.gmra.mxu1 %v2520_v21 }
 0x13b   :  { %v1138_v30 = vpop.f32.mrf.mxu0 }
 0x13c   :  { %v2251_v31 = vpack.c.bf16 %v1637_v27, %v1637_v27  ;;  %v1426_v32 = vadd.f32 %v1425_v29, %v1137_v28  ;;  %v1427_v33 = vpop.f32.mrf.mxu1 }
 0x13d   :  { %v1139_v34 = vpop.f32.mrf.mxu0 }
 0x13e   :  { %1958 = vst.msk [vmem:[%s3402_s3 + $0x34] sm:$0xf] %vm1944_vm0, %v2251_v31  ;;  %v1638_v35 = vmax.f32 %v1426_v32, 0.0  ;;  %v1140_v36 = vadd.f32 %v2982_v8, %v1139_v34  ;;  %v1428_v37 = vpop.f32.mrf.mxu1 }
 0x13f   :  { %v1141_v38 = vpop.f32.mrf.mxu0 }
 0x140   :  { %v2252_v39 = vpack.c.bf16 %v1638_v35, %v1638_v35  ;;  %v1429_v40 = vadd.f32 %v1428_v37, %v1140_v36  ;;  %v1430_v41 = vpop.f32.mrf.mxu1 }
 0x141   :  { %v1144_v42 = vpop.f32.mrf.mxu0 }
 0x142   :  { %1959 = vst.msk [vmem:[%s3402_s3 + $0x38] sm:$0xf] %vm1944_vm0, %v2252_v39  ;;  %v1639_v43 = vmax.f32 %v1429_v40, 0.0  ;;  %v1145_v44 = vadd.f32 %v2982_v8, %v1144_v42  ;;  %v1433_v45 = vpop.f32.mrf.mxu1 }
 0x143   :  { %v1146_v46 = vpop.f32.mrf.mxu0 }
 0x144   :  { %v2253_v47 = vpack.c.bf16 %v1639_v43, %v1639_v43  ;;  %v1434_v48 = vadd.f32 %v1433_v45, %v1145_v44  ;;  %v1435_v49 = vpop.f32.mrf.mxu1 }
 0x145   :  { %v1147_v50 = vpop.f32.mrf.mxu0 }
 0x146   :  { %1960 = vst.msk [vmem:[%s3402_s3 + $0x3c] sm:$0xf] %vm1944_vm0, %v2253_v47  ;;  %v1640_v51 = vmax.f32 %v1434_v48, 0.0  ;;  %v1148_v52 = vadd.f32 %v2982_v8, %v1147_v50  ;;  %v1436_v53 = vpop.f32.mrf.mxu1 }
 0x147   :  { %v1149_v54 = vpop.f32.mrf.mxu0 }
 0x148   :  { %v2254_v55 = vpack.c.bf16 %v1640_v51, %v1640_v51  ;;  %v1437_v56 = vadd.f32 %v1436_v53, %v1148_v52  ;;  %v1438_v57 = vpop.f32.mrf.mxu1 }
 0x149   :  { %v1152_v58 = vpop.f32.mrf.mxu0 }
 0x14a   :  { %1961 = vst.msk [vmem:[%s3402_s3 + $0x40] sm:$0xf] %vm1944_vm0, %v2254_v55  ;;  %v1641_v59 = vmax.f32 %v1437_v56, 0.0  ;;  %v1153_v60 = vadd.f32 %v2982_v8, %v1152_v58  ;;  %v1441_v61 = vpop.f32.mrf.mxu1 }
 0x14b   :  { %v1154_v62 = vpop.f32.mrf.mxu0 }
 0x14c   :  { %v2255_v63 = vpack.c.bf16 %v1641_v59, %v1641_v59  ;;  %v1442_v0 = vadd.f32 %v1441_v61, %v1153_v60  ;;  %v1443_v1 = vpop.f32.mrf.mxu1 }
 0x14d   :  { %v1155_v2 = vpop.f32.mrf.mxu0 }
 0x14e   :  { %1962 = vst.msk [vmem:[%s3402_s3 + $0x44] sm:$0xf] %vm1944_vm0, %v2255_v63  ;;  %v1642_v3 = vmax.f32 %v1442_v0, 0.0  ;;  %v1156_v4 = vadd.f32 %v2982_v8, %v1155_v2  ;;  %v1444_v5 = vpop.f32.mrf.mxu1 }
 0x14f   :  { %v1157_v6 = vpop.f32.mrf.mxu0 }
 0x150   :  { %v2256_v7 = vpack.c.bf16 %v1642_v3, %v1642_v3  ;;  %v1445_v9 = vadd.f32 %v1444_v5, %v1156_v4  ;;  %v1446_v10 = vpop.f32.mrf.mxu1 }
 0x151   :  { %v1160_v11 = vpop.f32.mrf.mxu0 }
 0x152   :  { %1963 = vst.msk [vmem:[%s3402_s3 + $0x48] sm:$0xf] %vm1944_vm0, %v2256_v7  ;;  %v1643_v12 = vmax.f32 %v1445_v9, 0.0  ;;  %v1161_v13 = vadd.f32 %v2982_v8, %v1160_v11  ;;  %v1449_v14 = vpop.f32.mrf.mxu1 }
 0x153   :  { %v1162_v15 = vpop.f32.mrf.mxu0 }
 0x154   :  { %v2257_v16 = vpack.c.bf16 %v1643_v12, %v1643_v12  ;;  %v1450_v17 = vadd.f32 %v1449_v14, %v1161_v13  ;;  %v1451_v18 = vpop.f32.mrf.mxu1 }
 0x155   :  { %v1163_v19 = vpop.f32.mrf.mxu0 }
 0x156   :  { %1964 = vst.msk [vmem:[%s3402_s3 + $0x4c] sm:$0xf] %vm1944_vm0, %v2257_v16  ;;  %v1644_v20 = vmax.f32 %v1450_v17, 0.0  ;;  %v1164_v21 = vadd.f32 %v2982_v8, %v1163_v19  ;;  %v1452_v22 = vpop.f32.mrf.mxu1 }
 0x157   :  { %v1165_v23 = vpop.f32.mrf.mxu0 }
 0x158   :  { %v2258_v24 = vpack.c.bf16 %v1644_v20, %v1644_v20  ;;  %v1453_v25 = vadd.f32 %v1452_v22, %v1164_v21  ;;  %v1454_v26 = vpop.f32.mrf.mxu1 }
 0x159   :  { %v1168_v27 = vpop.f32.mrf.mxu0 }
 0x15a   :  { %1965 = vst.msk [vmem:[%s3402_s3 + $0x50] sm:$0xf] %vm1944_vm0, %v2258_v24  ;;  %v1645_v28 = vmax.f32 %v1453_v25, 0.0  ;;  %v1169_v29 = vadd.f32 %v2982_v8, %v1168_v27  ;;  %v1457_v30 = vpop.f32.mrf.mxu1 }
 0x15b   :  { %v1170_v31 = vpop.f32.mrf.mxu0 }
 0x15c   :  { %v2259_v32 = vpack.c.bf16 %v1645_v28, %v1645_v28  ;;  %v1458_v33 = vadd.f32 %v1457_v30, %v1169_v29  ;;  %v1459_v34 = vpop.f32.mrf.mxu1 }
 0x15d   :  { %v1171_v35 = vpop.f32.mrf.mxu0 }
 0x15e   :  { %1966 = vst.msk [vmem:[%s3402_s3 + $0x54] sm:$0xf] %vm1944_vm0, %v2259_v32  ;;  %v1646_v36 = vmax.f32 %v1458_v33, 0.0  ;;  %v1172_v37 = vadd.f32 %v2982_v8, %v1171_v35  ;;  %v1460_v38 = vpop.f32.mrf.mxu1 }
 0x15f   :  { %v1173_v39 = vpop.f32.mrf.mxu0 }
 0x160   :  { %v2260_v40 = vpack.c.bf16 %v1646_v36, %v1646_v36  ;;  %v1461_v41 = vadd.f32 %v1460_v38, %v1172_v37  ;;  %v1462_v42 = vpop.f32.mrf.mxu1 }
 0x161   :  { %v1176_v43 = vpop.f32.mrf.mxu0 }
 0x162   :  { %1967 = vst.msk [vmem:[%s3402_s3 + $0x58] sm:$0xf] %vm1944_vm0, %v2260_v40  ;;  %v1647_v44 = vmax.f32 %v1461_v41, 0.0  ;;  %v1177_v45 = vadd.f32 %v2982_v8, %v1176_v43  ;;  %v1465_v46 = vpop.f32.mrf.mxu1 }
 0x163   :  { %v1178_v47 = vpop.f32.mrf.mxu0 }
 0x164   :  { %v2261_v48 = vpack.c.bf16 %v1647_v44, %v1647_v44  ;;  %v1466_v49 = vadd.f32 %v1465_v46, %v1177_v45  ;;  %v1467_v50 = vpop.f32.mrf.mxu1 }
 0x165   :  { %v1179_v51 = vpop.f32.mrf.mxu0 }
 0x166   :  { %1968 = vst.msk [vmem:[%s3402_s3 + $0x5c] sm:$0xf] %vm1944_vm0, %v2261_v48  ;;  %v1648_v52 = vmax.f32 %v1466_v49, 0.0  ;;  %v1180_v53 = vadd.f32 %v2982_v8, %v1179_v51  ;;  %v1468_v54 = vpop.f32.mrf.mxu1 }
 0x167   :  { %v1181_v55 = vpop.f32.mrf.mxu0 }
 0x168   :  { %v2262_v56 = vpack.c.bf16 %v1648_v52, %v1648_v52  ;;  %v1469_v57 = vadd.f32 %v1468_v54, %v1180_v53  ;;  %v1470_v58 = vpop.f32.mrf.mxu1 }
 0x169   :  { %v1184_v59 = vpop.f32.mrf.mxu0 }
 0x16a   :  { %1969 = vst.msk [vmem:[%s3402_s3 + $0x60] sm:$0xf] %vm1944_vm0, %v2262_v56  ;;  %v1649_v60 = vmax.f32 %v1469_v57, 0.0  ;;  %v1185_v61 = vadd.f32 %v2982_v8, %v1184_v59  ;;  %v1473_v62 = vpop.f32.mrf.mxu1 }
 0x16b   :  { %v1186_v63 = vpop.f32.mrf.mxu0 }
 0x16c   :  { %v2263_v0 = vpack.c.bf16 %v1649_v60, %v1649_v60  ;;  %v1474_v1 = vadd.f32 %v1473_v62, %v1185_v61  ;;  %v1475_v2 = vpop.f32.mrf.mxu1 }
 0x16d   :  { %v1187_v3 = vpop.f32.mrf.mxu0 }
 0x16e   :  { %1970 = vst.msk [vmem:[%s3402_s3 + $0x64] sm:$0xf] %vm1944_vm0, %v2263_v0  ;;  %v1650_v4 = vmax.f32 %v1474_v1, 0.0  ;;  %v1188_v5 = vadd.f32 %v2982_v8, %v1187_v3  ;;  %v1476_v6 = vpop.f32.mrf.mxu1 }
 0x16f   :  { %v1189_v7 = vpop.f32.mrf.mxu0 }
 0x170   :  { %v2264_v9 = vpack.c.bf16 %v1650_v4, %v1650_v4  ;;  %v1477_v10 = vadd.f32 %v1476_v6, %v1188_v5  ;;  %v1478_v11 = vpop.f32.mrf.mxu1 }
 0x171   :  { %v1192_v12 = vpop.f32.mrf.mxu0 }
 0x172   :  { %1971 = vst.msk [vmem:[%s3402_s3 + $0x68] sm:$0xf] %vm1944_vm0, %v2264_v9  ;;  %v1651_v13 = vmax.f32 %v1477_v10, 0.0  ;;  %v1193_v14 = vadd.f32 %v2982_v8, %v1192_v12  ;;  %v1481_v15 = vpop.f32.mrf.mxu1 }
 0x173   :  { %v1194_v16 = vpop.f32.mrf.mxu0 }
 0x174   :  { %v2265_v17 = vpack.c.bf16 %v1651_v13, %v1651_v13  ;;  %v1482_v18 = vadd.f32 %v1481_v15, %v1193_v14  ;;  %v1483_v19 = vpop.f32.mrf.mxu1 }
 0x175   :  { %v1195_v20 = vpop.f32.mrf.mxu0 }
 0x176   :  { %1972 = vst.msk [vmem:[%s3402_s3 + $0x6c] sm:$0xf] %vm1944_vm0, %v2265_v17  ;;  %v1652_v21 = vmax.f32 %v1482_v18, 0.0  ;;  %v1196_v22 = vadd.f32 %v2982_v8, %v1195_v20  ;;  %v1484_v23 = vpop.f32.mrf.mxu1 }
 0x177   :  { %v1197_v24 = vpop.f32.mrf.mxu0 }
 0x178   :  { %v2266_v25 = vpack.c.bf16 %v1652_v21, %v1652_v21  ;;  %v1485_v26 = vadd.f32 %v1484_v23, %v1196_v22  ;;  %v1486_v27 = vpop.f32.mrf.mxu1 }
 0x179   :  { %v1200_v28 = vpop.f32.mrf.mxu0 }
 0x17a   :  { %1973 = vst.msk [vmem:[%s3402_s3 + $0x70] sm:$0xf] %vm1944_vm0, %v2266_v25  ;;  %v1653_v29 = vmax.f32 %v1485_v26, 0.0  ;;  %v1201_v30 = vadd.f32 %v2982_v8, %v1200_v28  ;;  %v1489_v31 = vpop.f32.mrf.mxu1 }
 0x17b   :  { %v1202_v32 = vpop.f32.mrf.mxu0 }
 0x17c   :  { %v2267_v33 = vpack.c.bf16 %v1653_v29, %v1653_v29  ;;  %v1490_v34 = vadd.f32 %v1489_v31, %v1201_v30  ;;  %v1491_v35 = vpop.f32.mrf.mxu1 }
 0x17d   :  { %v1203_v36 = vpop.f32.mrf.mxu0 }
 0x17e   :  { %1974 = vst.msk [vmem:[%s3402_s3 + $0x74] sm:$0xf] %vm1944_vm0, %v2267_v33  ;;  %v1654_v37 = vmax.f32 %v1490_v34, 0.0  ;;  %v1204_v38 = vadd.f32 %v2982_v8, %v1203_v36  ;;  %v1492_v39 = vpop.f32.mrf.mxu1 }
 0x17f   :  { %v1205_v40 = vpop.f32.mrf.mxu0 }
 0x180   :  { %v2268_v41 = vpack.c.bf16 %v1654_v37, %v1654_v37  ;;  %v1493_v42 = vadd.f32 %v1492_v39, %v1204_v38  ;;  %v1494_v43 = vpop.f32.mrf.mxu1 }
 0x181   :  { %v1208_v44 = vpop.f32.mrf.mxu0 }
 0x182   :  { %1975 = vst.msk [vmem:[%s3402_s3 + $0x78] sm:$0xf] %vm1944_vm0, %v2268_v41  ;;  %v1655_v45 = vmax.f32 %v1493_v42, 0.0  ;;  %v1209_v46 = vadd.f32 %v2982_v8, %v1208_v44  ;;  %v1497_v47 = vpop.f32.mrf.mxu1 }
 0x183   :  { %v1210_v48 = vpop.f32.mrf.mxu0 }
 0x184   :  { %v2269_v49 = vpack.c.bf16 %v1655_v45, %v1655_v45  ;;  %v1498_v50 = vadd.f32 %v1497_v47, %v1209_v46  ;;  %v1499_v51 = vpop.f32.mrf.mxu1 }
 0x185   :  { %v1211_v52 = vpop.f32.mrf.mxu0 }
 0x186   :  { %1976 = vst.msk [vmem:[%s3402_s3 + $0x7c] sm:$0xf] %vm1944_vm0, %v2269_v49  ;;  %v1656_v53 = vmax.f32 %v1498_v50, 0.0  ;;  %v1212_v54 = vadd.f32 %v2982_v8, %v1211_v52  ;;  %v1500_v55 = vpop.f32.mrf.mxu1 }
 0x187   :  { %v1213_v56 = vpop.f32.mrf.mxu0 }
 0x188   :  { %v2270_v57 = vpack.c.bf16 %v1656_v53, %v1656_v53  ;;  %v1501_v58 = vadd.f32 %v1500_v55, %v1212_v54  ;;  %v1502_v59 = vpop.f32.mrf.mxu1 }
 0x189   :  { %v1216_v60 = vpop.f32.mrf.mxu0 }
 0x18a   :  { %1977 = vst.msk [vmem:[%s3402_s3 + $0x80] sm:$0xf] %vm1944_vm0, %v2270_v57  ;;  %v1657_v61 = vmax.f32 %v1501_v58, 0.0  ;;  %v1217_v62 = vadd.f32 %v2982_v8, %v1216_v60  ;;  %v1505_v63 = vpop.f32.mrf.mxu1 }
 0x18b   :  { %v1218_v0 = vpop.f32.mrf.mxu0 }
 0x18c   :  { %v2271_v1 = vpack.c.bf16 %v1657_v61, %v1657_v61  ;;  %v1506_v2 = vadd.f32 %v1505_v63, %v1217_v62  ;;  %v1507_v3 = vpop.f32.mrf.mxu1 }
 0x18d   :  { %v1219_v4 = vpop.f32.mrf.mxu0 }
 0x18e   :  { %1978 = vst.msk [vmem:[%s3402_s3 + $0x84] sm:$0xf] %vm1944_vm0, %v2271_v1  ;;  %v1658_v5 = vmax.f32 %v1506_v2, 0.0  ;;  %v1220_v6 = vadd.f32 %v2982_v8, %v1219_v4  ;;  %v1508_v7 = vpop.f32.mrf.mxu1 }
 0x18f   :  { %v1221_v9 = vpop.f32.mrf.mxu0 }
 0x190   :  { %v2272_v10 = vpack.c.bf16 %v1658_v5, %v1658_v5  ;;  %v1509_v11 = vadd.f32 %v1508_v7, %v1220_v6  ;;  %v1510_v12 = vpop.f32.mrf.mxu1 }
 0x191   :  { %v1224_v13 = vpop.f32.mrf.mxu0 }
 0x192   :  { %1979 = vst.msk [vmem:[%s3402_s3 + $0x88] sm:$0xf] %vm1944_vm0, %v2272_v10  ;;  %v1659_v14 = vmax.f32 %v1509_v11, 0.0  ;;  %v1225_v15 = vadd.f32 %v2982_v8, %v1224_v13  ;;  %v1513_v16 = vpop.f32.mrf.mxu1 }
 0x193   :  { %v1226_v17 = vpop.f32.mrf.mxu0 }
 0x194   :  { %v2273_v18 = vpack.c.bf16 %v1659_v14, %v1659_v14  ;;  %v1514_v19 = vadd.f32 %v1513_v16, %v1225_v15  ;;  %v1515_v20 = vpop.f32.mrf.mxu1 }
 0x195   :  { %v1227_v21 = vpop.f32.mrf.mxu0 }
 0x196   :  { %1980 = vst.msk [vmem:[%s3402_s3 + $0x8c] sm:$0xf] %vm1944_vm0, %v2273_v18  ;;  %v1660_v22 = vmax.f32 %v1514_v19, 0.0  ;;  %v1228_v23 = vadd.f32 %v2982_v8, %v1227_v21  ;;  %v1516_v24 = vpop.f32.mrf.mxu1 }
 0x197   :  { %v1229_v25 = vpop.f32.mrf.mxu0 }
 0x198   :  { %v2274_v26 = vpack.c.bf16 %v1660_v22, %v1660_v22  ;;  %v1517_v27 = vadd.f32 %v1516_v24, %v1228_v23  ;;  %v1518_v28 = vpop.f32.mrf.mxu1 }
 0x199   :  { %v1232_v29 = vpop.f32.mrf.mxu0 }
 0x19a   :  { %1981 = vst.msk [vmem:[%s3402_s3 + $0x90] sm:$0xf] %vm1944_vm0, %v2274_v26  ;;  %v1661_v30 = vmax.f32 %v1517_v27, 0.0  ;;  %v1233_v31 = vadd.f32 %v2982_v8, %v1232_v29  ;;  %v1521_v32 = vpop.f32.mrf.mxu1 }
 0x19b   :  { %v1234_v33 = vpop.f32.mrf.mxu0 }
 0x19c   :  { %v2275_v34 = vpack.c.bf16 %v1661_v30, %v1661_v30  ;;  %v1522_v35 = vadd.f32 %v1521_v32, %v1233_v31  ;;  %v1523_v36 = vpop.f32.mrf.mxu1 }
 0x19d   :  { %v1235_v37 = vpop.f32.mrf.mxu0 }
 0x19e   :  { %1982 = vst.msk [vmem:[%s3402_s3 + $0x94] sm:$0xf] %vm1944_vm0, %v2275_v34  ;;  %v1662_v38 = vmax.f32 %v1522_v35, 0.0  ;;  %v1236_v39 = vadd.f32 %v2982_v8, %v1235_v37  ;;  %v1524_v40 = vpop.f32.mrf.mxu1 }
 0x19f   :  { %v1237_v41 = vpop.f32.mrf.mxu0 }
 0x1a0   :  { %v2276_v42 = vpack.c.bf16 %v1662_v38, %v1662_v38  ;;  %v1525_v43 = vadd.f32 %v1524_v40, %v1236_v39  ;;  %v1526_v44 = vpop.f32.mrf.mxu1 }
 0x1a1   :  { %v1240_v45 = vpop.f32.mrf.mxu0 }
 0x1a2   :  { %1983 = vst.msk [vmem:[%s3402_s3 + $0x98] sm:$0xf] %vm1944_vm0, %v2276_v42  ;;  %v1663_v46 = vmax.f32 %v1525_v43, 0.0  ;;  %v1241_v47 = vadd.f32 %v2982_v8, %v1240_v45  ;;  %v1529_v48 = vpop.f32.mrf.mxu1 }
 0x1a3   :  { %v1242_v49 = vpop.f32.mrf.mxu0 }
 0x1a4   :  { %v2277_v50 = vpack.c.bf16 %v1663_v46, %v1663_v46  ;;  %v1530_v51 = vadd.f32 %v1529_v48, %v1241_v47  ;;  %v1531_v52 = vpop.f32.mrf.mxu1 }
 0x1a5   :  { %v1243_v53 = vpop.f32.mrf.mxu0 }
 0x1a6   :  { %1984 = vst.msk [vmem:[%s3402_s3 + $0x9c] sm:$0xf] %vm1944_vm0, %v2277_v50  ;;  %v1664_v54 = vmax.f32 %v1530_v51, 0.0  ;;  %v1244_v55 = vadd.f32 %v2982_v8, %v1243_v53  ;;  %v1532_v56 = vpop.f32.mrf.mxu1 }
 0x1a7   :  { %v1245_v57 = vpop.f32.mrf.mxu0 }
 0x1a8   :  { %v2278_v58 = vpack.c.bf16 %v1664_v54, %v1664_v54  ;;  %v1533_v59 = vadd.f32 %v1532_v56, %v1244_v55  ;;  %v1534_v60 = vpop.f32.mrf.mxu1 }
 0x1a9   :  { %v1248_v61 = vpop.f32.mrf.mxu0 }
 0x1aa   :  { %1985 = vst.msk [vmem:[%s3402_s3 + $0xa0] sm:$0xf] %vm1944_vm0, %v2278_v58  ;;  %v1665_v62 = vmax.f32 %v1533_v59, 0.0  ;;  %v1249_v63 = vadd.f32 %v2982_v8, %v1248_v61  ;;  %v1537_v0 = vpop.f32.mrf.mxu1 }
 0x1ab   :  { %v1250_v1 = vpop.f32.mrf.mxu0 }
 0x1ac   :  { %v2279_v2 = vpack.c.bf16 %v1665_v62, %v1665_v62  ;;  %v1538_v3 = vadd.f32 %v1537_v0, %v1249_v63  ;;  %v1539_v4 = vpop.f32.mrf.mxu1  ;;  %v3323_v0 = vld [vmem:[%s3401_s2] ss:$0 sm:$0xff] }
 0x1ad   :  { %v1251_v5 = vpop.f32.mrf.mxu0 }
 0x1ae   :  { %1986 = vst.msk [vmem:[%s3402_s3 + $0xa4] sm:$0xf] %vm1944_vm0, %v2279_v2  ;;  %v1666_v6 = vmax.f32 %v1538_v3, 0.0  ;;  %v1252_v7 = vadd.f32 %v2982_v8, %v1251_v5  ;;  %v1540_v9 = vpop.f32.mrf.mxu1 }
 0x1af   :  { %v1253_v10 = vpop.f32.mrf.mxu0 }
 0x1b0   :  { %v2280_v11 = vpack.c.bf16 %v1666_v6, %v1666_v6  ;;  %v1541_v12 = vadd.f32 %v1540_v9, %v1252_v7  ;;  %v1542_v13 = vpop.f32.mrf.mxu1 }
 0x1b1   :  { %v1256_v14 = vpop.f32.mrf.mxu0 }
 0x1b2   :  { %1987 = vst.msk [vmem:[%s3402_s3 + $0xa8] sm:$0xf] %vm1944_vm0, %v2280_v11  ;;  %v1667_v15 = vmax.f32 %v1541_v12, 0.0  ;;  %v1257_v16 = vadd.f32 %v2982_v8, %v1256_v14  ;;  %v1545_v17 = vpop.f32.mrf.mxu1 }
 0x1b3   :  { %v1258_v18 = vpop.f32.mrf.mxu0 }
 0x1b4   :  { %v2281_v19 = vpack.c.bf16 %v1667_v15, %v1667_v15  ;;  %v1546_v20 = vadd.f32 %v1545_v17, %v1257_v16  ;;  %v1547_v21 = vpop.f32.mrf.mxu1 }
 0x1b5   :  { %v1259_v22 = vpop.f32.mrf.mxu0 }
 0x1b6   :  { %1988 = vst.msk [vmem:[%s3402_s3 + $0xac] sm:$0xf] %vm1944_vm0, %v2281_v19  ;;  %v1668_v23 = vmax.f32 %v1546_v20, 0.0  ;;  %v1260_v24 = vadd.f32 %v2982_v8, %v1259_v22  ;;  %v1548_v25 = vpop.f32.mrf.mxu1 }
 0x1b7   :  { %v1261_v26 = vpop.f32.mrf.mxu0 }
 0x1b8   :  { %v2282_v27 = vpack.c.bf16 %v1668_v23, %v1668_v23  ;;  %v1549_v28 = vadd.f32 %v1548_v25, %v1260_v24  ;;  %v1550_v29 = vpop.f32.mrf.mxu1 }
 0x1b9   :  { %v1264_v30 = vpop.f32.mrf.mxu0 }
 0x1ba   :  { %1989 = vst.msk [vmem:[%s3402_s3 + $0xb0] sm:$0xf] %vm1944_vm0, %v2282_v27  ;;  %v1669_v31 = vmax.f32 %v1549_v28, 0.0  ;;  %v1265_v32 = vadd.f32 %v2982_v8, %v1264_v30  ;;  %v1553_v33 = vpop.f32.mrf.mxu1 }
 0x1bb   :  { %v1266_v34 = vpop.f32.mrf.mxu0 }
 0x1bc   :  { %v2283_v35 = vpack.c.bf16 %v1669_v31, %v1669_v31  ;;  %v1554_v36 = vadd.f32 %v1553_v33, %v1265_v32  ;;  %v1555_v37 = vpop.f32.mrf.mxu1 }
 0x1bd   :  { %v1267_v38 = vpop.f32.mrf.mxu0 }
 0x1be   :  { %1990 = vst.msk [vmem:[%s3402_s3 + $0xb4] sm:$0xf] %vm1944_vm0, %v2283_v35  ;;  %v1670_v39 = vmax.f32 %v1554_v36, 0.0  ;;  %v1268_v40 = vadd.f32 %v2982_v8, %v1267_v38  ;;  %v1556_v41 = vpop.f32.mrf.mxu1 }
 0x1bf   :  { %v1269_v42 = vpop.f32.mrf.mxu0 }
 0x1c0   :  { %v2284_v43 = vpack.c.bf16 %v1670_v39, %v1670_v39  ;;  %v1557_v44 = vadd.f32 %v1556_v41, %v1268_v40  ;;  %v1558_v45 = vpop.f32.mrf.mxu1 }
 0x1c1   :  { %v1272_v46 = vpop.f32.mrf.mxu0 }
 0x1c2   :  { %1991 = vst.msk [vmem:[%s3402_s3 + $0xb8] sm:$0xf] %vm1944_vm0, %v2284_v43  ;;  %v1671_v47 = vmax.f32 %v1557_v44, 0.0  ;;  %v1273_v48 = vadd.f32 %v2982_v8, %v1272_v46  ;;  %v1561_v49 = vpop.f32.mrf.mxu1 }
 0x1c3   :  { %v1274_v50 = vpop.f32.mrf.mxu0 }
 0x1c4   :  { %v2285_v51 = vpack.c.bf16 %v1671_v47, %v1671_v47  ;;  %v1562_v52 = vadd.f32 %v1561_v49, %v1273_v48  ;;  %v1563_v53 = vpop.f32.mrf.mxu1 }
 0x1c5   :  { %v1275_v54 = vpop.f32.mrf.mxu0 }
 0x1c6   :  { %1992 = vst.msk [vmem:[%s3402_s3 + $0xbc] sm:$0xf] %vm1944_vm0, %v2285_v51  ;;  %v1672_v55 = vmax.f32 %v1562_v52, 0.0  ;;  %v1276_v56 = vadd.f32 %v2982_v8, %v1275_v54  ;;  %v1564_v57 = vpop.f32.mrf.mxu1 }
 0x1c7   :  { %v1277_v58 = vpop.f32.mrf.mxu0 }
 0x1c8   :  { %v2286_v59 = vpack.c.bf16 %v1672_v55, %v1672_v55  ;;  %v1565_v60 = vadd.f32 %v1564_v57, %v1276_v56  ;;  %v1566_v61 = vpop.f32.mrf.mxu1 }
 0x1c9   :  { %v1280_v62 = vpop.f32.mrf.mxu0 }
 0x1ca   :  { %1993 = vst.msk [vmem:[%s3402_s3 + $0xc0] sm:$0xf] %vm1944_vm0, %v2286_v59  ;;  %v1673_v63 = vmax.f32 %v1565_v60, 0.0  ;;  %v1281_v1 = vadd.f32 %v3323_v0, %v1280_v62  ;;  %v1569_v8 = vpop.f32.mrf.mxu1 }
 0x1cb   :  { %v1282_v2 = vpop.f32.mrf.mxu0 }
 0x1cc   :  { %v2287_v3 = vpack.c.bf16 %v1673_v63, %v1673_v63  ;;  %v1570_v4 = vadd.f32 %v1569_v8, %v1281_v1  ;;  %v1571_v5 = vpop.f32.mrf.mxu1 }
 0x1cd   :  { %v1283_v6 = vpop.f32.mrf.mxu0 }
 0x1ce   :  { %1994 = vst.msk [vmem:[%s3402_s3 + $0xc4] sm:$0xf] %vm1944_vm0, %v2287_v3  ;;  %v1674_v7 = vmax.f32 %v1570_v4, 0.0  ;;  %v1284_v9 = vadd.f32 %v3323_v0, %v1283_v6  ;;  %v1572_v10 = vpop.f32.mrf.mxu1 }
 0x1cf   :  { %v1285_v11 = vpop.f32.mrf.mxu0 }
 0x1d0   :  { %v2288_v12 = vpack.c.bf16 %v1674_v7, %v1674_v7  ;;  %v1573_v13 = vadd.f32 %v1572_v10, %v1284_v9  ;;  %v1574_v14 = vpop.f32.mrf.mxu1 }
 0x1d1   :  { %v1288_v15 = vpop.f32.mrf.mxu0 }
 0x1d2   :  { %1995 = vst.msk [vmem:[%s3402_s3 + $0xc8] sm:$0xf] %vm1944_vm0, %v2288_v12  ;;  %v1675_v16 = vmax.f32 %v1573_v13, 0.0  ;;  %v1289_v17 = vadd.f32 %v3323_v0, %v1288_v15  ;;  %v1577_v18 = vpop.f32.mrf.mxu1 }
 0x1d3   :  { %v1290_v19 = vpop.f32.mrf.mxu0 }
 0x1d4   :  { %v2289_v20 = vpack.c.bf16 %v1675_v16, %v1675_v16  ;;  %v1578_v21 = vadd.f32 %v1577_v18, %v1289_v17  ;;  %v1579_v22 = vpop.f32.mrf.mxu1 }
 0x1d5   :  { %v1291_v23 = vpop.f32.mrf.mxu0 }
 0x1d6   :  { %1996 = vst.msk [vmem:[%s3402_s3 + $0xcc] sm:$0xf] %vm1944_vm0, %v2289_v20  ;;  %v1676_v24 = vmax.f32 %v1578_v21, 0.0  ;;  %v1292_v25 = vadd.f32 %v3323_v0, %v1291_v23  ;;  %v1580_v26 = vpop.f32.mrf.mxu1 }
 0x1d7   :  { %v1293_v27 = vpop.f32.mrf.mxu0 }
 0x1d8   :  { %v2290_v28 = vpack.c.bf16 %v1676_v24, %v1676_v24  ;;  %v1581_v29 = vadd.f32 %v1580_v26, %v1292_v25  ;;  %v1582_v30 = vpop.f32.mrf.mxu1 }
 0x1d9   :  { %v1296_v31 = vpop.f32.mrf.mxu0 }
 0x1da   :  { %1997 = vst.msk [vmem:[%s3402_s3 + $0xd0] sm:$0xf] %vm1944_vm0, %v2290_v28  ;;  %v1677_v32 = vmax.f32 %v1581_v29, 0.0  ;;  %v1297_v33 = vadd.f32 %v3323_v0, %v1296_v31  ;;  %v1585_v34 = vpop.f32.mrf.mxu1 }
 0x1db   :  { %v1298_v35 = vpop.f32.mrf.mxu0 }
 0x1dc   :  { %v2291_v36 = vpack.c.bf16 %v1677_v32, %v1677_v32  ;;  %v1586_v37 = vadd.f32 %v1585_v34, %v1297_v33  ;;  %v1587_v38 = vpop.f32.mrf.mxu1 }
 0x1dd   :  { %v1299_v39 = vpop.f32.mrf.mxu0 }
 0x1de   :  { %1998 = vst.msk [vmem:[%s3402_s3 + $0xd4] sm:$0xf] %vm1944_vm0, %v2291_v36  ;;  %v1678_v40 = vmax.f32 %v1586_v37, 0.0  ;;  %v1300_v41 = vadd.f32 %v3323_v0, %v1299_v39  ;;  %v1588_v42 = vpop.f32.mrf.mxu1 }
 0x1df   :  { %v1301_v43 = vpop.f32.mrf.mxu0 }
 0x1e0   :  { %v2292_v44 = vpack.c.bf16 %v1678_v40, %v1678_v40  ;;  %v1589_v45 = vadd.f32 %v1588_v42, %v1300_v41  ;;  %v1590_v46 = vpop.f32.mrf.mxu1 }
 0x1e1   :  { %v1304_v47 = vpop.f32.mrf.mxu0 }
 0x1e2   :  { %1999 = vst.msk [vmem:[%s3402_s3 + $0xd8] sm:$0xf] %vm1944_vm0, %v2292_v44  ;;  %v1679_v48 = vmax.f32 %v1589_v45, 0.0  ;;  %v1305_v49 = vadd.f32 %v3323_v0, %v1304_v47  ;;  %v1593_v50 = vpop.f32.mrf.mxu1 }
 0x1e3   :  { %v1306_v51 = vpop.f32.mrf.mxu0 }
 0x1e4   :  { %v2293_v52 = vpack.c.bf16 %v1679_v48, %v1679_v48  ;;  %v1594_v53 = vadd.f32 %v1593_v50, %v1305_v49  ;;  %v1595_v54 = vpop.f32.mrf.mxu1 }
 0x1e5   :  { %v1307_v55 = vpop.f32.mrf.mxu0 }
 0x1e6   :  { %2000 = vst.msk [vmem:[%s3402_s3 + $0xdc] sm:$0xf] %vm1944_vm0, %v2293_v52  ;;  %v1680_v56 = vmax.f32 %v1594_v53, 0.0  ;;  %v1308_v57 = vadd.f32 %v3323_v0, %v1307_v55  ;;  %v1596_v58 = vpop.f32.mrf.mxu1 }
 0x1e7   :  { %v1309_v59 = vpop.f32.mrf.mxu0 }
 0x1e8   :  { %v2294_v60 = vpack.c.bf16 %v1680_v56, %v1680_v56  ;;  %v1597_v61 = vadd.f32 %v1596_v58, %v1308_v57  ;;  %v1598_v62 = vpop.f32.mrf.mxu1 }
 0x1e9   :  { %v1312_v63 = vpop.f32.mrf.mxu0 }
 0x1ea   :  { %2001 = vst.msk [vmem:[%s3402_s3 + $0xe0] sm:$0xf] %vm1944_vm0, %v2294_v60  ;;  %v1681_v1 = vmax.f32 %v1597_v61, 0.0  ;;  %v1313_v8 = vadd.f32 %v3323_v0, %v1312_v63  ;;  %v1601_v2 = vpop.f32.mrf.mxu1 }
 0x1eb   :  { %v1314_v3 = vpop.f32.mrf.mxu0 }
 0x1ec   :  { %v2295_v4 = vpack.c.bf16 %v1681_v1, %v1681_v1  ;;  %v1602_v5 = vadd.f32 %v1601_v2, %v1313_v8  ;;  %v1603_v6 = vpop.f32.mrf.mxu1 }
 0x1ed   :  { %v1315_v7 = vpop.f32.mrf.mxu0 }
 0x1ee   :  { %2002 = vst.msk [vmem:[%s3402_s3 + $0xe4] sm:$0xf] %vm1944_vm0, %v2295_v4  ;;  %v1682_v9 = vmax.f32 %v1602_v5, 0.0  ;;  %v1316_v10 = vadd.f32 %v3323_v0, %v1315_v7  ;;  %v1604_v11 = vpop.f32.mrf.mxu1 }
 0x1ef   :  { %v1317_v12 = vpop.f32.mrf.mxu0 }
 0x1f0   :  { %v2296_v13 = vpack.c.bf16 %v1682_v9, %v1682_v9  ;;  %v1605_v14 = vadd.f32 %v1604_v11, %v1316_v10  ;;  %v1606_v15 = vpop.f32.mrf.mxu1 }
 0x1f1   :  { %v1320_v16 = vpop.f32.mrf.mxu0 }
 0x1f2   :  { %2003 = vst.msk [vmem:[%s3402_s3 + $0xe8] sm:$0xf] %vm1944_vm0, %v2296_v13  ;;  %v1683_v17 = vmax.f32 %v1605_v14, 0.0  ;;  %v1321_v18 = vadd.f32 %v3323_v0, %v1320_v16  ;;  %v1609_v19 = vpop.f32.mrf.mxu1 }
 0x1f3   :  { %v1322_v20 = vpop.f32.mrf.mxu0 }
 0x1f4   :  { %v2297_v21 = vpack.c.bf16 %v1683_v17, %v1683_v17  ;;  %v1610_v22 = vadd.f32 %v1609_v19, %v1321_v18  ;;  %v1611_v23 = vpop.f32.mrf.mxu1 }
 0x1f5   :  { %v1323_v24 = vpop.f32.mrf.mxu0 }
 0x1f6   :  { %2004 = vst.msk [vmem:[%s3402_s3 + $0xec] sm:$0xf] %vm1944_vm0, %v2297_v21  ;;  %v1684_v25 = vmax.f32 %v1610_v22, 0.0  ;;  %v1324_v26 = vadd.f32 %v3323_v0, %v1323_v24  ;;  %v1612_v27 = vpop.f32.mrf.mxu1 }
 0x1f7   :  { %v1325_v28 = vpop.f32.mrf.mxu0 }
 0x1f8   :  { %v2298_v29 = vpack.c.bf16 %v1684_v25, %v1684_v25  ;;  %v1613_v30 = vadd.f32 %v1612_v27, %v1324_v26  ;;  %v1614_v31 = vpop.f32.mrf.mxu1 }
 0x1f9   :  { %v1328_v32 = vpop.f32.mrf.mxu0 }
 0x1fa   :  { %2005 = vst.msk [vmem:[%s3402_s3 + $0xf0] sm:$0xf] %vm1944_vm0, %v2298_v29  ;;  %v1685_v33 = vmax.f32 %v1613_v30, 0.0  ;;  %v1329_v34 = vadd.f32 %v3323_v0, %v1328_v32  ;;  %v1617_v35 = vpop.f32.mrf.mxu1 }
 0x1fb   :  { %v1330_v36 = vpop.f32.mrf.mxu0 }
 0x1fc   :  { %v2299_v37 = vpack.c.bf16 %v1685_v33, %v1685_v33  ;;  %v1618_v38 = vadd.f32 %v1617_v35, %v1329_v34  ;;  %v1619_v39 = vpop.f32.mrf.mxu1 }
 0x1fd   :  { %v1331_v40 = vpop.f32.mrf.mxu0 }
 0x1fe   :  { %2006 = vst.msk [vmem:[%s3402_s3 + $0xf4] sm:$0xf] %vm1944_vm0, %v2299_v37  ;;  %v1686_v41 = vmax.f32 %v1618_v38, 0.0  ;;  %v1332_v42 = vadd.f32 %v3323_v0, %v1331_v40  ;;  %v1620_v43 = vpop.f32.mrf.mxu1 }
 0x1ff   :  { %v1333_v44 = vpop.f32.mrf.mxu0 }
 0x200   :  { %v2300_v45 = vpack.c.bf16 %v1686_v41, %v1686_v41  ;;  %v1621_v46 = vadd.f32 %v1620_v43, %v1332_v42  ;;  %v1622_v47 = vpop.f32.mrf.mxu1 }
 0x202   :  { %2007 = vst.msk [vmem:[%s3402_s3 + $0xf8] sm:$0xf] %vm1944_vm0, %v2300_v45  ;;  %v1687_v48 = vmax.f32 %v1621_v46, 0.0 }
 0x204   :  { %v2301_v49 = vpack.c.bf16 %v1687_v48, %v1687_v48 }
 0x206   :  { %2008 = vst.msk [vmem:[%s3402_s3 + $0xfc] sm:$0xf] %vm1944_vm0, %v2301_v49 }

// kernel: vae_forward.11
= control target key start
LH: loop header
LB: loop body
LE: loop exit
PB: predicated region body
PF: predicated region fallthrough
CT: control target
= control target key end

     0   :  { %vm744_vm0 = vcmask 519168   ;;  %s1367_s1 = inlined_call_operand.vmem [shape: bf16[512,64], index: 1, kind: input, shape index: {}]   ;;  %s1368_s0 = inlined_call_operand.vmem [shape: bf16[128,512], index: 0, kind: input, shape index: {}]   ;;  %s1369_s2 = inlined_call_operand.vmem [shape: f32[1,64], index: 2, kind: input, shape index: {}]   ;;  %s1370_s3 = inlined_call_operand.vmem [shape: bf16[128,64], index: 3, kind: output, shape index: {}]  }
   0x1   :  { %v990_v0 = vld [vmem:[%s1367_s1 + $0x78] sm:$0xff]   ;;  %v994_v4 = vld [vmem:[%s1367_s1 + $0x70] sm:$0xff]   ;;  %v998_v8 = vld [vmem:[%s1367_s1 + $0x68] sm:$0xff]  }
   0x2   :  { %v991_v1 = vld [vmem:[%s1367_s1 + $0xf8] sm:$0xff]   ;;  %862 = vmatprep.subr.bf16.mxu0 %v990_v0  ;;  %v995_v5 = vld [vmem:[%s1367_s1 + $0xf0] sm:$0xff]   ;;  %v999_v9 = vld [vmem:[%s1367_s1 + $0xe8] sm:$0xff]  }
   0x3   :  { %v992_v2 = vld [vmem:[%s1367_s1 + $0x38] sm:$0xff]   ;;  %926 = vmatprep.subr.bf16.mxu1 %v991_v1  ;;  %v996_v6 = vld [vmem:[%s1367_s1 + $0x30] sm:$0xff]   ;;  %v1000_v10 = vld [vmem:[%s1367_s1 + $0x28] sm:$0xff]  }
   0x4   :  { %v993_v3 = vld [vmem:[%s1367_s1 + $0xb8] sm:$0xff]   ;;  %863 = vmatpush3.bf16.msra.mxu0 %v992_v2  ;;  %v997_v7 = vld [vmem:[%s1367_s1 + $0xb0] sm:$0xff]   ;;  %v1001_v11 = vld [vmem:[%s1367_s1 + $0xa8] sm:$0xff]  }
   0x5   :  { %927 = vmatpush3.bf16.msra.mxu1 %v993_v3  ;;  %864 = vmatprep.subr.bf16.mxu0 %v994_v4  ;;  %v1002_v12 = vld [vmem:[%s1367_s1 + $0x60] sm:$0xff]   ;;  %v1006_v16 = vld [vmem:[%s1367_s1 + $0x58] sm:$0xff]   ;;  %v1010_v20 = vld [vmem:[%s1367_s1 + $0x50] sm:$0xff]  }
   0x6   :  { %928 = vmatprep.subr.bf16.mxu1 %v995_v5  ;;  %v1003_v13 = vld [vmem:[%s1367_s1 + $0xe0] sm:$0xff]   ;;  %v1007_v17 = vld [vmem:[%s1367_s1 + $0xd8] sm:$0xff]   ;;  %v1011_v21 = vld [vmem:[%s1367_s1 + $0xd0] sm:$0xff]  }
   0x7   :  { %v1004_v14 = vld [vmem:[%s1367_s1 + $0x20] sm:$0xff]   ;;  %v1008_v18 = vld [vmem:[%s1367_s1 + $0x18] sm:$0xff]   ;;  %v1012_v22 = vld [vmem:[%s1367_s1 + $0x10] sm:$0xff]  }
   0x8   :  { %865 = vmatpush3.bf16.msra.mxu0 %v996_v6  ;;  %v1005_v15 = vld [vmem:[%s1367_s1 + $0xa0] sm:$0xff]   ;;  %v1009_v19 = vld [vmem:[%s1367_s1 + $0x98] sm:$0xff]   ;;  %v1013_v23 = vld [vmem:[%s1367_s1 + $0x90] sm:$0xff]  }
   0x9   :  { %929 = vmatpush3.bf16.msra.mxu1 %v997_v7  ;;  %866 = vmatprep.subr.bf16.mxu0 %v998_v8  ;;  %v1014_v24 = vld [vmem:[%s1367_s1 + $0x48] sm:$0xff]   ;;  %v1018_v28 = vld [vmem:[%s1367_s1 + $0x40] sm:$0xff]  }
   0xa   :  { %930 = vmatprep.subr.bf16.mxu1 %v999_v9  ;;  %v1015_v25 = vld [vmem:[%s1367_s1 + $0xc8] sm:$0xff]   ;;  %v1019_v29 = vld [vmem:[%s1367_s1 + $0xc0] sm:$0xff]  }
   0xb   :  { %v1016_v26 = vld [vmem:[%s1367_s1 + $0x8] sm:$0xff]   ;;  %v1020_v30 = vld [vmem:[%s1367_s1] sm:$0xff]  }
   0xc   :  { %867 = vmatpush3.bf16.msra.mxu0 %v1000_v10  ;;  %v1017_v27 = vld [vmem:[%s1367_s1 + $0x88] sm:$0xff]   ;;  %v1021_v31 = vld [vmem:[%s1367_s1 + $0x80] sm:$0xff]  }
   0xd   :  { %931 = vmatpush3.bf16.msra.mxu1 %v1001_v11  ;;  %868 = vmatprep.subr.bf16.mxu0 %v1002_v12  ;;  %v1022_v32 = vld [vmem:[%s1368_s0] ss:$16 sps:$4 sm:$0xff]   ;;  %v1024_v33 = vld [vmem:[%s1368_s0 + $0x4] ss:$16 sps:$4 sm:$0xff]   ;;  %v1025_v34 = vld [vmem:[%s1368_s0 + $0x8] ss:$16 sps:$4 sm:$0xff]  }
   0xe   :  { %932 = vmatprep.subr.bf16.mxu1 %v1003_v13  ;;  %v1027_v35 = vld [vmem:[%s1368_s0 + $0xc] ss:$16 sps:$4 sm:$0xff]   ;;  %502 = vmatprep.mubr.bf16.mxu0 %v1024_v33  ;;  %v1028_v36 = vld [vmem:[%s1368_s0 + $0x24] ss:$16 sps:$4 sm:$0xff]   ;;  %v1032_v38 = vld [vmem:[%s1368_s0 + $0x20] ss:$16 sps:$4 sm:$0xff]  }
   0xf   :  { %599 = vmatprep.mubr.bf16.mxu1 %v1027_v35  ;;  %v1030_v37 = vld [vmem:[%s1368_s0 + $0x2c] ss:$16 sps:$4 sm:$0xff]   ;;  %v1033_v39 = vld [vmem:[%s1368_s0 + $0x28] ss:$16 sps:$4 sm:$0xff]   ;;  %v1034_v40 = vld [vmem:[%s1368_s0 + $0x44] ss:$16 sps:$4 sm:$0xff]  }
  0x10   :  { %869 = vmatpush3.bf16.msra.mxu0 %v1004_v14  ;;  %v1036_v41 = vld [vmem:[%s1368_s0 + $0x4c] ss:$16 sps:$4 sm:$0xff]   ;;  %v1038_v42 = vld [vmem:[%s1368_s0 + $0x40] ss:$16 sps:$4 sm:$0xff]   ;;  %v1039_v43 = vld [vmem:[%s1368_s0 + $0x48] ss:$16 sps:$4 sm:$0xff]  }
  0x11   :  { %933 = vmatpush3.bf16.msra.mxu1 %v1005_v15  ;;  %870 = vmatprep.subr.bf16.mxu0 %v1006_v16  ;;  %v1040_v44 = vld [vmem:[%s1368_s0 + $0x64] ss:$16 sps:$4 sm:$0xff]   ;;  %v1042_v45 = vld [vmem:[%s1368_s0 + $0x6c] ss:$16 sps:$4 sm:$0xff]   ;;  %v1044_v46 = vld [vmem:[%s1368_s0 + $0x60] ss:$16 sps:$4 sm:$0xff]  }
  0x12   :  { %934 = vmatprep.subr.bf16.mxu1 %v1007_v17  ;;  %v1045_v47 = vld [vmem:[%s1368_s0 + $0x68] ss:$16 sps:$4 sm:$0xff]   ;;  %v1046_v48 = vld [vmem:[%s1368_s0 + $0x84] ss:$16 sps:$4 sm:$0xff]   ;;  %v1048_v49 = vld [vmem:[%s1368_s0 + $0x8c] ss:$16 sps:$4 sm:$0xff]  }
  0x13   :  { %v1050_v50 = vld [vmem:[%s1368_s0 + $0x80] ss:$16 sps:$4 sm:$0xff]   ;;  %v1051_v51 = vld [vmem:[%s1368_s0 + $0x88] ss:$16 sps:$4 sm:$0xff]   ;;  %v1052_v52 = vld [vmem:[%s1368_s0 + $0xa4] ss:$16 sps:$4 sm:$0xff]  }
  0x14   :  { %871 = vmatpush3.bf16.msra.mxu0 %v1008_v18  ;;  %v1054_v53 = vld [vmem:[%s1368_s0 + $0xac] ss:$16 sps:$4 sm:$0xff]   ;;  %v1056_v54 = vld [vmem:[%s1368_s0 + $0xa0] ss:$16 sps:$4 sm:$0xff]   ;;  %v1057_v55 = vld [vmem:[%s1368_s0 + $0xa8] ss:$16 sps:$4 sm:$0xff]  }
  0x15   :  { %935 = vmatpush3.bf16.msra.mxu1 %v1009_v19  ;;  %872 = vmatprep.subr.bf16.mxu0 %v1010_v20  ;;  %v1058_v56 = vld [vmem:[%s1368_s0 + $0xc4] ss:$16 sps:$4 sm:$0xff]   ;;  %v1060_v57 = vld [vmem:[%s1368_s0 + $0xcc] ss:$16 sps:$4 sm:$0xff]   ;;  %v1062_v58 = vld [vmem:[%s1368_s0 + $0xc0] ss:$16 sps:$4 sm:$0xff]  }
  0x16   :  { %936 = vmatprep.subr.bf16.mxu1 %v1011_v21  ;;  %v1063_v59 = vld [vmem:[%s1368_s0 + $0xc8] ss:$16 sps:$4 sm:$0xff]   ;;  %v1064_v60 = vld [vmem:[%s1368_s0 + $0xe4] ss:$16 sps:$4 sm:$0xff]   ;;  %v1066_v61 = vld [vmem:[%s1368_s0 + $0xec] ss:$16 sps:$4 sm:$0xff]  }
  0x17   :  { %v1068_v62 = vld [vmem:[%s1368_s0 + $0xe0] ss:$16 sps:$4 sm:$0xff]   ;;  %v1069_v63 = vld [vmem:[%s1368_s0 + $0xe8] ss:$16 sps:$4 sm:$0xff]  }
  0x18   :  { %873 = vmatpush3.bf16.msra.mxu0 %v1012_v22  ;;  %v1285_v2 = vld [vmem:[%s1369_s2] ss:$0 sm:$0xff] }
  0x19   :  { %937 = vmatpush3.bf16.msra.mxu1 %v1013_v23  ;;  %874 = vmatprep.subr.bf16.mxu0 %v1014_v24 }
  0x1a   :  { %938 = vmatprep.subr.bf16.mxu1 %v1015_v25 }
  0x1c   :  { %875 = vmatpush3.bf16.msra.mxu0 %v1016_v26 }
  0x1d   :  { %939 = vmatpush3.bf16.msra.mxu1 %v1017_v27  ;;  %876 = vmatprep.subr.bf16.mxu0 %v1018_v28 }
  0x1e   :  { %940 = vmatprep.subr.bf16.mxu1 %v1019_v29 }
  0x20   :  { %877 = vmatpush3.bf16.msra.mxu0 %v1020_v30 }
  0x21   :  { %941 = vmatpush3.bf16.msra.mxu1 %v1021_v31 }
  0x23   :  { %503 = vmatmul.mubr.bf16.vlgmr.msra.gmra.mxu0 %v1022_v32 }
  0x24   :  { %600 = vmatmul.mubr.bf16.vlgmr.msra.gmra.mxu1 %v1025_v34  ;;  %510 = vmatprep.mubr.bf16.mxu0 %v1028_v36 }
  0x25   :  { %607 = vmatprep.mubr.bf16.mxu1 %v1030_v37 }
  0x2b   :  { %511 = vmatmul.mubr.bf16.gmra.mxu0 %v1032_v38 }
  0x2c   :  { %608 = vmatmul.mubr.bf16.gmra.mxu1 %v1033_v39  ;;  %518 = vmatprep.mubr.bf16.mxu0 %v1034_v40 }
  0x2d   :  { %615 = vmatprep.mubr.bf16.mxu1 %v1036_v41 }
  0x33   :  { %519 = vmatmul.mubr.bf16.gmra.mxu0 %v1038_v42 }
  0x34   :  { %616 = vmatmul.mubr.bf16.gmra.mxu1 %v1039_v43  ;;  %526 = vmatprep.mubr.bf16.mxu0 %v1040_v44 }
  0x35   :  { %623 = vmatprep.mubr.bf16.mxu1 %v1042_v45 }
  0x3b   :  { %527 = vmatmul.mubr.bf16.gmra.mxu0 %v1044_v46 }
  0x3c   :  { %624 = vmatmul.mubr.bf16.gmra.mxu1 %v1045_v47  ;;  %534 = vmatprep.mubr.bf16.mxu0 %v1046_v48 }
  0x3d   :  { %631 = vmatprep.mubr.bf16.mxu1 %v1048_v49 }
  0x43   :  { %535 = vmatmul.mubr.bf16.gmra.mxu0 %v1050_v50 }
  0x44   :  { %632 = vmatmul.mubr.bf16.gmra.mxu1 %v1051_v51  ;;  %542 = vmatprep.mubr.bf16.mxu0 %v1052_v52 }
  0x45   :  { %639 = vmatprep.mubr.bf16.mxu1 %v1054_v53 }
  0x4b   :  { %543 = vmatmul.mubr.bf16.gmra.mxu0 %v1056_v54 }
  0x4c   :  { %640 = vmatmul.mubr.bf16.gmra.mxu1 %v1057_v55  ;;  %550 = vmatprep.mubr.bf16.mxu0 %v1058_v56 }
  0x4d   :  { %647 = vmatprep.mubr.bf16.mxu1 %v1060_v57 }
  0x53   :  { %551 = vmatmul.mubr.bf16.gmra.mxu0 %v1062_v58 }
  0x54   :  { %648 = vmatmul.mubr.bf16.gmra.mxu1 %v1063_v59  ;;  %558 = vmatprep.mubr.bf16.mxu0 %v1064_v60 }
  0x55   :  { %655 = vmatprep.mubr.bf16.mxu1 %v1066_v61 }
  0x5b   :  { %559 = vmatmul.mubr.bf16.gmra.mxu0 %v1068_v62 }
  0x5c   :  { %656 = vmatmul.mubr.bf16.gmra.mxu1 %v1069_v63 }
  0xe3   :  { %v878_v0 = vpop.f32.mrf.mxu0 }
  0xe4   :  { %v942_v1 = vpop.f32.mrf.mxu1 }
  0xe5   :  { %v879_v3 = vpop.f32.mrf.mxu0 }
  0xe6   :  { %v880_v4 = vadd.f32 %v879_v3, %v878_v0  ;;  %v943_v5 = vpop.f32.mrf.mxu1 }
  0xe7   :  { %v881_v6 = vpop.f32.mrf.mxu0  ;;  %v944_v8 = vadd.f32 %v943_v5, %v942_v1 }
  0xe8   :  { %v505_v7 = vadd.f32 %v880_v4, %v1285_v2  ;;  %v945_v9 = vpop.f32.mrf.mxu1 }
  0xe9   :  { %v882_v10 = vpop.f32.mrf.mxu0 }
  0xea   :  { %v602_v11 = vadd.f32 %v944_v8, %v505_v7  ;;  %v883_v12 = vadd.f32 %v882_v10, %v881_v6  ;;  %v946_v13 = vpop.f32.mrf.mxu1 }
  0xeb   :  { %v884_v14 = vpop.f32.mrf.mxu0  ;;  %v947_v17 = vadd.f32 %v946_v13, %v945_v9 }
  0xec   :  { %v664_v15 = vmax.f32 %v602_v11, 0.0  ;;  %v508_v16 = vadd.f32 %v883_v12, %v1285_v2  ;;  %v948_v18 = vpop.f32.mrf.mxu1 }
  0xed   :  { %v885_v19 = vpop.f32.mrf.mxu0 }
  0xee   :  { %v846_v20 = vpack.c.bf16 %v664_v15, %v664_v15  ;;  %v605_v21 = vadd.f32 %v947_v17, %v508_v16  ;;  %v886_v22 = vadd.f32 %v885_v19, %v884_v14  ;;  %v949_v23 = vpop.f32.mrf.mxu1 }
  0xef   :  { %v887_v24 = vpop.f32.mrf.mxu0  ;;  %v950_v27 = vadd.f32 %v949_v23, %v948_v18 }
  0xf0   :  { %745 = vst.msk [vmem:[%s1370_s3] sm:$0xf] %vm744_vm0, %v846_v20  ;;  %v665_v25 = vmax.f32 %v605_v21, 0.0  ;;  %v513_v26 = vadd.f32 %v886_v22, %v1285_v2  ;;  %v951_v28 = vpop.f32.mrf.mxu1 }
  0xf1   :  { %v888_v29 = vpop.f32.mrf.mxu0 }
  0xf2   :  { %v847_v30 = vpack.c.bf16 %v665_v25, %v665_v25  ;;  %v610_v31 = vadd.f32 %v950_v27, %v513_v26  ;;  %v889_v32 = vadd.f32 %v888_v29, %v887_v24  ;;  %v952_v33 = vpop.f32.mrf.mxu1 }
  0xf3   :  { %v890_v34 = vpop.f32.mrf.mxu0  ;;  %v953_v37 = vadd.f32 %v952_v33, %v951_v28 }
  0xf4   :  { %746 = vst.msk [vmem:[%s1370_s3 + $0x4] sm:$0xf] %vm744_vm0, %v847_v30  ;;  %v666_v35 = vmax.f32 %v610_v31, 0.0  ;;  %v516_v36 = vadd.f32 %v889_v32, %v1285_v2  ;;  %v954_v38 = vpop.f32.mrf.mxu1 }
  0xf5   :  { %v891_v39 = vpop.f32.mrf.mxu0 }
  0xf6   :  { %v848_v40 = vpack.c.bf16 %v666_v35, %v666_v35  ;;  %v613_v41 = vadd.f32 %v953_v37, %v516_v36  ;;  %v892_v42 = vadd.f32 %v891_v39, %v890_v34  ;;  %v955_v43 = vpop.f32.mrf.mxu1 }
  0xf7   :  { %v893_v44 = vpop.f32.mrf.mxu0  ;;  %v956_v47 = vadd.f32 %v955_v43, %v954_v38 }
  0xf8   :  { %747 = vst.msk [vmem:[%s1370_s3 + $0x8] sm:$0xf] %vm744_vm0, %v848_v40  ;;  %v667_v45 = vmax.f32 %v613_v41, 0.0  ;;  %v521_v46 = vadd.f32 %v892_v42, %v1285_v2  ;;  %v957_v48 = vpop.f32.mrf.mxu1 }
  0xf9   :  { %v894_v49 = vpop.f32.mrf.mxu0 }
  0xfa   :  { %v849_v50 = vpack.c.bf16 %v667_v45, %v667_v45  ;;  %v618_v51 = vadd.f32 %v956_v47, %v521_v46  ;;  %v895_v52 = vadd.f32 %v894_v49, %v893_v44  ;;  %v958_v53 = vpop.f32.mrf.mxu1 }
  0xfb   :  { %v896_v54 = vpop.f32.mrf.mxu0  ;;  %v959_v57 = vadd.f32 %v958_v53, %v957_v48 }
  0xfc   :  { %748 = vst.msk [vmem:[%s1370_s3 + $0xc] sm:$0xf] %vm744_vm0, %v849_v50  ;;  %v668_v55 = vmax.f32 %v618_v51, 0.0  ;;  %v524_v56 = vadd.f32 %v895_v52, %v1285_v2  ;;  %v960_v58 = vpop.f32.mrf.mxu1 }
  0xfd   :  { %v897_v59 = vpop.f32.mrf.mxu0 }
  0xfe   :  { %v850_v60 = vpack.c.bf16 %v668_v55, %v668_v55  ;;  %v621_v61 = vadd.f32 %v959_v57, %v524_v56  ;;  %v898_v62 = vadd.f32 %v897_v59, %v896_v54  ;;  %v961_v63 = vpop.f32.mrf.mxu1 }
  0xff   :  { %v899_v0 = vpop.f32.mrf.mxu0  ;;  %v962_v4 = vadd.f32 %v961_v63, %v960_v58 }
 0x100   :  { %749 = vst.msk [vmem:[%s1370_s3 + $0x10] sm:$0xf] %vm744_vm0, %v850_v60  ;;  %v669_v1 = vmax.f32 %v621_v61, 0.0  ;;  %v529_v3 = vadd.f32 %v898_v62, %v1285_v2  ;;  %v963_v5 = vpop.f32.mrf.mxu1 }
 0x101   :  { %v900_v6 = vpop.f32.mrf.mxu0 }
 0x102   :  { %v851_v7 = vpack.c.bf16 %v669_v1, %v669_v1  ;;  %v626_v8 = vadd.f32 %v962_v4, %v529_v3  ;;  %v901_v9 = vadd.f32 %v900_v6, %v899_v0  ;;  %v964_v10 = vpop.f32.mrf.mxu1 }
 0x103   :  { %v902_v11 = vpop.f32.mrf.mxu0  ;;  %v965_v14 = vadd.f32 %v964_v10, %v963_v5 }
 0x104   :  { %750 = vst.msk [vmem:[%s1370_s3 + $0x14] sm:$0xf] %vm744_vm0, %v851_v7  ;;  %v670_v12 = vmax.f32 %v626_v8, 0.0  ;;  %v532_v13 = vadd.f32 %v901_v9, %v1285_v2  ;;  %v966_v15 = vpop.f32.mrf.mxu1 }
 0x105   :  { %v903_v16 = vpop.f32.mrf.mxu0 }
 0x106   :  { %v852_v17 = vpack.c.bf16 %v670_v12, %v670_v12  ;;  %v629_v18 = vadd.f32 %v965_v14, %v532_v13  ;;  %v904_v19 = vadd.f32 %v903_v16, %v902_v11  ;;  %v967_v20 = vpop.f32.mrf.mxu1 }
 0x107   :  { %v905_v21 = vpop.f32.mrf.mxu0  ;;  %v968_v24 = vadd.f32 %v967_v20, %v966_v15 }
 0x108   :  { %751 = vst.msk [vmem:[%s1370_s3 + $0x18] sm:$0xf] %vm744_vm0, %v852_v17  ;;  %v671_v22 = vmax.f32 %v629_v18, 0.0  ;;  %v537_v23 = vadd.f32 %v904_v19, %v1285_v2  ;;  %v969_v25 = vpop.f32.mrf.mxu1 }
 0x109   :  { %v906_v26 = vpop.f32.mrf.mxu0 }
 0x10a   :  { %v853_v27 = vpack.c.bf16 %v671_v22, %v671_v22  ;;  %v634_v28 = vadd.f32 %v968_v24, %v537_v23  ;;  %v907_v29 = vadd.f32 %v906_v26, %v905_v21  ;;  %v970_v30 = vpop.f32.mrf.mxu1 }
 0x10b   :  { %v908_v31 = vpop.f32.mrf.mxu0  ;;  %v971_v34 = vadd.f32 %v970_v30, %v969_v25 }
 0x10c   :  { %752 = vst.msk [vmem:[%s1370_s3 + $0x1c] sm:$0xf] %vm744_vm0, %v853_v27  ;;  %v672_v32 = vmax.f32 %v634_v28, 0.0  ;;  %v540_v33 = vadd.f32 %v907_v29, %v1285_v2  ;;  %v972_v35 = vpop.f32.mrf.mxu1 }
 0x10d   :  { %v909_v36 = vpop.f32.mrf.mxu0 }
 0x10e   :  { %v854_v37 = vpack.c.bf16 %v672_v32, %v672_v32  ;;  %v637_v38 = vadd.f32 %v971_v34, %v540_v33  ;;  %v910_v39 = vadd.f32 %v909_v36, %v908_v31  ;;  %v973_v40 = vpop.f32.mrf.mxu1 }
 0x10f   :  { %v911_v41 = vpop.f32.mrf.mxu0  ;;  %v974_v44 = vadd.f32 %v973_v40, %v972_v35 }
 0x110   :  { %753 = vst.msk [vmem:[%s1370_s3 + $0x20] sm:$0xf] %vm744_vm0, %v854_v37  ;;  %v673_v42 = vmax.f32 %v637_v38, 0.0  ;;  %v545_v43 = vadd.f32 %v910_v39, %v1285_v2  ;;  %v975_v45 = vpop.f32.mrf.mxu1 }
 0x111   :  { %v912_v46 = vpop.f32.mrf.mxu0 }
 0x112   :  { %v855_v47 = vpack.c.bf16 %v673_v42, %v673_v42  ;;  %v642_v48 = vadd.f32 %v974_v44, %v545_v43  ;;  %v913_v49 = vadd.f32 %v912_v46, %v911_v41  ;;  %v976_v50 = vpop.f32.mrf.mxu1 }
 0x113   :  { %v914_v51 = vpop.f32.mrf.mxu0  ;;  %v977_v54 = vadd.f32 %v976_v50, %v975_v45 }
 0x114   :  { %754 = vst.msk [vmem:[%s1370_s3 + $0x24] sm:$0xf] %vm744_vm0, %v855_v47  ;;  %v674_v52 = vmax.f32 %v642_v48, 0.0  ;;  %v548_v53 = vadd.f32 %v913_v49, %v1285_v2  ;;  %v978_v55 = vpop.f32.mrf.mxu1 }
 0x115   :  { %v915_v56 = vpop.f32.mrf.mxu0 }
 0x116   :  { %v856_v57 = vpack.c.bf16 %v674_v52, %v674_v52  ;;  %v645_v58 = vadd.f32 %v977_v54, %v548_v53  ;;  %v916_v59 = vadd.f32 %v915_v56, %v914_v51  ;;  %v979_v60 = vpop.f32.mrf.mxu1 }
 0x117   :  { %v917_v61 = vpop.f32.mrf.mxu0  ;;  %v980_v0 = vadd.f32 %v979_v60, %v978_v55 }
 0x118   :  { %755 = vst.msk [vmem:[%s1370_s3 + $0x28] sm:$0xf] %vm744_vm0, %v856_v57  ;;  %v675_v62 = vmax.f32 %v645_v58, 0.0  ;;  %v553_v63 = vadd.f32 %v916_v59, %v1285_v2  ;;  %v981_v1 = vpop.f32.mrf.mxu1 }
 0x119   :  { %v918_v3 = vpop.f32.mrf.mxu0 }
 0x11a   :  { %v857_v4 = vpack.c.bf16 %v675_v62, %v675_v62  ;;  %v650_v5 = vadd.f32 %v980_v0, %v553_v63  ;;  %v919_v6 = vadd.f32 %v918_v3, %v917_v61  ;;  %v982_v7 = vpop.f32.mrf.mxu1 }
 0x11b   :  { %v920_v8 = vpop.f32.mrf.mxu0  ;;  %v983_v11 = vadd.f32 %v982_v7, %v981_v1 }
 0x11c   :  { %756 = vst.msk [vmem:[%s1370_s3 + $0x2c] sm:$0xf] %vm744_vm0, %v857_v4  ;;  %v676_v9 = vmax.f32 %v650_v5, 0.0  ;;  %v556_v10 = vadd.f32 %v919_v6, %v1285_v2  ;;  %v984_v12 = vpop.f32.mrf.mxu1 }
 0x11d   :  { %v921_v13 = vpop.f32.mrf.mxu0 }
 0x11e   :  { %v858_v14 = vpack.c.bf16 %v676_v9, %v676_v9  ;;  %v653_v15 = vadd.f32 %v983_v11, %v556_v10  ;;  %v922_v16 = vadd.f32 %v921_v13, %v920_v8  ;;  %v985_v17 = vpop.f32.mrf.mxu1 }
 0x11f   :  { %v923_v18 = vpop.f32.mrf.mxu0  ;;  %v986_v21 = vadd.f32 %v985_v17, %v984_v12 }
 0x120   :  { %757 = vst.msk [vmem:[%s1370_s3 + $0x30] sm:$0xf] %vm744_vm0, %v858_v14  ;;  %v677_v19 = vmax.f32 %v653_v15, 0.0  ;;  %v561_v20 = vadd.f32 %v922_v16, %v1285_v2  ;;  %v987_v22 = vpop.f32.mrf.mxu1 }
 0x121   :  { %v924_v23 = vpop.f32.mrf.mxu0 }
 0x122   :  { %v859_v24 = vpack.c.bf16 %v677_v19, %v677_v19  ;;  %v658_v25 = vadd.f32 %v986_v21, %v561_v20  ;;  %v925_v26 = vadd.f32 %v924_v23, %v923_v18  ;;  %v988_v27 = vpop.f32.mrf.mxu1 }
 0x123   :  { %v989_v30 = vadd.f32 %v988_v27, %v987_v22 }
 0x124   :  { %758 = vst.msk [vmem:[%s1370_s3 + $0x34] sm:$0xf] %vm744_vm0, %v859_v24  ;;  %v678_v28 = vmax.f32 %v658_v25, 0.0  ;;  %v564_v29 = vadd.f32 %v925_v26, %v1285_v2 }
 0x126   :  { %v860_v31 = vpack.c.bf16 %v678_v28, %v678_v28  ;;  %v661_v32 = vadd.f32 %v989_v30, %v564_v29 }
 0x128   :  { %759 = vst.msk [vmem:[%s1370_s3 + $0x38] sm:$0xf] %vm744_vm0, %v860_v31  ;;  %v679_v33 = vmax.f32 %v661_v32, 0.0 }
 0x12a   :  { %v861_v34 = vpack.c.bf16 %v679_v33, %v679_v33 }
 0x12c   :  { %760 = vst.msk [vmem:[%s1370_s3 + $0x3c] sm:$0xf] %vm744_vm0, %v861_v34 }

// kernel: vae_forward.12
= control target key start
LH: loop header
LB: loop body
LE: loop exit
PB: predicated region body
PF: predicated region fallthrough
CT: control target
= control target key end

     0   :  { %vm846_vm0 = vcmask 519168   ;;  %s1399_s1 = inlined_call_operand.vmem [shape: bf16[1024,64], index: 1, kind: input, shape index: {}]   ;;  %s1400_s0 = inlined_call_operand.vmem [shape: bf16[32,1024], index: 0, kind: input, shape index: {}]   ;;  %s1401_s2 = inlined_call_operand.vmem [shape: f32[1,64], index: 2, kind: input, shape index: {}]   ;;  %s1402_s3 = inlined_call_operand.vmem [shape: bf16[32,64], index: 3, kind: output, shape index: {}]  }
   0x1   :  { %v1056_v0 = vld [vmem:[%s1399_s1 + $0x78] sm:$0xff]   ;;  %v1060_v4 = vld [vmem:[%s1399_s1 + $0x70] sm:$0xff]   ;;  %v1064_v8 = vld [vmem:[%s1399_s1 + $0x68] sm:$0xff]  }
   0x2   :  { %v1057_v1 = vld [vmem:[%s1399_s1 + $0xf8] sm:$0xff]   ;;  %944 = vmatprep.subr.bf16.mxu0 %v1056_v0  ;;  %v1061_v5 = vld [vmem:[%s1399_s1 + $0xf0] sm:$0xff]   ;;  %v1065_v9 = vld [vmem:[%s1399_s1 + $0xe8] sm:$0xff]  }
   0x3   :  { %v1058_v2 = vld [vmem:[%s1399_s1 + $0x38] sm:$0xff]   ;;  %972 = vmatprep.subr.bf16.mxu1 %v1057_v1  ;;  %v1062_v6 = vld [vmem:[%s1399_s1 + $0x30] sm:$0xff]   ;;  %v1066_v10 = vld [vmem:[%s1399_s1 + $0x28] sm:$0xff]  }
   0x4   :  { %v1059_v3 = vld [vmem:[%s1399_s1 + $0xb8] sm:$0xff]   ;;  %945 = vmatpush3.bf16.msra.mxu0 %v1058_v2  ;;  %v1063_v7 = vld [vmem:[%s1399_s1 + $0xb0] sm:$0xff]   ;;  %v1067_v11 = vld [vmem:[%s1399_s1 + $0xa8] sm:$0xff]  }
   0x5   :  { %973 = vmatpush3.bf16.msra.mxu1 %v1059_v3  ;;  %946 = vmatprep.subr.bf16.mxu0 %v1060_v4  ;;  %v1068_v12 = vld [vmem:[%s1399_s1 + $0x60] sm:$0xff]   ;;  %v1072_v16 = vld [vmem:[%s1399_s1 + $0x58] sm:$0xff]   ;;  %v1076_v20 = vld [vmem:[%s1399_s1 + $0x50] sm:$0xff]  }
   0x6   :  { %974 = vmatprep.subr.bf16.mxu1 %v1061_v5  ;;  %v1069_v13 = vld [vmem:[%s1399_s1 + $0xe0] sm:$0xff]   ;;  %v1073_v17 = vld [vmem:[%s1399_s1 + $0xd8] sm:$0xff]   ;;  %v1077_v21 = vld [vmem:[%s1399_s1 + $0xd0] sm:$0xff]  }
   0x7   :  { %v1070_v14 = vld [vmem:[%s1399_s1 + $0x20] sm:$0xff]   ;;  %v1074_v18 = vld [vmem:[%s1399_s1 + $0x18] sm:$0xff]   ;;  %v1078_v22 = vld [vmem:[%s1399_s1 + $0x10] sm:$0xff]  }
   0x8   :  { %947 = vmatpush3.bf16.msra.mxu0 %v1062_v6  ;;  %v1071_v15 = vld [vmem:[%s1399_s1 + $0xa0] sm:$0xff]   ;;  %v1075_v19 = vld [vmem:[%s1399_s1 + $0x98] sm:$0xff]   ;;  %v1079_v23 = vld [vmem:[%s1399_s1 + $0x90] sm:$0xff]  }
   0x9   :  { %975 = vmatpush3.bf16.msra.mxu1 %v1063_v7  ;;  %948 = vmatprep.subr.bf16.mxu0 %v1064_v8  ;;  %v1080_v24 = vld [vmem:[%s1399_s1 + $0x48] sm:$0xff]   ;;  %v1084_v28 = vld [vmem:[%s1399_s1 + $0x40] sm:$0xff]   ;;  %v1088_v40 = vld [vmem:[%s1399_s1 + $0x178] sm:$0xff]  }
   0xa   :  { %976 = vmatprep.subr.bf16.mxu1 %v1065_v9  ;;  %v1081_v25 = vld [vmem:[%s1399_s1 + $0xc8] sm:$0xff]   ;;  %v1085_v29 = vld [vmem:[%s1399_s1 + $0xc0] sm:$0xff]   ;;  %v1089_v41 = vld [vmem:[%s1399_s1 + $0x1f8] sm:$0xff]  }
   0xb   :  { %v1082_v26 = vld [vmem:[%s1399_s1 + $0x8] sm:$0xff]   ;;  %v1086_v30 = vld [vmem:[%s1399_s1] sm:$0xff]   ;;  %v1090_v42 = vld [vmem:[%s1399_s1 + $0x138] sm:$0xff]  }
   0xc   :  { %949 = vmatpush3.bf16.msra.mxu0 %v1066_v10  ;;  %v1083_v27 = vld [vmem:[%s1399_s1 + $0x88] sm:$0xff]   ;;  %v1087_v31 = vld [vmem:[%s1399_s1 + $0x80] sm:$0xff]   ;;  %v1091_v43 = vld [vmem:[%s1399_s1 + $0x1b8] sm:$0xff]  }
   0xd   :  { %977 = vmatpush3.bf16.msra.mxu1 %v1067_v11  ;;  %950 = vmatprep.subr.bf16.mxu0 %v1068_v12  ;;  %v15_v32 = vld [vmem:[%s1400_s0] sm:$0xff]  ;;  %v16_v34 = vld [vmem:[%s1400_s0 + $0x8] sm:$0xff]  ;;  %v1092_v44 = vld [vmem:[%s1399_s1 + $0x170] sm:$0xff]  }
   0xe   :  { %978 = vmatprep.subr.bf16.mxu1 %v1069_v13  ;;  %v19_v33 = vld [vmem:[%s1400_s0 + $0x20] sm:$0xff]  ;;  %v20_v37 = vld [vmem:[%s1400_s0 + $0x28] sm:$0xff]  ;;  %v1093_v45 = vld [vmem:[%s1399_s1 + $0x1f0] sm:$0xff]  }
   0xf   :  { %v856_v35 = vcombine.low %v15_v32, %v19_v33  ;;  %v857_v36 = vcombine.high %v15_v32, %v19_v33  ;;  %v858_v38 = vcombine.low %v16_v34, %v20_v37  ;;  %v859_v39 = vcombine.high %v16_v34, %v20_v37  ;;  %v1094_v46 = vld [vmem:[%s1399_s1 + $0x130] sm:$0xff]   ;;  %v1096_v48 = vld [vmem:[%s1399_s1 + $0x168] sm:$0xff]   ;;  %v1100_v52 = vld [vmem:[%s1399_s1 + $0x160] sm:$0xff]  }
  0x10   :  { %951 = vmatpush3.bf16.msra.mxu0 %v1070_v14  ;;  %v1095_v47 = vld [vmem:[%s1399_s1 + $0x1b0] sm:$0xff]   ;;  %v1097_v49 = vld [vmem:[%s1399_s1 + $0x1e8] sm:$0xff]   ;;  %v1101_v53 = vld [vmem:[%s1399_s1 + $0x1e0] sm:$0xff]  }
  0x11   :  { %979 = vmatpush3.bf16.msra.mxu1 %v1071_v15  ;;  %952 = vmatprep.subr.bf16.mxu0 %v1072_v16  ;;  %v1098_v50 = vld [vmem:[%s1399_s1 + $0x128] sm:$0xff]   ;;  %v1102_v54 = vld [vmem:[%s1399_s1 + $0x120] sm:$0xff]   ;;  %v1104_v56 = vld [vmem:[%s1399_s1 + $0x158] sm:$0xff]  }
  0x12   :  { %980 = vmatprep.subr.bf16.mxu1 %v1073_v17  ;;  %662 = vmatprep.mubr.bf16.mxu0 %v857_v36  ;;  %v1099_v51 = vld [vmem:[%s1399_s1 + $0x1a8] sm:$0xff]   ;;  %v1103_v55 = vld [vmem:[%s1399_s1 + $0x1a0] sm:$0xff]   ;;  %v1105_v57 = vld [vmem:[%s1399_s1 + $0x1d8] sm:$0xff]  }
  0x13   :  { %711 = vmatprep.mubr.bf16.mxu1 %v859_v39  ;;  %v23_v58 = vld [vmem:[%s1400_s0 + $0x40] sm:$0xff]  ;;  %v1106_v61 = vld [vmem:[%s1399_s1 + $0x118] sm:$0xff]   ;;  %v24_v0 = vld [vmem:[%s1400_s0 + $0x48] sm:$0xff] }
  0x14   :  { %953 = vmatpush3.bf16.msra.mxu0 %v1074_v18  ;;  %v27_v59 = vld [vmem:[%s1400_s0 + $0x60] sm:$0xff]  ;;  %v1107_v63 = vld [vmem:[%s1399_s1 + $0x198] sm:$0xff]   ;;  %v28_v1 = vld [vmem:[%s1400_s0 + $0x68] sm:$0xff] }
  0x15   :  { %981 = vmatpush3.bf16.msra.mxu1 %v1075_v19  ;;  %954 = vmatprep.subr.bf16.mxu0 %v1076_v20  ;;  %v865_v60 = vcombine.high %v23_v58, %v27_v59  ;;  %v864_v62 = vcombine.low %v23_v58, %v27_v59  ;;  %v867_v2 = vcombine.high %v24_v0, %v28_v1  ;;  %v1108_v4 = vld [vmem:[%s1399_s1 + $0x150] sm:$0xff]   ;;  %v1112_v8 = vld [vmem:[%s1399_s1 + $0x148] sm:$0xff]   ;;  %v1116_v12 = vld [vmem:[%s1399_s1 + $0x140] sm:$0xff]  }
  0x16   :  { %982 = vmatprep.subr.bf16.mxu1 %v1077_v21  ;;  %v866_v3 = vcombine.low %v24_v0, %v28_v1  ;;  %v1109_v5 = vld [vmem:[%s1399_s1 + $0x1d0] sm:$0xff]   ;;  %v1113_v9 = vld [vmem:[%s1399_s1 + $0x1c8] sm:$0xff]   ;;  %v1117_v13 = vld [vmem:[%s1399_s1 + $0x1c0] sm:$0xff]  }
  0x17   :  { %v1110_v6 = vld [vmem:[%s1399_s1 + $0x110] sm:$0xff]   ;;  %v1114_v10 = vld [vmem:[%s1399_s1 + $0x108] sm:$0xff]   ;;  %v1118_v14 = vld [vmem:[%s1399_s1 + $0x100] sm:$0xff]  }
  0x18   :  { %955 = vmatpush3.bf16.msra.mxu0 %v1078_v22  ;;  %v1111_v7 = vld [vmem:[%s1399_s1 + $0x190] sm:$0xff]   ;;  %v1115_v11 = vld [vmem:[%s1399_s1 + $0x188] sm:$0xff]   ;;  %v1119_v15 = vld [vmem:[%s1399_s1 + $0x180] sm:$0xff]  }
  0x19   :  { %983 = vmatpush3.bf16.msra.mxu1 %v1079_v23  ;;  %956 = vmatprep.subr.bf16.mxu0 %v1080_v24  ;;  %v17_v16 = vld [vmem:[%s1400_s0 + $0x10] sm:$0xff]  ;;  %v18_v18 = vld [vmem:[%s1400_s0 + $0x18] sm:$0xff] }
  0x1a   :  { %984 = vmatprep.subr.bf16.mxu1 %v1081_v25  ;;  %v21_v17 = vld [vmem:[%s1400_s0 + $0x30] sm:$0xff]  ;;  %v22_v19 = vld [vmem:[%s1400_s0 + $0x38] sm:$0xff] }
  0x1b   :  { %v860_v20 = vcombine.low %v17_v16, %v21_v17  ;;  %v861_v21 = vcombine.high %v17_v16, %v21_v17  ;;  %v862_v22 = vcombine.low %v18_v18, %v22_v19  ;;  %v863_v23 = vcombine.high %v18_v18, %v22_v19  ;;  %v25_v24 = vld [vmem:[%s1400_s0 + $0x50] sm:$0xff] }
  0x1c   :  { %957 = vmatpush3.bf16.msra.mxu0 %v1082_v26  ;;  %v29_v25 = vld [vmem:[%s1400_s0 + $0x70] sm:$0xff]  ;;  %v26_v26 = vld [vmem:[%s1400_s0 + $0x58] sm:$0xff] }
  0x1d   :  { %985 = vmatpush3.bf16.msra.mxu1 %v1083_v27  ;;  %958 = vmatprep.subr.bf16.mxu0 %v1084_v28  ;;  %v869_v27 = vcombine.high %v25_v24, %v29_v25  ;;  %v30_v28 = vld [vmem:[%s1400_s0 + $0x78] sm:$0xff] }
  0x1e   :  { %986 = vmatprep.subr.bf16.mxu1 %v1085_v29  ;;  %v871_v29 = vcombine.high %v26_v26, %v30_v28 }
  0x20   :  { %959 = vmatpush3.bf16.msra.mxu0 %v1086_v30  ;;  %v868_v30 = vcombine.low %v25_v24, %v29_v25 }
  0x21   :  { %987 = vmatpush3.bf16.msra.mxu1 %v1087_v31  ;;  %1000 = vmatprep.subr.bf16.mxu0 %v1088_v40  ;;  %v870_v31 = vcombine.low %v26_v26, %v30_v28 }
  0x22   :  { %1028 = vmatprep.subr.bf16.mxu1 %v1089_v41 }
  0x23   :  { %663 = vmatmul.mubr.bf16.vlgmr.msra.gmra.mxu0 %v856_v35 }
  0x24   :  { %712 = vmatmul.mubr.bf16.vlgmr.msra.gmra.mxu1 %v858_v38  ;;  %1001 = vmatpush3.bf16.msra.mxu0 %v1090_v42 }
  0x25   :  { %1029 = vmatpush3.bf16.msra.mxu1 %v1091_v43  ;;  %1002 = vmatprep.subr.bf16.mxu0 %v1092_v44 }
  0x26   :  { %1030 = vmatprep.subr.bf16.mxu1 %v1093_v45  ;;  %670 = vmatprep.mubr.bf16.mxu0 %v865_v60 }
  0x27   :  { %719 = vmatprep.mubr.bf16.mxu1 %v867_v2 }
  0x28   :  { %1003 = vmatpush3.bf16.msra.mxu0 %v1094_v46 }
  0x29   :  { %1031 = vmatpush3.bf16.msra.mxu1 %v1095_v47  ;;  %1004 = vmatprep.subr.bf16.mxu0 %v1096_v48  ;;  %v855_v47 = vld [vmem:[%s1401_s2] ss:$0 sm:$0xff] }
  0x2a   :  { %1032 = vmatprep.subr.bf16.mxu1 %v1097_v49 }
  0x2b   :  { %671 = vmatmul.mubr.bf16.gmra.mxu0 %v864_v62 }
  0x2c   :  { %1005 = vmatpush3.bf16.msra.mxu0 %v1098_v50  ;;  %720 = vmatmul.mubr.bf16.gmra.mxu1 %v866_v3 }
  0x2d   :  { %1033 = vmatpush3.bf16.msra.mxu1 %v1099_v51  ;;  %1006 = vmatprep.subr.bf16.mxu0 %v1100_v52 }
  0x2e   :  { %1034 = vmatprep.subr.bf16.mxu1 %v1101_v53  ;;  %760 = vmatprep.mubr.bf16.mxu0 %v861_v21 }
  0x2f   :  { %809 = vmatprep.mubr.bf16.mxu1 %v863_v23 }
  0x30   :  { %1007 = vmatpush3.bf16.msra.mxu0 %v1102_v54 }
  0x31   :  { %1035 = vmatpush3.bf16.msra.mxu1 %v1103_v55  ;;  %1008 = vmatprep.subr.bf16.mxu0 %v1104_v56 }
  0x32   :  { %1036 = vmatprep.subr.bf16.mxu1 %v1105_v57 }
  0x34   :  { %1009 = vmatpush3.bf16.msra.mxu0 %v1106_v61 }
  0x35   :  { %1037 = vmatpush3.bf16.msra.mxu1 %v1107_v63  ;;  %1010 = vmatprep.subr.bf16.mxu0 %v1108_v4 }
  0x36   :  { %1038 = vmatprep.subr.bf16.mxu1 %v1109_v5 }
  0x38   :  { %1011 = vmatpush3.bf16.msra.mxu0 %v1110_v6 }
  0x39   :  { %1039 = vmatpush3.bf16.msra.mxu1 %v1111_v7  ;;  %1012 = vmatprep.subr.bf16.mxu0 %v1112_v8 }
  0x3a   :  { %1040 = vmatprep.subr.bf16.mxu1 %v1113_v9 }
  0x3c   :  { %1013 = vmatpush3.bf16.msra.mxu0 %v1114_v10 }
  0x3d   :  { %1041 = vmatpush3.bf16.msra.mxu1 %v1115_v11  ;;  %1014 = vmatprep.subr.bf16.mxu0 %v1116_v12 }
  0x3e   :  { %1042 = vmatprep.subr.bf16.mxu1 %v1117_v13 }
  0x40   :  { %1015 = vmatpush3.bf16.msra.mxu0 %v1118_v14 }
  0x41   :  { %1043 = vmatpush3.bf16.msra.mxu1 %v1119_v15 }
  0x43   :  { %761 = vmatmul.mubr.bf16.vlgmr.msra.gmra.mxu0 %v860_v20 }
  0x44   :  { %810 = vmatmul.mubr.bf16.vlgmr.msra.gmra.mxu1 %v862_v22  ;;  %768 = vmatprep.mubr.bf16.mxu0 %v869_v27 }
  0x45   :  { %817 = vmatprep.mubr.bf16.mxu1 %v871_v29 }
  0x4b   :  { %769 = vmatmul.mubr.bf16.gmra.mxu0 %v868_v30 }
  0x4c   :  { %818 = vmatmul.mubr.bf16.gmra.mxu1 %v870_v31 }
  0xe3   :  { %v960_v32 = vpop.f32.mrf.mxu0 }
  0xe4   :  { %v988_v33 = vpop.f32.mrf.mxu1 }
  0xe5   :  { %v961_v34 = vpop.f32.mrf.mxu0 }
  0xe6   :  { %v989_v35 = vpop.f32.mrf.mxu1  ;;  %v962_v46 = vadd.f32 %v961_v34, %v960_v32 }
  0xe7   :  { %v963_v36 = vpop.f32.mrf.mxu0  ;;  %v990_v51 = vadd.f32 %v989_v35, %v988_v33 }
  0xe8   :  { %v991_v37 = vpop.f32.mrf.mxu1  ;;  %v665_v50 = vadd.f32 %v962_v46, %v855_v47 }
  0xe9   :  { %v964_v38 = vpop.f32.mrf.mxu0 }
  0xea   :  { %v992_v39 = vpop.f32.mrf.mxu1  ;;  %v965_v52 = vadd.f32 %v964_v38, %v963_v36  ;;  %v714_v58 = vadd.f32 %v990_v51, %v665_v50 }
  0xeb   :  { %v966_v40 = vpop.f32.mrf.mxu0  ;;  %v993_v63 = vadd.f32 %v992_v39, %v991_v37 }
  0xec   :  { %v994_v41 = vpop.f32.mrf.mxu1  ;;  %v668_v59 = vadd.f32 %v965_v52, %v855_v47 }
  0xed   :  { %v967_v42 = vpop.f32.mrf.mxu0 }
  0xee   :  { %v995_v43 = vpop.f32.mrf.mxu1  ;;  %v968_v55 = vadd.f32 %v967_v42, %v966_v40  ;;  %v717_v7 = vadd.f32 %v993_v63, %v668_v59 }
  0xef   :  { %v969_v44 = vpop.f32.mrf.mxu0  ;;  %v996_v3 = vadd.f32 %v995_v43, %v994_v41 }
  0xf0   :  { %v997_v45 = vpop.f32.mrf.mxu1  ;;  %v673_v2 = vadd.f32 %v968_v55, %v855_v47 }
  0xf1   :  { %v970_v48 = vpop.f32.mrf.mxu0 }
  0xf2   :  { %v998_v49 = vpop.f32.mrf.mxu1  ;;  %v971_v4 = vadd.f32 %v970_v48, %v969_v44  ;;  %v722_v15 = vadd.f32 %v996_v3, %v673_v2 }
  0xf3   :  { %v999_v19 = vadd.f32 %v998_v49, %v997_v45 }
  0xf4   :  { %v676_v16 = vadd.f32 %v971_v4, %v855_v47 }
  0xf6   :  { %v725_v30 = vadd.f32 %v999_v19, %v676_v16 }
 0x103   :  { %v1016_v53 = vpop.f32.mrf.mxu0 }
 0x104   :  { %v1044_v54 = vpop.f32.mrf.mxu1 }
 0x105   :  { %v1017_v56 = vpop.f32.mrf.mxu0 }
 0x106   :  { %v1045_v57 = vpop.f32.mrf.mxu1  ;;  %v1018_v60 = vadd.f32 %v1017_v56, %v1016_v53 }
 0x107   :  { %v1019_v61 = vpop.f32.mrf.mxu0  ;;  %v1046_v1 = vadd.f32 %v1045_v57, %v1044_v54 }
 0x108   :  { %v1047_v62 = vpop.f32.mrf.mxu1  ;;  %v763_v0 = vadd.f32 %v1018_v60, %v714_v58 }
 0x109   :  { %v1020_v5 = vpop.f32.mrf.mxu0 }
 0x10a   :  { %v1048_v6 = vpop.f32.mrf.mxu1  ;;  %v812_v8 = vadd.f32 %v1046_v1, %v763_v0  ;;  %v1021_v9 = vadd.f32 %v1020_v5, %v1019_v61 }
 0x10b   :  { %v1022_v10 = vpop.f32.mrf.mxu0  ;;  %v1049_v14 = vadd.f32 %v1048_v6, %v1047_v62 }
 0x10c   :  { %v1050_v11 = vpop.f32.mrf.mxu1  ;;  %v826_v12 = vmax.f32 %v812_v8, 0.0  ;;  %v766_v13 = vadd.f32 %v1021_v9, %v717_v7 }
 0x10d   :  { %v1023_v17 = vpop.f32.mrf.mxu0 }
 0x10e   :  { %v1051_v18 = vpop.f32.mrf.mxu1  ;;  %v940_v20 = vpack.c.bf16 %v826_v12, %v826_v12  ;;  %v815_v21 = vadd.f32 %v1049_v14, %v766_v13  ;;  %v1024_v22 = vadd.f32 %v1023_v17, %v1022_v10 }
 0x10f   :  { %v1025_v23 = vpop.f32.mrf.mxu0  ;;  %v1052_v27 = vadd.f32 %v1051_v18, %v1050_v11 }
 0x110   :  { %v1053_v24 = vpop.f32.mrf.mxu1  ;;  %847 = vst.msk [vmem:[%s1402_s3] sm:$0xf] %vm846_vm0, %v940_v20  ;;  %v827_v25 = vmax.f32 %v815_v21, 0.0  ;;  %v771_v26 = vadd.f32 %v1024_v22, %v722_v15 }
 0x111   :  { %v1026_v28 = vpop.f32.mrf.mxu0 }
 0x112   :  { %v1054_v29 = vpop.f32.mrf.mxu1  ;;  %v941_v31 = vpack.c.bf16 %v827_v25, %v827_v25  ;;  %v820_v32 = vadd.f32 %v1052_v27, %v771_v26  ;;  %v1027_v33 = vadd.f32 %v1026_v28, %v1025_v23 }
 0x113   :  { %v1055_v36 = vadd.f32 %v1054_v29, %v1053_v24 }
 0x114   :  { %848 = vst.msk [vmem:[%s1402_s3 + $0x4] sm:$0xf] %vm846_vm0, %v941_v31  ;;  %v828_v34 = vmax.f32 %v820_v32, 0.0  ;;  %v774_v35 = vadd.f32 %v1027_v33, %v725_v30 }
 0x116   :  { %v942_v37 = vpack.c.bf16 %v828_v34, %v828_v34  ;;  %v823_v38 = vadd.f32 %v1055_v36, %v774_v35 }
 0x118   :  { %849 = vst.msk [vmem:[%s1402_s3 + $0x8] sm:$0xf] %vm846_vm0, %v942_v37  ;;  %v829_v39 = vmax.f32 %v823_v38, 0.0 }
 0x11a   :  { %v943_v40 = vpack.c.bf16 %v829_v39, %v829_v39 }
 0x11c   :  { %850 = vst.msk [vmem:[%s1402_s3 + $0xc] sm:$0xf] %vm846_vm0, %v943_v40 }

// kernel: vae_forward.13
= control target key start
LH: loop header
LB: loop body
LE: loop exit
PB: predicated region body
PF: predicated region fallthrough
CT: control target
= control target key end

     0   :  { %v169_v36 = vlaneseq  ;;  %v2901_v37 = vmov 1966171168   ;;  %s2902_s12 = smov 10   ;;  %vm1261_vm0 = vcmask 1044480   ;;  %vm1257_vm1 = vcmask 80896   ;;  %s2905_s17 = smov 20   ;;  %s3863_s2 = inlined_call_operand.vmem [shape: bf16[1024,256], index: 2, kind: input, shape index: {}]   ;;  %s3864_s0 = inlined_call_operand.vmem [shape: bf16[2,1024], index: 0, kind: input, shape index: {}]   ;;  %s3865_s4 = inlined_call_operand.vmem [shape: bf16[256,20], index: 4, kind: input, shape index: {}]   ;;  %s3866_s1 = inlined_call_operand.vmem [shape: f32[2,10], index: 1, kind: input, shape index: {}]   ;;  %s3867_s3 = inlined_call_operand.vmem [shape: f32[1,256], index: 3, kind: input, shape index: {}]   ;;  %s3868_s6 = inlined_call_operand.vmem [shape: bf16[10,256], index: 6, kind: input, shape index: {}]   ;;  %s3869_s5 = inlined_call_operand.vmem [shape: f32[1,20], index: 5, kind: input, shape index: {}]   ;;  %s3870_s8 = inlined_call_operand.vmem [shape: bf16[256,1024], index: 8, kind: input, shape index: {}]   ;;  %s3871_s10 = inlined_call_operand.vmem [shape: f32[2,128], index: 10, kind: output, shape index: {0}]   ;;  %s3872_s7 = inlined_call_operand.vmem [shape: f32[1,256], index: 7, kind: input, shape index: {}]   ;;  %s3873_s9 = inlined_call_operand.vmem [shape: f32[1,1024], index: 9, kind: input, shape index: {}]   ;;  %s3874_s11 = inlined_call_operand.vmem [shape: bf16[2,1024], index: 11, kind: output, shape index: {1}]  }
   0x1   :  { %v2687_v0 = vld [vmem:[%s3863_s2 + $0x74] ss:$8 sps:$4 sm:$0xff]   ;;  %v2691_v2 = vld [vmem:[%s3863_s2 + $0x70] ss:$8 sps:$4 sm:$0xff]   ;;  %v2693_v4 = vld [vmem:[%s3863_s2 + $0x64] ss:$8 sps:$4 sm:$0xff]   ;;  %v182_v38 = vunpack.c.l.s4 %v2901_v37 }
   0x2   :  { %v2689_v1 = vld [vmem:[%s3863_s2 + $0x174] ss:$8 sps:$4 sm:$0xff]   ;;  %877 = vmatprep.subr.bf16.mxu0 %v2687_v0  ;;  %v2692_v3 = vld [vmem:[%s3863_s2 + $0x170] ss:$8 sps:$4 sm:$0xff]   ;;  %v2695_v5 = vld [vmem:[%s3863_s2 + $0x164] ss:$8 sps:$4 sm:$0xff]  }
   0x3   :  { %918 = vmatprep.subr.bf16.mxu1 %v2689_v1  ;;  %878 = vmatpush1.bf16.msra.mxu0 %v2691_v2  ;;  %v2697_v6 = vld [vmem:[%s3863_s2 + $0x60] ss:$8 sps:$4 sm:$0xff]   ;;  %v2699_v8 = vld [vmem:[%s3863_s2 + $0x54] ss:$8 sps:$4 sm:$0xff]   ;;  %v2703_v10 = vld [vmem:[%s3863_s2 + $0x50] ss:$8 sps:$4 sm:$0xff]   ;;  %v183_v43 = vunpack.c.0.s8 %v182_v38 }
   0x4   :  { %919 = vmatpush1.bf16.msra.mxu1 %v2692_v3  ;;  %879 = vmatprep.subr.bf16.mxu0 %v2693_v4  ;;  %v2698_v7 = vld [vmem:[%s3863_s2 + $0x160] ss:$8 sps:$4 sm:$0xff]   ;;  %v2701_v9 = vld [vmem:[%s3863_s2 + $0x154] ss:$8 sps:$4 sm:$0xff]   ;;  %v2704_v11 = vld [vmem:[%s3863_s2 + $0x150] ss:$8 sps:$4 sm:$0xff]  }
   0x5   :  { %920 = vmatprep.subr.bf16.mxu1 %v2695_v5  ;;  %v2705_v12 = vld [vmem:[%s3863_s2 + $0x44] ss:$8 sps:$4 sm:$0xff]   ;;  %v2709_v14 = vld [vmem:[%s3863_s2 + $0x40] ss:$8 sps:$4 sm:$0xff]   ;;  %v2711_v16 = vld [vmem:[%s3863_s2 + $0x34] ss:$8 sps:$4 sm:$0xff]  }
   0x6   :  { %v2707_v13 = vld [vmem:[%s3863_s2 + $0x144] ss:$8 sps:$4 sm:$0xff]   ;;  %v2710_v15 = vld [vmem:[%s3863_s2 + $0x140] ss:$8 sps:$4 sm:$0xff]   ;;  %v2713_v17 = vld [vmem:[%s3863_s2 + $0x134] ss:$8 sps:$4 sm:$0xff]  }
   0x7   :  { %880 = vmatpush1.bf16.msra.mxu0 %v2697_v6  ;;  %v2715_v18 = vld [vmem:[%s3863_s2 + $0x30] ss:$8 sps:$4 sm:$0xff]   ;;  %v2717_v20 = vld [vmem:[%s3863_s2 + $0x24] ss:$8 sps:$4 sm:$0xff]   ;;  %v2721_v22 = vld [vmem:[%s3863_s2 + $0x20] ss:$8 sps:$4 sm:$0xff]  }
   0x8   :  { %921 = vmatpush1.bf16.msra.mxu1 %v2698_v7  ;;  %881 = vmatprep.subr.bf16.mxu0 %v2699_v8  ;;  %v2716_v19 = vld [vmem:[%s3863_s2 + $0x130] ss:$8 sps:$4 sm:$0xff]   ;;  %v2719_v21 = vld [vmem:[%s3863_s2 + $0x124] ss:$8 sps:$4 sm:$0xff]   ;;  %v2722_v23 = vld [vmem:[%s3863_s2 + $0x120] ss:$8 sps:$4 sm:$0xff]  }
   0x9   :  { %922 = vmatprep.subr.bf16.mxu1 %v2701_v9  ;;  %v2723_v24 = vld [vmem:[%s3863_s2 + $0x14] ss:$8 sps:$4 sm:$0xff]   ;;  %v2727_v26 = vld [vmem:[%s3863_s2 + $0x10] ss:$8 sps:$4 sm:$0xff]   ;;  %v2729_v28 = vld [vmem:[%s3863_s2 + $0x4] ss:$8 sps:$4 sm:$0xff]  }
   0xa   :  { %v2725_v25 = vld [vmem:[%s3863_s2 + $0x114] ss:$8 sps:$4 sm:$0xff]   ;;  %v2728_v27 = vld [vmem:[%s3863_s2 + $0x110] ss:$8 sps:$4 sm:$0xff]   ;;  %v2731_v29 = vld [vmem:[%s3863_s2 + $0x104] ss:$8 sps:$4 sm:$0xff]  }
   0xb   :  { %882 = vmatpush1.bf16.msra.mxu0 %v2703_v10  ;;  %v2733_v30 = vld [vmem:[%s3863_s2] ss:$8 sps:$4 sm:$0xff]   ;;  %v2735_v32 = vld [vmem:[%s3863_s2 + $0xf4] ss:$8 sps:$4 sm:$0xff]   ;;  %v2739_v34 = vld [vmem:[%s3863_s2 + $0xf0] ss:$8 sps:$4 sm:$0xff]  }
   0xc   :  { %923 = vmatpush1.bf16.msra.mxu1 %v2704_v11  ;;  %883 = vmatprep.subr.bf16.mxu0 %v2705_v12  ;;  %v2734_v31 = vld [vmem:[%s3863_s2 + $0x100] ss:$8 sps:$4 sm:$0xff]   ;;  %v2737_v33 = vld [vmem:[%s3863_s2 + $0x1f4] ss:$8 sps:$4 sm:$0xff]   ;;  %v2740_v35 = vld [vmem:[%s3863_s2 + $0x1f0] ss:$8 sps:$4 sm:$0xff]  }
   0xd   :  { %924 = vmatprep.subr.bf16.mxu1 %v2707_v13  ;;  %v2741_v39 = vld [vmem:[%s3863_s2 + $0xe4] ss:$8 sps:$4 sm:$0xff]   ;;  %v2745_v41 = vld [vmem:[%s3863_s2 + $0xe0] ss:$8 sps:$4 sm:$0xff]   ;;  %v3083_v42 = vshrl.u32 %v169_v36, 7  ;;  %vm2299_vm2 = vcmask 162816  }
   0xe   :  { %v2743_v40 = vld [vmem:[%s3863_s2 + $0x1e4] ss:$8 sps:$4 sm:$0xff]   ;;  %v2746_v44 = vld [vmem:[%s3863_s2 + $0x1e0] ss:$8 sps:$4 sm:$0xff]   ;;  %v2747_v45 = vld [vmem:[%s3863_s2 + $0xd4] ss:$8 sps:$4 sm:$0xff]  }
   0xf   :  { %884 = vmatpush1.bf16.msra.mxu0 %v2709_v14  ;;  %v2749_v46 = vld [vmem:[%s3863_s2 + $0x1d4] ss:$8 sps:$4 sm:$0xff]   ;;  %v2751_v47 = vld [vmem:[%s3863_s2 + $0xd0] ss:$8 sps:$4 sm:$0xff]   ;;  %v3101_v49 = vsub.s32 %v183_v43, %v3083_v42  ;;  %v2753_v50 = vld [vmem:[%s3863_s2 + $0xc4] ss:$8 sps:$4 sm:$0xff]  }
  0x10   :  { %925 = vmatpush1.bf16.msra.mxu1 %v2710_v15  ;;  %885 = vmatprep.subr.bf16.mxu0 %v2711_v16  ;;  %v2752_v48 = vld [vmem:[%s3863_s2 + $0x1d0] ss:$8 sps:$4 sm:$0xff]   ;;  %v2755_v51 = vld [vmem:[%s3863_s2 + $0x1c4] ss:$8 sps:$4 sm:$0xff]   ;;  %v2757_v53 = vld [vmem:[%s3863_s2 + $0xc0] ss:$8 sps:$4 sm:$0xff]  }
  0x11   :  { %926 = vmatprep.subr.bf16.mxu1 %v2713_v17  ;;  %v38_v52 = vld [vmem:[%s3864_s0] sm:$0xff]  ;;  %v2759_v56 = vld [vmem:[%s3863_s2 + $0xb4] ss:$8 sps:$4 sm:$0xff]   ;;  %v2763_v59 = vld [vmem:[%s3863_s2 + $0xb0] ss:$8 sps:$4 sm:$0xff]   ;;  %vm2301_vm3 = vcmask 244736  }
  0x12   :  { %v187_v54 = vrot.slane %v38_v52, %v3101_v49  ;;  %v2758_v55 = vld [vmem:[%s3863_s2 + $0x1c0] ss:$8 sps:$4 sm:$0xff]   ;;  %v2761_v57 = vld [vmem:[%s3863_s2 + $0x1b4] ss:$8 sps:$4 sm:$0xff]   ;;  %v2764_v61 = vld [vmem:[%s3863_s2 + $0x1b0] ss:$8 sps:$4 sm:$0xff]   ;;  %v180_v1 = vcombine.high %v38_v52, %v38_v52 }
  0x13   :  { %886 = vmatpush1.bf16.msra.mxu0 %v2715_v18  ;;  %v2765_v62 = vld [vmem:[%s3863_s2 + $0xa4] ss:$8 sps:$4 sm:$0xff]   ;;  %v2769_v2 = vld [vmem:[%s3863_s2 + $0xa0] ss:$8 sps:$4 sm:$0xff]   ;;  %v2771_v4 = vld [vmem:[%s3863_s2 + $0x94] ss:$8 sps:$4 sm:$0xff]  }
  0x14   :  { %927 = vmatpush1.bf16.msra.mxu1 %v2716_v19  ;;  %887 = vmatprep.subr.bf16.mxu0 %v2717_v20  ;;  %v195_v58 = vcombine.high %v187_v54, %v187_v54  ;;  %v2767_v63 = vld [vmem:[%s3863_s2 + $0x1a4] ss:$8 sps:$4 sm:$0xff]   ;;  %v2770_v3 = vld [vmem:[%s3863_s2 + $0x1a0] ss:$8 sps:$4 sm:$0xff]   ;;  %v2773_v5 = vld [vmem:[%s3863_s2 + $0x194] ss:$8 sps:$4 sm:$0xff]   ;;  %v3151_v6 = vrot.slane %v180_v1, %v3101_v49  ;;  %v203_v13 = vrot.slane %v187_v54, %v3101_v49 }
  0x15   :  { %928 = vmatprep.subr.bf16.mxu1 %v2719_v21  ;;  %v2775_v7 = vld [vmem:[%s3863_s2 + $0x90] ss:$8 sps:$4 sm:$0xff]   ;;  %v2777_v9 = vld [vmem:[%s3863_s2 + $0x84] ss:$8 sps:$4 sm:$0xff]   ;;  %v2781_v12 = vld [vmem:[%s3863_s2 + $0x80] ss:$8 sps:$4 sm:$0xff]  }
  0x16   :  { %v217_v60 = vrot.slane %v195_v58, %v3101_v49  ;;  %v2776_v8 = vld [vmem:[%s3863_s2 + $0x190] ss:$8 sps:$4 sm:$0xff]   ;;  %v2779_v10 = vld [vmem:[%s3863_s2 + $0x184] ss:$8 sps:$4 sm:$0xff]   ;;  %v196_v11 = vcombine.high %v3151_v6, %v3151_v6  ;;  %v2782_v14 = vld [vmem:[%s3863_s2 + $0x180] ss:$8 sps:$4 sm:$0xff]   ;;  %v225_v18 = vcombine.high %v203_v13, %v203_v13 }
  0x17   :  { %888 = vmatpush1.bf16.msra.mxu0 %v2721_v22  ;;  %v2786_v15 = vld [vmem:[%s3863_s2 + $0x274] ss:$8 sps:$4 sm:$0xff]   ;;  %v2784_v19 = vld [vmem:[%s3863_s2 + $0x270] ss:$8 sps:$4 sm:$0xff]   ;;  %v2792_v21 = vld [vmem:[%s3863_s2 + $0x264] ss:$8 sps:$4 sm:$0xff]  }
  0x18   :  { %929 = vmatpush1.bf16.msra.mxu1 %v2722_v23  ;;  %889 = vmatprep.subr.bf16.mxu0 %v2723_v24  ;;  %v227_v0 = vcombine.high %v217_v60, %v217_v60  ;;  %v2789_v16 = vld [vmem:[%s3863_s2 + $0x374] ss:$8 sps:$4 sm:$0xff]   ;;  %v224_v17 = vrot.slane %v196_v11, %v3101_v49  ;;  %v2787_v20 = vld [vmem:[%s3863_s2 + $0x370] ss:$8 sps:$4 sm:$0xff]   ;;  %v2795_v22 = vld [vmem:[%s3863_s2 + $0x364] ss:$8 sps:$4 sm:$0xff]  }
  0x19   :  { %930 = vmatprep.subr.bf16.mxu1 %v2725_v25  ;;  %909 = vmatprep.mubr.bf16.mxu0 %v217_v60  ;;  %v2790_v24 = vld [vmem:[%s3863_s2 + $0x260] ss:$8 sps:$4 sm:$0xff]   ;;  %v2808_v36 = vld [vmem:[%s3863_s2 + $0x230] ss:$8 sps:$4 sm:$0xff]   ;;  %v2816_v38 = vld [vmem:[%s3863_s2 + $0x224] ss:$8 sps:$4 sm:$0xff]  }
  0x1a   :  { %950 = vmatprep.mubr.bf16.mxu1 %v227_v0  ;;  %v228_v23 = vcombine.high %v224_v17, %v224_v17  ;;  %v2793_v25 = vld [vmem:[%s3863_s2 + $0x360] ss:$8 sps:$4 sm:$0xff]   ;;  %v2811_v37 = vld [vmem:[%s3863_s2 + $0x330] ss:$8 sps:$4 sm:$0xff]   ;;  %v2822_v43 = vld [vmem:[%s3863_s2 + $0x214] ss:$8 sps:$4 sm:$0xff]  }
  0x1b   :  { %890 = vmatpush1.bf16.msra.mxu0 %v2727_v26  ;;  %v2798_v26 = vld [vmem:[%s3863_s2 + $0x254] ss:$8 sps:$4 sm:$0xff]   ;;  %v2832_v54 = vld [vmem:[%s3863_s2 + $0x2f0] ss:$8 sps:$4 sm:$0xff]   ;;  %v2838_v58 = vld [vmem:[%s3863_s2 + $0x2e0] ss:$8 sps:$4 sm:$0xff]  }
  0x1c   :  { %931 = vmatpush1.bf16.msra.mxu1 %v2728_v27  ;;  %891 = vmatprep.subr.bf16.mxu0 %v2729_v28  ;;  %v2801_v27 = vld [vmem:[%s3863_s2 + $0x354] ss:$8 sps:$4 sm:$0xff]   ;;  %v2796_v28 = vld [vmem:[%s3863_s2 + $0x250] ss:$8 sps:$4 sm:$0xff]   ;;  %v2852_v0 = vld [vmem:[%s3863_s2 + $0x2c4] ss:$8 sps:$4 sm:$0xff]  }
  0x1d   :  { %932 = vmatprep.subr.bf16.mxu1 %v2731_v29  ;;  %v2799_v29 = vld [vmem:[%s3863_s2 + $0x350] ss:$8 sps:$4 sm:$0xff]   ;;  %v2834_v52 = vld [vmem:[%s3863_s2 + $0x2f4] ss:$8 sps:$4 sm:$0xff]   ;;  %v2855_v1 = vld [vmem:[%s3863_s2 + $0x3c4] ss:$8 sps:$4 sm:$0xff]  }
  0x1e   :  { %v2846_v60 = vld [vmem:[%s3863_s2 + $0x2d4] ss:$8 sps:$4 sm:$0xff]   ;;  %v2862_v11 = vld [vmem:[%s3863_s2 + $0x2a0] ss:$8 sps:$4 sm:$0xff]  }
  0x1f   :  { %892 = vmatpush1.bf16.msra.mxu0 %v2733_v30  ;;  %v2804_v30 = vld [vmem:[%s3863_s2 + $0x244] ss:$8 sps:$4 sm:$0xff]  }
  0x20   :  { %933 = vmatpush1.bf16.msra.mxu1 %v2734_v31  ;;  %893 = vmatprep.subr.bf16.mxu0 %v2735_v32  ;;  %v2807_v31 = vld [vmem:[%s3863_s2 + $0x344] ss:$8 sps:$4 sm:$0xff]   ;;  %v2802_v32 = vld [vmem:[%s3863_s2 + $0x240] ss:$8 sps:$4 sm:$0xff]  }
  0x21   :  { %934 = vmatprep.subr.bf16.mxu1 %v2737_v33  ;;  %v2805_v33 = vld [vmem:[%s3863_s2 + $0x340] ss:$8 sps:$4 sm:$0xff]  }
  0x23   :  { %894 = vmatpush2.bf16.msra.mxu0 %v2739_v34  ;;  %v2810_v34 = vld [vmem:[%s3863_s2 + $0x234] ss:$8 sps:$4 sm:$0xff]  }
  0x24   :  { %935 = vmatpush2.bf16.msra.mxu1 %v2740_v35  ;;  %895 = vmatprep.subr.bf16.mxu0 %v2741_v39  ;;  %v2813_v35 = vld [vmem:[%s3863_s2 + $0x334] ss:$8 sps:$4 sm:$0xff]   ;;  %v2819_v39 = vld [vmem:[%s3863_s2 + $0x324] ss:$8 sps:$4 sm:$0xff]  }
  0x25   :  { %936 = vmatprep.subr.bf16.mxu1 %v2743_v40  ;;  %v2814_v40 = vld [vmem:[%s3863_s2 + $0x220] ss:$8 sps:$4 sm:$0xff]  }
  0x27   :  { %896 = vmatpush2.bf16.msra.mxu0 %v2745_v41  ;;  %v2817_v41 = vld [vmem:[%s3863_s2 + $0x320] ss:$8 sps:$4 sm:$0xff]  }
  0x28   :  { %937 = vmatpush2.bf16.msra.mxu1 %v2746_v44  ;;  %897 = vmatprep.subr.bf16.mxu0 %v2747_v45  ;;  %v2825_v44 = vld [vmem:[%s3863_s2 + $0x314] ss:$8 sps:$4 sm:$0xff]   ;;  %v2820_v45 = vld [vmem:[%s3863_s2 + $0x210] ss:$8 sps:$4 sm:$0xff]  }
  0x29   :  { %938 = vmatprep.subr.bf16.mxu1 %v2749_v46  ;;  %v2823_v46 = vld [vmem:[%s3863_s2 + $0x310] ss:$8 sps:$4 sm:$0xff]  }
  0x2b   :  { %898 = vmatpush2.bf16.msra.mxu0 %v2751_v47  ;;  %v2828_v47 = vld [vmem:[%s3863_s2 + $0x204] ss:$8 sps:$4 sm:$0xff]  }
  0x2c   :  { %939 = vmatpush2.bf16.msra.mxu1 %v2752_v48  ;;  %899 = vmatprep.subr.bf16.mxu0 %v2753_v50  ;;  %v2831_v48 = vld [vmem:[%s3863_s2 + $0x304] ss:$8 sps:$4 sm:$0xff]   ;;  %v2826_v50 = vld [vmem:[%s3863_s2 + $0x200] ss:$8 sps:$4 sm:$0xff]  }
  0x2d   :  { %940 = vmatprep.subr.bf16.mxu1 %v2755_v51  ;;  %v2829_v51 = vld [vmem:[%s3863_s2 + $0x300] ss:$8 sps:$4 sm:$0xff]  }
  0x2f   :  { %900 = vmatpush2.bf16.msra.mxu0 %v2757_v53  ;;  %v2837_v53 = vld [vmem:[%s3863_s2 + $0x3f4] ss:$8 sps:$4 sm:$0xff]  }
  0x30   :  { %941 = vmatpush2.bf16.msra.mxu1 %v2758_v55  ;;  %901 = vmatprep.subr.bf16.mxu0 %v2759_v56  ;;  %v2835_v55 = vld [vmem:[%s3863_s2 + $0x3f0] ss:$8 sps:$4 sm:$0xff]   ;;  %v2840_v56 = vld [vmem:[%s3863_s2 + $0x2e4] ss:$8 sps:$4 sm:$0xff]  }
  0x31   :  { %942 = vmatprep.subr.bf16.mxu1 %v2761_v57  ;;  %v2843_v57 = vld [vmem:[%s3863_s2 + $0x3e4] ss:$8 sps:$4 sm:$0xff]  }
  0x33   :  { %902 = vmatpush2.bf16.msra.mxu0 %v2763_v59  ;;  %v2841_v59 = vld [vmem:[%s3863_s2 + $0x3e0] ss:$8 sps:$4 sm:$0xff]  }
  0x34   :  { %943 = vmatpush2.bf16.msra.mxu1 %v2764_v61  ;;  %903 = vmatprep.subr.bf16.mxu0 %v2765_v62  ;;  %v2849_v61 = vld [vmem:[%s3863_s2 + $0x3d4] ss:$8 sps:$4 sm:$0xff]   ;;  %v2844_v62 = vld [vmem:[%s3863_s2 + $0x2d0] ss:$8 sps:$4 sm:$0xff]  }
  0x35   :  { %944 = vmatprep.subr.bf16.mxu1 %v2767_v63  ;;  %v2847_v63 = vld [vmem:[%s3863_s2 + $0x3d0] ss:$8 sps:$4 sm:$0xff]  }
  0x37   :  { %904 = vmatpush2.bf16.msra.mxu0 %v2769_v2  ;;  %v2850_v2 = vld [vmem:[%s3863_s2 + $0x2c0] ss:$8 sps:$4 sm:$0xff]  }
  0x38   :  { %945 = vmatpush2.bf16.msra.mxu1 %v2770_v3  ;;  %905 = vmatprep.subr.bf16.mxu0 %v2771_v4  ;;  %v2853_v3 = vld [vmem:[%s3863_s2 + $0x3c0] ss:$8 sps:$4 sm:$0xff]   ;;  %v2858_v4 = vld [vmem:[%s3863_s2 + $0x2b4] ss:$8 sps:$4 sm:$0xff]  }
  0x39   :  { %946 = vmatprep.subr.bf16.mxu1 %v2773_v5  ;;  %v2861_v5 = vld [vmem:[%s3863_s2 + $0x3b4] ss:$8 sps:$4 sm:$0xff]  }
  0x3b   :  { %906 = vmatpush2.bf16.msra.mxu0 %v2775_v7  ;;  %v2856_v7 = vld [vmem:[%s3863_s2 + $0x2b0] ss:$8 sps:$4 sm:$0xff]  }
  0x3c   :  { %947 = vmatpush2.bf16.msra.mxu1 %v2776_v8  ;;  %907 = vmatprep.subr.bf16.mxu0 %v2777_v9  ;;  %v2859_v8 = vld [vmem:[%s3863_s2 + $0x3b0] ss:$8 sps:$4 sm:$0xff]   ;;  %v2864_v9 = vld [vmem:[%s3863_s2 + $0x2a4] ss:$8 sps:$4 sm:$0xff]  }
  0x3d   :  { %948 = vmatprep.subr.bf16.mxu1 %v2779_v10  ;;  %v2867_v10 = vld [vmem:[%s3863_s2 + $0x3a4] ss:$8 sps:$4 sm:$0xff]  }
  0x3f   :  { %908 = vmatpush2.bf16.msra.mxu0 %v2781_v12  ;;  %v2865_v12 = vld [vmem:[%s3863_s2 + $0x3a0] ss:$8 sps:$4 sm:$0xff]  }
  0x40   :  { %949 = vmatpush2.bf16.msra.mxu1 %v2782_v14  ;;  %959 = vmatprep.subr.bf16.mxu0 %v2786_v15  ;;  %v2873_v14 = vld [vmem:[%s3863_s2 + $0x394] ss:$8 sps:$4 sm:$0xff]   ;;  %v2868_v15 = vld [vmem:[%s3863_s2 + $0x290] ss:$8 sps:$4 sm:$0xff]  }
  0x41   :  { %1000 = vmatprep.subr.bf16.mxu1 %v2789_v16  ;;  %v2871_v16 = vld [vmem:[%s3863_s2 + $0x390] ss:$8 sps:$4 sm:$0xff]  }
  0x42   :  { %910 = vmatmul.mubr.bf16.vlgmr.msra.gmra.mxu0 %v203_v13  ;;  %v2870_v13 = vld [vmem:[%s3863_s2 + $0x294] ss:$8 sps:$4 sm:$0xff]  }
  0x43   :  { %951 = vmatmul.mubr.bf16.vlgmr.msra.gmra.mxu1 %v225_v18  ;;  %960 = vmatpush1.bf16.msra.mxu0 %v2784_v19  ;;  %v2879_v18 = vld [vmem:[%s3863_s2 + $0x384] ss:$8 sps:$4 sm:$0xff]   ;;  %v210_v19 = vrot.slane %v3151_v6, %v3101_v49  ;;  %v2880_v6 = vld [vmem:[%s3865_s4 + $0x78] sm:$0xff]  }
  0x44   :  { %1001 = vmatpush1.bf16.msra.mxu1 %v2787_v20  ;;  %961 = vmatprep.subr.bf16.mxu0 %v2792_v21  ;;  %v2874_v20 = vld [vmem:[%s3863_s2 + $0x280] ss:$8 sps:$4 sm:$0xff]  }
  0x45   :  { %1002 = vmatprep.subr.bf16.mxu1 %v2795_v22  ;;  %991 = vmatprep.mubr.bf16.mxu0 %v224_v17  ;;  %v2876_v17 = vld [vmem:[%s3863_s2 + $0x284] ss:$8 sps:$4 sm:$0xff]   ;;  %v2877_v21 = vld [vmem:[%s3863_s2 + $0x380] ss:$8 sps:$4 sm:$0xff]   ;;  %v226_v22 = vcombine.high %v210_v19, %v210_v19 }
  0x46   :  { %1032 = vmatprep.mubr.bf16.mxu1 %v228_v23  ;;  %v2881_v23 = vld [vmem:[%s3865_s4 + $0x38] sm:$0xff]  }
  0x47   :  { %962 = vmatpush1.bf16.msra.mxu0 %v2790_v24  ;;  %v2882_v24 = vld [vmem:[%s3865_s4 + $0x70] sm:$0xff]  }
  0x48   :  { %1003 = vmatpush1.bf16.msra.mxu1 %v2793_v25  ;;  %963 = vmatprep.subr.bf16.mxu0 %v2798_v26  ;;  %v2883_v25 = vld [vmem:[%s3865_s4 + $0x30] sm:$0xff]   ;;  %v2884_v26 = vld [vmem:[%s3865_s4 + $0x68] sm:$0xff]  }
  0x49   :  { %1004 = vmatprep.subr.bf16.mxu1 %v2801_v27  ;;  %v2885_v27 = vld [vmem:[%s3865_s4 + $0x28] sm:$0xff]  }
  0x4b   :  { %964 = vmatpush1.bf16.msra.mxu0 %v2796_v28  ;;  %v2886_v28 = vld [vmem:[%s3865_s4 + $0x60] sm:$0xff]  }
  0x4c   :  { %1005 = vmatpush1.bf16.msra.mxu1 %v2799_v29  ;;  %965 = vmatprep.subr.bf16.mxu0 %v2804_v30  ;;  %v2887_v29 = vld [vmem:[%s3865_s4 + $0x20] sm:$0xff]   ;;  %v2888_v30 = vld [vmem:[%s3865_s4 + $0x58] sm:$0xff]  }
  0x4d   :  { %1006 = vmatprep.subr.bf16.mxu1 %v2807_v31  ;;  %v2889_v31 = vld [vmem:[%s3865_s4 + $0x18] sm:$0xff]  }
  0x4f   :  { %966 = vmatpush1.bf16.msra.mxu0 %v2802_v32  ;;  %v2890_v32 = vld [vmem:[%s3865_s4 + $0x50] sm:$0xff]  }
  0x50   :  { %1007 = vmatpush1.bf16.msra.mxu1 %v2805_v33  ;;  %967 = vmatprep.subr.bf16.mxu0 %v2810_v34  ;;  %v2891_v33 = vld [vmem:[%s3865_s4 + $0x10] sm:$0xff]   ;;  %v2892_v34 = vld [vmem:[%s3865_s4 + $0x48] sm:$0xff]  }
  0x51   :  { %1008 = vmatprep.subr.bf16.mxu1 %v2813_v35  ;;  %v2893_v35 = vld [vmem:[%s3865_s4 + $0x8] sm:$0xff]  }
  0x53   :  { %968 = vmatpush1.bf16.msra.mxu0 %v2808_v36  ;;  %v2894_v36 = vld [vmem:[%s3865_s4 + $0x40] sm:$0xff]  }
  0x54   :  { %1009 = vmatpush1.bf16.msra.mxu1 %v2811_v37  ;;  %969 = vmatprep.subr.bf16.mxu0 %v2816_v38  ;;  %v2895_v37 = vld [vmem:[%s3865_s4] sm:$0xff]  }
  0x55   :  { %1010 = vmatprep.subr.bf16.mxu1 %v2819_v39  ;;  %v1223_v38 = vld [vmem:[%s3866_s1] sm:$0x3] }
  0x56   :  { %1225 = vrot.lane.b32.xlu0 %v1223_v38, %s2902_s12 }
  0x57   :  { %970 = vmatpush1.bf16.msra.mxu0 %v2814_v40 }
  0x58   :  { %1011 = vmatpush1.bf16.msra.mxu1 %v2817_v41  ;;  %971 = vmatprep.subr.bf16.mxu0 %v2822_v43 }
  0x59   :  { %1012 = vmatprep.subr.bf16.mxu1 %v2825_v44 }
  0x5b   :  { %972 = vmatpush1.bf16.msra.mxu0 %v2820_v45 }
  0x5c   :  { %1013 = vmatpush1.bf16.msra.mxu1 %v2823_v46  ;;  %973 = vmatprep.subr.bf16.mxu0 %v2828_v47 }
  0x5d   :  { %1014 = vmatprep.subr.bf16.mxu1 %v2831_v48  ;;  %v3421_v48 = vsub.s32 0, %v3083_v42 }
  0x5f   :  { %974 = vmatpush1.bf16.msra.mxu0 %v2826_v50  ;;  %v167_v50 = vld [vmem:[%s3867_s3] sm:$0x3] }
  0x60   :  { %1015 = vmatpush1.bf16.msra.mxu1 %v2829_v51  ;;  %975 = vmatprep.subr.bf16.mxu0 %v2834_v52  ;;  %v3427_v51 = vsub.s32 1, %v3083_v42  ;;  %v172_v52 = vrot.slane %v167_v50, %v3421_v48 }
  0x61   :  { %1016 = vmatprep.subr.bf16.mxu1 %v2837_v53 }
  0x62   :  { %v176_v53 = vrot.slane %v167_v50, %v3427_v51 }
  0x63   :  { %976 = vmatpush2.bf16.msra.mxu0 %v2832_v54 }
  0x64   :  { %1017 = vmatpush2.bf16.msra.mxu1 %v2835_v55  ;;  %977 = vmatprep.subr.bf16.mxu0 %v2840_v56 }
  0x65   :  { %1018 = vmatprep.subr.bf16.mxu1 %v2843_v57 }
  0x67   :  { %978 = vmatpush2.bf16.msra.mxu0 %v2838_v58 }
  0x68   :  { %1019 = vmatpush2.bf16.msra.mxu1 %v2841_v59  ;;  %979 = vmatprep.subr.bf16.mxu0 %v2846_v60 }
  0x69   :  { %1020 = vmatprep.subr.bf16.mxu1 %v2849_v61 }
  0x6b   :  { %980 = vmatpush2.bf16.msra.mxu0 %v2844_v62 }
  0x6c   :  { %1021 = vmatpush2.bf16.msra.mxu1 %v2847_v63  ;;  %981 = vmatprep.subr.bf16.mxu0 %v2852_v0 }
  0x6d   :  { %1022 = vmatprep.subr.bf16.mxu1 %v2855_v1 }
  0x6f   :  { %982 = vmatpush2.bf16.msra.mxu0 %v2850_v2 }
  0x70   :  { %1023 = vmatpush2.bf16.msra.mxu1 %v2853_v3  ;;  %983 = vmatprep.subr.bf16.mxu0 %v2858_v4 }
  0x71   :  { %1024 = vmatprep.subr.bf16.mxu1 %v2861_v5 }
  0x73   :  { %984 = vmatpush2.bf16.msra.mxu0 %v2856_v7 }
  0x74   :  { %1025 = vmatpush2.bf16.msra.mxu1 %v2859_v8  ;;  %985 = vmatprep.subr.bf16.mxu0 %v2864_v9 }
  0x75   :  { %1026 = vmatprep.subr.bf16.mxu1 %v2867_v10 }
  0x77   :  { %986 = vmatpush2.bf16.msra.mxu0 %v2862_v11  ;;  %v2896_v11 = vld [vmem:[%s3868_s6 + $0x4] ss:$8 sps:$4 sm:$0x1f]  }
  0x78   :  { %1027 = vmatpush2.bf16.msra.mxu1 %v2865_v12  ;;  %987 = vmatprep.subr.bf16.mxu0 %v2870_v13  ;;  %v2898_v12 = vld [vmem:[%s3868_s6] ss:$8 sps:$4 sm:$0x1f]   ;;  %s2904_s6 = smov 118  }
  0x79   :  { %1028 = vmatprep.subr.bf16.mxu1 %v2873_v14  ;;  %v1263_v13 = vsel %vm1261_vm0, %v2898_v12, 0 }
  0x7b   :  { %988 = vmatpush2.bf16.msra.mxu0 %v2868_v15  ;;  %v2507_v15 = vld [vmem:[%s3869_s5] ss:$0 sm:$0xff] }
  0x7c   :  { %1029 = vmatpush2.bf16.msra.mxu1 %v2871_v16  ;;  %989 = vmatprep.subr.bf16.mxu0 %v2876_v17 }
  0x7d   :  { %1030 = vmatprep.subr.bf16.mxu1 %v2879_v18 }
  0x7f   :  { %990 = vmatpush2.bf16.msra.mxu0 %v2874_v20 }
  0x80   :  { %1031 = vmatpush2.bf16.msra.mxu1 %v2877_v21  ;;  %2660 = vmatprep.subr.bf16.mxu0 %v2880_v6  ;;  %v2903_v6 = vmov 0  }
  0x81   :  { %2526 = vmatprep.subr.msk.bf16.mxu1 %vm1261_vm0, %v2896_v11  ;;  %v1326_v11 = vld [vmem:[%s3870_s8 + $0x68] sm:$0xff] }
  0x82   :  { %992 = vmatmul.mubr.bf16.vlgmr.msra.gmra.mxu0 %v210_v19 }
  0x83   :  { %1033 = vmatmul.mubr.bf16.vlgmr.msra.gmra.mxu1 %v226_v22  ;;  %2661 = vmatpush3.bf16.msra.mxu0 %v2881_v23 }
  0x84   :  { %2662 = vmatprep.subr.bf16.mxu0 %v2882_v24  ;;  %1283 = vmatpush1.bf16.msra.mxu1 %v1263_v13 }
  0x85   :  { %1300 = vmatprep.mubr.bf16.mxu1 %v2903_v6 }
  0x87   :  { %2663 = vmatpush3.bf16.msra.mxu0 %v2883_v25 }
  0x88   :  { %2664 = vmatprep.subr.bf16.mxu0 %v2884_v26  ;;  %v1369_v26 = vld [vmem:[%s3870_s8 + $0x1c0] sm:$0xff] }
  0x8b   :  { %2665 = vmatpush3.bf16.msra.mxu0 %v2885_v27  ;;  %v1373_v27 = vld [vmem:[%s3870_s8 + $0x1e0] sm:$0xff] }
  0x8c   :  { %2666 = vmatprep.subr.bf16.mxu0 %v2886_v28  ;;  %v1370_v28 = vld [vmem:[%s3870_s8 + $0x1c8] sm:$0xff] }
  0x8f   :  { %2667 = vmatpush3.bf16.msra.mxu0 %v2887_v29  ;;  %v2585_v29 = vcombine.high %v1369_v26, %v1373_v27 }
  0x90   :  { %2668 = vmatprep.subr.bf16.mxu0 %v2888_v30  ;;  %v1374_v30 = vld [vmem:[%s3870_s8 + $0x1e8] sm:$0xff] }
  0x91   :  { %2123 = vmatprep.subr.bf16.mxu1 %v2585_v29 }
  0x93   :  { %2669 = vmatpush3.bf16.msra.mxu0 %v2889_v31  ;;  %v2586_v31 = vcombine.low %v1370_v28, %v1374_v30 }
  0x94   :  { %2670 = vmatprep.subr.bf16.mxu0 %v2890_v32  ;;  %v2587_v32 = vcombine.high %v1370_v28, %v1374_v30 }
  0x97   :  { %2671 = vmatpush3.bf16.msra.mxu0 %v2891_v33  ;;  %v1362_v33 = vld [vmem:[%s3870_s8 + $0x188] sm:$0xff] }
  0x98   :  { %2672 = vmatprep.subr.bf16.mxu0 %v2892_v34  ;;  %v1366_v34 = vld [vmem:[%s3870_s8 + $0x1a8] sm:$0xff] }
  0x99   :  { %v2578_v38 = vcombine.low %v1362_v33, %v1366_v34 }
  0x9b   :  { %2673 = vmatpush3.bf16.msra.mxu0 %v2893_v35  ;;  %v2579_v35 = vcombine.high %v1362_v33, %v1366_v34  ;;  %v1317_v33 = vld [vmem:[%s3870_s8 + $0x20] sm:$0xff]  ;;  %v1426_v34 = vld [vmem:[%s3870_s8 + $0x388] sm:$0xff] }
  0x9c   :  { %2674 = vmatprep.subr.bf16.mxu0 %v2894_v36  ;;  %v1354_v36 = vld [vmem:[%s3870_s8 + $0x148] sm:$0xff] }
  0x9f   :  { %2675 = vmatpush3.bf16.msra.mxu0 %v2895_v37  ;;  %v1358_v37 = vld [vmem:[%s3870_s8 + $0x168] sm:$0xff] }
  0xa0   :  { %2164 = vmatprep.subr.bf16.mxu0 %v2587_v32  ;;  %v2570_v50 = vcombine.low %v1354_v36, %v1358_v37 }
  0xc8   :  { %v1226_v23 = vpop.permute.xlu0 %1225 }
 0x102   :  { %v911_v39 = vpop.f32.mrf.mxu0 }
 0x103   :  { %v952_v40 = vpop.f32.mrf.mxu1  ;;  %v912_v54 = vadd.f32 %v911_v39, %v172_v52  ;;  %v1361_v39 = vld [vmem:[%s3870_s8 + $0x180] sm:$0xff] }
 0x104   :  { %v913_v41 = vpop.f32.mrf.mxu0 }
 0x105   :  { %v954_v43 = vpop.f32.mrf.mxu1  ;;  %v914_v55 = vadd.f32 %v913_v41, %v176_v53  ;;  %v953_v56 = vadd.f32 %v952_v40, %v912_v54  ;;  %v2571_v40 = vcombine.high %v1354_v36, %v1358_v37  ;;  %v1353_v54 = vld [vmem:[%s3870_s8 + $0x140] sm:$0xff] }
 0x106   :  { %v915_v44 = vpop.f32.mrf.mxu0 }
 0x107   :  { %v956_v45 = vpop.f32.mrf.mxu1  ;;  %v955_v59 = vadd.f32 %v954_v43, %v914_v55  ;;  %v1365_v43 = vld [vmem:[%s3870_s8 + $0x1a0] sm:$0xff]  ;;  %v1346_v44 = vld [vmem:[%s3870_s8 + $0x108] sm:$0xff] }
 0x108   :  { %v916_v46 = vpop.f32.mrf.mxu0  ;;  %v1350_v45 = vld [vmem:[%s3870_s8 + $0x128] sm:$0xff]  ;;  %v2577_v53 = vcombine.high %v1361_v39, %v1365_v43 }
 0x109   :  { %v957_v47 = vpop.f32.mrf.mxu1  ;;  %v2563_v55 = vcombine.high %v1346_v44, %v1350_v45 }
 0x10a   :  { %v2584_v47 = vcombine.low %v1369_v26, %v1373_v27  ;;  %v1434_v26 = vld [vmem:[%s3870_s8 + $0x3c8] sm:$0xff] }
 0x10b   :  { %v1438_v27 = vld [vmem:[%s3870_s8 + $0x3e8] sm:$0xff] }
 0x10c   :  { %v2651_v32 = vcombine.high %v1434_v26, %v1438_v27  ;;  %v2650_v37 = vcombine.low %v1434_v26, %v1438_v27  ;;  %v1390_v27 = vld [vmem:[%s3870_s8 + $0x268] sm:$0xff] }
 0x142   :  { %v993_v57 = vpop.f32.mrf.mxu0 }
 0x143   :  { %v1034_v58 = vpop.f32.mrf.mxu1  ;;  %v994_v60 = vadd.f32 %v993_v57, %v953_v56  ;;  %v1357_v56 = vld [vmem:[%s3870_s8 + $0x160] sm:$0xff]  ;;  %v1338_v57 = vld [vmem:[%s3870_s8 + $0xc8] sm:$0xff] }
 0x144   :  { %v995_v61 = vpop.f32.mrf.mxu0 }
 0x145   :  { %v1036_v62 = vpop.f32.mrf.mxu1  ;;  %v1035_v63 = vadd.f32 %v1034_v58, %v994_v60  ;;  %v996_v0 = vadd.f32 %v995_v61, %v955_v59  ;;  %v1342_v58 = vld [vmem:[%s3870_s8 + $0xe8] sm:$0xff]  ;;  %v2576_v59 = vcombine.low %v1361_v39, %v1365_v43  ;;  %v2562_v60 = vcombine.low %v1346_v44, %v1350_v45  ;;  %v1433_v39 = vld [vmem:[%s3870_s8 + $0x3c0] sm:$0xff] }
 0x146   :  { %v997_v1 = vpop.f32.mrf.mxu0  ;;  %v2569_v61 = vcombine.high %v1353_v54, %v1357_v56  ;;  %v1418_v43 = vld [vmem:[%s3870_s8 + $0x348] sm:$0xff] }
 0x147   :  { %v1038_v2 = vpop.f32.mrf.mxu1  ;;  %v1037_v3 = vadd.f32 %v1036_v62, %v996_v0  ;;  %v1041_v4 = vmax.f32 %v1035_v63, 0.0  ;;  %v1345_v62 = vld [vmem:[%s3870_s8 + $0x100] sm:$0xff]  ;;  %v2555_v63 = vcombine.high %v1338_v57, %v1342_v58  ;;  %v1330_v1 = vld [vmem:[%s3870_s8 + $0x88] sm:$0xff] }
 0x148   :  { %v998_v5 = vpop.f32.mrf.mxu0  ;;  %v1349_v0 = vld [vmem:[%s3870_s8 + $0x120] sm:$0xff]  ;;  %v1334_v2 = vld [vmem:[%s3870_s8 + $0xa8] sm:$0xff] }
 0x149   :  { %v1039_v7 = vpop.f32.mrf.mxu1  ;;  %v1042_v8 = vmax.f32 %v1037_v3, 0.0  ;;  %v1043_v10 = vpack.c.bf16 %v1041_v4, %v1041_v4  ;;  %v2568_v3 = vcombine.low %v1353_v54, %v1357_v56  ;;  %v2554_v4 = vcombine.low %v1338_v57, %v1342_v58  ;;  %v1422_v44 = vld [vmem:[%s3870_s8 + $0x368] sm:$0xff] }
 0x14a   :  { %v2561_v5 = vcombine.high %v1345_v62, %v1349_v0  ;;  %v1337_v7 = vld [vmem:[%s3870_s8 + $0xc0] sm:$0xff]  ;;  %v2560_v12 = vcombine.low %v1345_v62, %v1349_v0  ;;  %v2546_v13 = vcombine.low %v1330_v1, %v1334_v2  ;;  %v1410_v54 = vld [vmem:[%s3870_s8 + $0x308] sm:$0xff]  ;;  %v2634_v57 = vcombine.low %v1418_v43, %v1422_v44 }
 0x14b   :  { %v1044_v9 = vpack.c.bf16 %v1042_v8, %v1042_v8  ;;  %v2547_v8 = vcombine.high %v1330_v1, %v1334_v2  ;;  %v1402_v62 = vld [vmem:[%s3870_s8 + $0x2c8] sm:$0xff] }
 0x14d   :  { %1212 = vmatprep.mubr.bf16.mxu0 %v1044_v9  ;;  %v1341_v9 = vld [vmem:[%s3870_s8 + $0xe0] sm:$0xff] }
 0x14e   :  { %1213 = vmatmul.mubr.bf16.vlgmr.msra.gmra.mxu0 %v1043_v10  ;;  %v1322_v10 = vld [vmem:[%s3870_s8 + $0x48] sm:$0xff] }
 0x14f   :  { %2165 = vmatpush1.bf16.msra.mxu0 %v2586_v31  ;;  %v1313_v31 = vld [vmem:[%s3870_s8] sm:$0xff] }
 0x150   :  { %2166 = vmatprep.subr.bf16.mxu0 %v2579_v35  ;;  %v1430_v35 = vld [vmem:[%s3870_s8 + $0x3a8] sm:$0xff]  ;;  %v2528_v45 = vcombine.low %v1313_v31, %v1317_v33 }
 0x153   :  { %2167 = vmatpush1.bf16.msra.mxu0 %v2578_v38  ;;  %v2529_v38 = vcombine.high %v1313_v31, %v1317_v33  ;;  %v1377_v31 = vld [vmem:[%s3870_s8 + $0x200] sm:$0xff]  ;;  %v1378_v33 = vld [vmem:[%s3870_s8 + $0x208] sm:$0xff] }
 0x154   :  { %2168 = vmatprep.subr.bf16.mxu0 %v2571_v40  ;;  %v2643_v40 = vcombine.high %v1426_v34, %v1430_v35 }
 0x157   :  { %2169 = vmatpush1.bf16.msra.mxu0 %v2570_v50  ;;  %v1425_v50 = vld [vmem:[%s3870_s8 + $0x380] sm:$0xff] }
 0x158   :  { %2170 = vmatprep.subr.bf16.mxu0 %v2563_v55  ;;  %v1414_v55 = vld [vmem:[%s3870_s8 + $0x328] sm:$0xff] }
 0x159   :  { %v2626_v1 = vcombine.low %v1410_v54, %v1414_v55 }
 0x15b   :  { %2171 = vmatpush1.bf16.msra.mxu0 %v2562_v60  ;;  %v2627_v60 = vcombine.high %v1410_v54, %v1414_v55  ;;  %v1237_v54 = vld [vmem:[%s3872_s7] sm:$0x3] }
 0x15c   :  { %2172 = vmatprep.subr.bf16.mxu0 %v2555_v63  ;;  %v1406_v63 = vld [vmem:[%s3870_s8 + $0x2e8] sm:$0xff]  ;;  %v1242_v55 = vrot.slane %v1237_v54, %v3421_v48 }
 0x15f   :  { %2173 = vmatpush1.bf16.msra.mxu0 %v2554_v4  ;;  %v2619_v4 = vcombine.high %v1402_v62, %v1406_v63 }
 0x160   :  { %2174 = vmatprep.subr.bf16.mxu0 %v2547_v8  ;;  %v1398_v8 = vld [vmem:[%s3870_s8 + $0x2a8] sm:$0xff] }
 0x163   :  { %2175 = vmatpush1.bf16.msra.mxu0 %v2546_v13  ;;  %v1401_v13 = vld [vmem:[%s3870_s8 + $0x2c0] sm:$0xff] }
 0x20e   :  { %v2676_v14 = vpop.f32.mrf.mxu0 }
 0x210   :  { %v2677_v16 = vpop.f32.mrf.mxu0 }
 0x211   :  { %v2678_v17 = vadd.f32 %v2677_v16, %v2676_v14  ;;  %v2553_v14 = vcombine.high %v1337_v7, %v1341_v9  ;;  %v2539_v16 = vcombine.high %v1322_v10, %v1326_v11 }
 0x212   :  { %v2679_v18 = vpop.f32.mrf.mxu0 }
 0x213   :  { %v3440_v19 = vadd.f32 %v2678_v17, %v2507_v15  ;;  %v1329_v15 = vld [vmem:[%s3870_s8 + $0x80] sm:$0xff]  ;;  %v1314_v18 = vld [vmem:[%s3870_s8 + $0x8] sm:$0xff]  ;;  %2176 = vmatprep.subr.bf16.mxu0 %v2539_v16 }
 0x214   :  { %v2680_v20 = vpop.f32.mrf.mxu0  ;;  %v1333_v17 = vld [vmem:[%s3870_s8 + $0xa0] sm:$0xff] }
 0x215   :  { %v1220_v21 = vmul.f32 0.5, %v3440_v19  ;;  %v1318_v20 = vld [vmem:[%s3870_s8 + $0x28] sm:$0xff]  ;;  %v2545_v6 = vcombine.high %v1329_v15, %v1333_v17  ;;  %v2544_v28 = vcombine.low %v1329_v15, %v1333_v17 }
 0x216   :  { %v2530_v29 = vcombine.low %v1314_v18, %v1318_v20 }
 0x217   :  { %v1221_v22 = vmul.f32 1.442695, %v1220_v21  ;;  %v2552_v21 = vcombine.low %v1337_v7, %v1341_v9  ;;  %v1394_v7 = vld [vmem:[%s3870_s8 + $0x288] sm:$0xff] }
 0x218   :  { %v2610_v16 = vcombine.low %v1394_v7, %v1398_v8 }
 0x219   :  { %2899 = vpow2.f32 %v1221_v22  ;;  %v2538_v22 = vcombine.low %v1322_v10, %v1326_v11  ;;  %v2618_v10 = vcombine.low %v1402_v62, %v1406_v63  ;;  %v1363_v63 = vld [vmem:[%s3870_s8 + $0x190] sm:$0xff] }
 0x21b   :  { %2177 = vmatpush1.bf16.msra.mxu0 %v2538_v22 }
 0x226   :  { %v2900_v24 = vpop.eup %2899 }
 0x227   :  { %v1228_v25 = vmul.f32 %v2900_v24, %v1226_v23  ;;  %v1321_v23 = vld [vmem:[%s3870_s8 + $0x40] sm:$0xff]  ;;  %v2531_v24 = vcombine.high %v1314_v18, %v1318_v20 }
 0x228   :  { %v1393_v18 = vld [vmem:[%s3870_s8 + $0x280] sm:$0xff] }
 0x229   :  { %1230 = vrot.lane.b32.xlu0 %v1228_v25, %s2904_s6  ;;  %v1325_v25 = vld [vmem:[%s3870_s8 + $0x60] sm:$0xff]  ;;  %2178 = vmatprep.subr.bf16.mxu0 %v2531_v24 }
 0x22a   :  { %v2537_v30 = vcombine.high %v1321_v23, %v1325_v25  ;;  %v2536_v36 = vcombine.low %v1321_v23, %v1325_v25  ;;  %2179 = vmatpush1.bf16.msra.mxu0 %v2530_v29  ;;  %v1397_v20 = vld [vmem:[%s3870_s8 + $0x2a0] sm:$0xff]  ;;  %v1386_v25 = vld [vmem:[%s3870_s8 + $0x248] sm:$0xff] }
 0x22b   :  { %2180 = vmatprep.subr.bf16.mxu0 %v2651_v32  ;;  %v2609_v22 = vcombine.high %v1393_v18, %v1397_v20  ;;  %v1385_v23 = vld [vmem:[%s3870_s8 + $0x240] sm:$0xff]  ;;  %v2602_v29 = vcombine.low %v1386_v25, %v1390_v27 }
 0x22c   :  { %v1389_v24 = vld [vmem:[%s3870_s8 + $0x260] sm:$0xff] }
 0x22d   :  { %v2601_v26 = vcombine.high %v1385_v23, %v1389_v24  ;;  %v1381_v32 = vld [vmem:[%s3870_s8 + $0x220] sm:$0xff] }
 0x22e   :  { %2181 = vmatpush2.bf16.msra.mxu0 %v2650_v37 }
 0x22f   :  { %2182 = vmatprep.subr.bf16.mxu0 %v2643_v40  ;;  %v1375_v40 = vld [vmem:[%s3870_s8 + $0x1f0] sm:$0xff] }
 0x29b   :  { %v1231_v41 = vpop.permute.xlu0 %1230 }
 0x29c   :  { %v1233_v46 = vadd.f32 %v1231_v41, %v3440_v19  ;;  %v1437_v41 = vld [vmem:[%s3870_s8 + $0x3e0] sm:$0xff] }
 0x29d   :  { %v2648_v56 = vcombine.low %v1433_v39, %v1437_v41 }
 0x29e   :  { %v1234_v52 = vpack.c.bf16 %v1233_v46, %v1233_v46  ;;  %2296 = vrot.lane.b32.xlu1 %v1233_v46, %s2905_s17  ;;  %v2642_v46 = vcombine.low %v1426_v34, %v1430_v35  ;;  %v2593_v34 = vcombine.high %v1377_v31, %v1381_v32  ;;  %v1382_v35 = vld [vmem:[%s3870_s8 + $0x228] sm:$0xff] }
 0x29f   :  { %v2594_v37 = vcombine.low %v1378_v33, %v1382_v35 }
 0x2a0   :  { %2527 = vmatmul.mubr.msk.bf16.vlgmr.msra.gmra.mxu1 %vm1257_vm1, %v1234_v52  ;;  %v2635_v52 = vcombine.high %v1418_v43, %v1422_v44  ;;  %2183 = vmatpush2.bf16.msra.mxu0 %v2642_v46  ;;  %v1376_v44 = vld [vmem:[%s3870_s8 + $0x1f8] sm:$0xff] }
 0x2a1   :  { %2124 = vmatpush1.bf16.msra.mxu1 %v2584_v47  ;;  %v2649_v47 = vcombine.high %v1433_v39, %v1437_v41  ;;  %v1371_v39 = vld [vmem:[%s3870_s8 + $0x1d0] sm:$0xff]  ;;  %v1372_v41 = vld [vmem:[%s3870_s8 + $0x1d8] sm:$0xff] }
 0x2a2   :  { %2125 = vmatprep.subr.bf16.mxu1 %v2577_v53  ;;  %v1429_v53 = vld [vmem:[%s3870_s8 + $0x3a0] sm:$0xff]  ;;  %2184 = vmatprep.subr.bf16.mxu0 %v2635_v52  ;;  %v2589_v43 = vcombine.high %v1371_v39, %v1375_v40  ;;  %v2590_v46 = vcombine.low %v1372_v41, %v1376_v44 }
 0x2a3   :  { %v2641_v58 = vcombine.high %v1425_v50, %v1429_v53  ;;  %v2640_v0 = vcombine.low %v1425_v50, %v1429_v53 }
 0x2a4   :  { %2185 = vmatpush2.bf16.msra.mxu0 %v2634_v57 }
 0x2a5   :  { %2126 = vmatpush1.bf16.msra.mxu1 %v2576_v59  ;;  %v1417_v59 = vld [vmem:[%s3870_s8 + $0x340] sm:$0xff]  ;;  %2186 = vmatprep.subr.bf16.mxu0 %v2627_v60 }
 0x2a6   :  { %2127 = vmatprep.subr.bf16.mxu1 %v2569_v61  ;;  %v1421_v61 = vld [vmem:[%s3870_s8 + $0x360] sm:$0xff] }
 0x2a7   :  { %v2633_v2 = vcombine.high %v1417_v59, %v1421_v61  ;;  %v2632_v9 = vcombine.low %v1417_v59, %v1421_v61 }
 0x2a8   :  { %2187 = vmatpush2.bf16.msra.mxu0 %v2626_v1  ;;  %v1367_v1 = vld [vmem:[%s3870_s8 + $0x1b0] sm:$0xff] }
 0x2a9   :  { %2128 = vmatpush1.bf16.msra.mxu1 %v2568_v3  ;;  %v1409_v3 = vld [vmem:[%s3870_s8 + $0x300] sm:$0xff]  ;;  %2188 = vmatprep.subr.bf16.mxu0 %v2619_v4 }
 0x2aa   :  { %2129 = vmatprep.subr.bf16.mxu1 %v2561_v5  ;;  %v1413_v5 = vld [vmem:[%s3870_s8 + $0x320] sm:$0xff] }
 0x2ab   :  { %v2625_v11 = vcombine.high %v1409_v3, %v1413_v5  ;;  %v2624_v15 = vcombine.low %v1409_v3, %v1413_v5  ;;  %v1368_v3 = vld [vmem:[%s3870_s8 + $0x1b8] sm:$0xff] }
 0x2ac   :  { %2189 = vmatpush2.bf16.msra.mxu0 %v2618_v10  ;;  %v1359_v10 = vld [vmem:[%s3870_s8 + $0x170] sm:$0xff] }
 0x2ad   :  { %2130 = vmatpush1.bf16.msra.mxu1 %v2560_v12  ;;  %v2611_v12 = vcombine.high %v1394_v7, %v1398_v8  ;;  %v1355_v7 = vld [vmem:[%s3870_s8 + $0x150] sm:$0xff]  ;;  %v2581_v8 = vcombine.high %v1363_v63, %v1367_v1 }
 0x2ae   :  { %2131 = vmatprep.subr.bf16.mxu1 %v2553_v14  ;;  %v1405_v14 = vld [vmem:[%s3870_s8 + $0x2e0] sm:$0xff] }
 0x2af   :  { %v2617_v17 = vcombine.high %v1401_v13, %v1405_v14  ;;  %2190 = vmatprep.subr.bf16.mxu0 %v2611_v12  ;;  %v1360_v12 = vld [vmem:[%s3870_s8 + $0x178] sm:$0xff] }
 0x2b0   :  { %2191 = vmatpush2.bf16.msra.mxu0 %v2610_v16 }
 0x2b1   :  { %2132 = vmatpush1.bf16.msra.mxu1 %v2552_v21  ;;  %v2616_v21 = vcombine.low %v1401_v13, %v1405_v14  ;;  %v2580_v13 = vcombine.low %v1363_v63, %v1367_v1  ;;  %v1440_v63 = vld [vmem:[%s3870_s8 + $0x3f8] sm:$0xff] }
 0x2b2   :  { %2133 = vmatprep.subr.bf16.mxu1 %v2545_v6  ;;  %v2608_v6 = vcombine.low %v1393_v18, %v1397_v20  ;;  %v1351_v18 = vld [vmem:[%s3870_s8 + $0x130] sm:$0xff]  ;;  %v1348_v20 = vld [vmem:[%s3870_s8 + $0x118] sm:$0xff] }
 0x2b5   :  { %2134 = vmatpush1.bf16.msra.mxu1 %v2544_v28  ;;  %v2600_v28 = vcombine.low %v1385_v23, %v1389_v24 }
 0x2b6   :  { %2135 = vmatprep.subr.bf16.mxu1 %v2537_v30  ;;  %v2603_v30 = vcombine.high %v1386_v25, %v1390_v27  ;;  %v1339_v25 = vld [vmem:[%s3870_s8 + $0xd0] sm:$0xff]  ;;  %v1340_v27 = vld [vmem:[%s3870_s8 + $0xd8] sm:$0xff] }
 0x2b8   :  { %2192 = vmatprep.subr.bf16.mxu0 %v2603_v30 }
 0x2b9   :  { %2136 = vmatpush1.bf16.msra.mxu1 %v2536_v36  ;;  %2193 = vmatpush2.bf16.msra.mxu0 %v2602_v29  ;;  %v2592_v36 = vcombine.low %v1377_v31, %v1381_v32 }
 0x2ba   :  { %2137 = vmatprep.subr.bf16.mxu1 %v2529_v38  ;;  %v2595_v38 = vcombine.high %v1378_v33, %v1382_v35  ;;  %v1331_v33 = vld [vmem:[%s3870_s8 + $0x90] sm:$0xff]  ;;  %v1332_v35 = vld [vmem:[%s3870_s8 + $0x98] sm:$0xff] }
 0x2bc   :  { %2194 = vmatprep.subr.bf16.mxu0 %v2595_v38 }
 0x2bd   :  { %2138 = vmatpush1.bf16.msra.mxu1 %v2528_v45  ;;  %2195 = vmatpush2.bf16.msra.mxu0 %v2594_v37  ;;  %v2588_v45 = vcombine.low %v1371_v39, %v1375_v40 }
 0x2be   :  { %2139 = vmatprep.subr.bf16.mxu1 %v2649_v47  ;;  %v2591_v47 = vcombine.high %v1372_v41, %v1376_v44  ;;  %v1323_v41 = vld [vmem:[%s3870_s8 + $0x50] sm:$0xff]  ;;  %v1324_v44 = vld [vmem:[%s3870_s8 + $0x58] sm:$0xff] }
 0x2c0   :  { %2246 = vmatprep.subr.bf16.mxu0 %v2591_v47 }
 0x2c1   :  { %2140 = vmatpush2.bf16.msra.mxu1 %v2648_v56  ;;  %v1246_v56 = vrot.slane %v1237_v54, %v3427_v51  ;;  %v1319_v54 = vld [vmem:[%s3870_s8 + $0x30] sm:$0xff] }
 0x2c2   :  { %2141 = vmatprep.subr.bf16.mxu1 %v2641_v58 }
 0x2c5   :  { %2142 = vmatpush2.bf16.msra.mxu1 %v2640_v0 }
 0x2c6   :  { %2143 = vmatprep.subr.bf16.mxu1 %v2633_v2  ;;  %v1364_v2 = vld [vmem:[%s3870_s8 + $0x198] sm:$0xff] }
 0x2c7   :  { %v2582_v14 = vcombine.low %v1364_v2, %v1368_v3 }
 0x2c9   :  { %2144 = vmatpush2.bf16.msra.mxu1 %v2632_v9  ;;  %v2583_v9 = vcombine.high %v1364_v2, %v1368_v3 }
 0x2ca   :  { %2145 = vmatprep.subr.bf16.mxu1 %v2625_v11  ;;  %v1356_v11 = vld [vmem:[%s3870_s8 + $0x158] sm:$0xff] }
 0x2cb   :  { %v2575_v16 = vcombine.high %v1356_v11, %v1360_v12 }
 0x2cd   :  { %2146 = vmatpush2.bf16.msra.mxu1 %v2624_v15  ;;  %v2573_v15 = vcombine.high %v1355_v7, %v1359_v10 }
 0x2ce   :  { %2147 = vmatprep.subr.bf16.mxu1 %v2617_v17  ;;  %v1347_v17 = vld [vmem:[%s3870_s8 + $0x110] sm:$0xff] }
 0x2cf   :  { %v2565_v23 = vcombine.high %v1347_v17, %v1351_v18  ;;  %v2564_v29 = vcombine.low %v1347_v17, %v1351_v18  ;;  %v1424_v17 = vld [vmem:[%s3870_s8 + $0x378] sm:$0xff] }
 0x2d1   :  { %2148 = vmatpush2.bf16.msra.mxu1 %v2616_v21  ;;  %v1352_v21 = vld [vmem:[%s3870_s8 + $0x138] sm:$0xff] }
 0x2d2   :  { %2149 = vmatprep.subr.bf16.mxu1 %v2609_v22  ;;  %v2572_v22 = vcombine.low %v1355_v7, %v1359_v10  ;;  %v2567_v24 = vcombine.high %v1348_v20, %v1352_v21  ;;  %v2566_v30 = vcombine.low %v1348_v20, %v1352_v21  ;;  %v1431_v7 = vld [vmem:[%s3870_s8 + $0x3b0] sm:$0xff] }
 0x2d5   :  { %2150 = vmatpush2.bf16.msra.mxu1 %v2608_v6  ;;  %v2574_v6 = vcombine.low %v1356_v11, %v1360_v12 }
 0x2d6   :  { %2151 = vmatprep.subr.bf16.mxu1 %v2601_v26  ;;  %v1343_v26 = vld [vmem:[%s3870_s8 + $0xf0] sm:$0xff] }
 0x2d7   :  { %v2557_v31 = vcombine.high %v1339_v25, %v1343_v26  ;;  %v2556_v37 = vcombine.low %v1339_v25, %v1343_v26  ;;  %v1416_v25 = vld [vmem:[%s3870_s8 + $0x338] sm:$0xff] }
 0x2d9   :  { %2152 = vmatpush2.bf16.msra.mxu1 %v2600_v28  ;;  %v1344_v28 = vld [vmem:[%s3870_s8 + $0xf8] sm:$0xff] }
 0x2da   :  { %2153 = vmatprep.subr.bf16.mxu1 %v2593_v34  ;;  %v2559_v32 = vcombine.high %v1340_v27, %v1344_v28  ;;  %v1335_v34 = vld [vmem:[%s3870_s8 + $0xb0] sm:$0xff]  ;;  %v2558_v38 = vcombine.low %v1340_v27, %v1344_v28 }
 0x2db   :  { %v2549_v39 = vcombine.high %v1331_v33, %v1335_v34 }
 0x2dd   :  { %2154 = vmatpush2.bf16.msra.mxu1 %v2592_v36  ;;  %v1336_v36 = vld [vmem:[%s3870_s8 + $0xb8] sm:$0xff] }
 0x2de   :  { %2205 = vmatprep.subr.bf16.mxu1 %v2589_v43  ;;  %v2551_v40 = vcombine.high %v1332_v35, %v1336_v36  ;;  %v1327_v43 = vld [vmem:[%s3870_s8 + $0x70] sm:$0xff]  ;;  %v2550_v47 = vcombine.low %v1332_v35, %v1336_v36 }
 0x310   :  { %v2297_v50 = vpop.permute.xlu1 %2296 }
 0x311   :  { %v2300_v52 = vsel %vm2299_vm2, %v3440_v19, %v2297_v50  ;;  %v2541_v50 = vcombine.high %v1323_v41, %v1327_v43 }
 0x312   :  { %v2302_v53 = vsel %vm2301_vm3, %v2300_v52, 0.0 }
 0x313   :  { %2303 = vst [vmem:[%s3871_s10] sm:$0x3] %v2302_v53  ;;  %v1315_v53 = vld [vmem:[%s3870_s8 + $0x10] sm:$0xff] }
 0x360   :  { %v1302_v57 = vpop.f32.mrf.mxu1 }
 0x361   :  { %v1303_v58 = vadd.f32 %v1302_v57, %v1242_v55  ;;  %v1316_v55 = vld [vmem:[%s3870_s8 + $0x18] sm:$0xff]  ;;  %v2540_v57 = vcombine.low %v1323_v41, %v1327_v43 }
 0x362   :  { %v1304_v59 = vpop.f32.mrf.mxu1  ;;  %v1400_v41 = vld [vmem:[%s3870_s8 + $0x2b8] sm:$0xff] }
 0x363   :  { %v1305_v60 = vadd.f32 %v1304_v59, %v1246_v56  ;;  %v1309_v61 = vmax.f32 %v1303_v58, 0.0  ;;  %v1320_v56 = vld [vmem:[%s3870_s8 + $0x38] sm:$0xff]  ;;  %v2533_v59 = vcombine.high %v1315_v53, %v1319_v54 }
 0x364   :  { %v1306_v62 = vpop.f32.mrf.mxu1  ;;  %v2534_v1 = vcombine.low %v1316_v55, %v1320_v56 }
 0x365   :  { %v1310_v19 = vmax.f32 %v1305_v60, 0.0  ;;  %v3669_v5 = vpack.c.bf16 %v1309_v61, %v1309_v61  ;;  %v2535_v60 = vcombine.high %v1316_v55, %v1320_v56  ;;  %v1435_v61 = vld [vmem:[%s3870_s8 + $0x3d0] sm:$0xff] }
 0x366   :  { %v1307_v0 = vpop.f32.mrf.mxu1  ;;  %v1439_v62 = vld [vmem:[%s3870_s8 + $0x3f0] sm:$0xff] }
 0x367   :  { %v1312_v4 = vpack.c.bf16 %v1310_v19, %v1310_v19  ;;  %v1436_v19 = vld [vmem:[%s3870_s8 + $0x3d8] sm:$0xff]  ;;  %v2532_v0 = vcombine.low %v1315_v53, %v1319_v54  ;;  %v2653_v2 = vcombine.high %v1435_v61, %v1439_v62  ;;  %v2652_v10 = vcombine.low %v1435_v61, %v1439_v62 }
 0x368   :  { %v2655_v3 = vcombine.high %v1436_v19, %v1440_v63  ;;  %v2654_v11 = vcombine.low %v1436_v19, %v1440_v63  ;;  %v1392_v53 = vld [vmem:[%s3870_s8 + $0x278] sm:$0xff] }
 0x369   :  { %2155 = vmatprep.mubr.bf16.mxu1 %v1312_v4  ;;  %2196 = vmatprep.mubr.bf16.mxu0 %v1312_v4  ;;  %v1384_v61 = vld [vmem:[%s3870_s8 + $0x238] sm:$0xff] }
 0x36a   :  { %2156 = vmatmul.mubr.bf16.vlgmr.msra.gmra.mxu1 %v3669_v5  ;;  %2197 = vmatmul.mubr.bf16.vlgmr.msra.gmra.mxu0 %v3669_v5 }
 0x36b   :  { %2206 = vmatpush1.bf16.msra.mxu1 %v2588_v45  ;;  %2247 = vmatpush1.bf16.msra.mxu0 %v2590_v46  ;;  %v1328_v45 = vld [vmem:[%s3870_s8 + $0x78] sm:$0xff]  ;;  %v2548_v46 = vcombine.low %v1331_v33, %v1335_v34 }
 0x36c   :  { %2237 = vmatprep.mubr.bf16.mxu1 %v1312_v4  ;;  %2278 = vmatprep.mubr.bf16.mxu0 %v1312_v4  ;;  %v2543_v52 = vcombine.high %v1324_v44, %v1328_v45  ;;  %v2542_v58 = vcombine.low %v1324_v44, %v1328_v45  ;;  %v1427_v4 = vld [vmem:[%s3870_s8 + $0x390] sm:$0xff]  ;;  %v1408_v33 = vld [vmem:[%s3870_s8 + $0x2f8] sm:$0xff] }
 0x36d   :  { %2207 = vmatprep.subr.bf16.mxu1 %v2581_v8  ;;  %2248 = vmatprep.subr.bf16.mxu0 %v2583_v9  ;;  %v1428_v8 = vld [vmem:[%s3870_s8 + $0x398] sm:$0xff]  ;;  %v2645_v12 = vcombine.high %v1427_v4, %v1431_v7  ;;  %v2644_v18 = vcombine.low %v1427_v4, %v1431_v7  ;;  %v1441_v4 = vld [vmem:[%s3873_s9] sm:$0xff]  ;;  %v1457_v7 = vsub.s32 3, %v3083_v42 }
 0x36e   :  { %v1432_v9 = vld [vmem:[%s3870_s8 + $0x3b8] sm:$0xff] }
 0x36f   :  { %2208 = vmatpush1.bf16.msra.mxu1 %v2580_v13  ;;  %2249 = vmatpush1.bf16.msra.mxu0 %v2582_v14  ;;  %v2647_v13 = vcombine.high %v1428_v8, %v1432_v9  ;;  %v1419_v14 = vld [vmem:[%s3870_s8 + $0x350] sm:$0xff]  ;;  %v2646_v20 = vcombine.low %v1428_v8, %v1432_v9  ;;  %v1446_v8 = vrot.slane %v1441_v4, %v3421_v48 }
 0x370   :  { %2209 = vmatprep.subr.bf16.mxu1 %v2573_v15  ;;  %2250 = vmatprep.subr.bf16.mxu0 %v2575_v16  ;;  %v1423_v15 = vld [vmem:[%s3870_s8 + $0x370] sm:$0xff]  ;;  %v1420_v16 = vld [vmem:[%s3870_s8 + $0x358] sm:$0xff] }
 0x371   :  { %v2637_v21 = vcombine.high %v1419_v14, %v1423_v15  ;;  %v2636_v26 = vcombine.low %v1419_v14, %v1423_v15  ;;  %v2638_v27 = vcombine.low %v1420_v16, %v1424_v17 }
 0x373   :  { %2210 = vmatpush1.bf16.msra.mxu1 %v2572_v22  ;;  %2251 = vmatpush1.bf16.msra.mxu0 %v2574_v6  ;;  %v2639_v22 = vcombine.high %v1420_v16, %v1424_v17  ;;  %v1411_v6 = vld [vmem:[%s3870_s8 + $0x310] sm:$0xff] }
 0x374   :  { %2211 = vmatprep.subr.bf16.mxu1 %v2565_v23  ;;  %2252 = vmatprep.subr.bf16.mxu0 %v2567_v24  ;;  %v1415_v23 = vld [vmem:[%s3870_s8 + $0x330] sm:$0xff]  ;;  %v1412_v24 = vld [vmem:[%s3870_s8 + $0x318] sm:$0xff] }
 0x375   :  { %v2629_v28 = vcombine.high %v1411_v6, %v1415_v23  ;;  %v2628_v34 = vcombine.low %v1411_v6, %v1415_v23  ;;  %v2630_v35 = vcombine.low %v1412_v24, %v1416_v25 }
 0x377   :  { %2212 = vmatpush1.bf16.msra.mxu1 %v2564_v29  ;;  %2253 = vmatpush1.bf16.msra.mxu0 %v2566_v30  ;;  %v2631_v29 = vcombine.high %v1412_v24, %v1416_v25  ;;  %v1403_v30 = vld [vmem:[%s3870_s8 + $0x2d0] sm:$0xff] }
 0x378   :  { %2213 = vmatprep.subr.bf16.mxu1 %v2557_v31  ;;  %2254 = vmatprep.subr.bf16.mxu0 %v2559_v32  ;;  %v1407_v31 = vld [vmem:[%s3870_s8 + $0x2f0] sm:$0xff]  ;;  %v1404_v32 = vld [vmem:[%s3870_s8 + $0x2d8] sm:$0xff] }
 0x379   :  { %v2621_v36 = vcombine.high %v1403_v30, %v1407_v31  ;;  %v2620_v43 = vcombine.low %v1403_v30, %v1407_v31  ;;  %v2622_v44 = vcombine.low %v1404_v32, %v1408_v33  ;;  %v1461_v30 = vsub.s32 4, %v3083_v42 }
 0x37a   :  { %v1469_v31 = vsub.s32 6, %v3083_v42 }
 0x37b   :  { %2214 = vmatpush1.bf16.msra.mxu1 %v2556_v37  ;;  %2255 = vmatpush1.bf16.msra.mxu0 %v2558_v38  ;;  %v2623_v37 = vcombine.high %v1404_v32, %v1408_v33  ;;  %v1395_v38 = vld [vmem:[%s3870_s8 + $0x290] sm:$0xff]  ;;  %v1465_v32 = vsub.s32 5, %v3083_v42  ;;  %v1473_v33 = vsub.s32 7, %v3083_v42 }
 0x37c   :  { %2215 = vmatprep.subr.bf16.mxu1 %v2549_v39  ;;  %2256 = vmatprep.subr.bf16.mxu0 %v2551_v40  ;;  %v1399_v39 = vld [vmem:[%s3870_s8 + $0x2b0] sm:$0xff]  ;;  %v1396_v40 = vld [vmem:[%s3870_s8 + $0x298] sm:$0xff] }
 0x37d   :  { %v2613_v45 = vcombine.high %v1395_v38, %v1399_v39  ;;  %v2612_v54 = vcombine.low %v1395_v38, %v1399_v39  ;;  %v2614_v55 = vcombine.low %v1396_v40, %v1400_v41 }
 0x37f   :  { %2216 = vmatpush1.bf16.msra.mxu1 %v2548_v46  ;;  %2257 = vmatpush1.bf16.msra.mxu0 %v2550_v47  ;;  %v2615_v46 = vcombine.high %v1396_v40, %v1400_v41  ;;  %v1387_v47 = vld [vmem:[%s3870_s8 + $0x250] sm:$0xff] }
 0x380   :  { %2217 = vmatprep.subr.bf16.mxu1 %v2541_v50  ;;  %2258 = vmatprep.subr.bf16.mxu0 %v2543_v52  ;;  %v1391_v50 = vld [vmem:[%s3870_s8 + $0x270] sm:$0xff]  ;;  %v1388_v52 = vld [vmem:[%s3870_s8 + $0x258] sm:$0xff] }
 0x381   :  { %v2605_v56 = vcombine.high %v1387_v47, %v1391_v50  ;;  %v2604_v62 = vcombine.low %v1387_v47, %v1391_v50  ;;  %v2606_v19 = vcombine.low %v1388_v52, %v1392_v53 }
 0x383   :  { %2218 = vmatpush1.bf16.msra.mxu1 %v2540_v57  ;;  %2259 = vmatpush1.bf16.msra.mxu0 %v2542_v58  ;;  %v2607_v57 = vcombine.high %v1388_v52, %v1392_v53  ;;  %v1379_v58 = vld [vmem:[%s3870_s8 + $0x210] sm:$0xff] }
 0x384   :  { %2219 = vmatprep.subr.bf16.mxu1 %v2533_v59  ;;  %2260 = vmatprep.subr.bf16.mxu0 %v2535_v60  ;;  %v1383_v59 = vld [vmem:[%s3870_s8 + $0x230] sm:$0xff]  ;;  %v1380_v60 = vld [vmem:[%s3870_s8 + $0x218] sm:$0xff] }
 0x385   :  { %v2597_v63 = vcombine.high %v1379_v58, %v1383_v59 }
 0x387   :  { %2220 = vmatpush1.bf16.msra.mxu1 %v2532_v0  ;;  %2261 = vmatpush1.bf16.msra.mxu0 %v2534_v1  ;;  %v2599_v0 = vcombine.high %v1380_v60, %v1384_v61  ;;  %v2596_v1 = vcombine.low %v1379_v58, %v1383_v59 }
 0x388   :  { %2221 = vmatprep.subr.bf16.mxu1 %v2653_v2  ;;  %2262 = vmatprep.subr.bf16.mxu0 %v2655_v3  ;;  %v2598_v2 = vcombine.low %v1380_v60, %v1384_v61  ;;  %v1453_v3 = vsub.s32 2, %v3083_v42 }
 0x38a   :  { %v1454_v9 = vrot.slane %v1441_v4, %v1453_v3 }
 0x38b   :  { %2222 = vmatpush2.bf16.msra.mxu1 %v2652_v10  ;;  %2263 = vmatpush2.bf16.msra.mxu0 %v2654_v11  ;;  %v1450_v10 = vrot.slane %v1441_v4, %v3427_v51  ;;  %v1458_v11 = vrot.slane %v1441_v4, %v1457_v7 }
 0x38c   :  { %2223 = vmatprep.subr.bf16.mxu1 %v2645_v12  ;;  %2264 = vmatprep.subr.bf16.mxu0 %v2647_v13 }
 0x38f   :  { %2224 = vmatpush2.bf16.msra.mxu1 %v2644_v18  ;;  %2265 = vmatpush2.bf16.msra.mxu0 %v2646_v20 }
 0x390   :  { %2225 = vmatprep.subr.bf16.mxu1 %v2637_v21  ;;  %2266 = vmatprep.subr.bf16.mxu0 %v2639_v22 }
 0x393   :  { %2226 = vmatpush2.bf16.msra.mxu1 %v2636_v26  ;;  %2267 = vmatpush2.bf16.msra.mxu0 %v2638_v27 }
 0x394   :  { %2227 = vmatprep.subr.bf16.mxu1 %v2629_v28  ;;  %2268 = vmatprep.subr.bf16.mxu0 %v2631_v29 }
 0x397   :  { %2228 = vmatpush2.bf16.msra.mxu1 %v2628_v34  ;;  %2269 = vmatpush2.bf16.msra.mxu0 %v2630_v35  ;;  %v1462_v34 = vrot.slane %v1441_v4, %v1461_v30  ;;  %v1470_v35 = vrot.slane %v1441_v4, %v1469_v31 }
 0x398   :  { %2229 = vmatprep.subr.bf16.mxu1 %v2621_v36  ;;  %2270 = vmatprep.subr.bf16.mxu0 %v2623_v37  ;;  %v1466_v36 = vrot.slane %v1441_v4, %v1465_v32  ;;  %v1474_v37 = vrot.slane %v1441_v4, %v1473_v33 }
 0x39b   :  { %2230 = vmatpush2.bf16.msra.mxu1 %v2620_v43  ;;  %2271 = vmatpush2.bf16.msra.mxu0 %v2622_v44 }
 0x39c   :  { %2231 = vmatprep.subr.bf16.mxu1 %v2613_v45  ;;  %2272 = vmatprep.subr.bf16.mxu0 %v2615_v46 }
 0x39f   :  { %2232 = vmatpush2.bf16.msra.mxu1 %v2612_v54  ;;  %2273 = vmatpush2.bf16.msra.mxu0 %v2614_v55 }
 0x3a0   :  { %2233 = vmatprep.subr.bf16.mxu1 %v2605_v56  ;;  %2274 = vmatprep.subr.bf16.mxu0 %v2607_v57 }
 0x3a3   :  { %2234 = vmatpush2.bf16.msra.mxu1 %v2604_v62  ;;  %2275 = vmatpush2.bf16.msra.mxu0 %v2606_v19 }
 0x3a4   :  { %2235 = vmatprep.subr.bf16.mxu1 %v2597_v63  ;;  %2276 = vmatprep.subr.bf16.mxu0 %v2599_v0 }
 0x3a7   :  { %2236 = vmatpush2.bf16.msra.mxu1 %v2596_v1  ;;  %2277 = vmatpush2.bf16.msra.mxu0 %v2598_v2 }
 0x3aa   :  { %2238 = vmatmul.mubr.bf16.vlgmr.msra.gmra.mxu1 %v3669_v5  ;;  %2279 = vmatmul.mubr.bf16.vlgmr.msra.gmra.mxu0 %v3669_v5 }
 0x42a   :  { %v2157_v12 = vpop.f32.mrf.mxu1  ;;  %v2198_v13 = vpop.f32.mrf.mxu0 }
 0x42b   :  { %v2158_v14 = vadd.f32 %v2157_v12, %v1446_v8  ;;  %v2199_v15 = vadd.f32 %v2198_v13, %v1454_v9 }
 0x42c   :  { %v2159_v16 = vpop.f32.mrf.mxu1  ;;  %v2200_v5 = vpop.f32.mrf.mxu0 }
 0x42d   :  { %v2160_v17 = vadd.f32 %v2159_v16, %v1450_v10  ;;  %v2201_v18 = vadd.f32 %v2200_v5, %v1458_v11  ;;  %v2287_v22 = vmax.f32 %v2158_v14, 0.0  ;;  %v2289_v6 = vmax.f32 %v2199_v15, 0.0 }
 0x42e   :  { %v2161_v20 = vpop.f32.mrf.mxu1  ;;  %v2202_v21 = vpop.f32.mrf.mxu0 }
 0x42f   :  { %v2288_v23 = vmax.f32 %v2160_v17, 0.0  ;;  %v2290_v24 = vmax.f32 %v2201_v18, 0.0 }
 0x430   :  { %v2162_v25 = vpop.f32.mrf.mxu1  ;;  %v2203_v48 = vpop.f32.mrf.mxu0 }
 0x431   :  { %v2656_v26 = vpack.c.bf16 %v2288_v23, %v2287_v22  ;;  %v2657_v27 = vpack.c.bf16 %v2290_v24, %v2289_v6 }
 0x433   :  { %v2330_v51 = vrot.slane %v2656_v26, %v3101_v49  ;;  %v2337_v28 = vrot.slane %v2657_v27, %v3101_v49 }
 0x435   :  { %v2352_v29 = vcombine.low %v2330_v51, %v2337_v28 }
 0x437   :  { %v2360_v62 = vrot.slane %v2352_v29, %v3101_v49 }
 0x46a   :  { %v2239_v38 = vpop.f32.mrf.mxu1  ;;  %v2280_v39 = vpop.f32.mrf.mxu0 }
 0x46b   :  { %v2240_v40 = vadd.f32 %v2239_v38, %v1462_v34  ;;  %v2281_v41 = vadd.f32 %v2280_v39, %v1470_v35 }
 0x46c   :  { %v2241_v43 = vpop.f32.mrf.mxu1  ;;  %v2282_v44 = vpop.f32.mrf.mxu0 }
 0x46d   :  { %v2242_v45 = vadd.f32 %v2241_v43, %v1466_v36  ;;  %v2283_v46 = vadd.f32 %v2282_v44, %v1474_v37  ;;  %v2291_v52 = vmax.f32 %v2240_v40, 0.0  ;;  %v2293_v53 = vmax.f32 %v2281_v41, 0.0 }
 0x46e   :  { %v2243_v47 = vpop.f32.mrf.mxu1  ;;  %v2284_v50 = vpop.f32.mrf.mxu0 }
 0x46f   :  { %v2292_v54 = vmax.f32 %v2242_v45, 0.0  ;;  %v2294_v55 = vmax.f32 %v2283_v46, 0.0 }
 0x470   :  { %v2244_v56 = vpop.f32.mrf.mxu1  ;;  %v2285_v42 = vpop.f32.mrf.mxu0 }
 0x471   :  { %v2658_v57 = vpack.c.bf16 %v2292_v54, %v2291_v52  ;;  %v2659_v58 = vpack.c.bf16 %v2294_v55, %v2293_v53 }
 0x473   :  { %v2344_v59 = vrot.slane %v2658_v57, %v3101_v49  ;;  %v2351_v60 = vrot.slane %v2659_v58, %v3101_v49 }
 0x475   :  { %v2353_v61 = vcombine.low %v2344_v59, %v2351_v60 }
 0x477   :  { %v2367_v19 = vrot.slane %v2353_v61, %v3101_v49 }
 0x479   :  { %v2368_v63 = vcombine.low %v2360_v62, %v2367_v19 }
 0x47b   :  { %2370 = vst [vmem:[%s3874_s11] sm:$0xff] %v2368_v63 }

// kernel: vae_forward.14
= control target key start
LH: loop header
LB: loop body
LE: loop exit
PB: predicated region body
PF: predicated region fallthrough
CT: control target
= control target key end

     0   :  { %v56_v40 = vlaneseq  ;;  %s730_s1 = inlined_call_operand.vmem [shape: bf16[256,256], index: 1, kind: input, shape index: {}]   ;;  %s731_s0 = inlined_call_operand.vmem [shape: bf16[64,256], index: 0, kind: input, shape index: {}]   ;;  %s732_s2 = inlined_call_operand.vmem [shape: f32[1,256], index: 2, kind: input, shape index: {}]   ;;  %s733_s3 = inlined_call_operand.vmem [shape: bf16[64,256], index: 3, kind: output, shape index: {}]  }
   0x1   :  { %v503_v0 = vld [vmem:[%s730_s1 + $0x74] ss:$8 sps:$4 sm:$0xff]   ;;  %v505_v1 = vld [vmem:[%s730_s1 + $0x70] ss:$8 sps:$4 sm:$0xff]   ;;  %v506_v2 = vld [vmem:[%s730_s1 + $0x64] ss:$8 sps:$4 sm:$0xff]  }
   0x2   :  { %266 = vmatprep.subr.bf16.mxu0 %v503_v0  ;;  %471 = vmatprep.subr.bf16.mxu1 %v503_v0  ;;  %v508_v3 = vld [vmem:[%s730_s1 + $0x60] ss:$8 sps:$4 sm:$0xff]   ;;  %v509_v4 = vld [vmem:[%s730_s1 + $0x54] ss:$8 sps:$4 sm:$0xff]   ;;  %v511_v5 = vld [vmem:[%s730_s1 + $0x50] ss:$8 sps:$4 sm:$0xff]  }
   0x3   :  { %267 = vmatpush1.bf16.msra.mxu0 %v505_v1  ;;  %487 = vmatpush1.bf16.msra.mxu1 %v505_v1  ;;  %v512_v6 = vld [vmem:[%s730_s1 + $0x44] ss:$8 sps:$4 sm:$0xff]   ;;  %v514_v7 = vld [vmem:[%s730_s1 + $0x40] ss:$8 sps:$4 sm:$0xff]   ;;  %v515_v8 = vld [vmem:[%s730_s1 + $0x34] ss:$8 sps:$4 sm:$0xff]  }
   0x4   :  { %268 = vmatprep.subr.bf16.mxu0 %v506_v2  ;;  %472 = vmatprep.subr.bf16.mxu1 %v506_v2  ;;  %v517_v9 = vld [vmem:[%s730_s1 + $0x30] ss:$8 sps:$4 sm:$0xff]   ;;  %v518_v10 = vld [vmem:[%s730_s1 + $0x24] ss:$8 sps:$4 sm:$0xff]   ;;  %v520_v11 = vld [vmem:[%s730_s1 + $0x20] ss:$8 sps:$4 sm:$0xff]  }
   0x5   :  { %v521_v12 = vld [vmem:[%s730_s1 + $0x14] ss:$8 sps:$4 sm:$0xff]   ;;  %v553_v13 = vld [vmem:[%s731_s0 + $0x4] ss:$8 sps:$4 sm:$0xff]   ;;  %v523_v14 = vld [vmem:[%s730_s1 + $0x10] ss:$8 sps:$4 sm:$0xff]  }
   0x6   :  { %v556_v15 = vld [vmem:[%s731_s0 + $0x24] ss:$8 sps:$4 sm:$0xff]   ;;  %298 = vmatprep.mubr.bf16.mxu0 %v553_v13  ;;  %v526_v17 = vld [vmem:[%s730_s1] ss:$8 sps:$4 sm:$0xff]   ;;  %v527_v18 = vld [vmem:[%s730_s1 + $0xf4] ss:$8 sps:$4 sm:$0xff]  }
   0x7   :  { %269 = vmatpush1.bf16.msra.mxu0 %v508_v3  ;;  %488 = vmatpush1.bf16.msra.mxu1 %v508_v3  ;;  %v524_v16 = vld [vmem:[%s730_s1 + $0x4] ss:$8 sps:$4 sm:$0xff]   ;;  %v529_v19 = vld [vmem:[%s730_s1 + $0xf0] ss:$8 sps:$4 sm:$0xff]   ;;  %v532_v21 = vld [vmem:[%s730_s1 + $0xe0] ss:$8 sps:$4 sm:$0xff]  }
   0x8   :  { %270 = vmatprep.subr.bf16.mxu0 %v509_v4  ;;  %473 = vmatprep.subr.bf16.mxu1 %v509_v4  ;;  %v530_v20 = vld [vmem:[%s730_s1 + $0xe4] ss:$8 sps:$4 sm:$0xff]   ;;  %v533_v22 = vld [vmem:[%s730_s1 + $0xd4] ss:$8 sps:$4 sm:$0xff]   ;;  %v535_v23 = vld [vmem:[%s730_s1 + $0xd0] ss:$8 sps:$4 sm:$0xff]  }
   0x9   :  { %318 = vmatprep.mubr.bf16.mxu1 %v556_v15  ;;  %v536_v24 = vld [vmem:[%s730_s1 + $0xc4] ss:$8 sps:$4 sm:$0xff]   ;;  %v538_v25 = vld [vmem:[%s730_s1 + $0xc0] ss:$8 sps:$4 sm:$0xff]   ;;  %v539_v26 = vld [vmem:[%s730_s1 + $0xb4] ss:$8 sps:$4 sm:$0xff]  }
   0xa   :  { %v541_v27 = vld [vmem:[%s730_s1 + $0xb0] ss:$8 sps:$4 sm:$0xff]   ;;  %v542_v28 = vld [vmem:[%s730_s1 + $0xa4] ss:$8 sps:$4 sm:$0xff]   ;;  %v544_v29 = vld [vmem:[%s730_s1 + $0xa0] ss:$8 sps:$4 sm:$0xff]  }
   0xb   :  { %271 = vmatpush1.bf16.msra.mxu0 %v511_v5  ;;  %489 = vmatpush1.bf16.msra.mxu1 %v511_v5  ;;  %v545_v30 = vld [vmem:[%s730_s1 + $0x94] ss:$8 sps:$4 sm:$0xff]   ;;  %v547_v31 = vld [vmem:[%s730_s1 + $0x90] ss:$8 sps:$4 sm:$0xff]   ;;  %v548_v32 = vld [vmem:[%s730_s1 + $0x84] ss:$8 sps:$4 sm:$0xff]  }
   0xc   :  { %272 = vmatprep.subr.bf16.mxu0 %v512_v6  ;;  %474 = vmatprep.subr.bf16.mxu1 %v512_v6  ;;  %v550_v33 = vld [vmem:[%s730_s1 + $0x80] ss:$8 sps:$4 sm:$0xff]   ;;  %v557_v36 = vld [vmem:[%s731_s0 + $0x14] ss:$8 sps:$4 sm:$0xff]   ;;  %v561_v38 = vld [vmem:[%s731_s0 + $0x10] ss:$8 sps:$4 sm:$0xff]  }
   0xd   :  { %v551_v34 = vld [vmem:[%s731_s0] ss:$8 sps:$4 sm:$0xff]   ;;  %v559_v37 = vld [vmem:[%s731_s0 + $0x34] ss:$8 sps:$4 sm:$0xff]   ;;  %v562_v39 = vld [vmem:[%s731_s0 + $0x30] ss:$8 sps:$4 sm:$0xff]  }
   0xe   :  { %v554_v35 = vld [vmem:[%s731_s0 + $0x20] ss:$8 sps:$4 sm:$0xff]   ;;  %v57_v41 = vshrl.u32 %v56_v40, 7 }
   0xf   :  { %273 = vmatpush1.bf16.msra.mxu0 %v514_v7  ;;  %490 = vmatpush1.bf16.msra.mxu1 %v514_v7  ;;  %v54_v43 = vld [vmem:[%s732_s2] sm:$0x3] }
  0x10   :  { %274 = vmatprep.subr.bf16.mxu0 %v515_v8  ;;  %475 = vmatprep.subr.bf16.mxu1 %v515_v8  ;;  %v58_v42 = vsub.s32 0, %v57_v41  ;;  %v62_v44 = vsub.s32 1, %v57_v41 }
  0x12   :  { %v59_v45 = vrot.slane %v54_v43, %v58_v42  ;;  %v63_v46 = vrot.slane %v54_v43, %v62_v44 }
  0x13   :  { %275 = vmatpush1.bf16.msra.mxu0 %v517_v9  ;;  %491 = vmatpush1.bf16.msra.mxu1 %v517_v9 }
  0x14   :  { %276 = vmatprep.subr.bf16.mxu0 %v518_v10  ;;  %476 = vmatprep.subr.bf16.mxu1 %v518_v10 }
  0x17   :  { %277 = vmatpush1.bf16.msra.mxu0 %v520_v11  ;;  %492 = vmatpush1.bf16.msra.mxu1 %v520_v11 }
  0x18   :  { %278 = vmatprep.subr.bf16.mxu0 %v521_v12  ;;  %477 = vmatprep.subr.bf16.mxu1 %v521_v12 }
  0x1b   :  { %279 = vmatpush1.bf16.msra.mxu0 %v523_v14  ;;  %493 = vmatpush1.bf16.msra.mxu1 %v523_v14 }
  0x1c   :  { %280 = vmatprep.subr.bf16.mxu0 %v524_v16  ;;  %478 = vmatprep.subr.bf16.mxu1 %v524_v16 }
  0x1f   :  { %281 = vmatpush1.bf16.msra.mxu0 %v526_v17  ;;  %494 = vmatpush1.bf16.msra.mxu1 %v526_v17 }
  0x20   :  { %282 = vmatprep.subr.bf16.mxu0 %v527_v18  ;;  %479 = vmatprep.subr.bf16.mxu1 %v527_v18 }
  0x23   :  { %283 = vmatpush2.bf16.msra.mxu0 %v529_v19  ;;  %495 = vmatpush2.bf16.msra.mxu1 %v529_v19 }
  0x24   :  { %284 = vmatprep.subr.bf16.mxu0 %v530_v20  ;;  %480 = vmatprep.subr.bf16.mxu1 %v530_v20 }
  0x27   :  { %285 = vmatpush2.bf16.msra.mxu0 %v532_v21  ;;  %496 = vmatpush2.bf16.msra.mxu1 %v532_v21 }
  0x28   :  { %286 = vmatprep.subr.bf16.mxu0 %v533_v22  ;;  %481 = vmatprep.subr.bf16.mxu1 %v533_v22 }
  0x2b   :  { %287 = vmatpush2.bf16.msra.mxu0 %v535_v23  ;;  %497 = vmatpush2.bf16.msra.mxu1 %v535_v23 }
  0x2c   :  { %288 = vmatprep.subr.bf16.mxu0 %v536_v24  ;;  %482 = vmatprep.subr.bf16.mxu1 %v536_v24 }
  0x2f   :  { %289 = vmatpush2.bf16.msra.mxu0 %v538_v25  ;;  %498 = vmatpush2.bf16.msra.mxu1 %v538_v25 }
  0x30   :  { %290 = vmatprep.subr.bf16.mxu0 %v539_v26  ;;  %483 = vmatprep.subr.bf16.mxu1 %v539_v26 }
  0x33   :  { %291 = vmatpush2.bf16.msra.mxu0 %v541_v27  ;;  %499 = vmatpush2.bf16.msra.mxu1 %v541_v27 }
  0x34   :  { %292 = vmatprep.subr.bf16.mxu0 %v542_v28  ;;  %484 = vmatprep.subr.bf16.mxu1 %v542_v28 }
  0x37   :  { %293 = vmatpush2.bf16.msra.mxu0 %v544_v29  ;;  %500 = vmatpush2.bf16.msra.mxu1 %v544_v29 }
  0x38   :  { %294 = vmatprep.subr.bf16.mxu0 %v545_v30  ;;  %485 = vmatprep.subr.bf16.mxu1 %v545_v30 }
  0x3b   :  { %295 = vmatpush2.bf16.msra.mxu0 %v547_v31  ;;  %501 = vmatpush2.bf16.msra.mxu1 %v547_v31 }
  0x3c   :  { %296 = vmatprep.subr.bf16.mxu0 %v548_v32  ;;  %486 = vmatprep.subr.bf16.mxu1 %v548_v32 }
  0x3f   :  { %297 = vmatpush2.bf16.msra.mxu0 %v550_v33  ;;  %502 = vmatpush2.bf16.msra.mxu1 %v550_v33 }
  0x42   :  { %299 = vmatmul.mubr.bf16.vlgmr.msra.gmra.mxu0 %v551_v34  ;;  %319 = vmatmul.mubr.bf16.vlgmr.msra.gmra.mxu1 %v554_v35 }
  0x43   :  { %308 = vmatprep.mubr.bf16.mxu0 %v557_v36  ;;  %328 = vmatprep.mubr.bf16.mxu1 %v559_v37 }
  0x4a   :  { %309 = vmatmul.mubr.bf16.gmra.mxu0 %v561_v38  ;;  %329 = vmatmul.mubr.bf16.gmra.mxu1 %v562_v39 }
 0x102   :  { %v300_v47 = vpop.f32.mrf.mxu0  ;;  %v320_v48 = vpop.f32.mrf.mxu1 }
 0x103   :  { %v301_v49 = vadd.f32 %v300_v47, %v59_v45  ;;  %v321_v50 = vadd.f32 %v320_v48, %v59_v45 }
 0x104   :  { %v302_v51 = vpop.f32.mrf.mxu0  ;;  %v322_v52 = vpop.f32.mrf.mxu1 }
 0x105   :  { %v303_v53 = vadd.f32 %v302_v51, %v63_v46  ;;  %v323_v54 = vadd.f32 %v322_v52, %v63_v46  ;;  %v339_v57 = vmax.f32 %v301_v49, 0.0  ;;  %v347_v58 = vmax.f32 %v321_v50, 0.0 }
 0x106   :  { %v304_v55 = vpop.f32.mrf.mxu0  ;;  %v324_v56 = vpop.f32.mrf.mxu1 }
 0x107   :  { %v340_v59 = vmax.f32 %v303_v53, 0.0  ;;  %v348_v60 = vmax.f32 %v323_v54, 0.0  ;;  %v305_v61 = vadd.f32 %v304_v55, %v59_v45  ;;  %v325_v62 = vadd.f32 %v324_v56, %v59_v45 }
 0x108   :  { %v306_v63 = vpop.f32.mrf.mxu0  ;;  %v326_v0 = vpop.f32.mrf.mxu1 }
 0x109   :  { %v463_v1 = vpack.c.bf16 %v340_v59, %v339_v57  ;;  %v467_v2 = vpack.c.bf16 %v348_v60, %v347_v58  ;;  %v307_v3 = vadd.f32 %v306_v63, %v63_v46  ;;  %v327_v4 = vadd.f32 %v326_v0, %v63_v46 }
 0x10a   :  { %v310_v5 = vpop.f32.mrf.mxu0  ;;  %v330_v6 = vpop.f32.mrf.mxu1  ;;  %v341_v9 = vmax.f32 %v305_v61, 0.0  ;;  %v349_v10 = vmax.f32 %v325_v62, 0.0 }
 0x10b   :  { %403 = vst [vmem:[%s733_s3] sm:$0xff] %v463_v1  ;;  %407 = vst [vmem:[%s733_s3 + $0x20] sm:$0xff] %v467_v2  ;;  %v311_v7 = vadd.f32 %v310_v5, %v59_v45  ;;  %v331_v8 = vadd.f32 %v330_v6, %v59_v45  ;;  %v342_v11 = vmax.f32 %v307_v3, 0.0  ;;  %v350_v12 = vmax.f32 %v327_v4, 0.0 }
 0x10c   :  { %v312_v13 = vpop.f32.mrf.mxu0  ;;  %v332_v14 = vpop.f32.mrf.mxu1 }
 0x10d   :  { %v313_v15 = vadd.f32 %v312_v13, %v63_v46  ;;  %v333_v16 = vadd.f32 %v332_v14, %v63_v46  ;;  %v464_v17 = vpack.c.bf16 %v342_v11, %v341_v9  ;;  %v468_v18 = vpack.c.bf16 %v350_v12, %v349_v10 }
 0x10e   :  { %v314_v19 = vpop.f32.mrf.mxu0  ;;  %v334_v20 = vpop.f32.mrf.mxu1  ;;  %v343_v21 = vmax.f32 %v311_v7, 0.0  ;;  %v351_v22 = vmax.f32 %v331_v8, 0.0 }
 0x10f   :  { %v344_v23 = vmax.f32 %v313_v15, 0.0  ;;  %v352_v24 = vmax.f32 %v333_v16, 0.0  ;;  %404 = vst [vmem:[%s733_s3 + $0x8] sm:$0xff] %v464_v17  ;;  %408 = vst [vmem:[%s733_s3 + $0x28] sm:$0xff] %v468_v18  ;;  %v315_v25 = vadd.f32 %v314_v19, %v59_v45  ;;  %v335_v26 = vadd.f32 %v334_v20, %v59_v45 }
 0x110   :  { %v316_v27 = vpop.f32.mrf.mxu0  ;;  %v336_v28 = vpop.f32.mrf.mxu1 }
 0x111   :  { %v465_v29 = vpack.c.bf16 %v344_v23, %v343_v21  ;;  %v469_v30 = vpack.c.bf16 %v352_v24, %v351_v22  ;;  %v317_v31 = vadd.f32 %v316_v27, %v63_v46  ;;  %v337_v32 = vadd.f32 %v336_v28, %v63_v46 }
 0x112   :  { %v345_v33 = vmax.f32 %v315_v25, 0.0  ;;  %v353_v34 = vmax.f32 %v335_v26, 0.0 }
 0x113   :  { %405 = vst [vmem:[%s733_s3 + $0x10] sm:$0xff] %v465_v29  ;;  %409 = vst [vmem:[%s733_s3 + $0x30] sm:$0xff] %v469_v30  ;;  %v346_v35 = vmax.f32 %v317_v31, 0.0  ;;  %v354_v36 = vmax.f32 %v337_v32, 0.0 }
 0x115   :  { %v466_v37 = vpack.c.bf16 %v346_v35, %v345_v33  ;;  %v470_v38 = vpack.c.bf16 %v354_v36, %v353_v34 }
 0x117   :  { %406 = vst [vmem:[%s733_s3 + $0x18] sm:$0xff] %v466_v37  ;;  %410 = vst [vmem:[%s733_s3 + $0x38] sm:$0xff] %v470_v38 }

// kernel: vae_forward.15
= control target key start
LH: loop header
LB: loop body
LE: loop exit
PB: predicated region body
PF: predicated region fallthrough
CT: control target
= control target key end

     0   :  { %s1028_s1 = inlined_call_operand.vmem [shape: bf16[256,128], index: 1, kind: input, shape index: {}]   ;;  %s1029_s0 = inlined_call_operand.vmem [shape: bf16[176,256], index: 0, kind: input, shape index: {}]   ;;  %s1030_s2 = inlined_call_operand.vmem [shape: f32[1,128], index: 2, kind: input, shape index: {}]   ;;  %s1031_s3 = inlined_call_operand.vmem [shape: bf16[176,128], index: 3, kind: output, shape index: {}]  }
   0x1   :  { %v785_v0 = vld [vmem:[%s1028_s1 + $0x78] sm:$0xff]   ;;  %v787_v2 = vld [vmem:[%s1028_s1 + $0x70] sm:$0xff]   ;;  %v789_v4 = vld [vmem:[%s1028_s1 + $0x68] sm:$0xff]  }
   0x2   :  { %v786_v1 = vld [vmem:[%s1028_s1 + $0x38] sm:$0xff]   ;;  %687 = vmatprep.subr.bf16.mxu0 %v785_v0  ;;  %769 = vmatprep.subr.bf16.mxu1 %v785_v0  ;;  %v788_v3 = vld [vmem:[%s1028_s1 + $0x30] sm:$0xff]   ;;  %v790_v5 = vld [vmem:[%s1028_s1 + $0x28] sm:$0xff]  }
   0x3   :  { %688 = vmatpush3.bf16.msra.mxu0 %v786_v1  ;;  %777 = vmatpush3.bf16.msra.mxu1 %v786_v1  ;;  %v791_v6 = vld [vmem:[%s1028_s1 + $0x60] sm:$0xff]   ;;  %v793_v8 = vld [vmem:[%s1028_s1 + $0x58] sm:$0xff]   ;;  %v795_v10 = vld [vmem:[%s1028_s1 + $0x50] sm:$0xff]  }
   0x4   :  { %689 = vmatprep.subr.bf16.mxu0 %v787_v2  ;;  %770 = vmatprep.subr.bf16.mxu1 %v787_v2  ;;  %v792_v7 = vld [vmem:[%s1028_s1 + $0x20] sm:$0xff]   ;;  %v794_v9 = vld [vmem:[%s1028_s1 + $0x18] sm:$0xff]   ;;  %v796_v13 = vld [vmem:[%s1028_s1 + $0x10] sm:$0xff]  }
   0x5   :  { %v803_v11 = vld [vmem:[%s1029_s0 + $0x4] ss:$8 sps:$4 sm:$0xff]   ;;  %v801_v18 = vld [vmem:[%s1029_s0] ss:$8 sps:$4 sm:$0xff]   ;;  %v807_v20 = vld [vmem:[%s1029_s0 + $0x14] ss:$8 sps:$4 sm:$0xff]  }
   0x6   :  { %v806_v12 = vld [vmem:[%s1029_s0 + $0x64] ss:$8 sps:$4 sm:$0xff]   ;;  %314 = vmatprep.mubr.bf16.mxu0 %v803_v11  ;;  %v804_v19 = vld [vmem:[%s1029_s0 + $0x60] ss:$8 sps:$4 sm:$0xff]   ;;  %v810_v21 = vld [vmem:[%s1029_s0 + $0x74] ss:$8 sps:$4 sm:$0xff]  }
   0x7   :  { %690 = vmatpush3.bf16.msra.mxu0 %v788_v3  ;;  %778 = vmatpush3.bf16.msra.mxu1 %v788_v3  ;;  %v797_v14 = vld [vmem:[%s1028_s1 + $0x48] sm:$0xff]   ;;  %v799_v16 = vld [vmem:[%s1028_s1 + $0x40] sm:$0xff]   ;;  %v809_v22 = vld [vmem:[%s1029_s0 + $0x10] ss:$8 sps:$4 sm:$0xff]  }
   0x8   :  { %691 = vmatprep.subr.bf16.mxu0 %v789_v4  ;;  %771 = vmatprep.subr.bf16.mxu1 %v789_v4  ;;  %v798_v15 = vld [vmem:[%s1028_s1 + $0x8] sm:$0xff]   ;;  %v800_v17 = vld [vmem:[%s1028_s1] sm:$0xff]   ;;  %v812_v23 = vld [vmem:[%s1029_s0 + $0x70] ss:$8 sps:$4 sm:$0xff]  }
   0x9   :  { %362 = vmatprep.mubr.bf16.mxu1 %v806_v12  ;;  %v813_v24 = vld [vmem:[%s1029_s0 + $0x24] ss:$8 sps:$4 sm:$0xff]   ;;  %v815_v26 = vld [vmem:[%s1029_s0 + $0x20] ss:$8 sps:$4 sm:$0xff]   ;;  %v819_v28 = vld [vmem:[%s1029_s0 + $0x34] ss:$8 sps:$4 sm:$0xff]  }
   0xa   :  { %v816_v25 = vld [vmem:[%s1029_s0 + $0x84] ss:$8 sps:$4 sm:$0xff]   ;;  %v818_v27 = vld [vmem:[%s1029_s0 + $0x80] ss:$8 sps:$4 sm:$0xff]   ;;  %v822_v29 = vld [vmem:[%s1029_s0 + $0x94] ss:$8 sps:$4 sm:$0xff]  }
   0xb   :  { %692 = vmatpush3.bf16.msra.mxu0 %v790_v5  ;;  %779 = vmatpush3.bf16.msra.mxu1 %v790_v5  ;;  %v821_v30 = vld [vmem:[%s1029_s0 + $0x30] ss:$8 sps:$4 sm:$0xff]   ;;  %v825_v32 = vld [vmem:[%s1029_s0 + $0x44] ss:$8 sps:$4 sm:$0xff]   ;;  %v827_v34 = vld [vmem:[%s1029_s0 + $0x40] ss:$8 sps:$4 sm:$0xff]  }
   0xc   :  { %693 = vmatprep.subr.bf16.mxu0 %v791_v6  ;;  %772 = vmatprep.subr.bf16.mxu1 %v791_v6  ;;  %v824_v31 = vld [vmem:[%s1029_s0 + $0x90] ss:$8 sps:$4 sm:$0xff]   ;;  %v828_v33 = vld [vmem:[%s1029_s0 + $0xa4] ss:$8 sps:$4 sm:$0xff]   ;;  %v830_v35 = vld [vmem:[%s1029_s0 + $0xa0] ss:$8 sps:$4 sm:$0xff]  }
   0xd   :  { %v831_v36 = vld [vmem:[%s1029_s0 + $0x54] ss:$8 sps:$4 sm:$0xff]   ;;  %v833_v37 = vld [vmem:[%s1029_s0 + $0x50] ss:$8 sps:$4 sm:$0xff]   ;;  %v971_v42 = vld [vmem:[%s1030_s2] ss:$0 sm:$0xff] }
   0xf   :  { %694 = vmatpush3.bf16.msra.mxu0 %v792_v7  ;;  %780 = vmatpush3.bf16.msra.mxu1 %v792_v7 }
  0x10   :  { %695 = vmatprep.subr.bf16.mxu0 %v793_v8  ;;  %773 = vmatprep.subr.bf16.mxu1 %v793_v8 }
  0x13   :  { %696 = vmatpush3.bf16.msra.mxu0 %v794_v9  ;;  %781 = vmatpush3.bf16.msra.mxu1 %v794_v9 }
  0x14   :  { %697 = vmatprep.subr.bf16.mxu0 %v795_v10  ;;  %774 = vmatprep.subr.bf16.mxu1 %v795_v10 }
  0x17   :  { %698 = vmatpush3.bf16.msra.mxu0 %v796_v13  ;;  %782 = vmatpush3.bf16.msra.mxu1 %v796_v13 }
  0x18   :  { %699 = vmatprep.subr.bf16.mxu0 %v797_v14  ;;  %775 = vmatprep.subr.bf16.mxu1 %v797_v14 }
  0x1b   :  { %700 = vmatpush3.bf16.msra.mxu0 %v798_v15  ;;  %783 = vmatpush3.bf16.msra.mxu1 %v798_v15 }
  0x1c   :  { %701 = vmatprep.subr.bf16.mxu0 %v799_v16  ;;  %776 = vmatprep.subr.bf16.mxu1 %v799_v16 }
  0x1f   :  { %702 = vmatpush3.bf16.msra.mxu0 %v800_v17  ;;  %784 = vmatpush3.bf16.msra.mxu1 %v800_v17 }
  0x22   :  { %315 = vmatmul.mubr.bf16.vlgmr.msra.gmra.mxu0 %v801_v18  ;;  %363 = vmatmul.mubr.bf16.vlgmr.msra.gmra.mxu1 %v804_v19 }
  0x23   :  { %322 = vmatprep.mubr.bf16.mxu0 %v807_v20  ;;  %370 = vmatprep.mubr.bf16.mxu1 %v810_v21 }
  0x2a   :  { %323 = vmatmul.mubr.bf16.gmra.mxu0 %v809_v22  ;;  %371 = vmatmul.mubr.bf16.gmra.mxu1 %v812_v23 }
  0x2b   :  { %330 = vmatprep.mubr.bf16.mxu0 %v813_v24  ;;  %378 = vmatprep.mubr.bf16.mxu1 %v816_v25 }
  0x32   :  { %331 = vmatmul.mubr.bf16.gmra.mxu0 %v815_v26  ;;  %379 = vmatmul.mubr.bf16.gmra.mxu1 %v818_v27 }
  0x33   :  { %338 = vmatprep.mubr.bf16.mxu0 %v819_v28  ;;  %386 = vmatprep.mubr.bf16.mxu1 %v822_v29 }
  0x3a   :  { %339 = vmatmul.mubr.bf16.gmra.mxu0 %v821_v30  ;;  %387 = vmatmul.mubr.bf16.gmra.mxu1 %v824_v31 }
  0x3b   :  { %346 = vmatprep.mubr.bf16.mxu0 %v825_v32  ;;  %394 = vmatprep.mubr.bf16.mxu1 %v828_v33 }
  0x42   :  { %347 = vmatmul.mubr.bf16.gmra.mxu0 %v827_v34  ;;  %395 = vmatmul.mubr.bf16.gmra.mxu1 %v830_v35 }
  0x43   :  { %354 = vmatprep.mubr.bf16.mxu0 %v831_v36 }
  0x4a   :  { %355 = vmatmul.mubr.bf16.gmra.mxu0 %v833_v37 }
  0xe2   :  { %v703_v38 = vpop.f32.mrf.mxu0  ;;  %v739_v39 = vpop.f32.mrf.mxu1 }
  0xe4   :  { %v704_v40 = vpop.f32.mrf.mxu0  ;;  %v740_v41 = vpop.f32.mrf.mxu1 }
  0xe5   :  { %v705_v43 = vadd.f32 %v704_v40, %v703_v38  ;;  %v741_v44 = vadd.f32 %v740_v41, %v739_v39 }
  0xe6   :  { %v706_v45 = vpop.f32.mrf.mxu0  ;;  %v742_v46 = vpop.f32.mrf.mxu1 }
  0xe7   :  { %v365_v47 = vadd.f32 %v741_v44, %v971_v42  ;;  %v317_v48 = vadd.f32 %v705_v43, %v971_v42 }
  0xe8   :  { %v707_v49 = vpop.f32.mrf.mxu0  ;;  %v743_v50 = vpop.f32.mrf.mxu1 }
  0xe9   :  { %v708_v51 = vadd.f32 %v707_v49, %v706_v45  ;;  %v744_v52 = vadd.f32 %v743_v50, %v742_v46  ;;  %v415_v55 = vmax.f32 %v365_v47, 0.0  ;;  %v403_v58 = vmax.f32 %v317_v48, 0.0 }
  0xea   :  { %v709_v53 = vpop.f32.mrf.mxu0  ;;  %v745_v54 = vpop.f32.mrf.mxu1 }
  0xeb   :  { %v320_v56 = vadd.f32 %v708_v51, %v971_v42  ;;  %v368_v57 = vadd.f32 %v744_v52, %v971_v42 }
  0xec   :  { %v710_v59 = vpop.f32.mrf.mxu0  ;;  %v746_v60 = vpop.f32.mrf.mxu1 }
  0xed   :  { %v404_v61 = vmax.f32 %v320_v56, 0.0  ;;  %v416_v62 = vmax.f32 %v368_v57, 0.0  ;;  %v711_v63 = vadd.f32 %v710_v59, %v709_v53  ;;  %v747_v0 = vadd.f32 %v746_v60, %v745_v54 }
  0xee   :  { %v712_v1 = vpop.f32.mrf.mxu0  ;;  %v748_v2 = vpop.f32.mrf.mxu1 }
  0xef   :  { %v625_v3 = vpack.c.bf16 %v404_v61, %v403_v58  ;;  %v655_v4 = vpack.c.bf16 %v416_v62, %v415_v55  ;;  %v373_v5 = vadd.f32 %v747_v0, %v971_v42  ;;  %v325_v6 = vadd.f32 %v711_v63, %v971_v42 }
  0xf0   :  { %v713_v7 = vpop.f32.mrf.mxu0  ;;  %v749_v8 = vpop.f32.mrf.mxu1 }
  0xf1   :  { %626 = vst [vmem:[%s1031_s3] sm:$0xff] %v625_v3   ;;  %682 = vst [vmem:[%s1031_s3 + $0x30] sm:$0xff] %v655_v4   ;;  %v714_v9 = vadd.f32 %v713_v7, %v712_v1  ;;  %v750_v10 = vadd.f32 %v749_v8, %v748_v2  ;;  %v417_v13 = vmax.f32 %v373_v5, 0.0  ;;  %v405_v16 = vmax.f32 %v325_v6, 0.0 }
  0xf2   :  { %v715_v11 = vpop.f32.mrf.mxu0  ;;  %v751_v12 = vpop.f32.mrf.mxu1 }
  0xf3   :  { %v328_v14 = vadd.f32 %v714_v9, %v971_v42  ;;  %v376_v15 = vadd.f32 %v750_v10, %v971_v42 }
  0xf4   :  { %v716_v17 = vpop.f32.mrf.mxu0  ;;  %v752_v18 = vpop.f32.mrf.mxu1 }
  0xf5   :  { %v406_v19 = vmax.f32 %v328_v14, 0.0  ;;  %v418_v20 = vmax.f32 %v376_v15, 0.0  ;;  %v717_v21 = vadd.f32 %v716_v17, %v715_v11  ;;  %v753_v22 = vadd.f32 %v752_v18, %v751_v12 }
  0xf6   :  { %v718_v23 = vpop.f32.mrf.mxu0  ;;  %v754_v24 = vpop.f32.mrf.mxu1 }
  0xf7   :  { %v630_v25 = vpack.c.bf16 %v406_v19, %v405_v16  ;;  %v660_v26 = vpack.c.bf16 %v418_v20, %v417_v13  ;;  %v381_v27 = vadd.f32 %v753_v22, %v971_v42  ;;  %v333_v28 = vadd.f32 %v717_v21, %v971_v42 }
  0xf8   :  { %v719_v29 = vpop.f32.mrf.mxu0  ;;  %v755_v30 = vpop.f32.mrf.mxu1 }
  0xf9   :  { %677 = vst [vmem:[%s1031_s3 + $0x8] sm:$0xff] %v630_v25   ;;  %683 = vst [vmem:[%s1031_s3 + $0x38] sm:$0xff] %v660_v26   ;;  %v720_v31 = vadd.f32 %v719_v29, %v718_v23  ;;  %v756_v32 = vadd.f32 %v755_v30, %v754_v24  ;;  %v419_v35 = vmax.f32 %v381_v27, 0.0  ;;  %v407_v38 = vmax.f32 %v333_v28, 0.0 }
  0xfa   :  { %v721_v33 = vpop.f32.mrf.mxu0  ;;  %v757_v34 = vpop.f32.mrf.mxu1 }
  0xfb   :  { %v336_v36 = vadd.f32 %v720_v31, %v971_v42  ;;  %v384_v37 = vadd.f32 %v756_v32, %v971_v42 }
  0xfc   :  { %v722_v39 = vpop.f32.mrf.mxu0  ;;  %v758_v40 = vpop.f32.mrf.mxu1 }
  0xfd   :  { %v408_v41 = vmax.f32 %v336_v36, 0.0  ;;  %v420_v43 = vmax.f32 %v384_v37, 0.0  ;;  %v723_v44 = vadd.f32 %v722_v39, %v721_v33  ;;  %v759_v45 = vadd.f32 %v758_v40, %v757_v34 }
  0xfe   :  { %v724_v46 = vpop.f32.mrf.mxu0  ;;  %v760_v47 = vpop.f32.mrf.mxu1 }
  0xff   :  { %v635_v48 = vpack.c.bf16 %v408_v41, %v407_v38  ;;  %v665_v49 = vpack.c.bf16 %v420_v43, %v419_v35  ;;  %v389_v50 = vadd.f32 %v759_v45, %v971_v42  ;;  %v341_v51 = vadd.f32 %v723_v44, %v971_v42 }
 0x100   :  { %v725_v52 = vpop.f32.mrf.mxu0  ;;  %v761_v53 = vpop.f32.mrf.mxu1 }
 0x101   :  { %678 = vst [vmem:[%s1031_s3 + $0x10] sm:$0xff] %v635_v48   ;;  %684 = vst [vmem:[%s1031_s3 + $0x40] sm:$0xff] %v665_v49   ;;  %v726_v54 = vadd.f32 %v725_v52, %v724_v46  ;;  %v762_v55 = vadd.f32 %v761_v53, %v760_v47  ;;  %v421_v58 = vmax.f32 %v389_v50, 0.0  ;;  %v409_v61 = vmax.f32 %v341_v51, 0.0 }
 0x102   :  { %v727_v56 = vpop.f32.mrf.mxu0  ;;  %v763_v57 = vpop.f32.mrf.mxu1 }
 0x103   :  { %v344_v59 = vadd.f32 %v726_v54, %v971_v42  ;;  %v392_v60 = vadd.f32 %v762_v55, %v971_v42 }
 0x104   :  { %v728_v62 = vpop.f32.mrf.mxu0  ;;  %v764_v63 = vpop.f32.mrf.mxu1 }
 0x105   :  { %v410_v0 = vmax.f32 %v344_v59, 0.0  ;;  %v422_v1 = vmax.f32 %v392_v60, 0.0  ;;  %v729_v2 = vadd.f32 %v728_v62, %v727_v56  ;;  %v765_v3 = vadd.f32 %v764_v63, %v763_v57 }
 0x106   :  { %v730_v4 = vpop.f32.mrf.mxu0  ;;  %v766_v5 = vpop.f32.mrf.mxu1 }
 0x107   :  { %v640_v6 = vpack.c.bf16 %v410_v0, %v409_v61  ;;  %v670_v7 = vpack.c.bf16 %v422_v1, %v421_v58  ;;  %v397_v8 = vadd.f32 %v765_v3, %v971_v42  ;;  %v349_v11 = vadd.f32 %v729_v2, %v971_v42 }
 0x108   :  { %v731_v9 = vpop.f32.mrf.mxu0  ;;  %v767_v10 = vpop.f32.mrf.mxu1 }
 0x109   :  { %679 = vst [vmem:[%s1031_s3 + $0x18] sm:$0xff] %v640_v6   ;;  %685 = vst [vmem:[%s1031_s3 + $0x48] sm:$0xff] %v670_v7   ;;  %v732_v12 = vadd.f32 %v731_v9, %v730_v4  ;;  %v768_v13 = vadd.f32 %v767_v10, %v766_v5  ;;  %v423_v15 = vmax.f32 %v397_v8, 0.0  ;;  %v411_v19 = vmax.f32 %v349_v11, 0.0 }
 0x10a   :  { %v733_v14 = vpop.f32.mrf.mxu0 }
 0x10b   :  { %v352_v16 = vadd.f32 %v732_v12, %v971_v42  ;;  %v400_v17 = vadd.f32 %v768_v13, %v971_v42 }
 0x10c   :  { %v734_v18 = vpop.f32.mrf.mxu0 }
 0x10d   :  { %v412_v20 = vmax.f32 %v352_v16, 0.0  ;;  %v424_v21 = vmax.f32 %v400_v17, 0.0  ;;  %v735_v22 = vadd.f32 %v734_v18, %v733_v14 }
 0x10e   :  { %v736_v23 = vpop.f32.mrf.mxu0 }
 0x10f   :  { %v645_v24 = vpack.c.bf16 %v412_v20, %v411_v19  ;;  %v675_v25 = vpack.c.bf16 %v424_v21, %v423_v15  ;;  %v357_v27 = vadd.f32 %v735_v22, %v971_v42 }
 0x110   :  { %v737_v26 = vpop.f32.mrf.mxu0 }
 0x111   :  { %680 = vst [vmem:[%s1031_s3 + $0x20] sm:$0xff] %v645_v24   ;;  %686 = vst [vmem:[%s1031_s3 + $0x50] sm:$0xff] %v675_v25   ;;  %v738_v28 = vadd.f32 %v737_v26, %v736_v23  ;;  %v413_v30 = vmax.f32 %v357_v27, 0.0 }
 0x113   :  { %v360_v29 = vadd.f32 %v738_v28, %v971_v42 }
 0x115   :  { %v414_v31 = vmax.f32 %v360_v29, 0.0 }
 0x117   :  { %v650_v32 = vpack.c.bf16 %v414_v31, %v413_v30 }
 0x119   :  { %681 = vst [vmem:[%s1031_s3 + $0x28] sm:$0xff] %v650_v32  }

// kernel: vae_forward.16
= control target key start
LH: loop header
LB: loop body
LE: loop exit
PB: predicated region body
PF: predicated region fallthrough
CT: control target
= control target key end

     0   :  { %v1846_v0 = vmov 0.0   ;;  %vm1847_vm0 = vmmov 0   ;;  %s2283_s1 = inlined_call_operand.vmem [shape: bf16[128,128], index: 1, kind: input, shape index: {}]   ;;  %s2284_s0 = inlined_call_operand.vmem [shape: bf16[592,128], index: 0, kind: input, shape index: {}]   ;;  %s2285_s2 = inlined_call_operand.vmem [shape: f32[1,128], index: 2, kind: input, shape index: {}]   ;;  %s2286_s3 = inlined_call_operand.vmem [shape: bf16[592,128], index: 3, kind: output, shape index: {}]  }
   0x1   :  { %1619 = vmatprep.subr.bf16.mxu0 %v1846_v0  ;;  %v1801_v1 = vld [vmem:[%s2283_s1 + $0x38] sm:$0xff]   ;;  %1783 = vmatprep.subr.bf16.mxu1 %v1846_v0  ;;  %v1802_v2 = vld [vmem:[%s2283_s1 + $0x30] sm:$0xff]   ;;  %v1803_v3 = vld [vmem:[%s2283_s1 + $0x28] sm:$0xff]  }
   0x2   :  { %1635 = vmatprep.mubr.msk.bf16.mxu0 %vm1847_vm0, %v1846_v0  ;;  %1711 = vmatprep.mubr.msk.bf16.mxu1 %vm1847_vm0, %v1846_v0  ;;  %v1804_v4 = vld [vmem:[%s2283_s1 + $0x20] sm:$0xff]   ;;  %v1805_v5 = vld [vmem:[%s2283_s1 + $0x18] sm:$0xff]   ;;  %v1806_v6 = vld [vmem:[%s2283_s1 + $0x10] sm:$0xff]  }
   0x3   :  { %1620 = vmatpush3.bf16.msra.mxu0 %v1801_v1  ;;  %1791 = vmatpush3.bf16.msra.mxu1 %v1801_v1  ;;  %v1807_v7 = vld [vmem:[%s2283_s1 + $0x8] sm:$0xff]   ;;  %v1808_v8 = vld [vmem:[%s2283_s1] sm:$0xff]   ;;  %v1810_v10 = vld [vmem:[%s2284_s0 + $0x98] sm:$0xff]  }
   0x4   :  { %1621 = vmatprep.subr.bf16.mxu0 %v1846_v0  ;;  %1784 = vmatprep.subr.bf16.mxu1 %v1846_v0  ;;  %v1809_v9 = vld [vmem:[%s2284_s0] sm:$0xff]   ;;  %v1811_v11 = vld [vmem:[%s2284_s0 + $0x8] sm:$0xff]   ;;  %v1813_v13 = vld [vmem:[%s2284_s0 + $0x10] sm:$0xff]  }
   0x5   :  { %v1812_v12 = vld [vmem:[%s2284_s0 + $0xa0] sm:$0xff]   ;;  %v1814_v14 = vld [vmem:[%s2284_s0 + $0xa8] sm:$0xff]   ;;  %v1815_v15 = vld [vmem:[%s2284_s0 + $0x18] sm:$0xff]  }
   0x6   :  { %v1816_v16 = vld [vmem:[%s2284_s0 + $0xb0] sm:$0xff]   ;;  %v1817_v17 = vld [vmem:[%s2284_s0 + $0x20] sm:$0xff]   ;;  %v1818_v18 = vld [vmem:[%s2284_s0 + $0xb8] sm:$0xff]  }
   0x7   :  { %1622 = vmatpush3.bf16.msra.mxu0 %v1802_v2  ;;  %1792 = vmatpush3.bf16.msra.mxu1 %v1802_v2  ;;  %v1819_v19 = vld [vmem:[%s2284_s0 + $0x28] sm:$0xff]   ;;  %v1820_v20 = vld [vmem:[%s2284_s0 + $0xc0] sm:$0xff]   ;;  %v1821_v21 = vld [vmem:[%s2284_s0 + $0x30] sm:$0xff]  }
   0x8   :  { %1623 = vmatprep.subr.bf16.mxu0 %v1846_v0  ;;  %1785 = vmatprep.subr.bf16.mxu1 %v1846_v0  ;;  %v1822_v22 = vld [vmem:[%s2284_s0 + $0xc8] sm:$0xff]   ;;  %v1823_v23 = vld [vmem:[%s2284_s0 + $0x38] sm:$0xff]   ;;  %v1824_v24 = vld [vmem:[%s2284_s0 + $0xd0] sm:$0xff]  }
   0x9   :  { %v1825_v25 = vld [vmem:[%s2284_s0 + $0x40] sm:$0xff]   ;;  %v1826_v26 = vld [vmem:[%s2284_s0 + $0xd8] sm:$0xff]   ;;  %v1827_v27 = vld [vmem:[%s2284_s0 + $0x48] sm:$0xff]  }
   0xa   :  { %v1828_v28 = vld [vmem:[%s2284_s0 + $0xe0] sm:$0xff]   ;;  %v1829_v29 = vld [vmem:[%s2284_s0 + $0x50] sm:$0xff]   ;;  %v1830_v30 = vld [vmem:[%s2284_s0 + $0xe8] sm:$0xff]  }
   0xb   :  { %1624 = vmatpush3.bf16.msra.mxu0 %v1803_v3  ;;  %1793 = vmatpush3.bf16.msra.mxu1 %v1803_v3  ;;  %v1831_v31 = vld [vmem:[%s2284_s0 + $0x58] sm:$0xff]   ;;  %v1832_v32 = vld [vmem:[%s2284_s0 + $0xf0] sm:$0xff]   ;;  %v1833_v33 = vld [vmem:[%s2284_s0 + $0x60] sm:$0xff]  }
   0xc   :  { %1625 = vmatprep.subr.bf16.mxu0 %v1846_v0  ;;  %1786 = vmatprep.subr.bf16.mxu1 %v1846_v0  ;;  %v1834_v34 = vld [vmem:[%s2284_s0 + $0xf8] sm:$0xff]   ;;  %v1835_v35 = vld [vmem:[%s2284_s0 + $0x68] sm:$0xff]   ;;  %v1836_v36 = vld [vmem:[%s2284_s0 + $0x100] sm:$0xff]  }
   0xd   :  { %v1837_v37 = vld [vmem:[%s2284_s0 + $0x70] sm:$0xff]   ;;  %v1838_v38 = vld [vmem:[%s2284_s0 + $0x108] sm:$0xff]   ;;  %v1839_v39 = vld [vmem:[%s2284_s0 + $0x78] sm:$0xff]  }
   0xe   :  { %v1840_v40 = vld [vmem:[%s2284_s0 + $0x110] sm:$0xff]   ;;  %v1841_v41 = vld [vmem:[%s2284_s0 + $0x80] sm:$0xff]   ;;  %v1842_v42 = vld [vmem:[%s2284_s0 + $0x118] sm:$0xff]  }
   0xf   :  { %1626 = vmatpush3.bf16.msra.mxu0 %v1804_v4  ;;  %1794 = vmatpush3.bf16.msra.mxu1 %v1804_v4  ;;  %v1843_v43 = vld [vmem:[%s2284_s0 + $0x88] sm:$0xff]   ;;  %v1844_v44 = vld [vmem:[%s2284_s0 + $0x120] sm:$0xff]   ;;  %v1845_v45 = vld [vmem:[%s2284_s0 + $0x90] sm:$0xff]  }
  0x10   :  { %1627 = vmatprep.subr.bf16.mxu0 %v1846_v0  ;;  %1787 = vmatprep.subr.bf16.mxu1 %v1846_v0  ;;  %v2096_v46 = vld [vmem:[%s2285_s2] ss:$0 sm:$0xff] }
  0x13   :  { %1628 = vmatpush3.bf16.msra.mxu0 %v1805_v5  ;;  %1795 = vmatpush3.bf16.msra.mxu1 %v1805_v5 }
  0x14   :  { %1629 = vmatprep.subr.bf16.mxu0 %v1846_v0  ;;  %1788 = vmatprep.subr.bf16.mxu1 %v1846_v0 }
  0x17   :  { %1630 = vmatpush3.bf16.msra.mxu0 %v1806_v6  ;;  %1796 = vmatpush3.bf16.msra.mxu1 %v1806_v6 }
  0x18   :  { %1631 = vmatprep.subr.bf16.mxu0 %v1846_v0  ;;  %1789 = vmatprep.subr.bf16.mxu1 %v1846_v0 }
  0x1b   :  { %1632 = vmatpush3.bf16.msra.mxu0 %v1807_v7  ;;  %1797 = vmatpush3.bf16.msra.mxu1 %v1807_v7 }
  0x1c   :  { %1633 = vmatprep.subr.bf16.mxu0 %v1846_v0  ;;  %1790 = vmatprep.subr.bf16.mxu1 %v1846_v0 }
  0x1f   :  { %1634 = vmatpush3.bf16.msra.mxu0 %v1808_v8  ;;  %1798 = vmatpush3.bf16.msra.mxu1 %v1808_v8 }
  0x22   :  { %1636 = vmatmul.mubr.bf16.vlgmr.msra.gmra.mxu0 %v1809_v9  ;;  %1712 = vmatmul.mubr.bf16.vlgmr.msra.gmra.mxu1 %v1810_v10 }
  0x23   :  { %1639 = vmatprep.mubr.msk.bf16.mxu0 %vm1847_vm0, %v1846_v0  ;;  %1715 = vmatprep.mubr.msk.bf16.mxu1 %vm1847_vm0, %v1846_v0 }
  0x2a   :  { %1640 = vmatmul.mubr.bf16.gmra.mxu0 %v1811_v11  ;;  %1716 = vmatmul.mubr.bf16.gmra.mxu1 %v1812_v12 }
  0x2b   :  { %1643 = vmatprep.mubr.msk.bf16.mxu0 %vm1847_vm0, %v1846_v0  ;;  %1719 = vmatprep.mubr.msk.bf16.mxu1 %vm1847_vm0, %v1846_v0 }
  0x32   :  { %1644 = vmatmul.mubr.bf16.gmra.mxu0 %v1813_v13  ;;  %1720 = vmatmul.mubr.bf16.gmra.mxu1 %v1814_v14 }
  0x33   :  { %1647 = vmatprep.mubr.msk.bf16.mxu0 %vm1847_vm0, %v1846_v0  ;;  %1723 = vmatprep.mubr.msk.bf16.mxu1 %vm1847_vm0, %v1846_v0 }
  0x3a   :  { %1648 = vmatmul.mubr.bf16.gmra.mxu0 %v1815_v15  ;;  %1724 = vmatmul.mubr.bf16.gmra.mxu1 %v1816_v16 }
  0x3b   :  { %1651 = vmatprep.mubr.msk.bf16.mxu0 %vm1847_vm0, %v1846_v0  ;;  %1727 = vmatprep.mubr.msk.bf16.mxu1 %vm1847_vm0, %v1846_v0 }
  0x42   :  { %1652 = vmatmul.mubr.bf16.gmra.mxu0 %v1817_v17  ;;  %1728 = vmatmul.mubr.bf16.gmra.mxu1 %v1818_v18 }
  0x43   :  { %1655 = vmatprep.mubr.msk.bf16.mxu0 %vm1847_vm0, %v1846_v0  ;;  %1731 = vmatprep.mubr.msk.bf16.mxu1 %vm1847_vm0, %v1846_v0 }
  0x4a   :  { %1656 = vmatmul.mubr.bf16.gmra.mxu0 %v1819_v19  ;;  %1732 = vmatmul.mubr.bf16.gmra.mxu1 %v1820_v20 }
  0x4b   :  { %1659 = vmatprep.mubr.msk.bf16.mxu0 %vm1847_vm0, %v1846_v0  ;;  %1735 = vmatprep.mubr.msk.bf16.mxu1 %vm1847_vm0, %v1846_v0 }
  0x52   :  { %1660 = vmatmul.mubr.bf16.gmra.mxu0 %v1821_v21  ;;  %1736 = vmatmul.mubr.bf16.gmra.mxu1 %v1822_v22 }
  0x53   :  { %1663 = vmatprep.mubr.msk.bf16.mxu0 %vm1847_vm0, %v1846_v0  ;;  %1739 = vmatprep.mubr.msk.bf16.mxu1 %vm1847_vm0, %v1846_v0 }
  0x5a   :  { %1664 = vmatmul.mubr.bf16.gmra.mxu0 %v1823_v23  ;;  %1740 = vmatmul.mubr.bf16.gmra.mxu1 %v1824_v24 }
  0x5b   :  { %1667 = vmatprep.mubr.msk.bf16.mxu0 %vm1847_vm0, %v1846_v0  ;;  %1743 = vmatprep.mubr.msk.bf16.mxu1 %vm1847_vm0, %v1846_v0 }
  0x62   :  { %1668 = vmatmul.mubr.bf16.gmra.mxu0 %v1825_v25  ;;  %1744 = vmatmul.mubr.bf16.gmra.mxu1 %v1826_v26 }
  0x63   :  { %1671 = vmatprep.mubr.msk.bf16.mxu0 %vm1847_vm0, %v1846_v0  ;;  %1747 = vmatprep.mubr.msk.bf16.mxu1 %vm1847_vm0, %v1846_v0 }
  0x6a   :  { %1672 = vmatmul.mubr.bf16.gmra.mxu0 %v1827_v27  ;;  %1748 = vmatmul.mubr.bf16.gmra.mxu1 %v1828_v28 }
  0x6b   :  { %1675 = vmatprep.mubr.msk.bf16.mxu0 %vm1847_vm0, %v1846_v0  ;;  %1751 = vmatprep.mubr.msk.bf16.mxu1 %vm1847_vm0, %v1846_v0 }
  0x72   :  { %1676 = vmatmul.mubr.bf16.gmra.mxu0 %v1829_v29  ;;  %1752 = vmatmul.mubr.bf16.gmra.mxu1 %v1830_v30 }
  0x73   :  { %1679 = vmatprep.mubr.msk.bf16.mxu0 %vm1847_vm0, %v1846_v0  ;;  %1755 = vmatprep.mubr.msk.bf16.mxu1 %vm1847_vm0, %v1846_v0 }
  0x7a   :  { %1680 = vmatmul.mubr.bf16.gmra.mxu0 %v1831_v31  ;;  %1756 = vmatmul.mubr.bf16.gmra.mxu1 %v1832_v32 }
  0x7b   :  { %1683 = vmatprep.mubr.msk.bf16.mxu0 %vm1847_vm0, %v1846_v0  ;;  %1759 = vmatprep.mubr.msk.bf16.mxu1 %vm1847_vm0, %v1846_v0 }
  0x82   :  { %1684 = vmatmul.mubr.bf16.gmra.mxu0 %v1833_v33  ;;  %1760 = vmatmul.mubr.bf16.gmra.mxu1 %v1834_v34 }
  0x83   :  { %1687 = vmatprep.mubr.msk.bf16.mxu0 %vm1847_vm0, %v1846_v0  ;;  %1763 = vmatprep.mubr.msk.bf16.mxu1 %vm1847_vm0, %v1846_v0 }
  0x8a   :  { %1688 = vmatmul.mubr.bf16.gmra.mxu0 %v1835_v35  ;;  %1764 = vmatmul.mubr.bf16.gmra.mxu1 %v1836_v36 }
  0x8b   :  { %1691 = vmatprep.mubr.msk.bf16.mxu0 %vm1847_vm0, %v1846_v0  ;;  %1767 = vmatprep.mubr.msk.bf16.mxu1 %vm1847_vm0, %v1846_v0 }
  0x92   :  { %1692 = vmatmul.mubr.bf16.gmra.mxu0 %v1837_v37  ;;  %1768 = vmatmul.mubr.bf16.gmra.mxu1 %v1838_v38 }
  0x93   :  { %1695 = vmatprep.mubr.msk.bf16.mxu0 %vm1847_vm0, %v1846_v0  ;;  %1771 = vmatprep.mubr.msk.bf16.mxu1 %vm1847_vm0, %v1846_v0 }
  0x9a   :  { %1696 = vmatmul.mubr.bf16.gmra.mxu0 %v1839_v39  ;;  %1772 = vmatmul.mubr.bf16.gmra.mxu1 %v1840_v40 }
  0x9b   :  { %1699 = vmatprep.mubr.msk.bf16.mxu0 %vm1847_vm0, %v1846_v0  ;;  %1775 = vmatprep.mubr.msk.bf16.mxu1 %vm1847_vm0, %v1846_v0 }
  0xa2   :  { %1700 = vmatmul.mubr.bf16.gmra.mxu0 %v1841_v41  ;;  %1776 = vmatmul.mubr.bf16.gmra.mxu1 %v1842_v42 }
  0xa3   :  { %1703 = vmatprep.mubr.msk.bf16.mxu0 %vm1847_vm0, %v1846_v0  ;;  %1779 = vmatprep.mubr.msk.bf16.mxu1 %vm1847_vm0, %v1846_v0 }
  0xaa   :  { %1704 = vmatmul.mubr.bf16.gmra.mxu0 %v1843_v43  ;;  %1780 = vmatmul.mubr.bf16.gmra.mxu1 %v1844_v44 }
  0xab   :  { %1707 = vmatprep.mubr.msk.bf16.mxu0 %vm1847_vm0, %v1846_v0 }
  0xb2   :  { %1708 = vmatmul.mubr.bf16.gmra.mxu0 %v1845_v45 }
  0xe2   :  { %v416_v47 = vpop.f32.mrf.mxu0  ;;  %v568_v48 = vpop.f32.mrf.mxu1 }
  0xe3   :  { %v569_v49 = vadd.f32 %v2096_v46, %v568_v48  ;;  %v417_v52 = vadd.f32 %v2096_v46, %v416_v47 }
  0xe4   :  { %v1637_v50 = vpop.f32.mrf.mxu0  ;;  %v1713_v51 = vpop.f32.mrf.mxu1 }
  0xe5   :  { %v749_v55 = vmax.f32 %v569_v49, 0.0  ;;  %v711_v60 = vmax.f32 %v417_v52, 0.0 }
  0xe6   :  { %v419_v53 = vpop.f32.mrf.mxu0  ;;  %v571_v54 = vpop.f32.mrf.mxu1 }
  0xe7   :  { %v420_v56 = vadd.f32 %v2096_v46, %v419_v53  ;;  %v572_v57 = vadd.f32 %v2096_v46, %v571_v54 }
  0xe8   :  { %v1638_v58 = vpop.f32.mrf.mxu0  ;;  %v1714_v59 = vpop.f32.mrf.mxu1 }
  0xe9   :  { %v712_v61 = vmax.f32 %v420_v56, 0.0  ;;  %v750_v62 = vmax.f32 %v572_v57, 0.0 }
  0xea   :  { %v424_v63 = vpop.f32.mrf.mxu0  ;;  %v576_v0 = vpop.f32.mrf.mxu1 }
  0xeb   :  { %v1356_v1 = vpack.c.bf16 %v712_v61, %v711_v60  ;;  %v1451_v2 = vpack.c.bf16 %v750_v62, %v749_v55  ;;  %v577_v3 = vadd.f32 %v2096_v46, %v576_v0  ;;  %v425_v6 = vadd.f32 %v2096_v46, %v424_v63 }
  0xec   :  { %v1641_v4 = vpop.f32.mrf.mxu0  ;;  %v1717_v5 = vpop.f32.mrf.mxu1 }
  0xed   :  { %1357 = vst [vmem:[%s2286_s3] sm:$0xff] %v1356_v1   ;;  %1556 = vst [vmem:[%s2286_s3 + $0x98] sm:$0xff] %v1451_v2   ;;  %v751_v9 = vmax.f32 %v577_v3, 0.0  ;;  %v713_v14 = vmax.f32 %v425_v6, 0.0 }
  0xee   :  { %v427_v7 = vpop.f32.mrf.mxu0  ;;  %v579_v8 = vpop.f32.mrf.mxu1 }
  0xef   :  { %v428_v10 = vadd.f32 %v2096_v46, %v427_v7  ;;  %v580_v11 = vadd.f32 %v2096_v46, %v579_v8 }
  0xf0   :  { %v1642_v12 = vpop.f32.mrf.mxu0  ;;  %v1718_v13 = vpop.f32.mrf.mxu1 }
  0xf1   :  { %v714_v15 = vmax.f32 %v428_v10, 0.0  ;;  %v752_v16 = vmax.f32 %v580_v11, 0.0 }
  0xf2   :  { %v432_v17 = vpop.f32.mrf.mxu0  ;;  %v584_v18 = vpop.f32.mrf.mxu1 }
  0xf3   :  { %v1361_v19 = vpack.c.bf16 %v714_v15, %v713_v14  ;;  %v1456_v20 = vpack.c.bf16 %v752_v16, %v751_v9  ;;  %v585_v21 = vadd.f32 %v2096_v46, %v584_v18  ;;  %v433_v24 = vadd.f32 %v2096_v46, %v432_v17 }
  0xf4   :  { %v1645_v22 = vpop.f32.mrf.mxu0  ;;  %v1721_v23 = vpop.f32.mrf.mxu1 }
  0xf5   :  { %1538 = vst [vmem:[%s2286_s3 + $0x8] sm:$0xff] %v1361_v19   ;;  %1557 = vst [vmem:[%s2286_s3 + $0xa0] sm:$0xff] %v1456_v20   ;;  %v753_v27 = vmax.f32 %v585_v21, 0.0  ;;  %v715_v32 = vmax.f32 %v433_v24, 0.0 }
  0xf6   :  { %v435_v25 = vpop.f32.mrf.mxu0  ;;  %v587_v26 = vpop.f32.mrf.mxu1 }
  0xf7   :  { %v436_v28 = vadd.f32 %v2096_v46, %v435_v25  ;;  %v588_v29 = vadd.f32 %v2096_v46, %v587_v26 }
  0xf8   :  { %v1646_v30 = vpop.f32.mrf.mxu0  ;;  %v1722_v31 = vpop.f32.mrf.mxu1 }
  0xf9   :  { %v716_v33 = vmax.f32 %v436_v28, 0.0  ;;  %v754_v34 = vmax.f32 %v588_v29, 0.0 }
  0xfa   :  { %v440_v35 = vpop.f32.mrf.mxu0  ;;  %v592_v36 = vpop.f32.mrf.mxu1 }
  0xfb   :  { %v1366_v37 = vpack.c.bf16 %v716_v33, %v715_v32  ;;  %v1461_v38 = vpack.c.bf16 %v754_v34, %v753_v27  ;;  %v593_v39 = vadd.f32 %v2096_v46, %v592_v36  ;;  %v441_v42 = vadd.f32 %v2096_v46, %v440_v35 }
  0xfc   :  { %v1649_v40 = vpop.f32.mrf.mxu0  ;;  %v1725_v41 = vpop.f32.mrf.mxu1 }
  0xfd   :  { %1539 = vst [vmem:[%s2286_s3 + $0x10] sm:$0xff] %v1366_v37   ;;  %1558 = vst [vmem:[%s2286_s3 + $0xa8] sm:$0xff] %v1461_v38   ;;  %v755_v45 = vmax.f32 %v593_v39, 0.0  ;;  %v717_v51 = vmax.f32 %v441_v42, 0.0 }
  0xfe   :  { %v443_v43 = vpop.f32.mrf.mxu0  ;;  %v595_v44 = vpop.f32.mrf.mxu1 }
  0xff   :  { %v444_v47 = vadd.f32 %v2096_v46, %v443_v43  ;;  %v596_v48 = vadd.f32 %v2096_v46, %v595_v44 }
 0x100   :  { %v1650_v49 = vpop.f32.mrf.mxu0  ;;  %v1726_v50 = vpop.f32.mrf.mxu1 }
 0x101   :  { %v718_v52 = vmax.f32 %v444_v47, 0.0  ;;  %v756_v53 = vmax.f32 %v596_v48, 0.0 }
 0x102   :  { %v448_v54 = vpop.f32.mrf.mxu0  ;;  %v600_v55 = vpop.f32.mrf.mxu1 }
 0x103   :  { %v1371_v56 = vpack.c.bf16 %v718_v52, %v717_v51  ;;  %v1466_v57 = vpack.c.bf16 %v756_v53, %v755_v45  ;;  %v601_v58 = vadd.f32 %v2096_v46, %v600_v55  ;;  %v449_v61 = vadd.f32 %v2096_v46, %v448_v54 }
 0x104   :  { %v1653_v59 = vpop.f32.mrf.mxu0  ;;  %v1729_v60 = vpop.f32.mrf.mxu1 }
 0x105   :  { %1540 = vst [vmem:[%s2286_s3 + $0x18] sm:$0xff] %v1371_v56   ;;  %1559 = vst [vmem:[%s2286_s3 + $0xb0] sm:$0xff] %v1466_v57   ;;  %v757_v0 = vmax.f32 %v601_v58, 0.0  ;;  %v719_v5 = vmax.f32 %v449_v61, 0.0 }
 0x106   :  { %v451_v62 = vpop.f32.mrf.mxu0  ;;  %v603_v63 = vpop.f32.mrf.mxu1 }
 0x107   :  { %v452_v1 = vadd.f32 %v2096_v46, %v451_v62  ;;  %v604_v2 = vadd.f32 %v2096_v46, %v603_v63 }
 0x108   :  { %v1654_v3 = vpop.f32.mrf.mxu0  ;;  %v1730_v4 = vpop.f32.mrf.mxu1 }
 0x109   :  { %v720_v6 = vmax.f32 %v452_v1, 0.0  ;;  %v758_v7 = vmax.f32 %v604_v2, 0.0 }
 0x10a   :  { %v456_v8 = vpop.f32.mrf.mxu0  ;;  %v608_v9 = vpop.f32.mrf.mxu1 }
 0x10b   :  { %v1376_v10 = vpack.c.bf16 %v720_v6, %v719_v5  ;;  %v1471_v11 = vpack.c.bf16 %v758_v7, %v757_v0  ;;  %v609_v12 = vadd.f32 %v2096_v46, %v608_v9  ;;  %v457_v15 = vadd.f32 %v2096_v46, %v456_v8 }
 0x10c   :  { %v1657_v13 = vpop.f32.mrf.mxu0  ;;  %v1733_v14 = vpop.f32.mrf.mxu1 }
 0x10d   :  { %1541 = vst [vmem:[%s2286_s3 + $0x20] sm:$0xff] %v1376_v10   ;;  %1560 = vst [vmem:[%s2286_s3 + $0xb8] sm:$0xff] %v1471_v11   ;;  %v759_v18 = vmax.f32 %v609_v12, 0.0  ;;  %v721_v23 = vmax.f32 %v457_v15, 0.0 }
 0x10e   :  { %v459_v16 = vpop.f32.mrf.mxu0  ;;  %v611_v17 = vpop.f32.mrf.mxu1 }
 0x10f   :  { %v460_v19 = vadd.f32 %v2096_v46, %v459_v16  ;;  %v612_v20 = vadd.f32 %v2096_v46, %v611_v17 }
 0x110   :  { %v1658_v21 = vpop.f32.mrf.mxu0  ;;  %v1734_v22 = vpop.f32.mrf.mxu1 }
 0x111   :  { %v722_v24 = vmax.f32 %v460_v19, 0.0  ;;  %v760_v25 = vmax.f32 %v612_v20, 0.0 }
 0x112   :  { %v464_v26 = vpop.f32.mrf.mxu0  ;;  %v616_v27 = vpop.f32.mrf.mxu1 }
 0x113   :  { %v1381_v28 = vpack.c.bf16 %v722_v24, %v721_v23  ;;  %v1476_v29 = vpack.c.bf16 %v760_v25, %v759_v18  ;;  %v617_v30 = vadd.f32 %v2096_v46, %v616_v27  ;;  %v465_v33 = vadd.f32 %v2096_v46, %v464_v26 }
 0x114   :  { %v1661_v31 = vpop.f32.mrf.mxu0  ;;  %v1737_v32 = vpop.f32.mrf.mxu1 }
 0x115   :  { %1542 = vst [vmem:[%s2286_s3 + $0x28] sm:$0xff] %v1381_v28   ;;  %1561 = vst [vmem:[%s2286_s3 + $0xc0] sm:$0xff] %v1476_v29   ;;  %v761_v36 = vmax.f32 %v617_v30, 0.0  ;;  %v723_v41 = vmax.f32 %v465_v33, 0.0 }
 0x116   :  { %v467_v34 = vpop.f32.mrf.mxu0  ;;  %v619_v35 = vpop.f32.mrf.mxu1 }
 0x117   :  { %v468_v37 = vadd.f32 %v2096_v46, %v467_v34  ;;  %v620_v38 = vadd.f32 %v2096_v46, %v619_v35 }
 0x118   :  { %v1662_v39 = vpop.f32.mrf.mxu0  ;;  %v1738_v40 = vpop.f32.mrf.mxu1 }
 0x119   :  { %v724_v42 = vmax.f32 %v468_v37, 0.0  ;;  %v762_v43 = vmax.f32 %v620_v38, 0.0 }
 0x11a   :  { %v472_v44 = vpop.f32.mrf.mxu0  ;;  %v624_v45 = vpop.f32.mrf.mxu1 }
 0x11b   :  { %v1386_v47 = vpack.c.bf16 %v724_v42, %v723_v41  ;;  %v1481_v48 = vpack.c.bf16 %v762_v43, %v761_v36  ;;  %v625_v49 = vadd.f32 %v2096_v46, %v624_v45  ;;  %v473_v52 = vadd.f32 %v2096_v46, %v472_v44 }
 0x11c   :  { %v1665_v50 = vpop.f32.mrf.mxu0  ;;  %v1741_v51 = vpop.f32.mrf.mxu1 }
 0x11d   :  { %1543 = vst [vmem:[%s2286_s3 + $0x30] sm:$0xff] %v1386_v47   ;;  %1562 = vst [vmem:[%s2286_s3 + $0xc8] sm:$0xff] %v1481_v48   ;;  %v763_v55 = vmax.f32 %v625_v49, 0.0  ;;  %v725_v60 = vmax.f32 %v473_v52, 0.0 }
 0x11e   :  { %v475_v53 = vpop.f32.mrf.mxu0  ;;  %v627_v54 = vpop.f32.mrf.mxu1 }
 0x11f   :  { %v476_v56 = vadd.f32 %v2096_v46, %v475_v53  ;;  %v628_v57 = vadd.f32 %v2096_v46, %v627_v54 }
 0x120   :  { %v1666_v58 = vpop.f32.mrf.mxu0  ;;  %v1742_v59 = vpop.f32.mrf.mxu1 }
 0x121   :  { %v726_v61 = vmax.f32 %v476_v56, 0.0  ;;  %v764_v62 = vmax.f32 %v628_v57, 0.0 }
 0x122   :  { %v480_v63 = vpop.f32.mrf.mxu0  ;;  %v632_v0 = vpop.f32.mrf.mxu1 }
 0x123   :  { %v1391_v1 = vpack.c.bf16 %v726_v61, %v725_v60  ;;  %v1486_v2 = vpack.c.bf16 %v764_v62, %v763_v55  ;;  %v633_v3 = vadd.f32 %v2096_v46, %v632_v0  ;;  %v481_v6 = vadd.f32 %v2096_v46, %v480_v63 }
 0x124   :  { %v1669_v4 = vpop.f32.mrf.mxu0  ;;  %v1745_v5 = vpop.f32.mrf.mxu1 }
 0x125   :  { %1544 = vst [vmem:[%s2286_s3 + $0x38] sm:$0xff] %v1391_v1   ;;  %1563 = vst [vmem:[%s2286_s3 + $0xd0] sm:$0xff] %v1486_v2   ;;  %v765_v9 = vmax.f32 %v633_v3, 0.0  ;;  %v727_v14 = vmax.f32 %v481_v6, 0.0 }
 0x126   :  { %v483_v7 = vpop.f32.mrf.mxu0  ;;  %v635_v8 = vpop.f32.mrf.mxu1 }
 0x127   :  { %v484_v10 = vadd.f32 %v2096_v46, %v483_v7  ;;  %v636_v11 = vadd.f32 %v2096_v46, %v635_v8 }
 0x128   :  { %v1670_v12 = vpop.f32.mrf.mxu0  ;;  %v1746_v13 = vpop.f32.mrf.mxu1 }
 0x129   :  { %v728_v15 = vmax.f32 %v484_v10, 0.0  ;;  %v766_v16 = vmax.f32 %v636_v11, 0.0 }
 0x12a   :  { %v488_v17 = vpop.f32.mrf.mxu0  ;;  %v640_v18 = vpop.f32.mrf.mxu1 }
 0x12b   :  { %v1396_v19 = vpack.c.bf16 %v728_v15, %v727_v14  ;;  %v1491_v20 = vpack.c.bf16 %v766_v16, %v765_v9  ;;  %v641_v21 = vadd.f32 %v2096_v46, %v640_v18  ;;  %v489_v24 = vadd.f32 %v2096_v46, %v488_v17 }
 0x12c   :  { %v1673_v22 = vpop.f32.mrf.mxu0  ;;  %v1749_v23 = vpop.f32.mrf.mxu1 }
 0x12d   :  { %1545 = vst [vmem:[%s2286_s3 + $0x40] sm:$0xff] %v1396_v19   ;;  %1564 = vst [vmem:[%s2286_s3 + $0xd8] sm:$0xff] %v1491_v20   ;;  %v767_v27 = vmax.f32 %v641_v21, 0.0  ;;  %v729_v32 = vmax.f32 %v489_v24, 0.0 }
 0x12e   :  { %v491_v25 = vpop.f32.mrf.mxu0  ;;  %v643_v26 = vpop.f32.mrf.mxu1 }
 0x12f   :  { %v492_v28 = vadd.f32 %v2096_v46, %v491_v25  ;;  %v644_v29 = vadd.f32 %v2096_v46, %v643_v26 }
 0x130   :  { %v1674_v30 = vpop.f32.mrf.mxu0  ;;  %v1750_v31 = vpop.f32.mrf.mxu1 }
 0x131   :  { %v730_v33 = vmax.f32 %v492_v28, 0.0  ;;  %v768_v34 = vmax.f32 %v644_v29, 0.0 }
 0x132   :  { %v496_v35 = vpop.f32.mrf.mxu0  ;;  %v648_v36 = vpop.f32.mrf.mxu1 }
 0x133   :  { %v1401_v37 = vpack.c.bf16 %v730_v33, %v729_v32  ;;  %v1496_v38 = vpack.c.bf16 %v768_v34, %v767_v27  ;;  %v649_v39 = vadd.f32 %v2096_v46, %v648_v36  ;;  %v497_v42 = vadd.f32 %v2096_v46, %v496_v35 }
 0x134   :  { %v1677_v40 = vpop.f32.mrf.mxu0  ;;  %v1753_v41 = vpop.f32.mrf.mxu1 }
 0x135   :  { %1546 = vst [vmem:[%s2286_s3 + $0x48] sm:$0xff] %v1401_v37   ;;  %1565 = vst [vmem:[%s2286_s3 + $0xe0] sm:$0xff] %v1496_v38   ;;  %v769_v45 = vmax.f32 %v649_v39, 0.0  ;;  %v731_v51 = vmax.f32 %v497_v42, 0.0 }
 0x136   :  { %v499_v43 = vpop.f32.mrf.mxu0  ;;  %v651_v44 = vpop.f32.mrf.mxu1 }
 0x137   :  { %v500_v47 = vadd.f32 %v2096_v46, %v499_v43  ;;  %v652_v48 = vadd.f32 %v2096_v46, %v651_v44 }
 0x138   :  { %v1678_v49 = vpop.f32.mrf.mxu0  ;;  %v1754_v50 = vpop.f32.mrf.mxu1 }
 0x139   :  { %v732_v52 = vmax.f32 %v500_v47, 0.0  ;;  %v770_v53 = vmax.f32 %v652_v48, 0.0 }
 0x13a   :  { %v504_v54 = vpop.f32.mrf.mxu0  ;;  %v656_v55 = vpop.f32.mrf.mxu1 }
 0x13b   :  { %v1406_v56 = vpack.c.bf16 %v732_v52, %v731_v51  ;;  %v1501_v57 = vpack.c.bf16 %v770_v53, %v769_v45  ;;  %v657_v58 = vadd.f32 %v2096_v46, %v656_v55  ;;  %v505_v61 = vadd.f32 %v2096_v46, %v504_v54 }
 0x13c   :  { %v1681_v59 = vpop.f32.mrf.mxu0  ;;  %v1757_v60 = vpop.f32.mrf.mxu1 }
 0x13d   :  { %1547 = vst [vmem:[%s2286_s3 + $0x50] sm:$0xff] %v1406_v56   ;;  %1566 = vst [vmem:[%s2286_s3 + $0xe8] sm:$0xff] %v1501_v57   ;;  %v771_v0 = vmax.f32 %v657_v58, 0.0  ;;  %v733_v5 = vmax.f32 %v505_v61, 0.0 }
 0x13e   :  { %v507_v62 = vpop.f32.mrf.mxu0  ;;  %v659_v63 = vpop.f32.mrf.mxu1 }
 0x13f   :  { %v508_v1 = vadd.f32 %v2096_v46, %v507_v62  ;;  %v660_v2 = vadd.f32 %v2096_v46, %v659_v63 }
 0x140   :  { %v1682_v3 = vpop.f32.mrf.mxu0  ;;  %v1758_v4 = vpop.f32.mrf.mxu1 }
 0x141   :  { %v734_v6 = vmax.f32 %v508_v1, 0.0  ;;  %v772_v7 = vmax.f32 %v660_v2, 0.0 }
 0x142   :  { %v512_v8 = vpop.f32.mrf.mxu0  ;;  %v664_v9 = vpop.f32.mrf.mxu1 }
 0x143   :  { %v1411_v10 = vpack.c.bf16 %v734_v6, %v733_v5  ;;  %v1506_v11 = vpack.c.bf16 %v772_v7, %v771_v0  ;;  %v665_v12 = vadd.f32 %v2096_v46, %v664_v9  ;;  %v513_v15 = vadd.f32 %v2096_v46, %v512_v8 }
 0x144   :  { %v1685_v13 = vpop.f32.mrf.mxu0  ;;  %v1761_v14 = vpop.f32.mrf.mxu1 }
 0x145   :  { %1548 = vst [vmem:[%s2286_s3 + $0x58] sm:$0xff] %v1411_v10   ;;  %1567 = vst [vmem:[%s2286_s3 + $0xf0] sm:$0xff] %v1506_v11   ;;  %v773_v18 = vmax.f32 %v665_v12, 0.0  ;;  %v735_v23 = vmax.f32 %v513_v15, 0.0 }
 0x146   :  { %v515_v16 = vpop.f32.mrf.mxu0  ;;  %v667_v17 = vpop.f32.mrf.mxu1 }
 0x147   :  { %v516_v19 = vadd.f32 %v2096_v46, %v515_v16  ;;  %v668_v20 = vadd.f32 %v2096_v46, %v667_v17 }
 0x148   :  { %v1686_v21 = vpop.f32.mrf.mxu0  ;;  %v1762_v22 = vpop.f32.mrf.mxu1 }
 0x149   :  { %v736_v24 = vmax.f32 %v516_v19, 0.0  ;;  %v774_v25 = vmax.f32 %v668_v20, 0.0 }
 0x14a   :  { %v520_v26 = vpop.f32.mrf.mxu0  ;;  %v672_v27 = vpop.f32.mrf.mxu1 }
 0x14b   :  { %v1416_v28 = vpack.c.bf16 %v736_v24, %v735_v23  ;;  %v1511_v29 = vpack.c.bf16 %v774_v25, %v773_v18  ;;  %v673_v30 = vadd.f32 %v2096_v46, %v672_v27  ;;  %v521_v33 = vadd.f32 %v2096_v46, %v520_v26 }
 0x14c   :  { %v1689_v31 = vpop.f32.mrf.mxu0  ;;  %v1765_v32 = vpop.f32.mrf.mxu1 }
 0x14d   :  { %1549 = vst [vmem:[%s2286_s3 + $0x60] sm:$0xff] %v1416_v28   ;;  %1568 = vst [vmem:[%s2286_s3 + $0xf8] sm:$0xff] %v1511_v29   ;;  %v775_v36 = vmax.f32 %v673_v30, 0.0  ;;  %v737_v41 = vmax.f32 %v521_v33, 0.0 }
 0x14e   :  { %v523_v34 = vpop.f32.mrf.mxu0  ;;  %v675_v35 = vpop.f32.mrf.mxu1 }
 0x14f   :  { %v524_v37 = vadd.f32 %v2096_v46, %v523_v34  ;;  %v676_v38 = vadd.f32 %v2096_v46, %v675_v35 }
 0x150   :  { %v1690_v39 = vpop.f32.mrf.mxu0  ;;  %v1766_v40 = vpop.f32.mrf.mxu1 }
 0x151   :  { %v738_v42 = vmax.f32 %v524_v37, 0.0  ;;  %v776_v43 = vmax.f32 %v676_v38, 0.0 }
 0x152   :  { %v528_v44 = vpop.f32.mrf.mxu0  ;;  %v680_v45 = vpop.f32.mrf.mxu1 }
 0x153   :  { %v1421_v47 = vpack.c.bf16 %v738_v42, %v737_v41  ;;  %v1516_v48 = vpack.c.bf16 %v776_v43, %v775_v36  ;;  %v681_v49 = vadd.f32 %v2096_v46, %v680_v45  ;;  %v529_v52 = vadd.f32 %v2096_v46, %v528_v44 }
 0x154   :  { %v1693_v50 = vpop.f32.mrf.mxu0  ;;  %v1769_v51 = vpop.f32.mrf.mxu1 }
 0x155   :  { %1550 = vst [vmem:[%s2286_s3 + $0x68] sm:$0xff] %v1421_v47   ;;  %1569 = vst [vmem:[%s2286_s3 + $0x100] sm:$0xff] %v1516_v48   ;;  %v777_v55 = vmax.f32 %v681_v49, 0.0  ;;  %v739_v60 = vmax.f32 %v529_v52, 0.0 }
 0x156   :  { %v531_v53 = vpop.f32.mrf.mxu0  ;;  %v683_v54 = vpop.f32.mrf.mxu1 }
 0x157   :  { %v532_v56 = vadd.f32 %v2096_v46, %v531_v53  ;;  %v684_v57 = vadd.f32 %v2096_v46, %v683_v54 }
 0x158   :  { %v1694_v58 = vpop.f32.mrf.mxu0  ;;  %v1770_v59 = vpop.f32.mrf.mxu1 }
 0x159   :  { %v740_v61 = vmax.f32 %v532_v56, 0.0  ;;  %v778_v62 = vmax.f32 %v684_v57, 0.0 }
 0x15a   :  { %v536_v63 = vpop.f32.mrf.mxu0  ;;  %v688_v0 = vpop.f32.mrf.mxu1 }
 0x15b   :  { %v1426_v1 = vpack.c.bf16 %v740_v61, %v739_v60  ;;  %v1521_v2 = vpack.c.bf16 %v778_v62, %v777_v55  ;;  %v689_v3 = vadd.f32 %v2096_v46, %v688_v0  ;;  %v537_v6 = vadd.f32 %v2096_v46, %v536_v63 }
 0x15c   :  { %v1697_v4 = vpop.f32.mrf.mxu0  ;;  %v1773_v5 = vpop.f32.mrf.mxu1 }
 0x15d   :  { %1551 = vst [vmem:[%s2286_s3 + $0x70] sm:$0xff] %v1426_v1   ;;  %1570 = vst [vmem:[%s2286_s3 + $0x108] sm:$0xff] %v1521_v2   ;;  %v779_v9 = vmax.f32 %v689_v3, 0.0  ;;  %v741_v14 = vmax.f32 %v537_v6, 0.0 }
 0x15e   :  { %v539_v7 = vpop.f32.mrf.mxu0  ;;  %v691_v8 = vpop.f32.mrf.mxu1 }
 0x15f   :  { %v540_v10 = vadd.f32 %v2096_v46, %v539_v7  ;;  %v692_v11 = vadd.f32 %v2096_v46, %v691_v8 }
 0x160   :  { %v1698_v12 = vpop.f32.mrf.mxu0  ;;  %v1774_v13 = vpop.f32.mrf.mxu1 }
 0x161   :  { %v742_v15 = vmax.f32 %v540_v10, 0.0  ;;  %v780_v16 = vmax.f32 %v692_v11, 0.0 }
 0x162   :  { %v544_v17 = vpop.f32.mrf.mxu0  ;;  %v696_v18 = vpop.f32.mrf.mxu1 }
 0x163   :  { %v1431_v19 = vpack.c.bf16 %v742_v15, %v741_v14  ;;  %v1526_v20 = vpack.c.bf16 %v780_v16, %v779_v9  ;;  %v697_v21 = vadd.f32 %v2096_v46, %v696_v18  ;;  %v545_v24 = vadd.f32 %v2096_v46, %v544_v17 }
 0x164   :  { %v1701_v22 = vpop.f32.mrf.mxu0  ;;  %v1777_v23 = vpop.f32.mrf.mxu1 }
 0x165   :  { %1552 = vst [vmem:[%s2286_s3 + $0x78] sm:$0xff] %v1431_v19   ;;  %1571 = vst [vmem:[%s2286_s3 + $0x110] sm:$0xff] %v1526_v20   ;;  %v781_v27 = vmax.f32 %v697_v21, 0.0  ;;  %v743_v32 = vmax.f32 %v545_v24, 0.0 }
 0x166   :  { %v547_v25 = vpop.f32.mrf.mxu0  ;;  %v699_v26 = vpop.f32.mrf.mxu1 }
 0x167   :  { %v548_v28 = vadd.f32 %v2096_v46, %v547_v25  ;;  %v700_v29 = vadd.f32 %v2096_v46, %v699_v26 }
 0x168   :  { %v1702_v30 = vpop.f32.mrf.mxu0  ;;  %v1778_v31 = vpop.f32.mrf.mxu1 }
 0x169   :  { %v744_v33 = vmax.f32 %v548_v28, 0.0  ;;  %v782_v34 = vmax.f32 %v700_v29, 0.0 }
 0x16a   :  { %v552_v35 = vpop.f32.mrf.mxu0  ;;  %v704_v36 = vpop.f32.mrf.mxu1 }
 0x16b   :  { %v1436_v37 = vpack.c.bf16 %v744_v33, %v743_v32  ;;  %v1531_v38 = vpack.c.bf16 %v782_v34, %v781_v27  ;;  %v705_v39 = vadd.f32 %v2096_v46, %v704_v36  ;;  %v553_v42 = vadd.f32 %v2096_v46, %v552_v35 }
 0x16c   :  { %v1705_v40 = vpop.f32.mrf.mxu0  ;;  %v1781_v41 = vpop.f32.mrf.mxu1 }
 0x16d   :  { %1553 = vst [vmem:[%s2286_s3 + $0x80] sm:$0xff] %v1436_v37   ;;  %1572 = vst [vmem:[%s2286_s3 + $0x118] sm:$0xff] %v1531_v38   ;;  %v783_v45 = vmax.f32 %v705_v39, 0.0  ;;  %v745_v51 = vmax.f32 %v553_v42, 0.0 }
 0x16e   :  { %v555_v43 = vpop.f32.mrf.mxu0  ;;  %v707_v44 = vpop.f32.mrf.mxu1 }
 0x16f   :  { %v556_v47 = vadd.f32 %v2096_v46, %v555_v43  ;;  %v708_v48 = vadd.f32 %v2096_v46, %v707_v44 }
 0x170   :  { %v1706_v49 = vpop.f32.mrf.mxu0  ;;  %v1782_v50 = vpop.f32.mrf.mxu1 }
 0x171   :  { %v746_v52 = vmax.f32 %v556_v47, 0.0  ;;  %v784_v53 = vmax.f32 %v708_v48, 0.0 }
 0x172   :  { %v560_v54 = vpop.f32.mrf.mxu0 }
 0x173   :  { %v1441_v55 = vpack.c.bf16 %v746_v52, %v745_v51  ;;  %v1536_v56 = vpack.c.bf16 %v784_v53, %v783_v45  ;;  %v561_v58 = vadd.f32 %v2096_v46, %v560_v54 }
 0x174   :  { %v1709_v57 = vpop.f32.mrf.mxu0 }
 0x175   :  { %1554 = vst [vmem:[%s2286_s3 + $0x88] sm:$0xff] %v1441_v55   ;;  %1573 = vst [vmem:[%s2286_s3 + $0x120] sm:$0xff] %v1536_v56   ;;  %v747_v62 = vmax.f32 %v561_v58, 0.0 }
 0x176   :  { %v563_v59 = vpop.f32.mrf.mxu0 }
 0x177   :  { %v564_v60 = vadd.f32 %v2096_v46, %v563_v59 }
 0x178   :  { %v1710_v61 = vpop.f32.mrf.mxu0 }
 0x179   :  { %v748_v63 = vmax.f32 %v564_v60, 0.0 }
 0x17b   :  { %v1446_v0 = vpack.c.bf16 %v748_v63, %v747_v62 }
 0x17d   :  { %1555 = vst [vmem:[%s2286_s3 + $0x90] sm:$0xff] %v1446_v0  }

// kernel: vae_forward.17
= control target key start
LH: loop header
LB: loop body
LE: loop exit
PB: predicated region body
PF: predicated region fallthrough
CT: control target
= control target key end

     0   :  { %s1531_s12 = smov 0   ;;  %s1533_s13 = smov 0   ;;  %s1857_s0 = inlined_call_operand.vmem [shape: bf16[4,128], index: 0, kind: input, shape index: {}]   ;;  %s1858_s1 = inlined_call_operand.vmem [shape: bf16[128,2304], index: 1, kind: input, shape index: {}]   ;;  %s1859_s2 = inlined_call_operand.vmem [shape: f32[4,1], index: 2, kind: input, shape index: {}]   ;;  %s1860_s3 = inlined_call_operand.vmem [shape: f32[4,2304], index: 3, kind: output, shape index: {}]  }
   0x1   :  { %s1535_s14 = smov 0  }
   0x2 LB: > { %s1162_s15 = sadd.s32 4294967295, %s1506_s14   ;;  %s1548_s16 = sadd.s32 1, %s1506_s14   ;;  %s1506_s14 = sphi %s1535_s14, %s1863_s14   ;;  %s1502_s13 = sphi %s1533_s13, %s1862_s13   ;;  %s1498_s12 = sphi %s1531_s12, %s1861_s12  }
   0x3   : > { %s38_s17 = ssub.s32 %s1506_s14, %s1548_s16  ;;  %s41_s18 = sadd.s32 1, %s1502_s13 }
   0x4   : > { %p39_p0 = scmp.eq.s32.totalorder %s38_s17, 0  ;;  %p48_p1 = scmp.ne.s32.totalorder %s1502_s13, %s1498_s12 }
   0x5   : > { %p49_p2 = scmp.eq.s32.totalorder %s1506_s14, 0  ;;  %p1165_p4 = scmp.ge.s32.totalorder %s1506_s14, 2 }
   0x6   : > { %s1557_s19 = scalar_select %p39_p0, %s1502_s13, %s41_s18  }
   0x7   : > { %p50_p3 = por %p49_p2, %p48_p1  ;;  %127 = sbr.rel (%p1165_p4) target bundleno = 59 (0x3b), region = 24 }
   0xc   : > { %130 = sbr.rel (!%p50_p3) target bundleno = 59 (0x3b), region = 28  ;;  %s132_s20 = sand.u32 (%p50_p3), 1, %s1502_s13  }
   0xd   : > { %s1284_s21 = smul.u32 (%p50_p3), 36, %s1506_s14 }
   0xe   : > { %s1314_s22 = smul.u32 (%p50_p3), 576, %s132_s20 }
   0xf   : > { %s1565_s25 = scalar_lea.vmem (%p50_p3), %s1858_s1, %s1284_s21 }
  0x10   : > { %v152_v0 = vld [vmem:[%s1565_s25] sm:$0xff] (%p50_p3)  ;;  %v154_v1 = vld [vmem:[%s1565_s25 + $0x8] sm:$0xff] (%p50_p3)  ;;  %v156_v2 = vld [vmem:[%s1565_s25 + $0x10] sm:$0xff] (%p50_p3)  ;;  %s1570_s26 = scalar_lea.vmem (%p50_p3), [#allocation2], %s1314_s22 }
  0x11   : > { %153 = vst [vmem:[%s1570_s26] sm:$0xff] %v152_v0  ;;  %155 = vst [vmem:[%s1570_s26 + $0x8] sm:$0xff] %v154_v1  ;;  %v158_v3 = vld [vmem:[%s1565_s25 + $0x18] sm:$0xff]  ;;  %v160_v4 = vld [vmem:[%s1565_s25 + $0x48] sm:$0xff] }
  0x12   : > { %157 = vst [vmem:[%s1570_s26 + $0x10] sm:$0xff] %v156_v2  ;;  %v162_v5 = vld [vmem:[%s1565_s25 + $0x50] sm:$0xff]  ;;  %159 = vst [vmem:[%s1570_s26 + $0x18] sm:$0xff] %v158_v3  ;;  %v164_v6 = vld [vmem:[%s1565_s25 + $0x58] sm:$0xff] }
  0x13   : > { %161 = vst [vmem:[%s1570_s26 + $0x24] sm:$0xff] %v160_v4  ;;  %163 = vst [vmem:[%s1570_s26 + $0x2c] sm:$0xff] %v162_v5  ;;  %v166_v7 = vld [vmem:[%s1565_s25 + $0x60] sm:$0xff]  ;;  %v168_v8 = vld [vmem:[%s1565_s25 + $0x90] sm:$0xff] }
  0x14   : > { %165 = vst [vmem:[%s1570_s26 + $0x34] sm:$0xff] %v164_v6  ;;  %167 = vst [vmem:[%s1570_s26 + $0x3c] sm:$0xff] %v166_v7  ;;  %v170_v9 = vld [vmem:[%s1565_s25 + $0x98] sm:$0xff]  ;;  %v172_v10 = vld [vmem:[%s1565_s25 + $0xa0] sm:$0xff] }
  0x15   : > { %169 = vst [vmem:[%s1570_s26 + $0x48] sm:$0xff] %v168_v8  ;;  %v174_v11 = vld [vmem:[%s1565_s25 + $0xa8] sm:$0xff]  ;;  %171 = vst [vmem:[%s1570_s26 + $0x50] sm:$0xff] %v170_v9  ;;  %v176_v12 = vld [vmem:[%s1565_s25 + $0xd8] sm:$0xff] }
  0x16   : > { %173 = vst [vmem:[%s1570_s26 + $0x58] sm:$0xff] %v172_v10  ;;  %175 = vst [vmem:[%s1570_s26 + $0x60] sm:$0xff] %v174_v11  ;;  %v178_v13 = vld [vmem:[%s1565_s25 + $0xe0] sm:$0xff]  ;;  %v180_v14 = vld [vmem:[%s1565_s25 + $0xe8] sm:$0xff] }
  0x17   : > { %177 = vst [vmem:[%s1570_s26 + $0x6c] sm:$0xff] %v176_v12  ;;  %179 = vst [vmem:[%s1570_s26 + $0x74] sm:$0xff] %v178_v13  ;;  %v182_v15 = vld [vmem:[%s1565_s25 + $0xf0] sm:$0xff]  ;;  %v184_v16 = vld [vmem:[%s1565_s25 + $0x120] sm:$0xff] }
  0x18   : > { %181 = vst [vmem:[%s1570_s26 + $0x7c] sm:$0xff] %v180_v14  ;;  %v186_v17 = vld [vmem:[%s1565_s25 + $0x128] sm:$0xff]  ;;  %183 = vst [vmem:[%s1570_s26 + $0x84] sm:$0xff] %v182_v15  ;;  %v188_v18 = vld [vmem:[%s1565_s25 + $0x130] sm:$0xff] }
  0x19   : > { %185 = vst [vmem:[%s1570_s26 + $0x90] sm:$0xff] %v184_v16  ;;  %187 = vst [vmem:[%s1570_s26 + $0x98] sm:$0xff] %v186_v17  ;;  %v190_v19 = vld [vmem:[%s1565_s25 + $0x138] sm:$0xff]  ;;  %v192_v20 = vld [vmem:[%s1565_s25 + $0x168] sm:$0xff] }
  0x1a   : > { %189 = vst [vmem:[%s1570_s26 + $0xa0] sm:$0xff] %v188_v18  ;;  %191 = vst [vmem:[%s1570_s26 + $0xa8] sm:$0xff] %v190_v19  ;;  %v194_v21 = vld [vmem:[%s1565_s25 + $0x170] sm:$0xff]  ;;  %v196_v22 = vld [vmem:[%s1565_s25 + $0x178] sm:$0xff] }
  0x1b   : > { %193 = vst [vmem:[%s1570_s26 + $0xb4] sm:$0xff] %v192_v20  ;;  %v198_v23 = vld [vmem:[%s1565_s25 + $0x180] sm:$0xff]  ;;  %195 = vst [vmem:[%s1570_s26 + $0xbc] sm:$0xff] %v194_v21  ;;  %v200_v24 = vld [vmem:[%s1565_s25 + $0x1b0] sm:$0xff] }
  0x1c   : > { %197 = vst [vmem:[%s1570_s26 + $0xc4] sm:$0xff] %v196_v22  ;;  %199 = vst [vmem:[%s1570_s26 + $0xcc] sm:$0xff] %v198_v23  ;;  %v202_v25 = vld [vmem:[%s1565_s25 + $0x1b8] sm:$0xff]  ;;  %v204_v26 = vld [vmem:[%s1565_s25 + $0x1c0] sm:$0xff] }
  0x1d   : > { %201 = vst [vmem:[%s1570_s26 + $0xd8] sm:$0xff] %v200_v24  ;;  %203 = vst [vmem:[%s1570_s26 + $0xe0] sm:$0xff] %v202_v25  ;;  %v206_v27 = vld [vmem:[%s1565_s25 + $0x1c8] sm:$0xff]  ;;  %v208_v28 = vld [vmem:[%s1565_s25 + $0x1f8] sm:$0xff] }
  0x1e   : > { %205 = vst [vmem:[%s1570_s26 + $0xe8] sm:$0xff] %v204_v26  ;;  %v210_v29 = vld [vmem:[%s1565_s25 + $0x200] sm:$0xff]  ;;  %207 = vst [vmem:[%s1570_s26 + $0xf0] sm:$0xff] %v206_v27  ;;  %v212_v30 = vld [vmem:[%s1565_s25 + $0x208] sm:$0xff] }
  0x1f   : > { %209 = vst [vmem:[%s1570_s26 + $0xfc] sm:$0xff] %v208_v28  ;;  %211 = vst [vmem:[%s1570_s26 + $0x104] sm:$0xff] %v210_v29  ;;  %v214_v31 = vld [vmem:[%s1565_s25 + $0x210] sm:$0xff]  ;;  %v216_v32 = vld [vmem:[%s1565_s25 + $0x240] sm:$0xff] }
  0x20   : > { %213 = vst [vmem:[%s1570_s26 + $0x10c] sm:$0xff] %v212_v30  ;;  %215 = vst [vmem:[%s1570_s26 + $0x114] sm:$0xff] %v214_v31  ;;  %v218_v33 = vld [vmem:[%s1565_s25 + $0x248] sm:$0xff]  ;;  %v220_v34 = vld [vmem:[%s1565_s25 + $0x250] sm:$0xff] }
  0x21   : > { %217 = vst [vmem:[%s1570_s26 + $0x120] sm:$0xff] %v216_v32  ;;  %v222_v35 = vld [vmem:[%s1565_s25 + $0x258] sm:$0xff]  ;;  %219 = vst [vmem:[%s1570_s26 + $0x128] sm:$0xff] %v218_v33  ;;  %v224_v36 = vld [vmem:[%s1565_s25 + $0x288] sm:$0xff] }
  0x22   : > { %221 = vst [vmem:[%s1570_s26 + $0x130] sm:$0xff] %v220_v34  ;;  %223 = vst [vmem:[%s1570_s26 + $0x138] sm:$0xff] %v222_v35  ;;  %v226_v37 = vld [vmem:[%s1565_s25 + $0x290] sm:$0xff]  ;;  %v228_v38 = vld [vmem:[%s1565_s25 + $0x298] sm:$0xff] }
  0x23   : > { %225 = vst [vmem:[%s1570_s26 + $0x144] sm:$0xff] %v224_v36  ;;  %227 = vst [vmem:[%s1570_s26 + $0x14c] sm:$0xff] %v226_v37  ;;  %v230_v39 = vld [vmem:[%s1565_s25 + $0x2a0] sm:$0xff]  ;;  %v232_v40 = vld [vmem:[%s1565_s25 + $0x2d0] sm:$0xff] }
  0x24   : > { %229 = vst [vmem:[%s1570_s26 + $0x154] sm:$0xff] %v228_v38  ;;  %v234_v41 = vld [vmem:[%s1565_s25 + $0x2d8] sm:$0xff]  ;;  %231 = vst [vmem:[%s1570_s26 + $0x15c] sm:$0xff] %v230_v39  ;;  %v236_v42 = vld [vmem:[%s1565_s25 + $0x2e0] sm:$0xff] }
  0x25   : > { %233 = vst [vmem:[%s1570_s26 + $0x168] sm:$0xff] %v232_v40  ;;  %235 = vst [vmem:[%s1570_s26 + $0x170] sm:$0xff] %v234_v41  ;;  %v238_v43 = vld [vmem:[%s1565_s25 + $0x2e8] sm:$0xff]  ;;  %v240_v44 = vld [vmem:[%s1565_s25 + $0x318] sm:$0xff] }
  0x26   : > { %237 = vst [vmem:[%s1570_s26 + $0x178] sm:$0xff] %v236_v42  ;;  %239 = vst [vmem:[%s1570_s26 + $0x180] sm:$0xff] %v238_v43  ;;  %v242_v45 = vld [vmem:[%s1565_s25 + $0x320] sm:$0xff]  ;;  %v244_v46 = vld [vmem:[%s1565_s25 + $0x328] sm:$0xff] }
  0x27   : > { %241 = vst [vmem:[%s1570_s26 + $0x18c] sm:$0xff] %v240_v44  ;;  %v246_v47 = vld [vmem:[%s1565_s25 + $0x330] sm:$0xff]  ;;  %243 = vst [vmem:[%s1570_s26 + $0x194] sm:$0xff] %v242_v45  ;;  %v248_v48 = vld [vmem:[%s1565_s25 + $0x360] sm:$0xff] }
  0x28   : > { %245 = vst [vmem:[%s1570_s26 + $0x19c] sm:$0xff] %v244_v46  ;;  %247 = vst [vmem:[%s1570_s26 + $0x1a4] sm:$0xff] %v246_v47  ;;  %v250_v49 = vld [vmem:[%s1565_s25 + $0x368] sm:$0xff]  ;;  %v252_v50 = vld [vmem:[%s1565_s25 + $0x370] sm:$0xff] }
  0x29   : > { %249 = vst [vmem:[%s1570_s26 + $0x1b0] sm:$0xff] %v248_v48  ;;  %251 = vst [vmem:[%s1570_s26 + $0x1b8] sm:$0xff] %v250_v49  ;;  %v254_v51 = vld [vmem:[%s1565_s25 + $0x378] sm:$0xff]  ;;  %v256_v52 = vld [vmem:[%s1565_s25 + $0x3a8] sm:$0xff] }
  0x2a   : > { %253 = vst [vmem:[%s1570_s26 + $0x1c0] sm:$0xff] %v252_v50  ;;  %v258_v53 = vld [vmem:[%s1565_s25 + $0x3b0] sm:$0xff]  ;;  %255 = vst [vmem:[%s1570_s26 + $0x1c8] sm:$0xff] %v254_v51  ;;  %v260_v54 = vld [vmem:[%s1565_s25 + $0x3b8] sm:$0xff] }
  0x2b   : > { %257 = vst [vmem:[%s1570_s26 + $0x1d4] sm:$0xff] %v256_v52  ;;  %259 = vst [vmem:[%s1570_s26 + $0x1dc] sm:$0xff] %v258_v53  ;;  %v262_v55 = vld [vmem:[%s1565_s25 + $0x3c0] sm:$0xff]  ;;  %v264_v56 = vld [vmem:[%s1565_s25 + $0x3f0] sm:$0xff] }
  0x2c   : > { %261 = vst [vmem:[%s1570_s26 + $0x1e4] sm:$0xff] %v260_v54  ;;  %263 = vst [vmem:[%s1570_s26 + $0x1ec] sm:$0xff] %v262_v55  ;;  %v266_v57 = vld [vmem:[%s1565_s25 + $0x3f8] sm:$0xff]  ;;  %v268_v58 = vld [vmem:[%s1565_s25 + $0x400] sm:$0xff] }
  0x2d   : > { %265 = vst [vmem:[%s1570_s26 + $0x1f8] sm:$0xff] %v264_v56  ;;  %v270_v59 = vld [vmem:[%s1565_s25 + $0x408] sm:$0xff]  ;;  %267 = vst [vmem:[%s1570_s26 + $0x200] sm:$0xff] %v266_v57  ;;  %v272_v60 = vld [vmem:[%s1565_s25 + $0x438] sm:$0xff] }
  0x2e   : > { %269 = vst [vmem:[%s1570_s26 + $0x208] sm:$0xff] %v268_v58  ;;  %271 = vst [vmem:[%s1570_s26 + $0x210] sm:$0xff] %v270_v59  ;;  %v274_v61 = vld [vmem:[%s1565_s25 + $0x440] sm:$0xff]  ;;  %v276_v62 = vld [vmem:[%s1565_s25 + $0x448] sm:$0xff] }
  0x2f   : > { %273 = vst [vmem:[%s1570_s26 + $0x21c] sm:$0xff] %v272_v60  ;;  %275 = vst [vmem:[%s1570_s26 + $0x224] sm:$0xff] %v274_v61  ;;  %v278_v63 = vld [vmem:[%s1565_s25 + $0x450] sm:$0xff]  ;;  %v1167_v0 = vld [vmem:[%s1565_s25 + $0x20] sm:$0xf] }
  0x30   : > { %277 = vst [vmem:[%s1570_s26 + $0x22c] sm:$0xff] %v276_v62  ;;  %v1169_v1 = vld [vmem:[%s1565_s25 + $0x68] sm:$0xf]  ;;  %279 = vst [vmem:[%s1570_s26 + $0x234] sm:$0xff] %v278_v63  ;;  %v1171_v2 = vld [vmem:[%s1565_s25 + $0xb0] sm:$0xf] }
  0x31   : > { %1168 = vst [vmem:[%s1570_s26 + $0x20] sm:$0xf] %v1167_v0  ;;  %1170 = vst [vmem:[%s1570_s26 + $0x44] sm:$0xf] %v1169_v1  ;;  %v1173_v3 = vld [vmem:[%s1565_s25 + $0xf8] sm:$0xf] }
  0x32   : > { %v1175_v4 = vld [vmem:[%s1565_s25 + $0x140] sm:$0xf]  ;;  %1172 = vst [vmem:[%s1570_s26 + $0x68] sm:$0xf] %v1171_v2  ;;  %1174 = vst [vmem:[%s1570_s26 + $0x8c] sm:$0xf] %v1173_v3 }
  0x33   : > { %1176 = vst [vmem:[%s1570_s26 + $0xb0] sm:$0xf] %v1175_v4  ;;  %v1177_v5 = vld [vmem:[%s1565_s25 + $0x188] sm:$0xf]  ;;  %v1179_v6 = vld [vmem:[%s1565_s25 + $0x1d0] sm:$0xf] }
  0x34   : > { %v1181_v7 = vld [vmem:[%s1565_s25 + $0x218] sm:$0xf]  ;;  %1178 = vst [vmem:[%s1570_s26 + $0xd4] sm:$0xf] %v1177_v5  ;;  %1180 = vst [vmem:[%s1570_s26 + $0xf8] sm:$0xf] %v1179_v6 }
  0x35   : > { %1182 = vst [vmem:[%s1570_s26 + $0x11c] sm:$0xf] %v1181_v7  ;;  %v1183_v8 = vld [vmem:[%s1565_s25 + $0x260] sm:$0xf]  ;;  %v1185_v9 = vld [vmem:[%s1565_s25 + $0x2a8] sm:$0xf] }
  0x36   : > { %v1187_v10 = vld [vmem:[%s1565_s25 + $0x2f0] sm:$0xf]  ;;  %1184 = vst [vmem:[%s1570_s26 + $0x140] sm:$0xf] %v1183_v8  ;;  %1186 = vst [vmem:[%s1570_s26 + $0x164] sm:$0xf] %v1185_v9 }
  0x37   : > { %1188 = vst [vmem:[%s1570_s26 + $0x188] sm:$0xf] %v1187_v10  ;;  %v1189_v11 = vld [vmem:[%s1565_s25 + $0x338] sm:$0xf]  ;;  %v1191_v12 = vld [vmem:[%s1565_s25 + $0x380] sm:$0xf] }
  0x38   : > { %v1193_v13 = vld [vmem:[%s1565_s25 + $0x3c8] sm:$0xf]  ;;  %1190 = vst [vmem:[%s1570_s26 + $0x1ac] sm:$0xf] %v1189_v11  ;;  %1192 = vst [vmem:[%s1570_s26 + $0x1d0] sm:$0xf] %v1191_v12 }
  0x39   : > { %1194 = vst [vmem:[%s1570_s26 + $0x1f4] sm:$0xf] %v1193_v13  ;;  %v1195_v14 = vld [vmem:[%s1565_s25 + $0x410] sm:$0xf]  ;;  %v1197_v15 = vld [vmem:[%s1565_s25 + $0x458] sm:$0xf] }
  0x3a   : > { %1196 = vst [vmem:[%s1570_s26 + $0x218] sm:$0xf] %v1195_v14  ;;  %1198 = vst [vmem:[%s1570_s26 + $0x23c] sm:$0xf] %v1197_v15 }
  0x3b PF: > { %p1199_p5 = scmp.ge.s32.totalorder %s1506_s14, 1  ;;  %p324_p6 = scmp.lt.s32.totalorder %s1506_s14, 3 }
  0x3d   : > { %p325_p7 = pnand %p1199_p5, %p324_p6 }
  0x3e   : > { %s331_s27 = sand.u32 (!%p325_p7), 1, %s1498_s12   ;;  %s355_s7 = smul.u32 (!%p325_p7), 9, %s1162_s15 }
  0x3f   : > { %328 = sbr.rel (%p325_p7) target bundleno = 394 (0x18a), region = 54 }
  0x40   : > { %s1315_s28 = smul.u32 (!%p325_p7), 576, %s331_s27  ;;  %p356_p8 = scmp.lt.s32.totalorder (!%p325_p7), %s355_s7, 17 }
  0x42   : > { %s1738_s4 = scalar_lea.vmem (!%p325_p7), [#allocation2], %s1315_s28 }
  0x44   : > { %v1508_v16 = vmov 0   ;;  %v443_v17 = vld [vmem:[%s1859_s2] sm:$0xf]  ;;  %v1346_v19 = vld [vmem:[%s1738_s4 + $0x1f8] ss:$36 sps:$4 sm:$0xff]   ;;  %vm1510_vm0 = vmmov 0  }
  0x45   : > { %849 = vmatprep.mubr.bf16.mxu0 %v1508_v16  ;;  %890 = vmatprep.mubr.bf16.mxu1 %v1508_v16  ;;  %v1344_v18 = vld [vmem:[%s1738_s4 + $0x1fc] ss:$36 sps:$4 sm:$0xff]   ;;  %v1347_v20 = vld [vmem:[%s1738_s4 + $0x1b4] ss:$36 sps:$4 sm:$0xff]   ;;  %v1350_v22 = vld [vmem:[%s1738_s4 + $0x16c] ss:$36 sps:$4 sm:$0xff]  }
  0x46   : > { %1343 = vset.pattern.permute.xlu0 %v1508_v16  ;;  %817 = vmatprep.subr.bf16.mxu0 %v1344_v18  ;;  %v1349_v21 = vld [vmem:[%s1738_s4 + $0x1b0] ss:$36 sps:$4 sm:$0xff]   ;;  %v1352_v23 = vld [vmem:[%s1738_s4 + $0x168] ss:$36 sps:$4 sm:$0xff]   ;;  %v1364_v26 = vld [vmem:[%s1738_s4 + $0x200] ss:$36 sps:$4 sm:$0xff]  }
  0x47   : > { %446 = vperm.xlu0 %1343, %v443_v17   ;;  %818 = vmatpush1.bf16.msra.mxu0 %v1346_v19  ;;  %v1353_v24 = vld [vmem:[%s1738_s4 + $0x124] ss:$36 sps:$4 sm:$0xff]   ;;  %v1368_v28 = vld [vmem:[%s1738_s4 + $0x1bc] ss:$36 sps:$4 sm:$0xff]   ;;  %v1374_v32 = vld [vmem:[%s1738_s4 + $0x174] ss:$36 sps:$4 sm:$0xff]  }
  0x48   : > { %819 = vmatprep.subr.bf16.mxu0 %v1347_v20  ;;  %v1362_v25 = vld [vmem:[%s1738_s4 + $0x204] ss:$36 sps:$4 sm:$0xff]   ;;  %v1370_v29 = vld [vmem:[%s1738_s4 + $0x1b8] ss:$36 sps:$4 sm:$0xff]   ;;  %v1376_v34 = vld [vmem:[%s1738_s4 + $0x170] ss:$36 sps:$4 sm:$0xff]  }
  0x49   : > { %v1355_v27 = vld [vmem:[%s1738_s4 + $0x120] ss:$36 sps:$4 sm:$0xff]   ;;  %858 = vmatprep.subr.bf16.mxu1 %v1362_v25  ;;  %v1358_v31 = vld [vmem:[%s1738_s4 + $0xd8] ss:$36 sps:$4 sm:$0xff]   ;;  %v1380_v35 = vld [vmem:[%s1738_s4 + $0x12c] ss:$36 sps:$4 sm:$0xff]  }
  0x4a   : > { %859 = vmatpush1.bf16.msra.mxu1 %v1364_v26  ;;  %v1356_v30 = vld [vmem:[%s1738_s4 + $0xdc] ss:$36 sps:$4 sm:$0xff]   ;;  %v1359_v33 = vld [vmem:[%s1738_s4 + $0x94] ss:$36 sps:$4 sm:$0xff]   ;;  %v1365_v37 = vld [vmem:[%s1738_s4 + $0x4c] ss:$36 sps:$4 sm:$0xff]  }
  0x4b   : > { %820 = vmatpush1.bf16.msra.mxu0 %v1349_v21  ;;  %860 = vmatprep.subr.bf16.mxu1 %v1368_v28  ;;  %v1361_v36 = vld [vmem:[%s1738_s4 + $0x90] ss:$36 sps:$4 sm:$0xff]   ;;  %v1382_v38 = vld [vmem:[%s1738_s4 + $0x128] ss:$36 sps:$4 sm:$0xff]   ;;  %v1388_v42 = vld [vmem:[%s1738_s4 + $0xe0] ss:$36 sps:$4 sm:$0xff]  }
  0x4c   : > { %821 = vmatprep.subr.bf16.mxu0 %v1350_v22  ;;  %v1386_v39 = vld [vmem:[%s1738_s4 + $0xe4] ss:$36 sps:$4 sm:$0xff]   ;;  %v1392_v43 = vld [vmem:[%s1738_s4 + $0x9c] ss:$36 sps:$4 sm:$0xff]   ;;  %v1379_v45 = vld [vmem:[%s1738_s4 + $0x20c] ss:$36 sps:$4 sm:$0xff]  }
  0x4d   : > { %v1367_v40 = vld [vmem:[%s1738_s4 + $0x48] ss:$36 sps:$4 sm:$0xff]   ;;  %v1373_v44 = vld [vmem:[%s1738_s4] ss:$36 sps:$4 sm:$0xff]   ;;  %v1394_v46 = vld [vmem:[%s1738_s4 + $0x98] ss:$36 sps:$4 sm:$0xff]  }
  0x4e   : > { %861 = vmatpush1.bf16.msra.mxu1 %v1370_v29  ;;  %v1371_v41 = vld [vmem:[%s1738_s4 + $0x4] ss:$36 sps:$4 sm:$0xff]   ;;  %v1398_v47 = vld [vmem:[%s1738_s4 + $0x54] ss:$36 sps:$4 sm:$0xff]   ;;  %v1773_v48 = vld [vmem:[%s1857_s0] sm:$0x3] }
  0x4f   : > { %822 = vmatpush1.bf16.msra.mxu0 %v1352_v23  ;;  %862 = vmatprep.subr.bf16.mxu1 %v1374_v32  ;;  %v1377_v49 = vld [vmem:[%s1738_s4 + $0x208] ss:$36 sps:$4 sm:$0xff]   ;;  %v1400_v51 = vld [vmem:[%s1738_s4 + $0x50] ss:$36 sps:$4 sm:$0xff]   ;;  %v1383_v53 = vld [vmem:[%s1738_s4 + $0x1c0] ss:$36 sps:$4 sm:$0xff]  }
  0x50   : > { %823 = vmatprep.subr.bf16.mxu0 %v1353_v24  ;;  %v1385_v50 = vld [vmem:[%s1738_s4 + $0x1c4] ss:$36 sps:$4 sm:$0xff]   ;;  %v1404_v52 = vld [vmem:[%s1738_s4 + $0xc] ss:$36 sps:$4 sm:$0xff]   ;;  %v1391_v54 = vld [vmem:[%s1738_s4 + $0x17c] ss:$36 sps:$4 sm:$0xff]  }
  0x51   : > { %v1406_v55 = vld [vmem:[%s1738_s4 + $0x8] ss:$36 sps:$4 sm:$0xff]   ;;  %v1412_v56 = vld [vmem:[%s1738_s4 + $0x214] ss:$36 sps:$4 sm:$0xff]   ;;  %v1422_v3 = vld [vmem:[%s1738_s4 + $0x180] ss:$36 sps:$4 sm:$0xff]  }
  0x52   : > { %863 = vmatpush1.bf16.msra.mxu1 %v1376_v34  ;;  %v1389_v57 = vld [vmem:[%s1738_s4 + $0x178] ss:$36 sps:$4 sm:$0xff]   ;;  %v1410_v58 = vld [vmem:[%s1738_s4 + $0x210] ss:$36 sps:$4 sm:$0xff]   ;;  %v1416_v63 = vld [vmem:[%s1738_s4 + $0x1c8] ss:$36 sps:$4 sm:$0xff]  }
  0x53   : > { %824 = vmatpush1.bf16.msra.mxu0 %v1355_v27  ;;  %864 = vmatprep.subr.bf16.mxu1 %v1380_v35  ;;  %v1397_v59 = vld [vmem:[%s1738_s4 + $0x134] ss:$36 sps:$4 sm:$0xff]   ;;  %v1418_v60 = vld [vmem:[%s1738_s4 + $0x1cc] ss:$36 sps:$4 sm:$0xff]   ;;  %v1424_v0 = vld [vmem:[%s1738_s4 + $0x184] ss:$36 sps:$4 sm:$0xff]  }
  0x54   : > { %825 = vmatprep.subr.bf16.mxu0 %v1356_v30  ;;  %v1395_v61 = vld [vmem:[%s1738_s4 + $0x130] ss:$36 sps:$4 sm:$0xff]   ;;  %v1401_v1 = vld [vmem:[%s1738_s4 + $0xe8] ss:$36 sps:$4 sm:$0xff]   ;;  %v1428_v4 = vld [vmem:[%s1738_s4 + $0x13c] ss:$36 sps:$4 sm:$0xff]  }
  0x55   : > { %v1403_v62 = vld [vmem:[%s1738_s4 + $0xec] ss:$36 sps:$4 sm:$0xff]   ;;  %v1409_v2 = vld [vmem:[%s1738_s4 + $0xa4] ss:$36 sps:$4 sm:$0xff]   ;;  %v1426_v6 = vld [vmem:[%s1738_s4 + $0x138] ss:$36 sps:$4 sm:$0xff]  }
  0x56   : > { %865 = vmatpush1.bf16.msra.mxu1 %v1382_v38  ;;  %v1407_v5 = vld [vmem:[%s1738_s4 + $0xa0] ss:$36 sps:$4 sm:$0xff]   ;;  %v1432_v8 = vld [vmem:[%s1738_s4 + $0xf4] ss:$36 sps:$4 sm:$0xff]   ;;  %v1436_v12 = vld [vmem:[%s1738_s4 + $0xac] ss:$36 sps:$4 sm:$0xff]  }
  0x57   : > { %826 = vmatpush1.bf16.msra.mxu0 %v1358_v31  ;;  %866 = vmatprep.subr.bf16.mxu1 %v1386_v39  ;;  %v1415_v7 = vld [vmem:[%s1738_s4 + $0x5c] ss:$36 sps:$4 sm:$0xff]   ;;  %v1430_v10 = vld [vmem:[%s1738_s4 + $0xf0] ss:$36 sps:$4 sm:$0xff]   ;;  %v1434_v14 = vld [vmem:[%s1738_s4 + $0xa8] ss:$36 sps:$4 sm:$0xff]  }
  0x58   : > { %827 = vmatprep.subr.bf16.mxu0 %v1359_v33  ;;  %v1413_v9 = vld [vmem:[%s1738_s4 + $0x58] ss:$36 sps:$4 sm:$0xff]   ;;  %v1419_v13 = vld [vmem:[%s1738_s4 + $0x10] ss:$36 sps:$4 sm:$0xff]   ;;  %v1440_v15 = vld [vmem:[%s1738_s4 + $0x64] ss:$36 sps:$4 sm:$0xff]  }
  0x59   : > { %v1421_v11 = vld [vmem:[%s1738_s4 + $0x14] ss:$36 sps:$4 sm:$0xff]   ;;  %v1438_v17 = vld [vmem:[%s1738_s4 + $0x60] ss:$36 sps:$4 sm:$0xff]   ;;  %v1509_v18 = vmov 0.0   ;;  %s1865_s7 = smov (!%p356_p8, %s355_s7), 17 }
  0x5a   : > { %867 = vmatpush1.bf16.msra.mxu1 %v1388_v42  ;;  %v1444_v19 = vld [vmem:[%s1738_s4 + $0x1c] ss:$36 sps:$4 sm:$0xff]   ;;  %v1429_v20 = vld [vmem:[%s1738_s4 + $0x1d0] ss:$36 sps:$4 sm:$0xff]   ;;  %v1433_v22 = vld [vmem:[%s1738_s4 + $0x188] ss:$36 sps:$4 sm:$0xff]  }
  0x5b   : > { %828 = vmatpush1.bf16.msra.mxu0 %v1361_v36  ;;  %868 = vmatprep.subr.bf16.mxu1 %v1392_v43  ;;  %v1442_v21 = vld [vmem:[%s1738_s4 + $0x18] ss:$36 sps:$4 sm:$0xff]   ;;  %v1437_v23 = vld [vmem:[%s1738_s4 + $0x140] ss:$36 sps:$4 sm:$0xff]   ;;  %v1445_v25 = vld [vmem:[%s1738_s4 + $0xb0] ss:$36 sps:$4 sm:$0xff]  }
  0x5c   : > { %829 = vmatprep.subr.bf16.mxu0 %v1365_v37  ;;  %v1441_v24 = vld [vmem:[%s1738_s4 + $0xf8] ss:$36 sps:$4 sm:$0xff]   ;;  %v1446_v26 = vld [vmem:[%s1738_s4 + $0x68] ss:$36 sps:$4 sm:$0xff]   ;;  %v1447_v27 = vld [vmem:[%s1738_s4 + $0x20] ss:$36 sps:$4 sm:$0xff]  }
  0x5d   : > { %s1200_s8 = sshll.u32 %s1865_s7, 2 }
  0x5e   : > { %869 = vmatpush1.bf16.msra.mxu1 %v1394_v46  ;;  %s1837_s11 = scalar_lea.vmem %s1860_s3, %s1200_s8 }
  0x5f   : > { %830 = vmatpush1.bf16.msra.mxu0 %v1367_v40  ;;  %870 = vmatprep.subr.bf16.mxu1 %v1398_v47 }
  0x60   : > { %831 = vmatprep.subr.bf16.mxu0 %v1371_v41 }
  0x62   : > { %871 = vmatpush1.bf16.msra.mxu1 %v1400_v51 }
  0x63   : > { %832 = vmatpush1.bf16.msra.mxu0 %v1373_v44  ;;  %872 = vmatprep.subr.bf16.mxu1 %v1404_v52 }
  0x64   : > { %899 = vmatprep.subr.bf16.mxu0 %v1379_v45 }
  0x66   : > { %850 = vmatmul.mubr.bf16.vlgmr.msra.gmra.mxu0 %v1773_v48  ;;  %873 = vmatpush1.bf16.msra.mxu1 %v1406_v55 }
  0x67   : > { %900 = vmatpush1.bf16.msra.mxu0 %v1377_v49  ;;  %931 = vmatprep.mubr.bf16.mxu0 %v1508_v16 }
  0x68   : > { %901 = vmatprep.subr.bf16.mxu0 %v1385_v50  ;;  %940 = vmatprep.subr.bf16.mxu1 %v1412_v56 }
  0x69   : > { %891 = vmatmul.mubr.bf16.vlgmr.msra.gmra.mxu1 %v1773_v48 }
  0x6a   : > { %941 = vmatpush1.bf16.msra.mxu1 %v1410_v58  ;;  %972 = vmatprep.mubr.bf16.mxu1 %v1508_v16  ;;  %v1425_v16 = vld [vmem:[%s1738_s4 + $0x218] ss:$36 sps:$4 sm:$0xff]  }
  0x6b   : > { %902 = vmatpush1.bf16.msra.mxu0 %v1383_v53  ;;  %942 = vmatprep.subr.bf16.mxu1 %v1418_v60 }
  0x6c   : > { %903 = vmatprep.subr.bf16.mxu0 %v1391_v54 }
  0x6e   : > { %943 = vmatpush1.bf16.msra.mxu1 %v1416_v63 }
  0x6f   : > { %904 = vmatpush1.bf16.msra.mxu0 %v1389_v57  ;;  %944 = vmatprep.subr.bf16.mxu1 %v1424_v0 }
  0x70   : > { %905 = vmatprep.subr.bf16.mxu0 %v1397_v59 }
  0x72   : > { %945 = vmatpush1.bf16.msra.mxu1 %v1422_v3 }
  0x73   : > { %906 = vmatpush1.bf16.msra.mxu0 %v1395_v61  ;;  %946 = vmatprep.subr.bf16.mxu1 %v1428_v4 }
  0x74   : > { %907 = vmatprep.subr.bf16.mxu0 %v1403_v62 }
  0x76   : > { %947 = vmatpush1.bf16.msra.mxu1 %v1426_v6 }
  0x77   : > { %908 = vmatpush1.bf16.msra.mxu0 %v1401_v1  ;;  %948 = vmatprep.subr.bf16.mxu1 %v1432_v8 }
  0x78   : > { %909 = vmatprep.subr.bf16.mxu0 %v1409_v2 }
  0x7a   : > { %949 = vmatpush1.bf16.msra.mxu1 %v1430_v10 }
  0x7b   : > { %910 = vmatpush1.bf16.msra.mxu0 %v1407_v5  ;;  %950 = vmatprep.subr.bf16.mxu1 %v1436_v12 }
  0x7c   : > { %911 = vmatprep.subr.bf16.mxu0 %v1415_v7 }
  0x7e   : > { %951 = vmatpush1.bf16.msra.mxu1 %v1434_v14 }
  0x7f   : > { %912 = vmatpush1.bf16.msra.mxu0 %v1413_v9  ;;  %952 = vmatprep.subr.bf16.mxu1 %v1440_v15 }
  0x80   : > { %913 = vmatprep.subr.bf16.mxu0 %v1421_v11 }
  0x82   : > { %953 = vmatpush1.bf16.msra.mxu1 %v1438_v17 }
  0x83   : > { %914 = vmatpush1.bf16.msra.mxu0 %v1419_v13  ;;  %954 = vmatprep.subr.bf16.mxu1 %v1444_v19 }
  0x84   : > { %1294 = vmatprep.subr.bf16.mxu0 %v1509_v18 }
  0x86   : > { %932 = vmatmul.mubr.bf16.vlgmr.msra.gmra.mxu0 %v1773_v48  ;;  %955 = vmatpush1.bf16.msra.mxu1 %v1442_v21 }
  0x87   : > { %1295 = vmatpush3.bf16.msra.mxu0 %v1425_v16  ;;  %1310 = vmatprep.mubr.msk.bf16.mxu0 %vm1510_vm0, %v1509_v18 }
  0x88   : > { %1296 = vmatprep.subr.bf16.mxu0 %v1509_v18 }
  0x89   : > { %973 = vmatmul.mubr.bf16.vlgmr.msra.gmra.mxu1 %v1773_v48 }
  0x8b   : > { %1297 = vmatpush3.bf16.msra.mxu0 %v1429_v20 }
  0x8c   : > { %1298 = vmatprep.subr.bf16.mxu0 %v1509_v18 }
  0x8f   : > { %1299 = vmatpush3.bf16.msra.mxu0 %v1433_v22 }
  0x90   : > { %1300 = vmatprep.subr.bf16.mxu0 %v1509_v18 }
  0x93   : > { %1301 = vmatpush3.bf16.msra.mxu0 %v1437_v23 }
  0x94   : > { %1302 = vmatprep.subr.bf16.mxu0 %v1509_v18 }
  0x97   : > { %1303 = vmatpush3.bf16.msra.mxu0 %v1441_v24 }
  0x98   : > { %1304 = vmatprep.subr.bf16.mxu0 %v1509_v18 }
  0x9b   : > { %1305 = vmatpush3.bf16.msra.mxu0 %v1445_v25 }
  0x9c   : > { %1306 = vmatprep.subr.bf16.mxu0 %v1509_v18 }
  0x9f   : > { %1307 = vmatpush3.bf16.msra.mxu0 %v1446_v26 }
  0xa0   : > { %1308 = vmatprep.subr.bf16.mxu0 %v1509_v18 }
  0xa3   : > { %1309 = vmatpush3.bf16.msra.mxu0 %v1447_v27 }
  0xa6   : > { %1311 = vmatmul.mubr.bf16.vlgmr.msra.gmra.mxu0 %v1773_v48 }
  0xc2   : > { %v1824_v28 = vpop.permute.xlu0 %446 }
 0x126   : > { %v851_v29 = vpop.f32.mrf.mxu0 }
 0x127   : > { %v852_v30 = vadd.f32 %v851_v29, %v1824_v28 }
 0x128   : > { %v853_v31 = vpop.f32.mrf.mxu0 }
 0x129   : > { %v1273_v32 = vmul.f32 -1.442695, %v852_v30  ;;  %v854_v33 = vadd.f32 %v853_v31, %v1824_v28  ;;  %v892_v37 = vpop.f32.mrf.mxu1 }
 0x12a   : > { %v855_v34 = vpop.f32.mrf.mxu0  ;;  %v893_v38 = vadd.f32 %v892_v37, %v1824_v28 }
 0x12b   : > { %1448 = vpow2.f32 %v1273_v32  ;;  %v1274_v35 = vmul.f32 -1.442695, %v854_v33  ;;  %v894_v39 = vpop.f32.mrf.mxu1 }
 0x12c   : > { %v856_v36 = vpop.f32.mrf.mxu0  ;;  %v1275_v40 = vmul.f32 -1.442695, %v893_v38  ;;  %v895_v41 = vadd.f32 %v894_v39, %v1824_v28 }
 0x12d   : > { %1450 = vpow2.f32 %v1274_v35  ;;  %v896_v42 = vpop.f32.mrf.mxu1 }
 0x12e   : > { %1452 = vpow2.f32 %v1275_v40  ;;  %v1276_v43 = vmul.f32 -1.442695, %v895_v41 }
 0x12f   : > { %v897_v44 = vpop.f32.mrf.mxu1 }
 0x130   : > { %1454 = vpow2.f32 %v1276_v43 }
 0x138   : > { %v1449_v45 = vpop.eup %1448 }
 0x139   : > { %v1048_v46 = vadd.f32 1.0, %v1449_v45 }
 0x13a   : > { %v1451_v47 = vpop.eup %1450 }
 0x13b   : > { %1456 = vrcp.f32 %v1048_v46  ;;  %v1049_v48 = vadd.f32 1.0, %v1451_v47  ;;  %v1453_v49 = vpop.eup %1452 }
 0x13c   : > { %v1050_v50 = vadd.f32 1.0, %v1453_v49 }
 0x13d   : > { %1458 = vrcp.f32 %v1049_v48  ;;  %v1455_v51 = vpop.eup %1454 }
 0x13e   : > { %1460 = vrcp.f32 %v1050_v50  ;;  %v1051_v52 = vadd.f32 1.0, %v1455_v51 }
 0x140   : > { %1462 = vrcp.f32 %v1051_v52 }
 0x146   : > { %v933_v53 = vpop.f32.mrf.mxu0 }
 0x147   : > { %v934_v54 = vadd.f32 %v933_v53, %v1824_v28 }
 0x148   : > { %v1457_v55 = vpop.eup %1456  ;;  %v935_v56 = vpop.f32.mrf.mxu0 }
 0x149   : > { %v1277_v57 = vmul.f32 -1.442695, %v934_v54  ;;  %v936_v58 = vadd.f32 %v935_v56, %v1824_v28  ;;  %v974_v0 = vpop.f32.mrf.mxu1 }
 0x14a   : > { %v1459_v59 = vpop.eup %1458  ;;  %v937_v60 = vpop.f32.mrf.mxu0  ;;  %v975_v1 = vadd.f32 %v974_v0, %v1824_v28 }
 0x14b   : > { %v1083_v61 = vcombine.low %v1457_v55, %v1459_v59  ;;  %1464 = vpow2.f32 %v1277_v57  ;;  %v1278_v62 = vmul.f32 -1.442695, %v936_v58  ;;  %v1461_v2 = vpop.eup %1460  ;;  %v976_v3 = vpop.f32.mrf.mxu1 }
 0x14c   : > { %v938_v63 = vpop.f32.mrf.mxu0  ;;  %v1279_v4 = vmul.f32 -1.442695, %v975_v1  ;;  %v977_v5 = vadd.f32 %v976_v3, %v1824_v28 }
 0x14d   : > { %1091 = vst [vmem:[%s1837_s11] sm:$0xff] %v1083_v61  ;;  %1466 = vpow2.f32 %v1278_v62  ;;  %v1463_v6 = vpop.eup %1462  ;;  %v978_v7 = vpop.f32.mrf.mxu1 }
 0x14e   : > { %v1084_v8 = vcombine.low %v1461_v2, %v1463_v6  ;;  %1468 = vpow2.f32 %v1279_v4  ;;  %v1280_v9 = vmul.f32 -1.442695, %v977_v5 }
 0x14f   : > { %v979_v10 = vpop.f32.mrf.mxu1 }
 0x150   : > { %1092 = vst [vmem:[%s1837_s11 + $0x8] sm:$0xff] %v1084_v8  ;;  %1470 = vpow2.f32 %v1280_v9 }
 0x158   : > { %v1465_v11 = vpop.eup %1464 }
 0x159   : > { %v1052_v12 = vadd.f32 1.0, %v1465_v11 }
 0x15a   : > { %v1467_v13 = vpop.eup %1466 }
 0x15b   : > { %1472 = vrcp.f32 %v1052_v12  ;;  %v1053_v14 = vadd.f32 1.0, %v1467_v13  ;;  %v1469_v15 = vpop.eup %1468 }
 0x15c   : > { %v1054_v16 = vadd.f32 1.0, %v1469_v15 }
 0x15d   : > { %1474 = vrcp.f32 %v1053_v14  ;;  %v1471_v17 = vpop.eup %1470 }
 0x15e   : > { %1476 = vrcp.f32 %v1054_v16  ;;  %v1055_v18 = vadd.f32 1.0, %v1471_v17 }
 0x160   : > { %1478 = vrcp.f32 %v1055_v18 }
 0x166   : > { %v1015_v19 = vpop.f32.mrf.mxu0 }
 0x167   : > { %v1016_v20 = vadd.f32 %v1015_v19, %v1824_v28 }
 0x168   : > { %v1473_v21 = vpop.eup %1472  ;;  %v1312_v22 = vpop.f32.mrf.mxu0 }
 0x169   : > { %v1281_v23 = vmul.f32 -1.442695, %v1016_v20 }
 0x16a   : > { %v1475_v24 = vpop.eup %1474  ;;  %v1018_v25 = vpop.f32.mrf.mxu0 }
 0x16b   : > { %v1085_v26 = vcombine.low %v1473_v21, %v1475_v24  ;;  %1480 = vpow2.f32 %v1281_v23  ;;  %v1477_v29 = vpop.eup %1476 }
 0x16c   : > { %v1313_v27 = vpop.f32.mrf.mxu0 }
 0x16d   : > { %1093 = vst [vmem:[%s1837_s11 + $0x10] sm:$0xff] %v1085_v26  ;;  %v1479_v30 = vpop.eup %1478 }
 0x16e   : > { %v1086_v31 = vcombine.low %v1477_v29, %v1479_v30 }
 0x170   : > { %1094 = vst [vmem:[%s1837_s11 + $0x18] sm:$0xff] %v1086_v31 }
 0x178   : > { %v1481_v32 = vpop.eup %1480 }
 0x179   : > { %v1056_v33 = vadd.f32 1.0, %v1481_v32 }
 0x17b   : > { %1482 = vrcp.f32 %v1056_v33 }
 0x188   : > { %v1483_v34 = vpop.eup %1482 }
 0x189   : > { %1095 = vst [vmem:[%s1837_s11 + $0x20] sm:$0xf] %v1483_v34 }
 0x18a PF: > { %p10_p9 = scmp.ge.s32.totalorder %s1548_s16, 4   ;;  %s1861_s12 = smov %s1502_s13 }
 0x18b   : > { %s1862_s13 = smov %s1557_s19  ;;  %s1863_s14 = smov %s1548_s16 }
 0x18c   :  { %12 = sbr.rel (!%p10_p9) target bundleno = 2 (0x2), region = 99 }

</bundles_post_ra>
